<compile_context>
chip_gen: v5e
topology: v5e:2x2
jax: 0.10.0
libtpu: 0.0.40
codegen_flags: <defaults>
</compile_context>

<pallas_src>
import jax
import jax.numpy as jnp
import numpy as np
from jax.experimental import pallas as pl
from jax.experimental.pallas import tpu as pltpu

# ---- search-space configuration (the PcDartsCNN instantiated in-script) ----
C = 8                 # cell channel width
C_IN = 3              # input image channels
H = 16
W = 16
PC_K = 4              # partial-channel factor k
CP = C // PC_K        # channels fed to the mixed ops (= 2)
N_NODES = 4
NUM_EDGES = 14        # per cell type (2+3+4+5); all_edges = 28
BASIC_OPS = ("none", "skip_connect", "avg_pool_3x3", "conv_3x3")
N_OPS = len(BASIC_OPS)
N_CLASSES = 10

# edges (global index) fed by each source state: p0, p1, n0, n1, n2 (n3 feeds nothing)
STATE_EDGES = ((0, 2, 5, 9), (1, 3, 6, 10), (4, 7, 11), (8, 12), (13,))
EDGE_NODE = (0, 0, 1, 1, 1, 2, 2, 2, 2, 3, 3, 3, 3, 3)     # which node each edge feeds
_TAP_OFFS = tuple((dh - 1) * W + (dw - 1) for dh in range(3) for dw in range(3))

# packed-weight row layout inside the single fused (row, 32) weight operand
_KW = 32              # shared contraction width (9*C_in = 27 / 9*CP = 18, zero-padded to 32)
_W_COLS = 32
_ROW_STEM = 0         # (C, 27->32)        stem conv
_ROW_PRE = 8          # (2C, C)            both 1x1 preprocessors, stacked
_ROW_CONV = 24        # 5 x (8, 18->32)    per-state batched edge convs (CP rows per edge)
_ROW_POOL = 64        # (CP, 18->32)       avg-pool 3x3 summation pattern
_ROW_PERM_A = 72      # (C, CP)            channel_shuffle: temp1 -> shuffled slots
_ROW_PERM_R = 80      # (C, C)             channel_shuffle: bypass -> shuffled slots
_ROW_FC_W = 88        # (n_classes, 4C)    classifier weight
_ROW_FC_B = 98        # (n_classes, 1)     classifier bias
_W_ROWS = 108

_VMEM = pl.BlockSpec(memory_space=pltpu.MemorySpace.VMEM)
_SMEM = pl.BlockSpec(memory_space=pltpu.MemorySpace.SMEM)


# --------------------------- kernel A: architecture weights ---------------------------

def _arch_weights_kernel(alpha_ref, beta_ref, g_ref, aw_ref, bw_ref):
    # row softmax over ops for alpha
    a = alpha_ref[...]                                   # (E, n_ops)
    ae = jnp.exp(a - jnp.max(a, axis=-1, keepdims=True))
    asm = ae / jnp.sum(ae, axis=-1, keepdims=True)

    # grouped (per-node) softmax for beta
    b = beta_ref[...]                                    # (E, 1)
    G = g_ref[...]                                       # (E, n_nodes) one-hot membership
    S = jnp.where(G > 0, b, jnp.float32(-1e30))
    gmax = jnp.max(S, axis=0, keepdims=True)             # (1, n_nodes)
    gm = jnp.sum(G * gmax, axis=1, keepdims=True)        # (E, 1) per-edge group max
    eb = jnp.exp(b - gm)
    gsum = jnp.sum(jnp.where(G > 0, eb, 0.0), axis=0, keepdims=True)
    gs = jnp.sum(G * gsum, axis=1, keepdims=True)
    bw = eb / gs
    bw_ref[...] = bw
    aw_ref[...] = asm * bw                               # beta folded into the per-op weights


def arch_weights(alpha, beta, group):
    e = alpha.shape[0]
    return pl.pallas_call(
        _arch_weights_kernel,
        out_shape=(jax.ShapeDtypeStruct((e, alpha.shape[1]), jnp.float32),
                   jax.ShapeDtypeStruct((e, 1), jnp.float32)),
        in_specs=[_VMEM, _VMEM, _VMEM],
        out_specs=(_VMEM, _VMEM),
    )(alpha.astype(jnp.float32), beta.reshape(e, 1).astype(jnp.float32), group)


# --------------------------- kernel B: fused network forward ---------------------------

def _pcdarts_forward_kernel(aw_ref, bw_ref, x_ref, mi_ref, w_ref, gap_ref, o_ref, tap_ref):
    f32 = jnp.float32
    m = x_ref.shape[1]                                   # N*H*W (lane axis)

    # zero the K=32 tap scratch once: rows >= 27 are never written, keep matmul inputs finite
    tap_ref[...] = jnp.zeros(tap_ref.shape, f32)

    def fill_taps(v):
        """In-kernel im2col: masked 3x3-neighborhood taps of v (c, M) -> scratch rows [0, 9*c)."""
        c = v.shape[0]
        for t, off in enumerate(_TAP_OFFS):
            shift = (-off) % m
            r = v if shift == 0 else pltpu.roll(v, shift, axis=1)
            tap_ref[c * t:c * (t + 1), :] = r * mi_ref[t:t + 1, :]   # pad mask: (1, M) broadcast

    # ---- stem: Conv3x3(C_in -> C, pad=1, bias=False) -> BN (eval-identity); one K=32 matmul ----
    fill_taps(x_ref[...])                                              # rows 0..26
    stem = jnp.dot(w_ref[_ROW_STEM:_ROW_STEM + C, :], tap_ref[...],
                   preferred_element_type=f32)                         # (C, M)

    # ---- cell preprocessing (both inputs share the stem): ReLU -> 1x1 conv -> BN (identity) ----
    pre = jnp.dot(w_ref[_ROW_PRE:_ROW_PRE + 2 * C, 0:C], jnp.maximum(stem, 0.0),
                  preferred_element_type=f32)                          # (2C, M)
    states = [pre[0:C, :], pre[C:2 * C, :]]

    invc = mi_ref[9:10, :]                                             # avg-pool divisor (1, M)
    pool_w = w_ref[_ROW_POOL:_ROW_POOL + CP, :]
    pa = w_ref[_ROW_PERM_A:_ROW_PERM_A + C, 0:CP]
    pr = w_ref[_ROW_PERM_R:_ROW_PERM_R + C, 0:C]

    t_acc = [None] * N_NODES          # per node: sum_e aw_eff * (skip/pool/conv mix)   (CP, M)
    x_acc = [None] * N_NODES          # per node: sum_e bw * state                      (C, M)

    # state-major: prepare each source state once, scatter its edge contributions, and finalize
    # node (j-1) right after its last feeder (state j) so the live set stays bounded.
    for j in range(N_NODES + 1):
        s_j = states[j]
        xt = s_j[0:CP, :]                                              # partial channels (CP, M)
        fill_taps(xt)                                                  # rows 0..17 (rest zero/finite)
        stk = tap_ref[...]                                             # (32, M)
        conv = jnp.dot(w_ref[_ROW_CONV + 8 * j:_ROW_CONV + 8 * (j + 1), :],
                       jnp.maximum(stk, 0.0),
                       preferred_element_type=f32)                     # (8, M): CP rows per edge
        pool = jnp.dot(pool_w, stk, preferred_element_type=f32) * invc  # (CP, M), count_include_pad=False
        for pos, e in enumerate(STATE_EDGES[j]):
            node = EDGE_NODE[e]
            ce = conv[CP * pos:CP * (pos + 1), :]
            # PcMixedOp: 'none' contributes zero; alpha weights are pre-scaled by this edge's beta
            t_c = aw_ref[e, 1] * xt + aw_ref[e, 2] * pool + aw_ref[e, 3] * ce
            x_c = bw_ref[e, 0] * s_j
            t_acc[node] = t_c if t_acc[node] is None else t_acc[node] + t_c
            x_acc[node] = x_c if x_acc[node] is None else x_acc[node] + x_c
        if j >= 1:
            node = j - 1
            # concat([temp1, x_rest]) + channel_shuffle(k), folded (exactly, by linearity) into
            # two small permutation matmuls -> the new state
            states.append(jnp.dot(pa, t_acc[node], preferred_element_type=f32)
                          + jnp.dot(pr, x_acc[node], preferred_element_type=f32))

    # ---- head: GAP over spatial then Linear(4C -> n_classes), batched over all node outputs ----
    cat = jnp.concatenate(states[2:2 + N_NODES], axis=0)               # (4C, M), 8-row aligned
    pooled = jnp.dot(cat, gap_ref[...], preferred_element_type=f32)    # (4C, N)
    logits = jnp.dot(w_ref[_ROW_FC_W:_ROW_FC_W + N_CLASSES, :], pooled,
                     preferred_element_type=f32)                       # (n_classes, N)
    o_ref[...] = logits + w_ref[_ROW_FC_B:_ROW_FC_B + N_CLASSES, 0:1]


# --------------------------------- wrapper-side glue ---------------------------------

def _build_constants(n, h, w):
    """Pad masks / pooling divisor / GAP matrix / beta groups (layout plumbing only)."""
    m = n * h * w
    hw = h * w
    hh = (np.arange(m) // w) % h
    ww = np.arange(m) % w
    maskinv = np.zeros((10, m), np.float32)
    t = 0
    for dh in range(3):
        for dw in range(3):
            ok = ((hh + dh - 1 >= 0) & (hh + dh - 1 < h) &
                  (ww + dw - 1 >= 0) & (ww + dw - 1 < w))
            maskinv[t] = ok.astype(np.float32)
            t += 1
    maskinv[9] = 1.0 / maskinv[:9].sum(axis=0)            # AvgPool count_include_pad=False divisor
    img = np.arange(m) // hw
    gap = (img[:, None] == np.arange(n)[None, :]).astype(np.float32) / float(hw)   # (M, N)
    group = np.zeros((NUM_EDGES, N_NODES), np.float32)
    for e, node in enumerate(EDGE_NODE):
        group[e, node] = 1.0
    return jnp.asarray(maskinv), jnp.asarray(gap), jnp.asarray(group)


def _pack_weights(params):
    """All net weights, packed into one (108, 32) operand with 8-row-aligned, col-0 blocks."""
    f32 = jnp.float32

    def block(a, rows):
        a = a.astype(f32)
        return jnp.pad(a, ((0, rows - a.shape[0]), (0, _W_COLS - a.shape[1])))

    # stem: (9, C_in, C) [tap, in, out] -> (C, 9*C_in), col = tap*C_in + in
    stem = jnp.transpose(params["stem_w"], (2, 0, 1)).reshape(C, 9 * C_IN)
    # preprocessors: (C, C) [in, out] each -> (2C, C) [out, in]
    pre = jnp.concatenate([params["pre0_w"].T, params["pre1_w"].T], axis=0)
    # edge convs, packed densely per source state: row CP*pos + out, col tap*CP + in
    wconv = jnp.zeros((5 * 8, 9 * CP), f32)
    for s, edges in enumerate(STATE_EDGES):
        for pos, e in enumerate(edges):
            we = jnp.transpose(params["edge_conv_w"][e], (1, 0, 2)).reshape(CP, 9 * CP)
            wconv = wconv.at[8 * s + CP * pos:8 * s + CP * (pos + 1), :].set(we)
    # avg_pool_3x3 summation pattern
    pool_pat = np.zeros((CP, 9 * CP), np.float32)
    for t in range(9):
        for c in range(CP):
            pool_pat[c, t * CP + c] = 1.0
    # channel_shuffle(cat([temp1, x_rest]), groups=k): out[j] <- in[(j % k)*(C//k) + j//k]
    perm_a = np.zeros((C, CP), np.float32)
    perm_r = np.zeros((C, C), np.float32)
    for j in range(C):
        src = (j % PC_K) * (C // PC_K) + j // PC_K
        if src < CP:
            perm_a[j, src] = 1.0
        else:
            perm_r[j, src] = 1.0
    return jnp.concatenate([
        block(stem, _ROW_PRE - _ROW_STEM),
        block(pre, _ROW_CONV - _ROW_PRE),
        block(wconv, _ROW_POOL - _ROW_CONV),
        block(jnp.asarray(pool_pat), _ROW_PERM_A - _ROW_POOL),
        block(jnp.asarray(perm_a), _ROW_PERM_R - _ROW_PERM_A),
        block(jnp.asarray(perm_r), _ROW_FC_W - _ROW_PERM_R),
        block(params["fc_w"].T, _ROW_FC_B - _ROW_FC_W),
        block(params["fc_b"].reshape(N_CLASSES, 1), _W_ROWS - _ROW_FC_B),
    ], axis=0)


def controller_forward(x_nchw, params):
    """PCDartsCNNController.forward(x) == net(x, self.alpha, self.beta)."""
    n, c_in, h, w = x_nchw.shape
    assert (c_in, h, w) == (C_IN, H, W)
    m = n * h * w
    maskinv, gap, group = _build_constants(n, h, w)

    # architecture weights (normal-cell half): fused alpha/beta softmax, beta folded into alpha
    aw, bw = arch_weights(params["alpha"][:NUM_EDGES], params["beta"][:NUM_EDGES], group)

    # channel-major, lane-dense activations: (C_in, N*H*W)
    x_cm = jnp.transpose(x_nchw.astype(jnp.float32), (1, 0, 2, 3)).reshape(c_in, m)
    w_all = _pack_weights(params)

    logits_t = pl.pallas_call(
        _pcdarts_forward_kernel,
        out_shape=jax.ShapeDtypeStruct((N_CLASSES, n), jnp.float32),
        in_specs=[_SMEM, _SMEM, _VMEM, _VMEM, _VMEM, _VMEM],
        out_specs=_VMEM,
        scratch_shapes=[pltpu.VMEM((_KW, m), jnp.float32)],   # shared im2col tap buffer
    )(aw, bw, x_cm, maskinv, w_all, gap)
    return logits_t.T                                                           # (N, n_classes)


def init_params(key):
    ks = jax.random.split(key, 7)
    return {
        # controller parameters: alpha = cat([an, ar]) (28, n_ops), beta = cat([bn, br]) (28,)
        "alpha": 0.001 * jax.random.normal(ks[0], (2 * NUM_EDGES, N_OPS), jnp.float32),
        "beta": 0.001 * jax.random.normal(ks[1], (2 * NUM_EDGES,), jnp.float32),
        # net weights (synthetic deterministic init)
        "stem_w": 0.1 * jax.random.normal(ks[2], (9, C_IN, C), jnp.float32),        # [tap, in, out]
        "pre0_w": 0.1 * jax.random.normal(ks[3], (C, C), jnp.float32),              # [in, out]
        "pre1_w": 0.1 * jax.random.normal(ks[4], (C, C), jnp.float32),
        "edge_conv_w": 0.1 * jax.random.normal(ks[5], (NUM_EDGES, 9, CP, CP), jnp.float32),  # [e, tap, out, in]
        "fc_w": 0.1 * jax.random.normal(ks[6], (N_NODES * C, N_CLASSES), jnp.float32),
        "fc_b": jnp.zeros((N_CLASSES,), jnp.float32),
    }


if __name__ == "__main__":
    key = jax.random.PRNGKey(0)
    kx, kp = jax.random.split(key)
    x = jax.random.normal(kx, (2, C_IN, H, W), jnp.float32)     # NCHW, like the PyTorch module
    params = init_params(kp)
    logits = jax.jit(controller_forward)(x, params)
    jax.block_until_ready(logits)
    assert logits.shape == (2, N_CLASSES)
    assert bool(jnp.all(jnp.isfinite(logits)))
    print("KERNEL_OK")
</pallas_src>

<mosaic_0001>
module attributes {stable_mosaic.version = 11 : i64} {
  func.func @_arch_weights_kernel(%arg0: memref<14x4xf32, #tpu.memory_space<vmem>>, %arg1: memref<14x1xf32, #tpu.memory_space<vmem>>, %arg2: memref<14x4xf32, #tpu.memory_space<vmem>>, %arg3: memref<14x4xf32, #tpu.memory_space<vmem>>, %arg4: memref<14x1xf32, #tpu.memory_space<vmem>>) attributes {dimension_semantics = [], scalar_prefetch = 0 : i64, scratch_operands = 0 : i64, tpu.core_type = #tpu.core_type<tc>} {
    %c0 = arith.constant 0 : index
    %c0_0 = arith.constant 0 : index
    %0 = vector.load %arg0[%c0, %c0_0] : memref<14x4xf32, #tpu.memory_space<vmem>>, vector<14x4xf32>
    %cst = arith.constant dense<0xFF800000> : vector<14xf32>
    %1 = vector.multi_reduction <maximumf>, %0, %cst [1] : vector<14x4xf32> to vector<14xf32>
    %2 = vector.shape_cast %1 : vector<14xf32> to vector<14x1xf32>
    %3 = vector.broadcast %2 : vector<14x1xf32> to vector<14x4xf32>
    %4 = arith.subf %0, %3 : vector<14x4xf32>
    %5 = math.exp %4 : vector<14x4xf32>
    %cst_1 = arith.constant dense<0.000000e+00> : vector<14xf32>
    %6 = vector.multi_reduction <add>, %5, %cst_1 [1] : vector<14x4xf32> to vector<14xf32>
    %7 = vector.shape_cast %6 : vector<14xf32> to vector<14x1xf32>
    %8 = vector.broadcast %7 : vector<14x1xf32> to vector<14x4xf32>
    %9 = arith.divf %5, %8 : vector<14x4xf32>
    %c0_2 = arith.constant 0 : index
    %c0_3 = arith.constant 0 : index
    %10 = vector.load %arg1[%c0_2, %c0_3] : memref<14x1xf32, #tpu.memory_space<vmem>>, vector<14x1xf32>
    %c0_4 = arith.constant 0 : index
    %c0_5 = arith.constant 0 : index
    %11 = vector.load %arg2[%c0_4, %c0_5] : memref<14x4xf32, #tpu.memory_space<vmem>>, vector<14x4xf32>
    %cst_6 = arith.constant 0.000000e+00 : f32
    %12 = vector.broadcast %cst_6 : f32 to vector<14x4xf32>
    %13 = arith.cmpf ogt, %11, %12 : vector<14x4xf32>
    %cst_7 = arith.constant -1.000000e+30 : f32
    %14 = vector.shape_cast %10 : vector<14x1xf32> to vector<14x1xf32>
    %15 = vector.broadcast %14 : vector<14x1xf32> to vector<14x4xf32>
    %16 = vector.broadcast %cst_7 : f32 to vector<14x4xf32>
    %17 = arith.select %13, %15, %16 : vector<14x4xi1>, vector<14x4xf32>
    %cst_8 = arith.constant dense<0xFF800000> : vector<4xf32>
    %18 = vector.multi_reduction <maximumf>, %17, %cst_8 [0] : vector<14x4xf32> to vector<4xf32>
    %19 = vector.shape_cast %18 : vector<4xf32> to vector<1x4xf32>
    %20 = vector.broadcast %19 : vector<1x4xf32> to vector<14x4xf32>
    %21 = arith.mulf %11, %20 : vector<14x4xf32>
    %cst_9 = arith.constant dense<0.000000e+00> : vector<14xf32>
    %22 = vector.multi_reduction <add>, %21, %cst_9 [1] : vector<14x4xf32> to vector<14xf32>
    %23 = vector.shape_cast %22 : vector<14xf32> to vector<14x1xf32>
    %24 = arith.subf %10, %23 : vector<14x1xf32>
    %25 = math.exp %24 : vector<14x1xf32>
    %cst_10 = arith.constant 0.000000e+00 : f32
    %26 = vector.broadcast %cst_10 : f32 to vector<14x4xf32>
    %27 = arith.cmpf ogt, %11, %26 : vector<14x4xf32>
    %cst_11 = arith.constant 0.000000e+00 : f32
    %28 = vector.shape_cast %25 : vector<14x1xf32> to vector<14x1xf32>
    %29 = vector.broadcast %28 : vector<14x1xf32> to vector<14x4xf32>
    %30 = vector.broadcast %cst_11 : f32 to vector<14x4xf32>
    %31 = arith.select %27, %29, %30 : vector<14x4xi1>, vector<14x4xf32>
    %cst_12 = arith.constant dense<0.000000e+00> : vector<4xf32>
    %32 = vector.multi_reduction <add>, %31, %cst_12 [0] : vector<14x4xf32> to vector<4xf32>
    %33 = vector.shape_cast %32 : vector<4xf32> to vector<1x4xf32>
    %34 = vector.broadcast %33 : vector<1x4xf32> to vector<14x4xf32>
    %35 = arith.mulf %11, %34 : vector<14x4xf32>
    %cst_13 = arith.constant dense<0.000000e+00> : vector<14xf32>
    %36 = vector.multi_reduction <add>, %35, %cst_13 [1] : vector<14x4xf32> to vector<14xf32>
    %37 = vector.shape_cast %36 : vector<14xf32> to vector<14x1xf32>
    %38 = arith.divf %25, %37 : vector<14x1xf32>
    %c0_14 = arith.constant 0 : index
    %c0_15 = arith.constant 0 : index
    %39 = vector.load %arg4[%c0_14, %c0_15] : memref<14x1xf32, #tpu.memory_space<vmem>>, vector<14x1xf32>
    tpu.vector_store %arg4[%c0_14, %c0_15], %38 {strides = array<i32>} : memref<14x1xf32, #tpu.memory_space<vmem>>, vector<14x1xf32>,
    %40 = vector.broadcast %38 : vector<14x1xf32> to vector<14x4xf32>
    %41 = arith.mulf %9, %40 : vector<14x4xf32>
    %c0_16 = arith.constant 0 : index
    %c0_17 = arith.constant 0 : index
    %42 = vector.load %arg3[%c0_16, %c0_17] : memref<14x4xf32, #tpu.memory_space<vmem>>, vector<14x4xf32>
    tpu.vector_store %arg3[%c0_16, %c0_17], %41 {strides = array<i32>} : memref<14x4xf32, #tpu.memory_space<vmem>>, vector<14x4xf32>,
    return
  }
}

module attributes {stable_mosaic.version = 11 : i64} {
  func.func @_pcdarts_forward_kernel(%arg0: memref<14x4xf32, #tpu.memory_space<smem>>, %arg1: memref<14x1xf32, #tpu.memory_space<smem>>, %arg2: memref<3x512xf32, #tpu.memory_space<vmem>>, %arg3: memref<10x512xf32, #tpu.memory_space<vmem>>, %arg4: memref<108x32xf32, #tpu.memory_space<vmem>>, %arg5: memref<512x2xf32, #tpu.memory_space<vmem>>, %arg6: memref<10x2xf32, #tpu.memory_space<vmem>>, %arg7: memref<32x512xf32, #tpu.memory_space<vmem>>) attributes {dimension_semantics = [], scalar_prefetch = 0 : i64, scratch_operands = 1 : i64, tpu.core_type = #tpu.core_type<tc>} {
    %cst = arith.constant 0.000000e+00 : f32
    %0 = vector.broadcast %cst : f32 to vector<32x512xf32>
    %c0 = arith.constant 0 : index
    %c0_0 = arith.constant 0 : index
    %1 = vector.load %arg7[%c0, %c0_0] : memref<32x512xf32, #tpu.memory_space<vmem>>, vector<32x512xf32>
    tpu.vector_store %arg7[%c0, %c0_0], %0 {strides = array<i32>} : memref<32x512xf32, #tpu.memory_space<vmem>>, vector<32x512xf32>,
    %c0_1 = arith.constant 0 : index
    %c0_2 = arith.constant 0 : index
    %2 = vector.load %arg2[%c0_1, %c0_2] : memref<3x512xf32, #tpu.memory_space<vmem>>, vector<3x512xf32>
    %c17_i32 = arith.constant 17 : i32
    %3 = tpu.dynamic_rotate %2 by %c17_i32 dim 1 : vector<3x512xf32>, i32 -> vector<3x512xf32>
    %c0_3 = arith.constant 0 : index
    %c0_4 = arith.constant 0 : index
    %4 = vector.load %arg3[%c0_3, %c0_4] : memref<10x512xf32, #tpu.memory_space<vmem>>, vector<1x512xf32>
    %5 = vector.broadcast %4 : vector<1x512xf32> to vector<3x512xf32>
    %6 = arith.mulf %3, %5 : vector<3x512xf32>
    %c0_5 = arith.constant 0 : index
    %c0_6 = arith.constant 0 : index
    %7 = vector.load %arg7[%c0_5, %c0_6] : memref<32x512xf32, #tpu.memory_space<vmem>>, vector<3x512xf32>
    tpu.vector_store %arg7[%c0_5, %c0_6], %6 {strides = array<i32>} : memref<32x512xf32, #tpu.memory_space<vmem>>, vector<3x512xf32>,
    %c16_i32 = arith.constant 16 : i32
    %8 = tpu.dynamic_rotate %2 by %c16_i32 dim 1 : vector<3x512xf32>, i32 -> vector<3x512xf32>
    %c1 = arith.constant 1 : index
    %c0_7 = arith.constant 0 : index
    %9 = vector.load %arg3[%c1, %c0_7] : memref<10x512xf32, #tpu.memory_space<vmem>>, vector<1x512xf32>
    %10 = vector.broadcast %9 : vector<1x512xf32> to vector<3x512xf32>
    %11 = arith.mulf %8, %10 : vector<3x512xf32>
    %c3 = arith.constant 3 : index
    %c0_8 = arith.constant 0 : index
    %12 = vector.load %arg7[%c3, %c0_8] : memref<32x512xf32, #tpu.memory_space<vmem>>, vector<3x512xf32>
    tpu.vector_store %arg7[%c3, %c0_8], %11 {strides = array<i32>} : memref<32x512xf32, #tpu.memory_space<vmem>>, vector<3x512xf32>,
    %c15_i32 = arith.constant 15 : i32
    %13 = tpu.dynamic_rotate %2 by %c15_i32 dim 1 : vector<3x512xf32>, i32 -> vector<3x512xf32>
    %c2 = arith.constant 2 : index
    %c0_9 = arith.constant 0 : index
    %14 = vector.load %arg3[%c2, %c0_9] : memref<10x512xf32, #tpu.memory_space<vmem>>, vector<1x512xf32>
    %15 = vector.broadcast %14 : vector<1x512xf32> to vector<3x512xf32>
    %16 = arith.mulf %13, %15 : vector<3x512xf32>
    %c6 = arith.constant 6 : index
    %c0_10 = arith.constant 0 : index
    %17 = vector.load %arg7[%c6, %c0_10] : memref<32x512xf32, #tpu.memory_space<vmem>>, vector<3x512xf32>
    tpu.vector_store %arg7[%c6, %c0_10], %16 {strides = array<i32>} : memref<32x512xf32, #tpu.memory_space<vmem>>, vector<3x512xf32>,
    %c1_i32 = arith.constant 1 : i32
    %18 = tpu.dynamic_rotate %2 by %c1_i32 dim 1 : vector<3x512xf32>, i32 -> vector<3x512xf32>
    %c3_11 = arith.constant 3 : index
    %c0_12 = arith.constant 0 : index
    %19 = vector.load %arg3[%c3_11, %c0_12] : memref<10x512xf32, #tpu.memory_space<vmem>>, vector<1x512xf32>
    %20 = vector.broadcast %19 : vector<1x512xf32> to vector<3x512xf32>
    %21 = arith.mulf %18, %20 : vector<3x512xf32>
    %c9 = arith.constant 9 : index
    %c0_13 = arith.constant 0 : index
    %22 = vector.load %arg7[%c9, %c0_13] : memref<32x512xf32, #tpu.memory_space<vmem>>, vector<3x512xf32>
    tpu.vector_store %arg7[%c9, %c0_13], %21 {strides = array<i32>} : memref<32x512xf32, #tpu.memory_space<vmem>>, vector<3x512xf32>,
    %c4 = arith.constant 4 : index
    %c0_14 = arith.constant 0 : index
    %23 = vector.load %arg3[%c4, %c0_14] : memref<10x512xf32, #tpu.memory_space<vmem>>, vector<1x512xf32>
    %24 = vector.broadcast %23 : vector<1x512xf32> to vector<3x512xf32>
    %25 = arith.mulf %2, %24 : vector<3x512xf32>
    %c12 = arith.constant 12 : index
    %c0_15 = arith.constant 0 : index
    %26 = vector.load %arg7[%c12, %c0_15] : memref<32x512xf32, #tpu.memory_space<vmem>>, vector<3x512xf32>
    tpu.vector_store %arg7[%c12, %c0_15], %25 {strides = array<i32>} : memref<32x512xf32, #tpu.memory_space<vmem>>, vector<3x512xf32>,
    %c511_i32 = arith.constant 511 : i32
    %27 = tpu.dynamic_rotate %2 by %c511_i32 dim 1 : vector<3x512xf32>, i32 -> vector<3x512xf32>
    %c5 = arith.constant 5 : index
    %c0_16 = arith.constant 0 : index
    %28 = vector.load %arg3[%c5, %c0_16] : memref<10x512xf32, #tpu.memory_space<vmem>>, vector<1x512xf32>
    %29 = vector.broadcast %28 : vector<1x512xf32> to vector<3x512xf32>
    %30 = arith.mulf %27, %29 : vector<3x512xf32>
    %c15 = arith.constant 15 : index
    %c0_17 = arith.constant 0 : index
    %31 = vector.load %arg7[%c15, %c0_17] : memref<32x512xf32, #tpu.memory_space<vmem>>, vector<3x512xf32>
    tpu.vector_store %arg7[%c15, %c0_17], %30 {strides = array<i32>} : memref<32x512xf32, #tpu.memory_space<vmem>>, vector<3x512xf32>,
    %c497_i32 = arith.constant 497 : i32
    %32 = tpu.dynamic_rotate %2 by %c497_i32 dim 1 : vector<3x512xf32>, i32 -> vector<3x512xf32>
    %c6_18 = arith.constant 6 : index
    %c0_19 = arith.constant 0 : index
    %33 = vector.load %arg3[%c6_18, %c0_19] : memref<10x512xf32, #tpu.memory_space<vmem>>, vector<1x512xf32>
    %34 = vector.broadcast %33 : vector<1x512xf32> to vector<3x512xf32>
    %35 = arith.mulf %32, %34 : vector<3x512xf32>
    %c18 = arith.constant 18 : index
    %c0_20 = arith.constant 0 : index
    %36 = vector.load %arg7[%c18, %c0_20] : memref<32x512xf32, #tpu.memory_space<vmem>>, vector<3x512xf32>
    tpu.vector_store %arg7[%c18, %c0_20], %35 {strides = array<i32>} : memref<32x512xf32, #tpu.memory_space<vmem>>, vector<3x512xf32>,
    %c496_i32 = arith.constant 496 : i32
    %37 = tpu.dynamic_rotate %2 by %c496_i32 dim 1 : vector<3x512xf32>, i32 -> vector<3x512xf32>
    %c7 = arith.constant 7 : index
    %c0_21 = arith.constant 0 : index
    %38 = vector.load %arg3[%c7, %c0_21] : memref<10x512xf32, #tpu.memory_space<vmem>>, vector<1x512xf32>
    %39 = vector.broadcast %38 : vector<1x512xf32> to vector<3x512xf32>
    %40 = arith.mulf %37, %39 : vector<3x512xf32>
    %c21 = arith.constant 21 : index
    %c0_22 = arith.constant 0 : index
    %41 = vector.load %arg7[%c21, %c0_22] : memref<32x512xf32, #tpu.memory_space<vmem>>, vector<3x512xf32>
    tpu.vector_store %arg7[%c21, %c0_22], %40 {strides = array<i32>} : memref<32x512xf32, #tpu.memory_space<vmem>>, vector<3x512xf32>,
    %c495_i32 = arith.constant 495 : i32
    %42 = tpu.dynamic_rotate %2 by %c495_i32 dim 1 : vector<3x512xf32>, i32 -> vector<3x512xf32>
    %c8 = arith.constant 8 : index
    %c0_23 = arith.constant 0 : index
    %43 = vector.load %arg3[%c8, %c0_23] : memref<10x512xf32, #tpu.memory_space<vmem>>, vector<1x512xf32>
    %44 = vector.broadcast %43 : vector<1x512xf32> to vector<3x512xf32>
    %45 = arith.mulf %42, %44 : vector<3x512xf32>
    %c24 = arith.constant 24 : index
    %c0_24 = arith.constant 0 : index
    %46 = vector.load %arg7[%c24, %c0_24] : memref<32x512xf32, #tpu.memory_space<vmem>>, vector<3x512xf32>
    tpu.vector_store %arg7[%c24, %c0_24], %45 {strides = array<i32>} : memref<32x512xf32, #tpu.memory_space<vmem>>, vector<3x512xf32>,
    %c0_25 = arith.constant 0 : index
    %c0_26 = arith.constant 0 : index
    %47 = vector.load %arg4[%c0_25, %c0_26] : memref<108x32xf32, #tpu.memory_space<vmem>>, vector<8x32xf32>
    %c0_27 = arith.constant 0 : index
    %c0_28 = arith.constant 0 : index
    %48 = vector.load %arg7[%c0_27, %c0_28] : memref<32x512xf32, #tpu.memory_space<vmem>>, vector<32x512xf32>
    %cst_29 = arith.constant dense<0.000000e+00> : vector<8x512xf32>
    %49 = tpu.matmul %47, %48, %cst_29 {dimension_numbers = #tpu.dot_dimension_numbers<[1], [0], [0], [1], [0, 0, 1, 1], [], []>} : vector<8x32xf32>, vector<32x512xf32>, vector<8x512xf32> -> vector<8x512xf32>
    %c8_30 = arith.constant 8 : index
    %c0_31 = arith.constant 0 : index
    %50 = vector.load %arg4[%c8_30, %c0_31] : memref<108x32xf32, #tpu.memory_space<vmem>>, vector<16x8xf32>
    %cst_32 = arith.constant 0.000000e+00 : f32
    %51 = vector.broadcast %cst_32 : f32 to vector<8x512xf32>
    %52 = arith.maximumf %49, %51 : vector<8x512xf32>
    %cst_33 = arith.constant dense<0.000000e+00> : vector<16x512xf32>
    %53 = tpu.matmul %50, %52, %cst_33 {dimension_numbers = #tpu.dot_dimension_numbers<[1], [0], [0], [1], [0, 0, 1, 1], [], []>} : vector<16x8xf32>, vector<8x512xf32>, vector<16x512xf32> -> vector<16x512xf32>
    %54 = vector.extract_strided_slice %53 {offsets = [0, 0], sizes = [8, 512], strides = [1, 1]} : vector<16x512xf32> to vector<8x512xf32>
    %55 = vector.extract_strided_slice %53 {offsets = [8, 0], sizes = [8, 512], strides = [1, 1]} : vector<16x512xf32> to vector<8x512xf32>
    %c9_34 = arith.constant 9 : index
    %c0_35 = arith.constant 0 : index
    %56 = vector.load %arg3[%c9_34, %c0_35] : memref<10x512xf32, #tpu.memory_space<vmem>>, vector<1x512xf32>
    %c64 = arith.constant 64 : index
    %c0_36 = arith.constant 0 : index
    %57 = vector.load %arg4[%c64, %c0_36] : memref<108x32xf32, #tpu.memory_space<vmem>>, vector<2x32xf32>
    %c72 = arith.constant 72 : index
    %c0_37 = arith.constant 0 : index
    %58 = vector.load %arg4[%c72, %c0_37] : memref<108x32xf32, #tpu.memory_space<vmem>>, vector<8x2xf32>
    %c80 = arith.constant 80 : index
    %c0_38 = arith.constant 0 : index
    %59 = vector.load %arg4[%c80, %c0_38] : memref<108x32xf32, #tpu.memory_space<vmem>>, vector<8x8xf32>
    %60 = vector.extract_strided_slice %54 {offsets = [0, 0], sizes = [2, 512], strides = [1, 1]} : vector<8x512xf32> to vector<2x512xf32>
    %c17_i32_39 = arith.constant 17 : i32
    %61 = tpu.dynamic_rotate %60 by %c17_i32_39 dim 1 : vector<2x512xf32>, i32 -> vector<2x512xf32>
    %c0_40 = arith.constant 0 : index
    %c0_41 = arith.constant 0 : index
    %62 = vector.load %arg3[%c0_40, %c0_41] : memref<10x512xf32, #tpu.memory_space<vmem>>, vector<1x512xf32>
    %63 = vector.broadcast %62 : vector<1x512xf32> to vector<2x512xf32>
    %64 = arith.mulf %61, %63 : vector<2x512xf32>
    %c0_42 = arith.constant 0 : index
    %c0_43 = arith.constant 0 : index
    %65 = vector.load %arg7[%c0_42, %c0_43] : memref<32x512xf32, #tpu.memory_space<vmem>>, vector<2x512xf32>
    tpu.vector_store %arg7[%c0_42, %c0_43], %64 {strides = array<i32>} : memref<32x512xf32, #tpu.memory_space<vmem>>, vector<2x512xf32>,
    %c16_i32_44 = arith.constant 16 : i32
    %66 = tpu.dynamic_rotate %60 by %c16_i32_44 dim 1 : vector<2x512xf32>, i32 -> vector<2x512xf32>
    %c1_45 = arith.constant 1 : index
    %c0_46 = arith.constant 0 : index
    %67 = vector.load %arg3[%c1_45, %c0_46] : memref<10x512xf32, #tpu.memory_space<vmem>>, vector<1x512xf32>
    %68 = vector.broadcast %67 : vector<1x512xf32> to vector<2x512xf32>
    %69 = arith.mulf %66, %68 : vector<2x512xf32>
    %c2_47 = arith.constant 2 : index
    %c0_48 = arith.constant 0 : index
    %70 = vector.load %arg7[%c2_47, %c0_48] : memref<32x512xf32, #tpu.memory_space<vmem>>, vector<2x512xf32>
    tpu.vector_store %arg7[%c2_47, %c0_48], %69 {strides = array<i32>} : memref<32x512xf32, #tpu.memory_space<vmem>>, vector<2x512xf32>,
    %c15_i32_49 = arith.constant 15 : i32
    %71 = tpu.dynamic_rotate %60 by %c15_i32_49 dim 1 : vector<2x512xf32>, i32 -> vector<2x512xf32>
    %c2_50 = arith.constant 2 : index
    %c0_51 = arith.constant 0 : index
    %72 = vector.load %arg3[%c2_50, %c0_51] : memref<10x512xf32, #tpu.memory_space<vmem>>, vector<1x512xf32>
    %73 = vector.broadcast %72 : vector<1x512xf32> to vector<2x512xf32>
    %74 = arith.mulf %71, %73 : vector<2x512xf32>
    %c4_52 = arith.constant 4 : index
    %c0_53 = arith.constant 0 : index
    %75 = vector.load %arg7[%c4_52, %c0_53] : memref<32x512xf32, #tpu.memory_space<vmem>>, vector<2x512xf32>
    tpu.vector_store %arg7[%c4_52, %c0_53], %74 {strides = array<i32>} : memref<32x512xf32, #tpu.memory_space<vmem>>, vector<2x512xf32>,
    %c1_i32_54 = arith.constant 1 : i32
    %76 = tpu.dynamic_rotate %60 by %c1_i32_54 dim 1 : vector<2x512xf32>, i32 -> vector<2x512xf32>
    %c3_55 = arith.constant 3 : index
    %c0_56 = arith.constant 0 : index
    %77 = vector.load %arg3[%c3_55, %c0_56] : memref<10x512xf32, #tpu.memory_space<vmem>>, vector<1x512xf32>
    %78 = vector.broadcast %77 : vector<1x512xf32> to vector<2x512xf32>
    %79 = arith.mulf %76, %78 : vector<2x512xf32>
    %c6_57 = arith.constant 6 : index
    %c0_58 = arith.constant 0 : index
    %80 = vector.load %arg7[%c6_57, %c0_58] : memref<32x512xf32, #tpu.memory_space<vmem>>, vector<2x512xf32>
    tpu.vector_store %arg7[%c6_57, %c0_58], %79 {strides = array<i32>} : memref<32x512xf32, #tpu.memory_space<vmem>>, vector<2x512xf32>,
    %c4_59 = arith.constant 4 : index
    %c0_60 = arith.constant 0 : index
    %81 = vector.load %arg3[%c4_59, %c0_60] : memref<10x512xf32, #tpu.memory_space<vmem>>, vector<1x512xf32>
    %82 = vector.broadcast %81 : vector<1x512xf32> to vector<2x512xf32>
    %83 = arith.mulf %60, %82 : vector<2x512xf32>
    %c8_61 = arith.constant 8 : index
    %c0_62 = arith.constant 0 : index
    %84 = vector.load %arg7[%c8_61, %c0_62] : memref<32x512xf32, #tpu.memory_space<vmem>>, vector<2x512xf32>
    tpu.vector_store %arg7[%c8_61, %c0_62], %83 {strides = array<i32>} : memref<32x512xf32, #tpu.memory_space<vmem>>, vector<2x512xf32>,
    %c511_i32_63 = arith.constant 511 : i32
    %85 = tpu.dynamic_rotate %60 by %c511_i32_63 dim 1 : vector<2x512xf32>, i32 -> vector<2x512xf32>
    %c5_64 = arith.constant 5 : index
    %c0_65 = arith.constant 0 : index
    %86 = vector.load %arg3[%c5_64, %c0_65] : memref<10x512xf32, #tpu.memory_space<vmem>>, vector<1x512xf32>
    %87 = vector.broadcast %86 : vector<1x512xf32> to vector<2x512xf32>
    %88 = arith.mulf %85, %87 : vector<2x512xf32>
    %c10 = arith.constant 10 : index
    %c0_66 = arith.constant 0 : index
    %89 = vector.load %arg7[%c10, %c0_66] : memref<32x512xf32, #tpu.memory_space<vmem>>, vector<2x512xf32>
    tpu.vector_store %arg7[%c10, %c0_66], %88 {strides = array<i32>} : memref<32x512xf32, #tpu.memory_space<vmem>>, vector<2x512xf32>,
    %c497_i32_67 = arith.constant 497 : i32
    %90 = tpu.dynamic_rotate %60 by %c497_i32_67 dim 1 : vector<2x512xf32>, i32 -> vector<2x512xf32>
    %c6_68 = arith.constant 6 : index
    %c0_69 = arith.constant 0 : index
    %91 = vector.load %arg3[%c6_68, %c0_69] : memref<10x512xf32, #tpu.memory_space<vmem>>, vector<1x512xf32>
    %92 = vector.broadcast %91 : vector<1x512xf32> to vector<2x512xf32>
    %93 = arith.mulf %90, %92 : vector<2x512xf32>
    %c12_70 = arith.constant 12 : index
    %c0_71 = arith.constant 0 : index
    %94 = vector.load %arg7[%c12_70, %c0_71] : memref<32x512xf32, #tpu.memory_space<vmem>>, vector<2x512xf32>
    tpu.vector_store %arg7[%c12_70, %c0_71], %93 {strides = array<i32>} : memref<32x512xf32, #tpu.memory_space<vmem>>, vector<2x512xf32>,
    %c496_i32_72 = arith.constant 496 : i32
    %95 = tpu.dynamic_rotate %60 by %c496_i32_72 dim 1 : vector<2x512xf32>, i32 -> vector<2x512xf32>
    %c7_73 = arith.constant 7 : index
    %c0_74 = arith.constant 0 : index
    %96 = vector.load %arg3[%c7_73, %c0_74] : memref<10x512xf32, #tpu.memory_space<vmem>>, vector<1x512xf32>
    %97 = vector.broadcast %96 : vector<1x512xf32> to vector<2x512xf32>
    %98 = arith.mulf %95, %97 : vector<2x512xf32>
    %c14 = arith.constant 14 : index
    %c0_75 = arith.constant 0 : index
    %99 = vector.load %arg7[%c14, %c0_75] : memref<32x512xf32, #tpu.memory_space<vmem>>, vector<2x512xf32>
    tpu.vector_store %arg7[%c14, %c0_75], %98 {strides = array<i32>} : memref<32x512xf32, #tpu.memory_space<vmem>>, vector<2x512xf32>,
    %c495_i32_76 = arith.constant 495 : i32
    %100 = tpu.dynamic_rotate %60 by %c495_i32_76 dim 1 : vector<2x512xf32>, i32 -> vector<2x512xf32>
    %c8_77 = arith.constant 8 : index
    %c0_78 = arith.constant 0 : index
    %101 = vector.load %arg3[%c8_77, %c0_78] : memref<10x512xf32, #tpu.memory_space<vmem>>, vector<1x512xf32>
    %102 = vector.broadcast %101 : vector<1x512xf32> to vector<2x512xf32>
    %103 = arith.mulf %100, %102 : vector<2x512xf32>
    %c16 = arith.constant 16 : index
    %c0_79 = arith.constant 0 : index
    %104 = vector.load %arg7[%c16, %c0_79] : memref<32x512xf32, #tpu.memory_space<vmem>>, vector<2x512xf32>
    tpu.vector_store %arg7[%c16, %c0_79], %103 {strides = array<i32>} : memref<32x512xf32, #tpu.memory_space<vmem>>, vector<2x512xf32>,
    %c0_80 = arith.constant 0 : index
    %c0_81 = arith.constant 0 : index
    %105 = vector.load %arg7[%c0_80, %c0_81] : memref<32x512xf32, #tpu.memory_space<vmem>>, vector<32x512xf32>
    %c24_82 = arith.constant 24 : index
    %c0_83 = arith.constant 0 : index
    %106 = vector.load %arg4[%c24_82, %c0_83] : memref<108x32xf32, #tpu.memory_space<vmem>>, vector<8x32xf32>
    %cst_84 = arith.constant 0.000000e+00 : f32
    %107 = vector.broadcast %cst_84 : f32 to vector<32x512xf32>
    %108 = arith.maximumf %105, %107 : vector<32x512xf32>
    %cst_85 = arith.constant dense<0.000000e+00> : vector<8x512xf32>
    %109 = tpu.matmul %106, %108, %cst_85 {dimension_numbers = #tpu.dot_dimension_numbers<[1], [0], [0], [1], [0, 0, 1, 1], [], []>} : vector<8x32xf32>, vector<32x512xf32>, vector<8x512xf32> -> vector<8x512xf32>
    %cst_86 = arith.constant dense<0.000000e+00> : vector<2x512xf32>
    %110 = tpu.matmul %57, %105, %cst_86 {dimension_numbers = #tpu.dot_dimension_numbers<[1], [0], [0], [1], [0, 0, 1, 1], [], []>} : vector<2x32xf32>, vector<32x512xf32>, vector<2x512xf32> -> vector<2x512xf32>
    %111 = vector.broadcast %56 : vector<1x512xf32> to vector<2x512xf32>
    %112 = arith.mulf %110, %111 : vector<2x512xf32>
    %113 = vector.extract_strided_slice %109 {offsets = [0, 0], sizes = [2, 512], strides = [1, 1]} : vector<8x512xf32> to vector<2x512xf32>
    %c0_87 = arith.constant 0 : index
    %c1_88 = arith.constant 1 : index
    %114 = memref.load %arg0[%c0_87, %c1_88] : memref<14x4xf32, #tpu.memory_space<smem>>
    %115 = vector.broadcast %114 : f32 to vector<2x512xf32>
    %116 = arith.mulf %115, %60 : vector<2x512xf32>
    %c0_89 = arith.constant 0 : index
    %c2_90 = arith.constant 2 : index
    %117 = memref.load %arg0[%c0_89, %c2_90] : memref<14x4xf32, #tpu.memory_space<smem>>
    %118 = vector.broadcast %117 : f32 to vector<2x512xf32>
    %119 = arith.mulf %118, %112 : vector<2x512xf32>
    %120 = arith.addf %116, %119 : vector<2x512xf32>
    %c0_91 = arith.constant 0 : index
    %c3_92 = arith.constant 3 : index
    %121 = memref.load %arg0[%c0_91, %c3_92] : memref<14x4xf32, #tpu.memory_space<smem>>
    %122 = vector.broadcast %121 : f32 to vector<2x512xf32>
    %123 = arith.mulf %122, %113 : vector<2x512xf32>
    %124 = arith.addf %120, %123 : vector<2x512xf32>
    %c0_93 = arith.constant 0 : index
    %c0_94 = arith.constant 0 : index
    %125 = memref.load %arg1[%c0_93, %c0_94] : memref<14x1xf32, #tpu.memory_space<smem>>
    %126 = vector.broadcast %125 : f32 to vector<8x512xf32>
    %127 = arith.mulf %126, %54 : vector<8x512xf32>
    %128 = vector.extract_strided_slice %109 {offsets = [2, 0], sizes = [2, 512], strides = [1, 1]} : vector<8x512xf32> to vector<2x512xf32>
    %c2_95 = arith.constant 2 : index
    %c1_96 = arith.constant 1 : index
    %129 = memref.load %arg0[%c2_95, %c1_96] : memref<14x4xf32, #tpu.memory_space<smem>>
    %130 = vector.broadcast %129 : f32 to vector<2x512xf32>
    %131 = arith.mulf %130, %60 : vector<2x512xf32>
    %c2_97 = arith.constant 2 : index
    %c2_98 = arith.constant 2 : index
    %132 = memref.load %arg0[%c2_97, %c2_98] : memref<14x4xf32, #tpu.memory_space<smem>>
    %133 = vector.broadcast %132 : f32 to vector<2x512xf32>
    %134 = arith.mulf %133, %112 : vector<2x512xf32>
    %135 = arith.addf %131, %134 : vector<2x512xf32>
    %c2_99 = arith.constant 2 : index
    %c3_100 = arith.constant 3 : index
    %136 = memref.load %arg0[%c2_99, %c3_100] : memref<14x4xf32, #tpu.memory_space<smem>>
    %137 = vector.broadcast %136 : f32 to vector<2x512xf32>
    %138 = arith.mulf %137, %128 : vector<2x512xf32>
    %139 = arith.addf %135, %138 : vector<2x512xf32>
    %c2_101 = arith.constant 2 : index
    %c0_102 = arith.constant 0 : index
    %140 = memref.load %arg1[%c2_101, %c0_102] : memref<14x1xf32, #tpu.memory_space<smem>>
    %141 = vector.broadcast %140 : f32 to vector<8x512xf32>
    %142 = arith.mulf %141, %54 : vector<8x512xf32>
    %143 = vector.extract_strided_slice %109 {offsets = [4, 0], sizes = [2, 512], strides = [1, 1]} : vector<8x512xf32> to vector<2x512xf32>
    %c5_103 = arith.constant 5 : index
    %c1_104 = arith.constant 1 : index
    %144 = memref.load %arg0[%c5_103, %c1_104] : memref<14x4xf32, #tpu.memory_space<smem>>
    %145 = vector.broadcast %144 : f32 to vector<2x512xf32>
    %146 = arith.mulf %145, %60 : vector<2x512xf32>
    %c5_105 = arith.constant 5 : index
    %c2_106 = arith.constant 2 : index
    %147 = memref.load %arg0[%c5_105, %c2_106] : memref<14x4xf32, #tpu.memory_space<smem>>
    %148 = vector.broadcast %147 : f32 to vector<2x512xf32>
    %149 = arith.mulf %148, %112 : vector<2x512xf32>
    %150 = arith.addf %146, %149 : vector<2x512xf32>
    %c5_107 = arith.constant 5 : index
    %c3_108 = arith.constant 3 : index
    %151 = memref.load %arg0[%c5_107, %c3_108] : memref<14x4xf32, #tpu.memory_space<smem>>
    %152 = vector.broadcast %151 : f32 to vector<2x512xf32>
    %153 = arith.mulf %152, %143 : vector<2x512xf32>
    %154 = arith.addf %150, %153 : vector<2x512xf32>
    %c5_109 = arith.constant 5 : index
    %c0_110 = arith.constant 0 : index
    %155 = memref.load %arg1[%c5_109, %c0_110] : memref<14x1xf32, #tpu.memory_space<smem>>
    %156 = vector.broadcast %155 : f32 to vector<8x512xf32>
    %157 = arith.mulf %156, %54 : vector<8x512xf32>
    %158 = vector.extract_strided_slice %109 {offsets = [6, 0], sizes = [2, 512], strides = [1, 1]} : vector<8x512xf32> to vector<2x512xf32>
    %c9_111 = arith.constant 9 : index
    %c1_112 = arith.constant 1 : index
    %159 = memref.load %arg0[%c9_111, %c1_112] : memref<14x4xf32, #tpu.memory_space<smem>>
    %160 = vector.broadcast %159 : f32 to vector<2x512xf32>
    %161 = arith.mulf %160, %60 : vector<2x512xf32>
    %c9_113 = arith.constant 9 : index
    %c2_114 = arith.constant 2 : index
    %162 = memref.load %arg0[%c9_113, %c2_114] : memref<14x4xf32, #tpu.memory_space<smem>>
    %163 = vector.broadcast %162 : f32 to vector<2x512xf32>
    %164 = arith.mulf %163, %112 : vector<2x512xf32>
    %165 = arith.addf %161, %164 : vector<2x512xf32>
    %c9_115 = arith.constant 9 : index
    %c3_116 = arith.constant 3 : index
    %166 = memref.load %arg0[%c9_115, %c3_116] : memref<14x4xf32, #tpu.memory_space<smem>>
    %167 = vector.broadcast %166 : f32 to vector<2x512xf32>
    %168 = arith.mulf %167, %158 : vector<2x512xf32>
    %169 = arith.addf %165, %168 : vector<2x512xf32>
    %c9_117 = arith.constant 9 : index
    %c0_118 = arith.constant 0 : index
    %170 = memref.load %arg1[%c9_117, %c0_118] : memref<14x1xf32, #tpu.memory_space<smem>>
    %171 = vector.broadcast %170 : f32 to vector<8x512xf32>
    %172 = arith.mulf %171, %54 : vector<8x512xf32>
    %173 = vector.extract_strided_slice %55 {offsets = [0, 0], sizes = [2, 512], strides = [1, 1]} : vector<8x512xf32> to vector<2x512xf32>
    %c17_i32_119 = arith.constant 17 : i32
    %174 = tpu.dynamic_rotate %173 by %c17_i32_119 dim 1 : vector<2x512xf32>, i32 -> vector<2x512xf32>
    %c0_120 = arith.constant 0 : index
    %c0_121 = arith.constant 0 : index
    %175 = vector.load %arg3[%c0_120, %c0_121] : memref<10x512xf32, #tpu.memory_space<vmem>>, vector<1x512xf32>
    %176 = vector.broadcast %175 : vector<1x512xf32> to vector<2x512xf32>
    %177 = arith.mulf %174, %176 : vector<2x512xf32>
    %c0_122 = arith.constant 0 : index
    %c0_123 = arith.constant 0 : index
    %178 = vector.load %arg7[%c0_122, %c0_123] : memref<32x512xf32, #tpu.memory_space<vmem>>, vector<2x512xf32>
    tpu.vector_store %arg7[%c0_122, %c0_123], %177 {strides = array<i32>} : memref<32x512xf32, #tpu.memory_space<vmem>>, vector<2x512xf32>,
    %c16_i32_124 = arith.constant 16 : i32
    %179 = tpu.dynamic_rotate %173 by %c16_i32_124 dim 1 : vector<2x512xf32>, i32 -> vector<2x512xf32>
    %c1_125 = arith.constant 1 : index
    %c0_126 = arith.constant 0 : index
    %180 = vector.load %arg3[%c1_125, %c0_126] : memref<10x512xf32, #tpu.memory_space<vmem>>, vector<1x512xf32>
    %181 = vector.broadcast %180 : vector<1x512xf32> to vector<2x512xf32>
    %182 = arith.mulf %179, %181 : vector<2x512xf32>
    %c2_127 = arith.constant 2 : index
    %c0_128 = arith.constant 0 : index
    %183 = vector.load %arg7[%c2_127, %c0_128] : memref<32x512xf32, #tpu.memory_space<vmem>>, vector<2x512xf32>
    tpu.vector_store %arg7[%c2_127, %c0_128], %182 {strides = array<i32>} : memref<32x512xf32, #tpu.memory_space<vmem>>, vector<2x512xf32>,
    %c15_i32_129 = arith.constant 15 : i32
    %184 = tpu.dynamic_rotate %173 by %c15_i32_129 dim 1 : vector<2x512xf32>, i32 -> vector<2x512xf32>
    %c2_130 = arith.constant 2 : index
    %c0_131 = arith.constant 0 : index
    %185 = vector.load %arg3[%c2_130, %c0_131] : memref<10x512xf32, #tpu.memory_space<vmem>>, vector<1x512xf32>
    %186 = vector.broadcast %185 : vector<1x512xf32> to vector<2x512xf32>
    %187 = arith.mulf %184, %186 : vector<2x512xf32>
    %c4_132 = arith.constant 4 : index
    %c0_133 = arith.constant 0 : index
    %188 = vector.load %arg7[%c4_132, %c0_133] : memref<32x512xf32, #tpu.memory_space<vmem>>, vector<2x512xf32>
    tpu.vector_store %arg7[%c4_132, %c0_133], %187 {strides = array<i32>} : memref<32x512xf32, #tpu.memory_space<vmem>>, vector<2x512xf32>,
    %c1_i32_134 = arith.constant 1 : i32
    %189 = tpu.dynamic_rotate %173 by %c1_i32_134 dim 1 : vector<2x512xf32>, i32 -> vector<2x512xf32>
    %c3_135 = arith.constant 3 : index
    %c0_136 = arith.constant 0 : index
    %190 = vector.load %arg3[%c3_135, %c0_136] : memref<10x512xf32, #tpu.memory_space<vmem>>, vector<1x512xf32>
    %191 = vector.broadcast %190 : vector<1x512xf32> to vector<2x512xf32>
    %192 = arith.mulf %189, %191 : vector<2x512xf32>
    %c6_137 = arith.constant 6 : index
    %c0_138 = arith.constant 0 : index
    %193 = vector.load %arg7[%c6_137, %c0_138] : memref<32x512xf32, #tpu.memory_space<vmem>>, vector<2x512xf32>
    tpu.vector_store %arg7[%c6_137, %c0_138], %192 {strides = array<i32>} : memref<32x512xf32, #tpu.memory_space<vmem>>, vector<2x512xf32>,
    %c4_139 = arith.constant 4 : index
    %c0_140 = arith.constant 0 : index
    %194 = vector.load %arg3[%c4_139, %c0_140] : memref<10x512xf32, #tpu.memory_space<vmem>>, vector<1x512xf32>
    %195 = vector.broadcast %194 : vector<1x512xf32> to vector<2x512xf32>
    %196 = arith.mulf %173, %195 : vector<2x512xf32>
    %c8_141 = arith.constant 8 : index
    %c0_142 = arith.constant 0 : index
    %197 = vector.load %arg7[%c8_141, %c0_142] : memref<32x512xf32, #tpu.memory_space<vmem>>, vector<2x512xf32>
    tpu.vector_store %arg7[%c8_141, %c0_142], %196 {strides = array<i32>} : memref<32x512xf32, #tpu.memory_space<vmem>>, vector<2x512xf32>,
    %c511_i32_143 = arith.constant 511 : i32
    %198 = tpu.dynamic_rotate %173 by %c511_i32_143 dim 1 : vector<2x512xf32>, i32 -> vector<2x512xf32>
    %c5_144 = arith.constant 5 : index
    %c0_145 = arith.constant 0 : index
    %199 = vector.load %arg3[%c5_144, %c0_145] : memref<10x512xf32, #tpu.memory_space<vmem>>, vector<1x512xf32>
    %200 = vector.broadcast %199 : vector<1x512xf32> to vector<2x512xf32>
    %201 = arith.mulf %198, %200 : vector<2x512xf32>
    %c10_146 = arith.constant 10 : index
    %c0_147 = arith.constant 0 : index
    %202 = vector.load %arg7[%c10_146, %c0_147] : memref<32x512xf32, #tpu.memory_space<vmem>>, vector<2x512xf32>
    tpu.vector_store %arg7[%c10_146, %c0_147], %201 {strides = array<i32>} : memref<32x512xf32, #tpu.memory_space<vmem>>, vector<2x512xf32>,
    %c497_i32_148 = arith.constant 497 : i32
    %203 = tpu.dynamic_rotate %173 by %c497_i32_148 dim 1 : vector<2x512xf32>, i32 -> vector<2x512xf32>
    %c6_149 = arith.constant 6 : index
    %c0_150 = arith.constant 0 : index
    %204 = vector.load %arg3[%c6_149, %c0_150] : memref<10x512xf32, #tpu.memory_space<vmem>>, vector<1x512xf32>
    %205 = vector.broadcast %204 : vector<1x512xf32> to vector<2x512xf32>
    %206 = arith.mulf %203, %205 : vector<2x512xf32>
    %c12_151 = arith.constant 12 : index
    %c0_152 = arith.constant 0 : index
    %207 = vector.load %arg7[%c12_151, %c0_152] : memref<32x512xf32, #tpu.memory_space<vmem>>, vector<2x512xf32>
    tpu.vector_store %arg7[%c12_151, %c0_152], %206 {strides = array<i32>} : memref<32x512xf32, #tpu.memory_space<vmem>>, vector<2x512xf32>,
    %c496_i32_153 = arith.constant 496 : i32
    %208 = tpu.dynamic_rotate %173 by %c496_i32_153 dim 1 : vector<2x512xf32>, i32 -> vector<2x512xf32>
    %c7_154 = arith.constant 7 : index
    %c0_155 = arith.constant 0 : index
    %209 = vector.load %arg3[%c7_154, %c0_155] : memref<10x512xf32, #tpu.memory_space<vmem>>, vector<1x512xf32>
    %210 = vector.broadcast %209 : vector<1x512xf32> to vector<2x512xf32>
    %211 = arith.mulf %208, %210 : vector<2x512xf32>
    %c14_156 = arith.constant 14 : index
    %c0_157 = arith.constant 0 : index
    %212 = vector.load %arg7[%c14_156, %c0_157] : memref<32x512xf32, #tpu.memory_space<vmem>>, vector<2x512xf32>
    tpu.vector_store %arg7[%c14_156, %c0_157], %211 {strides = array<i32>} : memref<32x512xf32, #tpu.memory_space<vmem>>, vector<2x512xf32>,
    %c495_i32_158 = arith.constant 495 : i32
    %213 = tpu.dynamic_rotate %173 by %c495_i32_158 dim 1 : vector<2x512xf32>, i32 -> vector<2x512xf32>
    %c8_159 = arith.constant 8 : index
    %c0_160 = arith.constant 0 : index
    %214 = vector.load %arg3[%c8_159, %c0_160] : memref<10x512xf32, #tpu.memory_space<vmem>>, vector<1x512xf32>
    %215 = vector.broadcast %214 : vector<1x512xf32> to vector<2x512xf32>
    %216 = arith.mulf %213, %215 : vector<2x512xf32>
    %c16_161 = arith.constant 16 : index
    %c0_162 = arith.constant 0 : index
    %217 = vector.load %arg7[%c16_161, %c0_162] : memref<32x512xf32, #tpu.memory_space<vmem>>, vector<2x512xf32>
    tpu.vector_store %arg7[%c16_161, %c0_162], %216 {strides = array<i32>} : memref<32x512xf32, #tpu.memory_space<vmem>>, vector<2x512xf32>,
    %c0_163 = arith.constant 0 : index
    %c0_164 = arith.constant 0 : index
    %218 = vector.load %arg7[%c0_163, %c0_164] : memref<32x512xf32, #tpu.memory_space<vmem>>, vector<32x512xf32>
    %c32 = arith.constant 32 : index
    %c0_165 = arith.constant 0 : index
    %219 = vector.load %arg4[%c32, %c0_165] : memref<108x32xf32, #tpu.memory_space<vmem>>, vector<8x32xf32>
    %cst_166 = arith.constant 0.000000e+00 : f32
    %220 = vector.broadcast %cst_166 : f32 to vector<32x512xf32>
    %221 = arith.maximumf %218, %220 : vector<32x512xf32>
    %cst_167 = arith.constant dense<0.000000e+00> : vector<8x512xf32>
    %222 = tpu.matmul %219, %221, %cst_167 {dimension_numbers = #tpu.dot_dimension_numbers<[1], [0], [0], [1], [0, 0, 1, 1], [], []>} : vector<8x32xf32>, vector<32x512xf32>, vector<8x512xf32> -> vector<8x512xf32>
    %cst_168 = arith.constant dense<0.000000e+00> : vector<2x512xf32>
    %223 = tpu.matmul %57, %218, %cst_168 {dimension_numbers = #tpu.dot_dimension_numbers<[1], [0], [0], [1], [0, 0, 1, 1], [], []>} : vector<2x32xf32>, vector<32x512xf32>, vector<2x512xf32> -> vector<2x512xf32>
    %224 = vector.broadcast %56 : vector<1x512xf32> to vector<2x512xf32>
    %225 = arith.mulf %223, %224 : vector<2x512xf32>
    %226 = vector.extract_strided_slice %222 {offsets = [0, 0], sizes = [2, 512], strides = [1, 1]} : vector<8x512xf32> to vector<2x512xf32>
    %c1_169 = arith.constant 1 : index
    %c1_170 = arith.constant 1 : index
    %227 = memref.load %arg0[%c1_169, %c1_170] : memref<14x4xf32, #tpu.memory_space<smem>>
    %228 = vector.broadcast %227 : f32 to vector<2x512xf32>
    %229 = arith.mulf %228, %173 : vector<2x512xf32>
    %c1_171 = arith.constant 1 : index
    %c2_172 = arith.constant 2 : index
    %230 = memref.load %arg0[%c1_171, %c2_172] : memref<14x4xf32, #tpu.memory_space<smem>>
    %231 = vector.broadcast %230 : f32 to vector<2x512xf32>
    %232 = arith.mulf %231, %225 : vector<2x512xf32>
    %233 = arith.addf %229, %232 : vector<2x512xf32>
    %c1_173 = arith.constant 1 : index
    %c3_174 = arith.constant 3 : index
    %234 = memref.load %arg0[%c1_173, %c3_174] : memref<14x4xf32, #tpu.memory_space<smem>>
    %235 = vector.broadcast %234 : f32 to vector<2x512xf32>
    %236 = arith.mulf %235, %226 : vector<2x512xf32>
    %237 = arith.addf %233, %236 : vector<2x512xf32>
    %c1_175 = arith.constant 1 : index
    %c0_176 = arith.constant 0 : index
    %238 = memref.load %arg1[%c1_175, %c0_176] : memref<14x1xf32, #tpu.memory_space<smem>>
    %239 = vector.broadcast %238 : f32 to vector<8x512xf32>
    %240 = arith.mulf %239, %55 : vector<8x512xf32>
    %241 = arith.addf %124, %237 : vector<2x512xf32>
    %242 = arith.addf %127, %240 : vector<8x512xf32>
    %243 = vector.extract_strided_slice %222 {offsets = [2, 0], sizes = [2, 512], strides = [1, 1]} : vector<8x512xf32> to vector<2x512xf32>
    %c3_177 = arith.constant 3 : index
    %c1_178 = arith.constant 1 : index
    %244 = memref.load %arg0[%c3_177, %c1_178] : memref<14x4xf32, #tpu.memory_space<smem>>
    %245 = vector.broadcast %244 : f32 to vector<2x512xf32>
    %246 = arith.mulf %245, %173 : vector<2x512xf32>
    %c3_179 = arith.constant 3 : index
    %c2_180 = arith.constant 2 : index
    %247 = memref.load %arg0[%c3_179, %c2_180] : memref<14x4xf32, #tpu.memory_space<smem>>
    %248 = vector.broadcast %247 : f32 to vector<2x512xf32>
    %249 = arith.mulf %248, %225 : vector<2x512xf32>
    %250 = arith.addf %246, %249 : vector<2x512xf32>
    %c3_181 = arith.constant 3 : index
    %c3_182 = arith.constant 3 : index
    %251 = memref.load %arg0[%c3_181, %c3_182] : memref<14x4xf32, #tpu.memory_space<smem>>
    %252 = vector.broadcast %251 : f32 to vector<2x512xf32>
    %253 = arith.mulf %252, %243 : vector<2x512xf32>
    %254 = arith.addf %250, %253 : vector<2x512xf32>
    %c3_183 = arith.constant 3 : index
    %c0_184 = arith.constant 0 : index
    %255 = memref.load %arg1[%c3_183, %c0_184] : memref<14x1xf32, #tpu.memory_space<smem>>
    %256 = vector.broadcast %255 : f32 to vector<8x512xf32>
    %257 = arith.mulf %256, %55 : vector<8x512xf32>
    %258 = arith.addf %139, %254 : vector<2x512xf32>
    %259 = arith.addf %142, %257 : vector<8x512xf32>
    %260 = vector.extract_strided_slice %222 {offsets = [4, 0], sizes = [2, 512], strides = [1, 1]} : vector<8x512xf32> to vector<2x512xf32>
    %c6_185 = arith.constant 6 : index
    %c1_186 = arith.constant 1 : index
    %261 = memref.load %arg0[%c6_185, %c1_186] : memref<14x4xf32, #tpu.memory_space<smem>>
    %262 = vector.broadcast %261 : f32 to vector<2x512xf32>
    %263 = arith.mulf %262, %173 : vector<2x512xf32>
    %c6_187 = arith.constant 6 : index
    %c2_188 = arith.constant 2 : index
    %264 = memref.load %arg0[%c6_187, %c2_188] : memref<14x4xf32, #tpu.memory_space<smem>>
    %265 = vector.broadcast %264 : f32 to vector<2x512xf32>
    %266 = arith.mulf %265, %225 : vector<2x512xf32>
    %267 = arith.addf %263, %266 : vector<2x512xf32>
    %c6_189 = arith.constant 6 : index
    %c3_190 = arith.constant 3 : index
    %268 = memref.load %arg0[%c6_189, %c3_190] : memref<14x4xf32, #tpu.memory_space<smem>>
    %269 = vector.broadcast %268 : f32 to vector<2x512xf32>
    %270 = arith.mulf %269, %260 : vector<2x512xf32>
    %271 = arith.addf %267, %270 : vector<2x512xf32>
    %c6_191 = arith.constant 6 : index
    %c0_192 = arith.constant 0 : index
    %272 = memref.load %arg1[%c6_191, %c0_192] : memref<14x1xf32, #tpu.memory_space<smem>>
    %273 = vector.broadcast %272 : f32 to vector<8x512xf32>
    %274 = arith.mulf %273, %55 : vector<8x512xf32>
    %275 = arith.addf %154, %271 : vector<2x512xf32>
    %276 = arith.addf %157, %274 : vector<8x512xf32>
    %277 = vector.extract_strided_slice %222 {offsets = [6, 0], sizes = [2, 512], strides = [1, 1]} : vector<8x512xf32> to vector<2x512xf32>
    %c10_193 = arith.constant 10 : index
    %c1_194 = arith.constant 1 : index
    %278 = memref.load %arg0[%c10_193, %c1_194] : memref<14x4xf32, #tpu.memory_space<smem>>
    %279 = vector.broadcast %278 : f32 to vector<2x512xf32>
    %280 = arith.mulf %279, %173 : vector<2x512xf32>
    %c10_195 = arith.constant 10 : index
    %c2_196 = arith.constant 2 : index
    %281 = memref.load %arg0[%c10_195, %c2_196] : memref<14x4xf32, #tpu.memory_space<smem>>
    %282 = vector.broadcast %281 : f32 to vector<2x512xf32>
    %283 = arith.mulf %282, %225 : vector<2x512xf32>
    %284 = arith.addf %280, %283 : vector<2x512xf32>
    %c10_197 = arith.constant 10 : index
    %c3_198 = arith.constant 3 : index
    %285 = memref.load %arg0[%c10_197, %c3_198] : memref<14x4xf32, #tpu.memory_space<smem>>
    %286 = vector.broadcast %285 : f32 to vector<2x512xf32>
    %287 = arith.mulf %286, %277 : vector<2x512xf32>
    %288 = arith.addf %284, %287 : vector<2x512xf32>
    %c10_199 = arith.constant 10 : index
    %c0_200 = arith.constant 0 : index
    %289 = memref.load %arg1[%c10_199, %c0_200] : memref<14x1xf32, #tpu.memory_space<smem>>
    %290 = vector.broadcast %289 : f32 to vector<8x512xf32>
    %291 = arith.mulf %290, %55 : vector<8x512xf32>
    %292 = arith.addf %169, %288 : vector<2x512xf32>
    %293 = arith.addf %172, %291 : vector<8x512xf32>
    %cst_201 = arith.constant dense<0.000000e+00> : vector<8x512xf32>
    %294 = tpu.matmul %58, %241, %cst_201 {dimension_numbers = #tpu.dot_dimension_numbers<[1], [0], [0], [1], [0, 0, 1, 1], [], []>} : vector<8x2xf32>, vector<2x512xf32>, vector<8x512xf32> -> vector<8x512xf32>
    %cst_202 = arith.constant dense<0.000000e+00> : vector<8x512xf32>
    %295 = tpu.matmul %59, %242, %cst_202 {dimension_numbers = #tpu.dot_dimension_numbers<[1], [0], [0], [1], [0, 0, 1, 1], [], []>} : vector<8x8xf32>, vector<8x512xf32>, vector<8x512xf32> -> vector<8x512xf32>
    %296 = arith.addf %294, %295 : vector<8x512xf32>
    %297 = vector.extract_strided_slice %296 {offsets = [0, 0], sizes = [2, 512], strides = [1, 1]} : vector<8x512xf32> to vector<2x512xf32>
    %c17_i32_203 = arith.constant 17 : i32
    %298 = tpu.dynamic_rotate %297 by %c17_i32_203 dim 1 : vector<2x512xf32>, i32 -> vector<2x512xf32>
    %c0_204 = arith.constant 0 : index
    %c0_205 = arith.constant 0 : index
    %299 = vector.load %arg3[%c0_204, %c0_205] : memref<10x512xf32, #tpu.memory_space<vmem>>, vector<1x512xf32>
    %300 = vector.broadcast %299 : vector<1x512xf32> to vector<2x512xf32>
    %301 = arith.mulf %298, %300 : vector<2x512xf32>
    %c0_206 = arith.constant 0 : index
    %c0_207 = arith.constant 0 : index
    %302 = vector.load %arg7[%c0_206, %c0_207] : memref<32x512xf32, #tpu.memory_space<vmem>>, vector<2x512xf32>
    tpu.vector_store %arg7[%c0_206, %c0_207], %301 {strides = array<i32>} : memref<32x512xf32, #tpu.memory_space<vmem>>, vector<2x512xf32>,
    %c16_i32_208 = arith.constant 16 : i32
    %303 = tpu.dynamic_rotate %297 by %c16_i32_208 dim 1 : vector<2x512xf32>, i32 -> vector<2x512xf32>
    %c1_209 = arith.constant 1 : index
    %c0_210 = arith.constant 0 : index
    %304 = vector.load %arg3[%c1_209, %c0_210] : memref<10x512xf32, #tpu.memory_space<vmem>>, vector<1x512xf32>
    %305 = vector.broadcast %304 : vector<1x512xf32> to vector<2x512xf32>
    %306 = arith.mulf %303, %305 : vector<2x512xf32>
    %c2_211 = arith.constant 2 : index
    %c0_212 = arith.constant 0 : index
    %307 = vector.load %arg7[%c2_211, %c0_212] : memref<32x512xf32, #tpu.memory_space<vmem>>, vector<2x512xf32>
    tpu.vector_store %arg7[%c2_211, %c0_212], %306 {strides = array<i32>} : memref<32x512xf32, #tpu.memory_space<vmem>>, vector<2x512xf32>,
    %c15_i32_213 = arith.constant 15 : i32
    %308 = tpu.dynamic_rotate %297 by %c15_i32_213 dim 1 : vector<2x512xf32>, i32 -> vector<2x512xf32>
    %c2_214 = arith.constant 2 : index
    %c0_215 = arith.constant 0 : index
    %309 = vector.load %arg3[%c2_214, %c0_215] : memref<10x512xf32, #tpu.memory_space<vmem>>, vector<1x512xf32>
    %310 = vector.broadcast %309 : vector<1x512xf32> to vector<2x512xf32>
    %311 = arith.mulf %308, %310 : vector<2x512xf32>
    %c4_216 = arith.constant 4 : index
    %c0_217 = arith.constant 0 : index
    %312 = vector.load %arg7[%c4_216, %c0_217] : memref<32x512xf32, #tpu.memory_space<vmem>>, vector<2x512xf32>
    tpu.vector_store %arg7[%c4_216, %c0_217], %311 {strides = array<i32>} : memref<32x512xf32, #tpu.memory_space<vmem>>, vector<2x512xf32>,
    %c1_i32_218 = arith.constant 1 : i32
    %313 = tpu.dynamic_rotate %297 by %c1_i32_218 dim 1 : vector<2x512xf32>, i32 -> vector<2x512xf32>
    %c3_219 = arith.constant 3 : index
    %c0_220 = arith.constant 0 : index
    %314 = vector.load %arg3[%c3_219, %c0_220] : memref<10x512xf32, #tpu.memory_space<vmem>>, vector<1x512xf32>
    %315 = vector.broadcast %314 : vector<1x512xf32> to vector<2x512xf32>
    %316 = arith.mulf %313, %315 : vector<2x512xf32>
    %c6_221 = arith.constant 6 : index
    %c0_222 = arith.constant 0 : index
    %317 = vector.load %arg7[%c6_221, %c0_222] : memref<32x512xf32, #tpu.memory_space<vmem>>, vector<2x512xf32>
    tpu.vector_store %arg7[%c6_221, %c0_222], %316 {strides = array<i32>} : memref<32x512xf32, #tpu.memory_space<vmem>>, vector<2x512xf32>,
    %c4_223 = arith.constant 4 : index
    %c0_224 = arith.constant 0 : index
    %318 = vector.load %arg3[%c4_223, %c0_224] : memref<10x512xf32, #tpu.memory_space<vmem>>, vector<1x512xf32>
    %319 = vector.broadcast %318 : vector<1x512xf32> to vector<2x512xf32>
    %320 = arith.mulf %297, %319 : vector<2x512xf32>
    %c8_225 = arith.constant 8 : index
    %c0_226 = arith.constant 0 : index
    %321 = vector.load %arg7[%c8_225, %c0_226] : memref<32x512xf32, #tpu.memory_space<vmem>>, vector<2x512xf32>
    tpu.vector_store %arg7[%c8_225, %c0_226], %320 {strides = array<i32>} : memref<32x512xf32, #tpu.memory_space<vmem>>, vector<2x512xf32>,
    %c511_i32_227 = arith.constant 511 : i32
    %322 = tpu.dynamic_rotate %297 by %c511_i32_227 dim 1 : vector<2x512xf32>, i32 -> vector<2x512xf32>
    %c5_228 = arith.constant 5 : index
    %c0_229 = arith.constant 0 : index
    %323 = vector.load %arg3[%c5_228, %c0_229] : memref<10x512xf32, #tpu.memory_space<vmem>>, vector<1x512xf32>
    %324 = vector.broadcast %323 : vector<1x512xf32> to vector<2x512xf32>
    %325 = arith.mulf %322, %324 : vector<2x512xf32>
    %c10_230 = arith.constant 10 : index
    %c0_231 = arith.constant 0 : index
    %326 = vector.load %arg7[%c10_230, %c0_231] : memref<32x512xf32, #tpu.memory_space<vmem>>, vector<2x512xf32>
    tpu.vector_store %arg7[%c10_230, %c0_231], %325 {strides = array<i32>} : memref<32x512xf32, #tpu.memory_space<vmem>>, vector<2x512xf32>,
    %c497_i32_232 = arith.constant 497 : i32
    %327 = tpu.dynamic_rotate %297 by %c497_i32_232 dim 1 : vector<2x512xf32>, i32 -> vector<2x512xf32>
    %c6_233 = arith.constant 6 : index
    %c0_234 = arith.constant 0 : index
    %328 = vector.load %arg3[%c6_233, %c0_234] : memref<10x512xf32, #tpu.memory_space<vmem>>, vector<1x512xf32>
    %329 = vector.broadcast %328 : vector<1x512xf32> to vector<2x512xf32>
    %330 = arith.mulf %327, %329 : vector<2x512xf32>
    %c12_235 = arith.constant 12 : index
    %c0_236 = arith.constant 0 : index
    %331 = vector.load %arg7[%c12_235, %c0_236] : memref<32x512xf32, #tpu.memory_space<vmem>>, vector<2x512xf32>
    tpu.vector_store %arg7[%c12_235, %c0_236], %330 {strides = array<i32>} : memref<32x512xf32, #tpu.memory_space<vmem>>, vector<2x512xf32>,
    %c496_i32_237 = arith.constant 496 : i32
    %332 = tpu.dynamic_rotate %297 by %c496_i32_237 dim 1 : vector<2x512xf32>, i32 -> vector<2x512xf32>
    %c7_238 = arith.constant 7 : index
    %c0_239 = arith.constant 0 : index
    %333 = vector.load %arg3[%c7_238, %c0_239] : memref<10x512xf32, #tpu.memory_space<vmem>>, vector<1x512xf32>
    %334 = vector.broadcast %333 : vector<1x512xf32> to vector<2x512xf32>
    %335 = arith.mulf %332, %334 : vector<2x512xf32>
    %c14_240 = arith.constant 14 : index
    %c0_241 = arith.constant 0 : index
    %336 = vector.load %arg7[%c14_240, %c0_241] : memref<32x512xf32, #tpu.memory_space<vmem>>, vector<2x512xf32>
    tpu.vector_store %arg7[%c14_240, %c0_241], %335 {strides = array<i32>} : memref<32x512xf32, #tpu.memory_space<vmem>>, vector<2x512xf32>,
    %c495_i32_242 = arith.constant 495 : i32
    %337 = tpu.dynamic_rotate %297 by %c495_i32_242 dim 1 : vector<2x512xf32>, i32 -> vector<2x512xf32>
    %c8_243 = arith.constant 8 : index
    %c0_244 = arith.constant 0 : index
    %338 = vector.load %arg3[%c8_243, %c0_244] : memref<10x512xf32, #tpu.memory_space<vmem>>, vector<1x512xf32>
    %339 = vector.broadcast %338 : vector<1x512xf32> to vector<2x512xf32>
    %340 = arith.mulf %337, %339 : vector<2x512xf32>
    %c16_245 = arith.constant 16 : index
    %c0_246 = arith.constant 0 : index
    %341 = vector.load %arg7[%c16_245, %c0_246] : memref<32x512xf32, #tpu.memory_space<vmem>>, vector<2x512xf32>
    tpu.vector_store %arg7[%c16_245, %c0_246], %340 {strides = array<i32>} : memref<32x512xf32, #tpu.memory_space<vmem>>, vector<2x512xf32>,
    %c0_247 = arith.constant 0 : index
    %c0_248 = arith.constant 0 : index
    %342 = vector.load %arg7[%c0_247, %c0_248] : memref<32x512xf32, #tpu.memory_space<vmem>>, vector<32x512xf32>
    %c40 = arith.constant 40 : index
    %c0_249 = arith.constant 0 : index
    %343 = vector.load %arg4[%c40, %c0_249] : memref<108x32xf32, #tpu.memory_space<vmem>>, vector<8x32xf32>
    %cst_250 = arith.constant 0.000000e+00 : f32
    %344 = vector.broadcast %cst_250 : f32 to vector<32x512xf32>
    %345 = arith.maximumf %342, %344 : vector<32x512xf32>
    %cst_251 = arith.constant dense<0.000000e+00> : vector<8x512xf32>
    %346 = tpu.matmul %343, %345, %cst_251 {dimension_numbers = #tpu.dot_dimension_numbers<[1], [0], [0], [1], [0, 0, 1, 1], [], []>} : vector<8x32xf32>, vector<32x512xf32>, vector<8x512xf32> -> vector<8x512xf32>
    %cst_252 = arith.constant dense<0.000000e+00> : vector<2x512xf32>
    %347 = tpu.matmul %57, %342, %cst_252 {dimension_numbers = #tpu.dot_dimension_numbers<[1], [0], [0], [1], [0, 0, 1, 1], [], []>} : vector<2x32xf32>, vector<32x512xf32>, vector<2x512xf32> -> vector<2x512xf32>
    %348 = vector.broadcast %56 : vector<1x512xf32> to vector<2x512xf32>
    %349 = arith.mulf %347, %348 : vector<2x512xf32>
    %350 = vector.extract_strided_slice %346 {offsets = [0, 0], sizes = [2, 512], strides = [1, 1]} : vector<8x512xf32> to vector<2x512xf32>
    %c4_253 = arith.constant 4 : index
    %c1_254 = arith.constant 1 : index
    %351 = memref.load %arg0[%c4_253, %c1_254] : memref<14x4xf32, #tpu.memory_space<smem>>
    %352 = vector.broadcast %351 : f32 to vector<2x512xf32>
    %353 = arith.mulf %352, %297 : vector<2x512xf32>
    %c4_255 = arith.constant 4 : index
    %c2_256 = arith.constant 2 : index
    %354 = memref.load %arg0[%c4_255, %c2_256] : memref<14x4xf32, #tpu.memory_space<smem>>
    %355 = vector.broadcast %354 : f32 to vector<2x512xf32>
    %356 = arith.mulf %355, %349 : vector<2x512xf32>
    %357 = arith.addf %353, %356 : vector<2x512xf32>
    %c4_257 = arith.constant 4 : index
    %c3_258 = arith.constant 3 : index
    %358 = memref.load %arg0[%c4_257, %c3_258] : memref<14x4xf32, #tpu.memory_space<smem>>
    %359 = vector.broadcast %358 : f32 to vector<2x512xf32>
    %360 = arith.mulf %359, %350 : vector<2x512xf32>
    %361 = arith.addf %357, %360 : vector<2x512xf32>
    %c4_259 = arith.constant 4 : index
    %c0_260 = arith.constant 0 : index
    %362 = memref.load %arg1[%c4_259, %c0_260] : memref<14x1xf32, #tpu.memory_space<smem>>
    %363 = vector.broadcast %362 : f32 to vector<8x512xf32>
    %364 = arith.mulf %363, %296 : vector<8x512xf32>
    %365 = arith.addf %258, %361 : vector<2x512xf32>
    %366 = arith.addf %259, %364 : vector<8x512xf32>
    %367 = vector.extract_strided_slice %346 {offsets = [2, 0], sizes = [2, 512], strides = [1, 1]} : vector<8x512xf32> to vector<2x512xf32>
    %c7_261 = arith.constant 7 : index
    %c1_262 = arith.constant 1 : index
    %368 = memref.load %arg0[%c7_261, %c1_262] : memref<14x4xf32, #tpu.memory_space<smem>>
    %369 = vector.broadcast %368 : f32 to vector<2x512xf32>
    %370 = arith.mulf %369, %297 : vector<2x512xf32>
    %c7_263 = arith.constant 7 : index
    %c2_264 = arith.constant 2 : index
    %371 = memref.load %arg0[%c7_263, %c2_264] : memref<14x4xf32, #tpu.memory_space<smem>>
    %372 = vector.broadcast %371 : f32 to vector<2x512xf32>
    %373 = arith.mulf %372, %349 : vector<2x512xf32>
    %374 = arith.addf %370, %373 : vector<2x512xf32>
    %c7_265 = arith.constant 7 : index
    %c3_266 = arith.constant 3 : index
    %375 = memref.load %arg0[%c7_265, %c3_266] : memref<14x4xf32, #tpu.memory_space<smem>>
    %376 = vector.broadcast %375 : f32 to vector<2x512xf32>
    %377 = arith.mulf %376, %367 : vector<2x512xf32>
    %378 = arith.addf %374, %377 : vector<2x512xf32>
    %c7_267 = arith.constant 7 : index
    %c0_268 = arith.constant 0 : index
    %379 = memref.load %arg1[%c7_267, %c0_268] : memref<14x1xf32, #tpu.memory_space<smem>>
    %380 = vector.broadcast %379 : f32 to vector<8x512xf32>
    %381 = arith.mulf %380, %296 : vector<8x512xf32>
    %382 = arith.addf %275, %378 : vector<2x512xf32>
    %383 = arith.addf %276, %381 : vector<8x512xf32>
    %384 = vector.extract_strided_slice %346 {offsets = [4, 0], sizes = [2, 512], strides = [1, 1]} : vector<8x512xf32> to vector<2x512xf32>
    %c11 = arith.constant 11 : index
    %c1_269 = arith.constant 1 : index
    %385 = memref.load %arg0[%c11, %c1_269] : memref<14x4xf32, #tpu.memory_space<smem>>
    %386 = vector.broadcast %385 : f32 to vector<2x512xf32>
    %387 = arith.mulf %386, %297 : vector<2x512xf32>
    %c11_270 = arith.constant 11 : index
    %c2_271 = arith.constant 2 : index
    %388 = memref.load %arg0[%c11_270, %c2_271] : memref<14x4xf32, #tpu.memory_space<smem>>
    %389 = vector.broadcast %388 : f32 to vector<2x512xf32>
    %390 = arith.mulf %389, %349 : vector<2x512xf32>
    %391 = arith.addf %387, %390 : vector<2x512xf32>
    %c11_272 = arith.constant 11 : index
    %c3_273 = arith.constant 3 : index
    %392 = memref.load %arg0[%c11_272, %c3_273] : memref<14x4xf32, #tpu.memory_space<smem>>
    %393 = vector.broadcast %392 : f32 to vector<2x512xf32>
    %394 = arith.mulf %393, %384 : vector<2x512xf32>
    %395 = arith.addf %391, %394 : vector<2x512xf32>
    %c11_274 = arith.constant 11 : index
    %c0_275 = arith.constant 0 : index
    %396 = memref.load %arg1[%c11_274, %c0_275] : memref<14x1xf32, #tpu.memory_space<smem>>
    %397 = vector.broadcast %396 : f32 to vector<8x512xf32>
    %398 = arith.mulf %397, %296 : vector<8x512xf32>
    %399 = arith.addf %292, %395 : vector<2x512xf32>
    %400 = arith.addf %293, %398 : vector<8x512xf32>
    %cst_276 = arith.constant dense<0.000000e+00> : vector<8x512xf32>
    %401 = tpu.matmul %58, %365, %cst_276 {dimension_numbers = #tpu.dot_dimension_numbers<[1], [0], [0], [1], [0, 0, 1, 1], [], []>} : vector<8x2xf32>, vector<2x512xf32>, vector<8x512xf32> -> vector<8x512xf32>
    %cst_277 = arith.constant dense<0.000000e+00> : vector<8x512xf32>
    %402 = tpu.matmul %59, %366, %cst_277 {dimension_numbers = #tpu.dot_dimension_numbers<[1], [0], [0], [1], [0, 0, 1, 1], [], []>} : vector<8x8xf32>, vector<8x512xf32>, vector<8x512xf32> -> vector<8x512xf32>
    %403 = arith.addf %401, %402 : vector<8x512xf32>
    %404 = vector.extract_strided_slice %403 {offsets = [0, 0], sizes = [2, 512], strides = [1, 1]} : vector<8x512xf32> to vector<2x512xf32>
    %c17_i32_278 = arith.constant 17 : i32
    %405 = tpu.dynamic_rotate %404 by %c17_i32_278 dim 1 : vector<2x512xf32>, i32 -> vector<2x512xf32>
    %c0_279 = arith.constant 0 : index
    %c0_280 = arith.constant 0 : index
    %406 = vector.load %arg3[%c0_279, %c0_280] : memref<10x512xf32, #tpu.memory_space<vmem>>, vector<1x512xf32>
    %407 = vector.broadcast %406 : vector<1x512xf32> to vector<2x512xf32>
    %408 = arith.mulf %405, %407 : vector<2x512xf32>
    %c0_281 = arith.constant 0 : index
    %c0_282 = arith.constant 0 : index
    %409 = vector.load %arg7[%c0_281, %c0_282] : memref<32x512xf32, #tpu.memory_space<vmem>>, vector<2x512xf32>
    tpu.vector_store %arg7[%c0_281, %c0_282], %408 {strides = array<i32>} : memref<32x512xf32, #tpu.memory_space<vmem>>, vector<2x512xf32>,
    %c16_i32_283 = arith.constant 16 : i32
    %410 = tpu.dynamic_rotate %404 by %c16_i32_283 dim 1 : vector<2x512xf32>, i32 -> vector<2x512xf32>
    %c1_284 = arith.constant 1 : index
    %c0_285 = arith.constant 0 : index
    %411 = vector.load %arg3[%c1_284, %c0_285] : memref<10x512xf32, #tpu.memory_space<vmem>>, vector<1x512xf32>
    %412 = vector.broadcast %411 : vector<1x512xf32> to vector<2x512xf32>
    %413 = arith.mulf %410, %412 : vector<2x512xf32>
    %c2_286 = arith.constant 2 : index
    %c0_287 = arith.constant 0 : index
    %414 = vector.load %arg7[%c2_286, %c0_287] : memref<32x512xf32, #tpu.memory_space<vmem>>, vector<2x512xf32>
    tpu.vector_store %arg7[%c2_286, %c0_287], %413 {strides = array<i32>} : memref<32x512xf32, #tpu.memory_space<vmem>>, vector<2x512xf32>,
    %c15_i32_288 = arith.constant 15 : i32
    %415 = tpu.dynamic_rotate %404 by %c15_i32_288 dim 1 : vector<2x512xf32>, i32 -> vector<2x512xf32>
    %c2_289 = arith.constant 2 : index
    %c0_290 = arith.constant 0 : index
    %416 = vector.load %arg3[%c2_289, %c0_290] : memref<10x512xf32, #tpu.memory_space<vmem>>, vector<1x512xf32>
    %417 = vector.broadcast %416 : vector<1x512xf32> to vector<2x512xf32>
    %418 = arith.mulf %415, %417 : vector<2x512xf32>
    %c4_291 = arith.constant 4 : index
    %c0_292 = arith.constant 0 : index
    %419 = vector.load %arg7[%c4_291, %c0_292] : memref<32x512xf32, #tpu.memory_space<vmem>>, vector<2x512xf32>
    tpu.vector_store %arg7[%c4_291, %c0_292], %418 {strides = array<i32>} : memref<32x512xf32, #tpu.memory_space<vmem>>, vector<2x512xf32>,
    %c1_i32_293 = arith.constant 1 : i32
    %420 = tpu.dynamic_rotate %404 by %c1_i32_293 dim 1 : vector<2x512xf32>, i32 -> vector<2x512xf32>
    %c3_294 = arith.constant 3 : index
    %c0_295 = arith.constant 0 : index
    %421 = vector.load %arg3[%c3_294, %c0_295] : memref<10x512xf32, #tpu.memory_space<vmem>>, vector<1x512xf32>
    %422 = vector.broadcast %421 : vector<1x512xf32> to vector<2x512xf32>
    %423 = arith.mulf %420, %422 : vector<2x512xf32>
    %c6_296 = arith.constant 6 : index
    %c0_297 = arith.constant 0 : index
    %424 = vector.load %arg7[%c6_296, %c0_297] : memref<32x512xf32, #tpu.memory_space<vmem>>, vector<2x512xf32>
    tpu.vector_store %arg7[%c6_296, %c0_297], %423 {strides = array<i32>} : memref<32x512xf32, #tpu.memory_space<vmem>>, vector<2x512xf32>,
    %c4_298 = arith.constant 4 : index
    %c0_299 = arith.constant 0 : index
    %425 = vector.load %arg3[%c4_298, %c0_299] : memref<10x512xf32, #tpu.memory_space<vmem>>, vector<1x512xf32>
    %426 = vector.broadcast %425 : vector<1x512xf32> to vector<2x512xf32>
    %427 = arith.mulf %404, %426 : vector<2x512xf32>
    %c8_300 = arith.constant 8 : index
    %c0_301 = arith.constant 0 : index
    %428 = vector.load %arg7[%c8_300, %c0_301] : memref<32x512xf32, #tpu.memory_space<vmem>>, vector<2x512xf32>
    tpu.vector_store %arg7[%c8_300, %c0_301], %427 {strides = array<i32>} : memref<32x512xf32, #tpu.memory_space<vmem>>, vector<2x512xf32>,
    %c511_i32_302 = arith.constant 511 : i32
    %429 = tpu.dynamic_rotate %404 by %c511_i32_302 dim 1 : vector<2x512xf32>, i32 -> vector<2x512xf32>
    %c5_303 = arith.constant 5 : index
    %c0_304 = arith.constant 0 : index
    %430 = vector.load %arg3[%c5_303, %c0_304] : memref<10x512xf32, #tpu.memory_space<vmem>>, vector<1x512xf32>
    %431 = vector.broadcast %430 : vector<1x512xf32> to vector<2x512xf32>
    %432 = arith.mulf %429, %431 : vector<2x512xf32>
    %c10_305 = arith.constant 10 : index
    %c0_306 = arith.constant 0 : index
    %433 = vector.load %arg7[%c10_305, %c0_306] : memref<32x512xf32, #tpu.memory_space<vmem>>, vector<2x512xf32>
    tpu.vector_store %arg7[%c10_305, %c0_306], %432 {strides = array<i32>} : memref<32x512xf32, #tpu.memory_space<vmem>>, vector<2x512xf32>,
    %c497_i32_307 = arith.constant 497 : i32
    %434 = tpu.dynamic_rotate %404 by %c497_i32_307 dim 1 : vector<2x512xf32>, i32 -> vector<2x512xf32>
    %c6_308 = arith.constant 6 : index
    %c0_309 = arith.constant 0 : index
    %435 = vector.load %arg3[%c6_308, %c0_309] : memref<10x512xf32, #tpu.memory_space<vmem>>, vector<1x512xf32>
    %436 = vector.broadcast %435 : vector<1x512xf32> to vector<2x512xf32>
    %437 = arith.mulf %434, %436 : vector<2x512xf32>
    %c12_310 = arith.constant 12 : index
    %c0_311 = arith.constant 0 : index
    %438 = vector.load %arg7[%c12_310, %c0_311] : memref<32x512xf32, #tpu.memory_space<vmem>>, vector<2x512xf32>
    tpu.vector_store %arg7[%c12_310, %c0_311], %437 {strides = array<i32>} : memref<32x512xf32, #tpu.memory_space<vmem>>, vector<2x512xf32>,
    %c496_i32_312 = arith.constant 496 : i32
    %439 = tpu.dynamic_rotate %404 by %c496_i32_312 dim 1 : vector<2x512xf32>, i32 -> vector<2x512xf32>
    %c7_313 = arith.constant 7 : index
    %c0_314 = arith.constant 0 : index
    %440 = vector.load %arg3[%c7_313, %c0_314] : memref<10x512xf32, #tpu.memory_space<vmem>>, vector<1x512xf32>
    %441 = vector.broadcast %440 : vector<1x512xf32> to vector<2x512xf32>
    %442 = arith.mulf %439, %441 : vector<2x512xf32>
    %c14_315 = arith.constant 14 : index
    %c0_316 = arith.constant 0 : index
    %443 = vector.load %arg7[%c14_315, %c0_316] : memref<32x512xf32, #tpu.memory_space<vmem>>, vector<2x512xf32>
    tpu.vector_store %arg7[%c14_315, %c0_316], %442 {strides = array<i32>} : memref<32x512xf32, #tpu.memory_space<vmem>>, vector<2x512xf32>,
    %c495_i32_317 = arith.constant 495 : i32
    %444 = tpu.dynamic_rotate %404 by %c495_i32_317 dim 1 : vector<2x512xf32>, i32 -> vector<2x512xf32>
    %c8_318 = arith.constant 8 : index
    %c0_319 = arith.constant 0 : index
    %445 = vector.load %arg3[%c8_318, %c0_319] : memref<10x512xf32, #tpu.memory_space<vmem>>, vector<1x512xf32>
    %446 = vector.broadcast %445 : vector<1x512xf32> to vector<2x512xf32>
    %447 = arith.mulf %444, %446 : vector<2x512xf32>
    %c16_320 = arith.constant 16 : index
    %c0_321 = arith.constant 0 : index
    %448 = vector.load %arg7[%c16_320, %c0_321] : memref<32x512xf32, #tpu.memory_space<vmem>>, vector<2x512xf32>
    tpu.vector_store %arg7[%c16_320, %c0_321], %447 {strides = array<i32>} : memref<32x512xf32, #tpu.memory_space<vmem>>, vector<2x512xf32>,
    %c0_322 = arith.constant 0 : index
    %c0_323 = arith.constant 0 : index
    %449 = vector.load %arg7[%c0_322, %c0_323] : memref<32x512xf32, #tpu.memory_space<vmem>>, vector<32x512xf32>
    %c48 = arith.constant 48 : index
    %c0_324 = arith.constant 0 : index
    %450 = vector.load %arg4[%c48, %c0_324] : memref<108x32xf32, #tpu.memory_space<vmem>>, vector<8x32xf32>
    %cst_325 = arith.constant 0.000000e+00 : f32
    %451 = vector.broadcast %cst_325 : f32 to vector<32x512xf32>
    %452 = arith.maximumf %449, %451 : vector<32x512xf32>
    %cst_326 = arith.constant dense<0.000000e+00> : vector<8x512xf32>
    %453 = tpu.matmul %450, %452, %cst_326 {dimension_numbers = #tpu.dot_dimension_numbers<[1], [0], [0], [1], [0, 0, 1, 1], [], []>} : vector<8x32xf32>, vector<32x512xf32>, vector<8x512xf32> -> vector<8x512xf32>
    %cst_327 = arith.constant dense<0.000000e+00> : vector<2x512xf32>
    %454 = tpu.matmul %57, %449, %cst_327 {dimension_numbers = #tpu.dot_dimension_numbers<[1], [0], [0], [1], [0, 0, 1, 1], [], []>} : vector<2x32xf32>, vector<32x512xf32>, vector<2x512xf32> -> vector<2x512xf32>
    %455 = vector.broadcast %56 : vector<1x512xf32> to vector<2x512xf32>
    %456 = arith.mulf %454, %455 : vector<2x512xf32>
    %457 = vector.extract_strided_slice %453 {offsets = [0, 0], sizes = [2, 512], strides = [1, 1]} : vector<8x512xf32> to vector<2x512xf32>
    %c8_328 = arith.constant 8 : index
    %c1_329 = arith.constant 1 : index
    %458 = memref.load %arg0[%c8_328, %c1_329] : memref<14x4xf32, #tpu.memory_space<smem>>
    %459 = vector.broadcast %458 : f32 to vector<2x512xf32>
    %460 = arith.mulf %459, %404 : vector<2x512xf32>
    %c8_330 = arith.constant 8 : index
    %c2_331 = arith.constant 2 : index
    %461 = memref.load %arg0[%c8_330, %c2_331] : memref<14x4xf32, #tpu.memory_space<smem>>
    %462 = vector.broadcast %461 : f32 to vector<2x512xf32>
    %463 = arith.mulf %462, %456 : vector<2x512xf32>
    %464 = arith.addf %460, %463 : vector<2x512xf32>
    %c8_332 = arith.constant 8 : index
    %c3_333 = arith.constant 3 : index
    %465 = memref.load %arg0[%c8_332, %c3_333] : memref<14x4xf32, #tpu.memory_space<smem>>
    %466 = vector.broadcast %465 : f32 to vector<2x512xf32>
    %467 = arith.mulf %466, %457 : vector<2x512xf32>
    %468 = arith.addf %464, %467 : vector<2x512xf32>
    %c8_334 = arith.constant 8 : index
    %c0_335 = arith.constant 0 : index
    %469 = memref.load %arg1[%c8_334, %c0_335] : memref<14x1xf32, #tpu.memory_space<smem>>
    %470 = vector.broadcast %469 : f32 to vector<8x512xf32>
    %471 = arith.mulf %470, %403 : vector<8x512xf32>
    %472 = arith.addf %382, %468 : vector<2x512xf32>
    %473 = arith.addf %383, %471 : vector<8x512xf32>
    %474 = vector.extract_strided_slice %453 {offsets = [2, 0], sizes = [2, 512], strides = [1, 1]} : vector<8x512xf32> to vector<2x512xf32>
    %c12_336 = arith.constant 12 : index
    %c1_337 = arith.constant 1 : index
    %475 = memref.load %arg0[%c12_336, %c1_337] : memref<14x4xf32, #tpu.memory_space<smem>>
    %476 = vector.broadcast %475 : f32 to vector<2x512xf32>
    %477 = arith.mulf %476, %404 : vector<2x512xf32>
    %c12_338 = arith.constant 12 : index
    %c2_339 = arith.constant 2 : index
    %478 = memref.load %arg0[%c12_338, %c2_339] : memref<14x4xf32, #tpu.memory_space<smem>>
    %479 = vector.broadcast %478 : f32 to vector<2x512xf32>
    %480 = arith.mulf %479, %456 : vector<2x512xf32>
    %481 = arith.addf %477, %480 : vector<2x512xf32>
    %c12_340 = arith.constant 12 : index
    %c3_341 = arith.constant 3 : index
    %482 = memref.load %arg0[%c12_340, %c3_341] : memref<14x4xf32, #tpu.memory_space<smem>>
    %483 = vector.broadcast %482 : f32 to vector<2x512xf32>
    %484 = arith.mulf %483, %474 : vector<2x512xf32>
    %485 = arith.addf %481, %484 : vector<2x512xf32>
    %c12_342 = arith.constant 12 : index
    %c0_343 = arith.constant 0 : index
    %486 = memref.load %arg1[%c12_342, %c0_343] : memref<14x1xf32, #tpu.memory_space<smem>>
    %487 = vector.broadcast %486 : f32 to vector<8x512xf32>
    %488 = arith.mulf %487, %403 : vector<8x512xf32>
    %489 = arith.addf %399, %485 : vector<2x512xf32>
    %490 = arith.addf %400, %488 : vector<8x512xf32>
    %cst_344 = arith.constant dense<0.000000e+00> : vector<8x512xf32>
    %491 = tpu.matmul %58, %472, %cst_344 {dimension_numbers = #tpu.dot_dimension_numbers<[1], [0], [0], [1], [0, 0, 1, 1], [], []>} : vector<8x2xf32>, vector<2x512xf32>, vector<8x512xf32> -> vector<8x512xf32>
    %cst_345 = arith.constant dense<0.000000e+00> : vector<8x512xf32>
    %492 = tpu.matmul %59, %473, %cst_345 {dimension_numbers = #tpu.dot_dimension_numbers<[1], [0], [0], [1], [0, 0, 1, 1], [], []>} : vector<8x8xf32>, vector<8x512xf32>, vector<8x512xf32> -> vector<8x512xf32>
    %493 = arith.addf %491, %492 : vector<8x512xf32>
    %494 = vector.extract_strided_slice %493 {offsets = [0, 0], sizes = [2, 512], strides = [1, 1]} : vector<8x512xf32> to vector<2x512xf32>
    %c17_i32_346 = arith.constant 17 : i32
    %495 = tpu.dynamic_rotate %494 by %c17_i32_346 dim 1 : vector<2x512xf32>, i32 -> vector<2x512xf32>
    %c0_347 = arith.constant 0 : index
    %c0_348 = arith.constant 0 : index
    %496 = vector.load %arg3[%c0_347, %c0_348] : memref<10x512xf32, #tpu.memory_space<vmem>>, vector<1x512xf32>
    %497 = vector.broadcast %496 : vector<1x512xf32> to vector<2x512xf32>
    %498 = arith.mulf %495, %497 : vector<2x512xf32>
    %c0_349 = arith.constant 0 : index
    %c0_350 = arith.constant 0 : index
    %499 = vector.load %arg7[%c0_349, %c0_350] : memref<32x512xf32, #tpu.memory_space<vmem>>, vector<2x512xf32>
    tpu.vector_store %arg7[%c0_349, %c0_350], %498 {strides = array<i32>} : memref<32x512xf32, #tpu.memory_space<vmem>>, vector<2x512xf32>,
    %c16_i32_351 = arith.constant 16 : i32
    %500 = tpu.dynamic_rotate %494 by %c16_i32_351 dim 1 : vector<2x512xf32>, i32 -> vector<2x512xf32>
    %c1_352 = arith.constant 1 : index
    %c0_353 = arith.constant 0 : index
    %501 = vector.load %arg3[%c1_352, %c0_353] : memref<10x512xf32, #tpu.memory_space<vmem>>, vector<1x512xf32>
    %502 = vector.broadcast %501 : vector<1x512xf32> to vector<2x512xf32>
    %503 = arith.mulf %500, %502 : vector<2x512xf32>
    %c2_354 = arith.constant 2 : index
    %c0_355 = arith.constant 0 : index
    %504 = vector.load %arg7[%c2_354, %c0_355] : memref<32x512xf32, #tpu.memory_space<vmem>>, vector<2x512xf32>
    tpu.vector_store %arg7[%c2_354, %c0_355], %503 {strides = array<i32>} : memref<32x512xf32, #tpu.memory_space<vmem>>, vector<2x512xf32>,
    %c15_i32_356 = arith.constant 15 : i32
    %505 = tpu.dynamic_rotate %494 by %c15_i32_356 dim 1 : vector<2x512xf32>, i32 -> vector<2x512xf32>
    %c2_357 = arith.constant 2 : index
    %c0_358 = arith.constant 0 : index
    %506 = vector.load %arg3[%c2_357, %c0_358] : memref<10x512xf32, #tpu.memory_space<vmem>>, vector<1x512xf32>
    %507 = vector.broadcast %506 : vector<1x512xf32> to vector<2x512xf32>
    %508 = arith.mulf %505, %507 : vector<2x512xf32>
    %c4_359 = arith.constant 4 : index
    %c0_360 = arith.constant 0 : index
    %509 = vector.load %arg7[%c4_359, %c0_360] : memref<32x512xf32, #tpu.memory_space<vmem>>, vector<2x512xf32>
    tpu.vector_store %arg7[%c4_359, %c0_360], %508 {strides = array<i32>} : memref<32x512xf32, #tpu.memory_space<vmem>>, vector<2x512xf32>,
    %c1_i32_361 = arith.constant 1 : i32
    %510 = tpu.dynamic_rotate %494 by %c1_i32_361 dim 1 : vector<2x512xf32>, i32 -> vector<2x512xf32>
    %c3_362 = arith.constant 3 : index
    %c0_363 = arith.constant 0 : index
    %511 = vector.load %arg3[%c3_362, %c0_363] : memref<10x512xf32, #tpu.memory_space<vmem>>, vector<1x512xf32>
    %512 = vector.broadcast %511 : vector<1x512xf32> to vector<2x512xf32>
    %513 = arith.mulf %510, %512 : vector<2x512xf32>
    %c6_364 = arith.constant 6 : index
    %c0_365 = arith.constant 0 : index
    %514 = vector.load %arg7[%c6_364, %c0_365] : memref<32x512xf32, #tpu.memory_space<vmem>>, vector<2x512xf32>
    tpu.vector_store %arg7[%c6_364, %c0_365], %513 {strides = array<i32>} : memref<32x512xf32, #tpu.memory_space<vmem>>, vector<2x512xf32>,
    %c4_366 = arith.constant 4 : index
    %c0_367 = arith.constant 0 : index
    %515 = vector.load %arg3[%c4_366, %c0_367] : memref<10x512xf32, #tpu.memory_space<vmem>>, vector<1x512xf32>
    %516 = vector.broadcast %515 : vector<1x512xf32> to vector<2x512xf32>
    %517 = arith.mulf %494, %516 : vector<2x512xf32>
    %c8_368 = arith.constant 8 : index
    %c0_369 = arith.constant 0 : index
    %518 = vector.load %arg7[%c8_368, %c0_369] : memref<32x512xf32, #tpu.memory_space<vmem>>, vector<2x512xf32>
    tpu.vector_store %arg7[%c8_368, %c0_369], %517 {strides = array<i32>} : memref<32x512xf32, #tpu.memory_space<vmem>>, vector<2x512xf32>,
    %c511_i32_370 = arith.constant 511 : i32
    %519 = tpu.dynamic_rotate %494 by %c511_i32_370 dim 1 : vector<2x512xf32>, i32 -> vector<2x512xf32>
    %c5_371 = arith.constant 5 : index
    %c0_372 = arith.constant 0 : index
    %520 = vector.load %arg3[%c5_371, %c0_372] : memref<10x512xf32, #tpu.memory_space<vmem>>, vector<1x512xf32>
    %521 = vector.broadcast %520 : vector<1x512xf32> to vector<2x512xf32>
    %522 = arith.mulf %519, %521 : vector<2x512xf32>
    %c10_373 = arith.constant 10 : index
    %c0_374 = arith.constant 0 : index
    %523 = vector.load %arg7[%c10_373, %c0_374] : memref<32x512xf32, #tpu.memory_space<vmem>>, vector<2x512xf32>
    tpu.vector_store %arg7[%c10_373, %c0_374], %522 {strides = array<i32>} : memref<32x512xf32, #tpu.memory_space<vmem>>, vector<2x512xf32>,
    %c497_i32_375 = arith.constant 497 : i32
    %524 = tpu.dynamic_rotate %494 by %c497_i32_375 dim 1 : vector<2x512xf32>, i32 -> vector<2x512xf32>
    %c6_376 = arith.constant 6 : index
    %c0_377 = arith.constant 0 : index
    %525 = vector.load %arg3[%c6_376, %c0_377] : memref<10x512xf32, #tpu.memory_space<vmem>>, vector<1x512xf32>
    %526 = vector.broadcast %525 : vector<1x512xf32> to vector<2x512xf32>
    %527 = arith.mulf %524, %526 : vector<2x512xf32>
    %c12_378 = arith.constant 12 : index
    %c0_379 = arith.constant 0 : index
    %528 = vector.load %arg7[%c12_378, %c0_379] : memref<32x512xf32, #tpu.memory_space<vmem>>, vector<2x512xf32>
    tpu.vector_store %arg7[%c12_378, %c0_379], %527 {strides = array<i32>} : memref<32x512xf32, #tpu.memory_space<vmem>>, vector<2x512xf32>,
    %c496_i32_380 = arith.constant 496 : i32
    %529 = tpu.dynamic_rotate %494 by %c496_i32_380 dim 1 : vector<2x512xf32>, i32 -> vector<2x512xf32>
    %c7_381 = arith.constant 7 : index
    %c0_382 = arith.constant 0 : index
    %530 = vector.load %arg3[%c7_381, %c0_382] : memref<10x512xf32, #tpu.memory_space<vmem>>, vector<1x512xf32>
    %531 = vector.broadcast %530 : vector<1x512xf32> to vector<2x512xf32>
    %532 = arith.mulf %529, %531 : vector<2x512xf32>
    %c14_383 = arith.constant 14 : index
    %c0_384 = arith.constant 0 : index
    %533 = vector.load %arg7[%c14_383, %c0_384] : memref<32x512xf32, #tpu.memory_space<vmem>>, vector<2x512xf32>
    tpu.vector_store %arg7[%c14_383, %c0_384], %532 {strides = array<i32>} : memref<32x512xf32, #tpu.memory_space<vmem>>, vector<2x512xf32>,
    %c495_i32_385 = arith.constant 495 : i32
    %534 = tpu.dynamic_rotate %494 by %c495_i32_385 dim 1 : vector<2x512xf32>, i32 -> vector<2x512xf32>
    %c8_386 = arith.constant 8 : index
    %c0_387 = arith.constant 0 : index
    %535 = vector.load %arg3[%c8_386, %c0_387] : memref<10x512xf32, #tpu.memory_space<vmem>>, vector<1x512xf32>
    %536 = vector.broadcast %535 : vector<1x512xf32> to vector<2x512xf32>
    %537 = arith.mulf %534, %536 : vector<2x512xf32>
    %c16_388 = arith.constant 16 : index
    %c0_389 = arith.constant 0 : index
    %538 = vector.load %arg7[%c16_388, %c0_389] : memref<32x512xf32, #tpu.memory_space<vmem>>, vector<2x512xf32>
    tpu.vector_store %arg7[%c16_388, %c0_389], %537 {strides = array<i32>} : memref<32x512xf32, #tpu.memory_space<vmem>>, vector<2x512xf32>,
    %c0_390 = arith.constant 0 : index
    %c0_391 = arith.constant 0 : index
    %539 = vector.load %arg7[%c0_390, %c0_391] : memref<32x512xf32, #tpu.memory_space<vmem>>, vector<32x512xf32>
    %c56 = arith.constant 56 : index
    %c0_392 = arith.constant 0 : index
    %540 = vector.load %arg4[%c56, %c0_392] : memref<108x32xf32, #tpu.memory_space<vmem>>, vector<8x32xf32>
    %cst_393 = arith.constant 0.000000e+00 : f32
    %541 = vector.broadcast %cst_393 : f32 to vector<32x512xf32>
    %542 = arith.maximumf %539, %541 : vector<32x512xf32>
    %cst_394 = arith.constant dense<0.000000e+00> : vector<8x512xf32>
    %543 = tpu.matmul %540, %542, %cst_394 {dimension_numbers = #tpu.dot_dimension_numbers<[1], [0], [0], [1], [0, 0, 1, 1], [], []>} : vector<8x32xf32>, vector<32x512xf32>, vector<8x512xf32> -> vector<8x512xf32>
    %cst_395 = arith.constant dense<0.000000e+00> : vector<2x512xf32>
    %544 = tpu.matmul %57, %539, %cst_395 {dimension_numbers = #tpu.dot_dimension_numbers<[1], [0], [0], [1], [0, 0, 1, 1], [], []>} : vector<2x32xf32>, vector<32x512xf32>, vector<2x512xf32> -> vector<2x512xf32>
    %545 = vector.broadcast %56 : vector<1x512xf32> to vector<2x512xf32>
    %546 = arith.mulf %544, %545 : vector<2x512xf32>
    %547 = vector.extract_strided_slice %543 {offsets = [0, 0], sizes = [2, 512], strides = [1, 1]} : vector<8x512xf32> to vector<2x512xf32>
    %c13 = arith.constant 13 : index
    %c1_396 = arith.constant 1 : index
    %548 = memref.load %arg0[%c13, %c1_396] : memref<14x4xf32, #tpu.memory_space<smem>>
    %549 = vector.broadcast %548 : f32 to vector<2x512xf32>
    %550 = arith.mulf %549, %494 : vector<2x512xf32>
    %c13_397 = arith.constant 13 : index
    %c2_398 = arith.constant 2 : index
    %551 = memref.load %arg0[%c13_397, %c2_398] : memref<14x4xf32, #tpu.memory_space<smem>>
    %552 = vector.broadcast %551 : f32 to vector<2x512xf32>
    %553 = arith.mulf %552, %546 : vector<2x512xf32>
    %554 = arith.addf %550, %553 : vector<2x512xf32>
    %c13_399 = arith.constant 13 : index
    %c3_400 = arith.constant 3 : index
    %555 = memref.load %arg0[%c13_399, %c3_400] : memref<14x4xf32, #tpu.memory_space<smem>>
    %556 = vector.broadcast %555 : f32 to vector<2x512xf32>
    %557 = arith.mulf %556, %547 : vector<2x512xf32>
    %558 = arith.addf %554, %557 : vector<2x512xf32>
    %c13_401 = arith.constant 13 : index
    %c0_402 = arith.constant 0 : index
    %559 = memref.load %arg1[%c13_401, %c0_402] : memref<14x1xf32, #tpu.memory_space<smem>>
    %560 = vector.broadcast %559 : f32 to vector<8x512xf32>
    %561 = arith.mulf %560, %493 : vector<8x512xf32>
    %562 = arith.addf %489, %558 : vector<2x512xf32>
    %563 = arith.addf %490, %561 : vector<8x512xf32>
    %cst_403 = arith.constant dense<0.000000e+00> : vector<8x512xf32>
    %564 = tpu.matmul %58, %562, %cst_403 {dimension_numbers = #tpu.dot_dimension_numbers<[1], [0], [0], [1], [0, 0, 1, 1], [], []>} : vector<8x2xf32>, vector<2x512xf32>, vector<8x512xf32> -> vector<8x512xf32>
    %cst_404 = arith.constant dense<0.000000e+00> : vector<8x512xf32>
    %565 = tpu.matmul %59, %563, %cst_404 {dimension_numbers = #tpu.dot_dimension_numbers<[1], [0], [0], [1], [0, 0, 1, 1], [], []>} : vector<8x8xf32>, vector<8x512xf32>, vector<8x512xf32> -> vector<8x512xf32>
    %566 = arith.addf %564, %565 : vector<8x512xf32>
    %567 = tpu.concatenate %296, %403, %493, %566 in 0 : vector<8x512xf32>, vector<8x512xf32>, vector<8x512xf32>, vector<8x512xf32> -> vector<32x512xf32>
    %c0_405 = arith.constant 0 : index
    %c0_406 = arith.constant 0 : index
    %568 = vector.load %arg5[%c0_405, %c0_406] : memref<512x2xf32, #tpu.memory_space<vmem>>, vector<512x2xf32>
    %cst_407 = arith.constant dense<0.000000e+00> : vector<32x2xf32>
    %569 = tpu.matmul %567, %568, %cst_407 {dimension_numbers = #tpu.dot_dimension_numbers<[1], [0], [0], [1], [0, 0, 1, 1], [], []>} : vector<32x512xf32>, vector<512x2xf32>, vector<32x2xf32> -> vector<32x2xf32>
    %c88 = arith.constant 88 : index
    %c0_408 = arith.constant 0 : index
    %570 = vector.load %arg4[%c88, %c0_408] : memref<108x32xf32, #tpu.memory_space<vmem>>, vector<10x32xf32>
    %cst_409 = arith.constant dense<0.000000e+00> : vector<10x2xf32>
    %571 = tpu.matmul %570, %569, %cst_409 {dimension_numbers = #tpu.dot_dimension_numbers<[1], [0], [0], [1], [0, 0, 1, 1], [], []>} : vector<10x32xf32>, vector<32x2xf32>, vector<10x2xf32> -> vector<10x2xf32>
    %c98 = arith.constant 98 : index
    %c0_410 = arith.constant 0 : index
    %572 = vector.load %arg4[%c98, %c0_410] : memref<108x32xf32, #tpu.memory_space<vmem>>, vector<10x1xf32>
    %573 = vector.broadcast %572 : vector<10x1xf32> to vector<10x2xf32>
    %574 = arith.addf %571, %573 : vector<10x2xf32>
    %c0_411 = arith.constant 0 : index
    %c0_412 = arith.constant 0 : index
    %575 = vector.load %arg6[%c0_411, %c0_412] : memref<10x2xf32, #tpu.memory_space<vmem>>, vector<10x2xf32>
    tpu.vector_store %arg6[%c0_411, %c0_412], %574 {strides = array<i32>} : memref<10x2xf32, #tpu.memory_space<vmem>>, vector<10x2xf32>,
    return
  }
}

</mosaic_0001>

<bundles_post_ra>
// kernel: controller_forward.2
= control target key start
LH: loop header
LB: loop body
LE: loop exit
PB: predicated region body
PF: predicated region fallthrough
CT: control target
= control target key end

     0   :  { %v214_v0 = vmov 0   ;;  %vm18_vm2 = vcmask 31744   ;;  %vm22_vm3 = vcmask 29696   ;;  %vm168_vm12 = vcmask 7168   ;;  %s304_s1 = inlined_call_operand.vmem [shape: f32[14,1], index: 1, kind: input, shape index: {}]   ;;  %s305_s2 = inlined_call_operand.vmem [shape: f32[14,4], index: 2, kind: input, shape index: {}]   ;;  %s306_s0 = inlined_call_operand.vmem [shape: f32[14,4], index: 0, kind: input, shape index: {}]   ;;  %s307_s4 = inlined_call_operand.vmem [shape: f32[14,1], index: 4, kind: output, shape index: {1}]   ;;  %s308_s3 = inlined_call_operand.vmem [shape: f32[14,4], index: 3, kind: output, shape index: {0}]  }
   0x1   :  { %195 = vset.pattern.permute.xlu0 %v214_v0  ;;  %v68_v1 = vld [vmem:[%s304_s1] sm:$0xff]  ;;  %196 = vset.pattern.permute.xlu2 %v214_v0  ;;  %v69_v2 = vld [vmem:[%s304_s1 + $0x8] sm:$0x3f]  ;;  %vm170_vm13 = vcmask 5120  }
   0x2   :  { %76 = vperm.xlu0 %195, %v68_v1   ;;  %197 = vset.pattern.permute.xlu1 %v214_v0  ;;  %v70_v4 = vld [vmem:[%s305_s2] sm:$0xff]  ;;  %v71_v5 = vld [vmem:[%s305_s2 + $0x8] sm:$0x3f] }
   0x3   :  { %vm72_vm0 = vcmp.gt.f32.partialorder %v70_v4, 0.0  ;;  %vm73_vm1 = vcmp.gt.f32.partialorder %v71_v5, 0.0  ;;  %v16_v22 = vld [vmem:[%s306_s0] sm:$0xff]  ;;  %v17_v24 = vld [vmem:[%s306_s0 + $0x8] sm:$0x3f] }
   0x4   :  { %v19_v23 = vsel %vm18_vm2, %v16_v22, -inf  ;;  %v23_v25 = vsel %vm22_vm3, %v17_v24, -inf }
   0xa   :  { %81 = vperm.xlu0 %195, %v69_v2  }
  0x34   :  { %20 = vmax.xlane.f32.xlu0 %v19_v23 }
  0x74   :  { %v77_v3 = vpop.permute.xlu0 %76 }
  0x75   :  { %v84_v6 = vsel %vm72_vm0, %v77_v3, -1e+30 }
  0x76   :  { %v86_v9 = vsel %vm18_vm2, %v84_v6, -inf }
  0x7c   :  { %v82_v7 = vpop.permute.xlu0 %81 }
  0x7d   :  { %v85_v8 = vsel %vm73_vm1, %v82_v7, -1e+30 }
  0x7e   :  { %v87_v10 = vsel %vm22_vm3, %v85_v8, -inf }
  0x7f   :  { %v88_v11 = vmax.f32 %v86_v9, %v87_v10 }
  0x81   :  { %v89_v12 = vrot.slane %v88_v11, 4 }
  0x83   :  { %v90_v13 = vmax.f32 %v88_v11, %v89_v12 }
  0x85   :  { %v91_v14 = vrot.slane %v90_v13, 2 }
  0x87   :  { %v92_v15 = vmax.f32 %v90_v13, %v91_v14 }
  0x89   :  { %v93_v16 = vrot.slane %v92_v15, 1 }
  0x8b   :  { %v94_v17 = vmax.f32 %v92_v15, %v93_v16 }
  0x8d   :  { %v95_v18 = vmul.f32 %v94_v17, %v70_v4  ;;  %v96_v20 = vmul.f32 %v94_v17, %v71_v5 }
  0x8f   :  { %v97_v19 = vsel %vm18_vm2, %v95_v18, 0.0  ;;  %v100_v21 = vsel %vm22_vm3, %v96_v20, 0.0 }
  0x90   :  { %98 = vadd.xlane.f32.xlu1 %v97_v19 }
  0x98   :  { %101 = vadd.xlane.f32.xlu1 %v100_v21 }
  0xa0   :  { %24 = vmax.xlane.f32.xlu1 %v23_v25 }
  0xa7   :  { %v21_v42 = vpop.xlane.xlu0 %20 }
  0xa8   :  { %v26_v44 = vsub.f32 %v16_v22, %v21_v42 }
  0xaa   :  { %v28_v47 = vmul.f32 1.442695, %v26_v44 }
 0x103   :  { %v99_v26 = vpop.xlane.xlu1 %98 }
 0x104   :  { %v103_v27 = vsub.f32 %v68_v1, %v99_v26 }
 0x106   :  { %v105_v28 = vmul.f32 1.442695, %v103_v27 }
 0x108   :  { %198 = vpow2.f32 %v105_v28 }
 0x10b   :  { %v102_v29 = vpop.xlane.xlu1 %101 }
 0x10c   :  { %v104_v30 = vsub.f32 %v69_v2, %v102_v29 }
 0x10e   :  { %v266_v31 = vpop.eup %198  ;;  %v107_v32 = vmul.f32 1.442695, %v104_v30 }
 0x10f   :  { %111 = vperm.xlu2 %196, %v266_v31  }
 0x110   :  { %200 = vpow2.f32 %v107_v32 }
 0x111   :  { %202 = vpow2.f32 %v28_v47 }
 0x113   :  { %v25_v49 = vpop.xlane.xlu1 %24 }
 0x114   :  { %v27_v51 = vsub.f32 %v17_v24, %v25_v49 }
 0x116   :  { %v269_v33 = vpop.eup %200  ;;  %v30_v56 = vmul.f32 1.442695, %v27_v51 }
 0x117   :  { %116 = vperm.xlu2 %196, %v269_v33   ;;  %v278_v57 = vpop.eup %202 }
 0x118   :  { %204 = vpow2.f32 %v30_v56  ;;  %v32_v58 = vsel %vm18_vm2, %v278_v57, 0.0 }
 0x11e   :  { %v282_v59 = vpop.eup %204 }
 0x11f   :  { %v35_v60 = vsel %vm22_vm3, %v282_v59, 0.0 }
 0x169   :  { %v112_v34 = vpop.permute.xlu2 %111 }
 0x16a   :  { %v119_v35 = vsel %vm72_vm0, %v112_v34, 0.0 }
 0x16b   :  { %v121_v38 = vsel %vm18_vm2, %v119_v35, 0.0 }
 0x171   :  { %v117_v36 = vpop.permute.xlu2 %116 }
 0x172   :  { %v120_v37 = vsel %vm73_vm1, %v117_v36, 0.0 }
 0x173   :  { %v122_v39 = vsel %vm22_vm3, %v120_v37, 0.0 }
 0x174   :  { %v123_v40 = vadd.f32 %v122_v39, %v121_v38 }
 0x176   :  { %v124_v41 = vrot.slane %v123_v40, 4 }
 0x178   :  { %v125_v43 = vadd.f32 %v124_v41, %v123_v40 }
 0x17a   :  { %v126_v45 = vrot.slane %v125_v43, 2 }
 0x17c   :  { %v127_v46 = vadd.f32 %v126_v45, %v125_v43 }
 0x17e   :  { %v128_v48 = vrot.slane %v127_v46, 1 }
 0x180   :  { %v129_v50 = vadd.f32 %v128_v48, %v127_v46 }
 0x182   :  { %v130_v52 = vmul.f32 %v129_v50, %v70_v4  ;;  %v131_v53 = vmul.f32 %v129_v50, %v71_v5 }
 0x184   :  { %v132_v54 = vsel %vm18_vm2, %v130_v52, 0.0  ;;  %v135_v55 = vsel %vm22_vm3, %v131_v53, 0.0 }
 0x185   :  { %133 = vadd.xlane.f32.xlu2 %v132_v54  ;;  %136 = vadd.xlane.f32.xlu1 %v135_v55 }
 0x18d   :  { %33 = vadd.xlane.f32.xlu1 %v32_v58 }
 0x195   :  { %36 = vadd.xlane.f32.xlu1 %v35_v60 }
 0x1f8   :  { %v134_v61 = vpop.xlane.xlu2 %133  ;;  %v137_v62 = vpop.xlane.xlu1 %136 }
 0x1f9   :  { %206 = vrcp.f32 %v134_v61  ;;  %v149_v4 = vand.u32 2147483648, %v134_v61  ;;  %v164_v7 = vand.u32 2147483648, %v137_v62  ;;  %v147_v8 = vand.u32 2147483647, %v134_v61 }
 0x1fa   :  { %208 = vrcp.f32 %v137_v62  ;;  %v162_v10 = vand.u32 2147483647, %v137_v62  ;;  %vm143_vm6 = vweird.f32 %v134_v61  ;;  %vm158_vm7 = vweird.f32 %v137_v62 }
 0x1fb   :  { %v150_v12 = vor.u32 1.1754944e-38, %v149_v4  ;;  %v165_v14 = vor.u32 1.1754944e-38, %v164_v7  ;;  %vm148_vm10 = vcmp.eq.f32.partialorder %v147_v8, 8.507059e+37 }
 0x1fc   :  { %vm163_vm11 = vcmp.eq.f32.partialorder %v162_v10, 8.507059e+37 }
 0x1ff   :  { %v207_v63 = vpop.eup %206 }
 0x200   :  { %v209_v0 = vpop.eup %208  ;;  %v139_v1 = vmul.f32 %v207_v63, %v134_v61  ;;  %vm144_vm4 = vweird.f32 %v207_v63  ;;  %v34_v21 = vpop.xlane.xlu1 %33 }
 0x201   :  { %v154_v2 = vmul.f32 %v209_v0, %v137_v62  ;;  %vm159_vm5 = vweird.f32 %v209_v0  ;;  %vm145_vm8 = vmor %vm143_vm6, %vm144_vm4  ;;  %vm43_vm4 = vweird.f32 %v34_v21  ;;  %v49_v40 = vand.u32 2147483648, %v34_v21 }
 0x202   :  { %v140_v3 = vsub.f32 1.0, %v139_v1  ;;  %vm160_vm9 = vmor %vm158_vm7, %vm159_vm5  ;;  %v47_v42 = vand.u32 2147483647, %v34_v21 }
 0x203   :  { %v155_v5 = vsub.f32 1.0, %v154_v2  ;;  %v50_v43 = vor.u32 1.1754944e-38, %v49_v40 }
 0x204   :  { %v141_v6 = vmul.f32 %v207_v63, %v140_v3  ;;  %vm48_vm7 = vcmp.eq.f32.partialorder %v47_v42, 8.507059e+37 }
 0x205   :  { %v156_v9 = vmul.f32 %v209_v0, %v155_v5 }
 0x206   :  { %v142_v11 = vadd.f32 %v207_v63, %v141_v6 }
 0x207   :  { %v157_v13 = vadd.f32 %v209_v0, %v156_v9 }
 0x208   :  { %v146_v15 = vsel %vm145_vm8, %v207_v63, %v142_v11  ;;  %v37_v22 = vpop.xlane.xlu1 %36 }
 0x209   :  { %v161_v16 = vsel %vm160_vm9, %v209_v0, %v157_v13  ;;  %v151_v17 = vsel %vm148_vm10, %v150_v12, %v146_v15  ;;  %210 = vrcp.f32 %v37_v22  ;;  %vm58_vm14 = vweird.f32 %v37_v22 }
 0x20a   :  { %v166_v18 = vsel %vm163_vm11, %v165_v14, %v161_v16  ;;  %v152_v19 = vmul.f32 %v266_v31, %v151_v17  ;;  %v64_v27 = vand.u32 2147483648, %v37_v22  ;;  %v62_v29 = vand.u32 2147483647, %v37_v22 }
 0x20b   :  { %v167_v20 = vmul.f32 %v269_v33, %v166_v18  ;;  %212 = vrcp.f32 %v34_v21 }
 0x20c   :  { %169 = vst.msk [vmem:[%s307_s4] sm:$0xff] %vm168_vm12, %v152_v19  ;;  %174 = vperm.xlu1 %197, %v152_v19   ;;  %v65_v30 = vor.u32 1.1754944e-38, %v64_v27  ;;  %vm63_vm1 = vcmp.eq.f32.partialorder %v62_v29, 8.507059e+37 }
 0x20d   :  { %179 = vperm.xlu2 %196, %v167_v20   ;;  %171 = vst.msk [vmem:[%s307_s4 + $0x8] sm:$0x3f] %vm170_vm13, %v167_v20 }
 0x20f   :  { %v211_v23 = vpop.eup %210 }
 0x210   :  { %v54_v24 = vmul.f32 %v211_v23, %v37_v22  ;;  %vm59_vm15 = vweird.f32 %v211_v23 }
 0x211   :  { %vm60_vm0 = vmor %vm58_vm14, %vm59_vm15  ;;  %v213_v33 = vpop.eup %212 }
 0x212   :  { %v55_v25 = vsub.f32 1.0, %v54_v24  ;;  %v39_v35 = vmul.f32 %v213_v33, %v34_v21  ;;  %vm44_vm5 = vweird.f32 %v213_v33 }
 0x213   :  { %vm45_vm6 = vmor %vm43_vm4, %vm44_vm5 }
 0x214   :  { %v56_v26 = vmul.f32 %v211_v23, %v55_v25  ;;  %v40_v38 = vsub.f32 1.0, %v39_v35 }
 0x216   :  { %v57_v28 = vadd.f32 %v211_v23, %v56_v26  ;;  %v41_v39 = vmul.f32 %v213_v33, %v40_v38 }
 0x218   :  { %v61_v31 = vsel %vm60_vm0, %v211_v23, %v57_v28  ;;  %v42_v41 = vadd.f32 %v213_v33, %v41_v39 }
 0x219   :  { %v66_v32 = vsel %vm63_vm1, %v65_v30, %v61_v31 }
 0x21a   :  { %v67_v34 = vmul.f32 %v282_v59, %v66_v32  ;;  %v46_v44 = vsel %vm45_vm6, %v213_v33, %v42_v41 }
 0x21b   :  { %v51_v45 = vsel %vm48_vm7, %v50_v43, %v46_v44 }
 0x21c   :  { %v52_v46 = vmul.f32 %v278_v57, %v51_v45 }
 0x267   :  { %v180_v36 = vpop.permute.xlu2 %179 }
 0x268   :  { %v183_v37 = vmul.f32 %v180_v36, %v67_v34 }
 0x26a   :  { %185 = vst.msk [vmem:[%s308_s3 + $0x8] sm:$0x3f] %vm22_vm3, %v183_v37 }
 0x27e   :  { %v175_v47 = vpop.permute.xlu1 %174 }
 0x27f   :  { %v182_v48 = vmul.f32 %v175_v47, %v52_v46 }
 0x281   :  { %184 = vst.msk [vmem:[%s308_s3] sm:$0xff] %vm18_vm2, %v182_v48 }

// kernel: controller_forward.3
= control target key start
LH: loop header
LB: loop body
LE: loop exit
PB: predicated region body
PF: predicated region fallthrough
CT: control target
= control target key end

     0   :  { %11 = vsyncpa [#allocation4], 0  ;;  %s8052_s0 = inlined_call_operand.vmem [shape: f32[14,4], index: 0, kind: input, shape index: {}]   ;;  %s8053_s1 = inlined_call_operand.vmem [shape: f32[14,1], index: 1, kind: input, shape index: {}]   ;;  %s8054_s2 = inlined_call_operand.vmem [shape: f32[3,512], index: 2, kind: input, shape index: {}]   ;;  %s8055_s3 = inlined_call_operand.vmem [shape: f32[10,512], index: 3, kind: input, shape index: {}]   ;;  %s8056_s4 = inlined_call_operand.vmem [shape: f32[108,32], index: 4, kind: input, shape index: {}]   ;;  %s8057_s5 = inlined_call_operand.vmem [shape: f32[512,2], index: 5, kind: input, shape index: {}]   ;;  %s8058_s6 = inlined_call_operand.vmem [shape: f32[10,2], index: 6, kind: output, shape index: {}]  }
   0x1   :  { %s17_s23 = sshll.u32 %s8052_s0, 4  ;;  %s18_s23 = int_to_ptr.vmem [resolvable:$true] %s17_s23 }
   0x2   :  { %12 = vsyncpa [#allocation6], 0  ;;  %s28_s26 = sshll.u32 %s8053_s1, 4  ;;  %s5233_s27 = smov [#allocation3]   ;;  %s29_s26 = int_to_ptr.vmem [resolvable:$true] %s28_s26 }
   0x3   :  { %s5234_s28 = smov 128   ;;  %s5235_s29 = smov 8  }
   0x4   :  { %23 = dma.vmem_to_smem %s18_s23, 256, %s5233_s27, [#allocation4], %s5234_s28, %s5234_s28, %s5235_s29  }
   0x5   :  { %s5236_s30 = smov [#allocation5]  }
   0x6   :  { %34 = dma.vmem_to_smem %s29_s26, 256, %s5236_s30, [#allocation6], %s5234_s28, %s5234_s28, %s5235_s29  }
   0x7   :  { %5229 = dma.done.wait [#allocation4], 256  }
   0x8   :  { %5230 = vsyncadd [#allocation4], 4294967040 }
   0x9   :  { %5231 = dma.done.wait [#allocation6], 256  }
   0xa   :  { %5232 = vsyncadd [#allocation6], 4294967040 }
   0xb   :  { %51 = sfence }
   0xc   :  { %v5291_v0 = vld [vmem:[%s8054_s2 + $0x8] sm:$0x77]  ;;  %v5296_v1 = vld [vmem:[%s8054_s2] sm:$0x77]  ;;  %s5237_s1 = smov 17   ;;  %s5238_s11 = smov 16   ;;  %v91_v51 = vlaneseq }
   0xd   :  { %74 = vst [vmem:[#allocation1 + $0x10] ss:$2 sm:$0xff] %v5291_v0  ;;  %v4971_v6 = vld [vmem:[%s8055_s3 + $0x4] ss:$8 sm:$0xf]  ;;  %vm294_vm0 = vcmask 1043456  }
   0xe   :  { %72 = vst [vmem:[#allocation1] ss:$2 sm:$0xff] %v5296_v1  ;;  %v291_v9 = vperm.slane %v4971_v6, 3  ;;  %v289_v12 = vperm.slane %v4971_v6, 1  ;;  %v290_v13 = vperm.slane %v4971_v6, 2  ;;  %v288_v15 = vperm.slane %v4971_v6, 0 }
   0xf   :  { %s5239_s12 = smov 15   ;;  %s5240_s13 = smov 1   ;;  %v5245_v49 = vmov 0.0   ;;  %v5376_v53 = vand.u32 127, %v91_v51  ;;  %vm548_vm9 = vcmask 261120   ;;  %vm638_vm10 = vcmask 64512  }
  0x10   :  { %v293_v14 = vrot.slane %v291_v9, 4  ;;  %v292_v16 = vrot.slane %v289_v12, 4  ;;  %s5241_s14 = smov 127   ;;  %s5242_s15 = smov 113   ;;  %55 = vst [vmem:[#allocation2 + $0x18] sm:$0xff] %v5245_v49  ;;  %vm2261_vm11 = vcmask 1041408  }
  0x11   :  { %s5243_s16 = smov 112   ;;  %s5244_s17 = smov 111   ;;  %52 = vst [vmem:[#allocation2 + $0x30] sm:$0xff] %v5245_v49  ;;  %v5381_v54 = vld [vmem:[%s8055_s3] ss:$8 sm:$0xf] }
  0x12   :  { %v296_v21 = vsel %vm294_vm0, %v290_v13, %v293_v14  ;;  %v295_v22 = vsel %vm294_vm0, %v288_v15, %v292_v16  ;;  %53 = vst [vmem:[#allocation2] sm:$0xff] %v5245_v49  ;;  %v103_v55 = vperm.slane %v5381_v54, 3  ;;  %vm93_vm1 = vcmp.lt.s32.totalorder %v5376_v53, 17  ;;  %v5397_v63 = vld [vmem:[%s8055_s3 + $0x1] ss:$8 sm:$0xf] }
  0x13   :  { %v300_v23 = vmul.f32 %v296_v21, %v5291_v0  ;;  %v299_v24 = vmul.f32 %v295_v22, %v5296_v1  ;;  %54 = vst [vmem:[#allocation2 + $0x58] sm:$0xff] %v5245_v49  ;;  %v102_v56 = vperm.slane %v5381_v54, 2  ;;  %vm135_vm2 = vcmp.lt.s32.totalorder %v5376_v53, 16  ;;  %v5433_v22 = vld [vmem:[%s8055_s3 + $0x3] ss:$8 sm:$0xf] }
  0x14   :  { %v77_v2 = vld.sshfl [vmem:[#allocation1 + $0x10] sm:$0xff pattern:$0x75316420]  ;;  %v78_v3 = vld.sshfl [vmem:[#allocation1 + $0x18] sm:$0xff pattern:$0x75316420] }
  0x15   :  { %87 = vrot.lane.b32.xlu1 %v77_v2, %s5237_s1  ;;  %118 = vst [vmem:[#allocation1 + $0x10] ss:$2 sm:$0xff] %v5291_v0  ;;  %v76_v4 = vld.sshfl [vmem:[#allocation1 + $0x8] sm:$0xff pattern:$0x75316420]  ;;  %89 = vrot.lane.b32.xlu2 %v78_v3, %s5237_s1  ;;  %v145_v3 = vperm.slane %v5397_v63, 2 }
  0x16   :  { %85 = vrot.lane.b32.xlu0 %v76_v4, %s5237_s1  ;;  %v5304_v5 = vld.sshfl [vmem:[#allocation1] sm:$0xff pattern:$0x75316420]  ;;  %56 = vst [vmem:[#allocation2 + $0x50] sm:$0xff] %v5245_v49  ;;  %vm190_vm3 = vcmp.lt.s32.totalorder %v5376_v53, 15  ;;  %vm249_vm4 = vcmp.lt.s32.totalorder %v5376_v53, 1 }
  0x17   :  { %116 = vst [vmem:[#allocation1] ss:$2 sm:$0xff] %v5296_v1  ;;  %vm397_vm5 = vcmp.lt.s32.totalorder %v5376_v53, 113  ;;  %vm338_vm6 = vcmp.lt.s32.totalorder %v5376_v53, 127  ;;  %vm452_vm7 = vcmp.lt.s32.totalorder %v5376_v53, 112  ;;  %vm507_vm8 = vcmp.lt.s32.totalorder %v5376_v53, 111 }
  0x18   :  { %57 = vst [vmem:[#allocation2 + $0x68] sm:$0xff] %v5245_v49  ;;  %s6167_s23 = sld [smem:[#allocation5]]  ;;  %vm2257_vm12 = vcmask 15360   ;;  %vm4960_vm13 = vcmask 9216  }
  0x19   :  { %58 = vst [vmem:[#allocation2 + $0x8] sm:$0xff] %v5245_v49  ;;  %s6170_s24 = sld [smem:[#allocation5 + $0x80]] }
  0x1a   :  { %59 = vst [vmem:[#allocation2 + $0x48] sm:$0xff] %v5245_v49  ;;  %s5008_s27 = sld [smem:[#allocation3 + $0x101]] }
  0x1b   :  { %60 = vst [vmem:[#allocation2 + $0x40] sm:$0xff] %v5245_v49  ;;  %s5010_s28 = sld [smem:[#allocation3 + $0x103]] }
  0x1c   :  { %v121_v7 = vld.sshfl [vmem:[#allocation1 + $0x10] sm:$0xff pattern:$0x75316420]  ;;  %v122_v8 = vld.sshfl [vmem:[#allocation1 + $0x18] sm:$0xff pattern:$0x75316420] }
  0x1d   :  { %131 = vrot.lane.b32.xlu1 %v121_v7, %s5238_s11  ;;  %173 = vst [vmem:[#allocation1 + $0x10] ss:$2 sm:$0xff] %v5291_v0  ;;  %133 = vrot.lane.b32.xlu2 %v122_v8, %s5238_s11  ;;  %v5415_v8 = vld [vmem:[%s8055_s3 + $0x2] ss:$8 sm:$0xf]  ;;  %s5014_s29 = sld [smem:[#allocation3 + $0x283]] }
  0x1e   :  { %v120_v10 = vld.sshfl [vmem:[#allocation1 + $0x8] sm:$0xff pattern:$0x75316420]  ;;  %v5313_v11 = vld.sshfl [vmem:[#allocation1] sm:$0xff pattern:$0x75316420] }
  0x1f   :  { %129 = vrot.lane.b32.xlu0 %v120_v10, %s5238_s11  ;;  %171 = vst [vmem:[#allocation1] ss:$2 sm:$0xff] %v5296_v1  ;;  %v201_v12 = vperm.slane %v5415_v8, 3  ;;  %v200_v15 = vperm.slane %v5415_v8, 2  ;;  %s5018_s30 = sld [smem:[#allocation3 + $0x483]] }
  0x20   :  { %61 = vst [vmem:[#allocation2 + $0x20] sm:$0xff] %v5245_v49  ;;  %s5012_s7 = sld [smem:[#allocation3 + $0x281]] }
  0x21   :  { %62 = vst [vmem:[#allocation2 + $0x10] sm:$0xff] %v5245_v49  ;;  %s5009_s0 = sld [smem:[#allocation3 + $0x102]] }
  0x22   :  { %63 = vst [vmem:[#allocation2 + $0x38] sm:$0xff] %v5245_v49  ;;  %s5013_s8 = sld [smem:[#allocation3 + $0x282]] }
  0x23   :  { %64 = vst [vmem:[#allocation2 + $0x60] sm:$0xff] %v5245_v49  ;;  %s5017_s9 = sld [smem:[#allocation3 + $0x482]] }
  0x24   :  { %v176_v17 = vld.sshfl [vmem:[#allocation1 + $0x10] sm:$0xff pattern:$0x75316420]  ;;  %v177_v18 = vld.sshfl [vmem:[#allocation1 + $0x18] sm:$0xff pattern:$0x75316420] }
  0x25   :  { %186 = vrot.lane.b32.xlu1 %v176_v17, %s5239_s12  ;;  %188 = vrot.lane.b32.xlu2 %v177_v18, %s5239_s12  ;;  %232 = vst [vmem:[#allocation1 + $0x10] ss:$2 sm:$0xff] %v5291_v0  ;;  %s5016_s2 = sld [smem:[#allocation3 + $0x481]] }
  0x26   :  { %v175_v19 = vld.sshfl [vmem:[#allocation1 + $0x8] sm:$0xff pattern:$0x75316420]  ;;  %v5320_v20 = vld.sshfl [vmem:[#allocation1] sm:$0xff pattern:$0x75316420] }
  0x27   :  { %184 = vrot.lane.b32.xlu0 %v175_v19, %s5239_s12  ;;  %230 = vst [vmem:[#allocation1] ss:$2 sm:$0xff] %v5296_v1  ;;  %s5005_s21 = sld [smem:[#allocation3 + $0x1]] }
  0x28   :  { %65 = vst [vmem:[#allocation2 + $0x70] sm:$0xff] %v5245_v49  ;;  %s5036_s22 = sld [smem:[#allocation3 + $0x81]] }
  0x29   :  { %66 = vst [vmem:[#allocation2 + $0x78] sm:$0xff] %v5245_v49  ;;  %s5048_s25 = sld [smem:[#allocation3 + $0x501]] }
  0x2a   :  { %67 = vst [vmem:[#allocation2 + $0x28] sm:$0xff] %v5245_v49  ;;  %s5007_s26 = sld [smem:[#allocation3 + $0x3]] }
  0x2b   :  { %8099 = vst [vmem:[#allocation9_spill] sm:$0xff] %v5376_v53  ;;  %s5011_s18 = sld [smem:[#allocation5 + $0x100]] }
  0x2c   :  { %v235_v25 = vld.sshfl [vmem:[#allocation1 + $0x10] sm:$0xff pattern:$0x75316420]  ;;  %v236_v26 = vld.sshfl [vmem:[#allocation1 + $0x18] sm:$0xff pattern:$0x75316420] }
  0x2d   :  { %245 = vrot.lane.b32.xlu1 %v235_v25, %s5240_s13  ;;  %247 = vrot.lane.b32.xlu2 %v236_v26, %s5240_s13  ;;  %306 = vst [vmem:[#allocation1 + $0x11] ss:$2 sm:$0xff] %v300_v23  ;;  %s5083_s19 = sld [smem:[#allocation5 + $0x200]] }
  0x2e   :  { %v234_v27 = vld.sshfl [vmem:[#allocation1 + $0x8] sm:$0xff pattern:$0x75316420]  ;;  %v233_v28 = vld.sshfl [vmem:[#allocation1] sm:$0xff pattern:$0x75316420] }
  0x2f   :  { %243 = vrot.lane.b32.xlu0 %v234_v27, %s5240_s13  ;;  %304 = vst [vmem:[#allocation1 + $0x1] ss:$2 sm:$0xff] %v299_v24  ;;  %v260_v24 = vperm.slane %v5433_v22, 3  ;;  %v259_v27 = vperm.slane %v5433_v22, 2  ;;  %s5043_s20 = sld [smem:[#allocation5 + $0x180]] }
  0x34   :  { %v5329_v29 = vld.sshfl [vmem:[#allocation1 + $0x10] sm:$0xff pattern:$0x75316420]  ;;  %v5331_v30 = vld.sshfl [vmem:[#allocation1 + $0x18] sm:$0xff pattern:$0x75316420] }
  0x35   :  { %321 = vst [vmem:[#allocation1 + $0x10] ss:$2 sm:$0xff] %v5291_v0 }
  0x36   :  { %v5334_v31 = vld.sshfl [vmem:[#allocation1] sm:$0xff pattern:$0x75316420]  ;;  %v5336_v32 = vld.sshfl [vmem:[#allocation1 + $0x8] sm:$0xff pattern:$0x75316420] }
  0x37   :  { %319 = vst [vmem:[#allocation1] ss:$2 sm:$0xff] %v5296_v1 }
  0x38   :  { %315 = vst [vmem:[#allocation2 + $0x50] sm:$0x70] %v5334_v31  ;;  %v4973_v31 = vld [vmem:[%s8055_s3 + $0x6] ss:$8 sm:$0xf] }
  0x39   :  { %316 = vst [vmem:[#allocation2 + $0x68] sm:$0x70] %v5336_v32  ;;  %v408_v51 = vperm.slane %v4973_v31, 3 }
  0x3a   :  { %317 = vst [vmem:[#allocation2 + $0x8] sm:$0x70] %v5329_v29 }
  0x3b   :  { %318 = vst [vmem:[#allocation2 + $0x48] sm:$0x70] %v5331_v30 }
  0x3c   :  { %v325_v33 = vld.sshfl [vmem:[#allocation1 + $0x18] sm:$0xff pattern:$0x75316420]  ;;  %v324_v34 = vld.sshfl [vmem:[#allocation1 + $0x10] sm:$0xff pattern:$0x75316420] }
  0x3d   :  { %336 = vrot.lane.b32.xlu1 %v325_v33, %s5241_s14  ;;  %380 = vst [vmem:[#allocation1 + $0x10] ss:$2 sm:$0xff] %v5291_v0 }
  0x3e   :  { %v322_v35 = vld.sshfl [vmem:[#allocation1] sm:$0xff pattern:$0x75316420]  ;;  %v323_v36 = vld.sshfl [vmem:[#allocation1 + $0x8] sm:$0xff pattern:$0x75316420] }
  0x3f   :  { %330 = vrot.lane.b32.xlu0 %v322_v35, %s5241_s14  ;;  %378 = vst [vmem:[#allocation1] ss:$2 sm:$0xff] %v5296_v1  ;;  %v407_v35 = vperm.slane %v4973_v31, 2 }
  0x44   :  { %v383_v37 = vld.sshfl [vmem:[#allocation1 + $0x10] sm:$0xff pattern:$0x75316420]  ;;  %v384_v38 = vld.sshfl [vmem:[#allocation1 + $0x18] sm:$0xff pattern:$0x75316420] }
  0x45   :  { %393 = vrot.lane.b32.xlu2 %v383_v37, %s5242_s15  ;;  %435 = vst [vmem:[#allocation1 + $0x10] ss:$2 sm:$0xff] %v5291_v0 }
  0x46   :  { %v381_v39 = vld.sshfl [vmem:[#allocation1] sm:$0xff pattern:$0x75316420]  ;;  %v382_v40 = vld.sshfl [vmem:[#allocation1 + $0x8] sm:$0xff pattern:$0x75316420] }
  0x47   :  { %334 = vrot.lane.b32.xlu0 %v324_v34, %s5241_s14  ;;  %389 = vrot.lane.b32.xlu1 %v381_v39, %s5242_s15  ;;  %433 = vst [vmem:[#allocation1] ss:$2 sm:$0xff] %v5296_v1 }
  0x4c   :  { %v439_v41 = vld.sshfl [vmem:[#allocation1 + $0x18] sm:$0xff pattern:$0x75316420]  ;;  %v438_v42 = vld.sshfl [vmem:[#allocation1 + $0x10] sm:$0xff pattern:$0x75316420] }
  0x4d   :  { %395 = vrot.lane.b32.xlu2 %v384_v38, %s5242_s15  ;;  %490 = vst [vmem:[#allocation1 + $0x10] ss:$2 sm:$0xff] %v5291_v0 }
  0x4e   :  { %v436_v43 = vld.sshfl [vmem:[#allocation1] sm:$0xff pattern:$0x75316420]  ;;  %v437_v44 = vld.sshfl [vmem:[#allocation1 + $0x8] sm:$0xff pattern:$0x75316420] }
  0x4f   :  { %332 = vrot.lane.b32.xlu0 %v323_v36, %s5241_s14  ;;  %391 = vrot.lane.b32.xlu1 %v382_v40, %s5242_s15  ;;  %488 = vst [vmem:[#allocation1] ss:$2 sm:$0xff] %v5296_v1  ;;  %v146_v1 = vperm.slane %v5397_v63, 3 }
  0x54   :  { %v493_v45 = vld.sshfl [vmem:[#allocation1 + $0x10] sm:$0xff pattern:$0x75316420]  ;;  %v494_v47 = vld.sshfl [vmem:[#allocation1 + $0x18] sm:$0xff pattern:$0x75316420] }
  0x55   :  { %450 = vrot.lane.b32.xlu2 %v439_v41, %s5243_s16  ;;  %v4972_v41 = vld [vmem:[%s8055_s3 + $0x5] ss:$8 sm:$0xf] }
  0x56   :  { %v491_v46 = vld.sshfl [vmem:[#allocation1] sm:$0xff pattern:$0x75316420]  ;;  %v492_v48 = vld.sshfl [vmem:[#allocation1 + $0x8] sm:$0xff pattern:$0x75316420] }
  0x57   :  { %448 = vrot.lane.b32.xlu1 %v438_v42, %s5243_s16  ;;  %444 = vrot.lane.b32.xlu0 %v436_v43, %s5243_s16  ;;  %v348_v49 = vperm.slane %v4972_v41, 2 }
  0x5d   :  { %446 = vrot.lane.b32.xlu2 %v437_v44, %s5243_s16  ;;  %v349_v44 = vperm.slane %v4972_v41, 3 }
  0x5f   :  { %503 = vrot.lane.b32.xlu1 %v493_v45, %s5244_s17  ;;  %499 = vrot.lane.b32.xlu0 %v491_v46, %s5244_s17 }
  0x65   :  { %505 = vrot.lane.b32.xlu2 %v494_v47, %s5244_s17 }
  0x67   :  { %182 = vrot.lane.b32.xlu1 %v5320_v20, %s5239_s12  ;;  %501 = vrot.lane.b32.xlu0 %v492_v48, %s5244_s17 }
  0x6d   :  { %241 = vrot.lane.b32.xlu2 %v233_v28, %s5240_s13 }
  0x6f   :  { %83 = vrot.lane.b32.xlu1 %v5304_v5, %s5237_s1  ;;  %127 = vrot.lane.b32.xlu0 %v5313_v11, %s5238_s11  ;;  %v5368_v50 = vpop.permute.xlu2 %89 }
  0x77   :  { %v5374_v52 = vpop.permute.xlu2 %133 }
  0x7f   :  { %v5399_v0 = vpop.permute.xlu2 %188 }
  0x87   :  { %v88_v57 = vpop.permute.xlu1 %87  ;;  %v5419_v13 = vpop.permute.xlu2 %247 }
  0x88   :  { %v94_v58 = vsel %vm93_vm1, %v88_v57, %v5368_v50  ;;  %v5389_v59 = vpop.permute.xlu0 %85 }
  0x89   :  { %v111_v60 = vmul.f32 %v103_v55, %v94_v58  ;;  %v95_v61 = vsel %vm93_vm1, %v5389_v59, %v88_v57 }
  0x8a   :  { %v110_v62 = vmul.f32 %v102_v56, %v95_v61 }
  0x8b   :  { %115 = vst [vmem:[#allocation2 + $0x18] sm:$0x7] %v111_v60 }
  0x8c   :  { %114 = vst [vmem:[#allocation2 + $0x58] sm:$0x7] %v110_v62 }
  0x8f   :  { %v132_v2 = vpop.permute.xlu1 %131 }
  0x90   :  { %v136_v4 = vsel %vm135_vm2, %v132_v2, %v5374_v52 }
  0x91   :  { %v154_v5 = vmul.f32 %v146_v1, %v136_v4  ;;  %v5407_v6 = vpop.permute.xlu0 %129  ;;  %v347_v4 = vperm.slane %v4972_v41, 1 }
  0x92   :  { %v137_v7 = vsel %vm135_vm2, %v5407_v6, %v132_v2 }
  0x93   :  { %v162_v9 = vrot.slane %v154_v5, 5  ;;  %v153_v10 = vmul.f32 %v145_v3, %v137_v7  ;;  %v346_v3 = vperm.slane %v4972_v41, 0  ;;  %v405_v5 = vperm.slane %v4973_v31, 0 }
  0x95   :  { %170 = vst [vmem:[#allocation2 + $0x18] sm:$0x38] %v162_v9  ;;  %v161_v11 = vrot.slane %v153_v10, 5  ;;  %v406_v9 = vperm.slane %v4973_v31, 1 }
  0x97   :  { %169 = vst [vmem:[#allocation2 + $0x58] sm:$0x38] %v161_v11  ;;  %v187_v14 = vpop.permute.xlu1 %186 }
  0x98   :  { %v191_v16 = vsel %vm190_vm3, %v187_v14, %v5399_v0 }
  0x99   :  { %v209_v17 = vmul.f32 %v201_v12, %v191_v16  ;;  %v5425_v18 = vpop.permute.xlu0 %184 }
  0x9a   :  { %v192_v19 = vsel %vm190_vm3, %v5425_v18, %v187_v14 }
  0x9b   :  { %v217_v20 = vrot.slane %v209_v17, 2  ;;  %v208_v21 = vmul.f32 %v200_v15, %v192_v19 }
  0x9d   :  { %225 = vst [vmem:[#allocation2 + $0x18] sm:$0xc0] %v217_v20  ;;  %v216_v23 = vrot.slane %v208_v21, 2 }
  0x9e   :  { %229 = vst [vmem:[#allocation2 + $0x48] sm:$0x1] %v217_v20 }
  0x9f   :  { %224 = vst [vmem:[#allocation2 + $0x58] sm:$0xc0] %v216_v23  ;;  %v394_v25 = vpop.permute.xlu2 %393  ;;  %v246_v26 = vpop.permute.xlu1 %245 }
  0xa0   :  { %228 = vst [vmem:[#allocation2 + $0x8] sm:$0x1] %v216_v23  ;;  %v250_v28 = vsel %vm249_vm4, %v246_v26, %v5419_v13  ;;  %v4974_v23 = vld [vmem:[%s8055_s3 + $0x7] ss:$8 sm:$0xf] }
  0xa1   :  { %v268_v29 = vmul.f32 %v260_v24, %v250_v28  ;;  %v5441_v30 = vpop.permute.xlu0 %243  ;;  %v258_v28 = vperm.slane %v5433_v22, 1  ;;  %v462_v31 = vperm.slane %v4974_v23, 2 }
  0xa2   :  { %v251_v32 = vsel %vm249_vm4, %v5441_v30, %v246_v26 }
  0xa3   :  { %v276_v33 = vrot.slane %v268_v29, 7  ;;  %v267_v34 = vmul.f32 %v259_v27, %v251_v32  ;;  %v257_v27 = vperm.slane %v5433_v22, 0  ;;  %v461_v29 = vperm.slane %v4974_v23, 1 }
  0xa5   :  { %284 = vst [vmem:[#allocation2 + $0x48] sm:$0xe] %v276_v33  ;;  %v275_v36 = vrot.slane %v267_v34, 7  ;;  %v460_v33 = vperm.slane %v4974_v23, 0 }
  0xa7   :  { %v396_v37 = vpop.permute.xlu2 %395  ;;  %283 = vst [vmem:[#allocation2 + $0x8] sm:$0xe] %v275_v36 }
  0xa8   :  { %v398_v38 = vsel %vm397_vm5, %v394_v25, %v396_v37 }
  0xa9   :  { %v415_v39 = vmul.f32 %v407_v35, %v398_v38 }
  0xab   :  { %v423_v40 = vrot.slane %v415_v39, 6 }
  0xad   :  { %431 = vst [vmem:[#allocation2 + $0x10] sm:$0x1c] %v423_v40 }
  0xaf   :  { %v337_v42 = vpop.permute.xlu1 %336  ;;  %v5455_v43 = vpop.permute.xlu2 %450 }
  0xb1   :  { %v331_v45 = vpop.permute.xlu0 %330 }
  0xb2   :  { %v342_v46 = vsel %vm338_vm6, %v337_v42, %v331_v45 }
  0xb3   :  { %v357_v47 = vmul.f32 %v349_v44, %v342_v46 }
  0xb5   :  { %v365_v48 = vrot.slane %v357_v47, 1 }
  0xb7   :  { %373 = vst [vmem:[#allocation2 + $0x48] sm:$0x80] %v365_v48  ;;  %v447_v55 = vpop.permute.xlu2 %446 }
  0xb8   :  { %377 = vst [vmem:[#allocation2 + $0x38] sm:$0x3] %v365_v48 }
  0xb9   :  { %v335_v56 = vpop.permute.xlu0 %334  ;;  %v390_v57 = vpop.permute.xlu1 %389 }
  0xba   :  { %v339_v58 = vsel %vm338_vm6, %v335_v56, %v337_v42  ;;  %v401_v60 = vsel %vm397_vm5, %v396_v37, %v390_v57  ;;  %v463_v37 = vperm.slane %v4974_v23, 3 }
  0xbb   :  { %v356_v61 = vmul.f32 %v348_v49, %v339_v58  ;;  %v416_v62 = vmul.f32 %v408_v51, %v401_v60  ;;  %v4975_v51 = vld [vmem:[%s8055_s3 + $0x20] ss:$8 sm:$0xf] }
  0xbc   :  { %v518_v60 = vperm.slane %v4975_v51, 3 }
  0xbd   :  { %v364_v1 = vrot.slane %v356_v61, 1  ;;  %v424_v2 = vrot.slane %v416_v62, 6 }
  0xbf   :  { %372 = vst [vmem:[#allocation2 + $0x8] sm:$0x80] %v364_v1  ;;  %v5464_v7 = vpop.permute.xlu2 %505 }
  0xc0   :  { %376 = vst [vmem:[#allocation2 + $0x10] sm:$0x3] %v364_v1 }
  0xc1   :  { %432 = vst [vmem:[#allocation2 + $0x38] sm:$0x1c] %v424_v2  ;;  %v333_v10 = vpop.permute.xlu0 %332  ;;  %v392_v11 = vpop.permute.xlu1 %391 }
  0xc2   :  { %v340_v12 = vsel %vm338_vm6, %v333_v10, %v335_v56  ;;  %v341_v14 = vsel %vm338_vm6, %v331_v45, %v333_v10  ;;  %v399_v15 = vsel %vm397_vm5, %v392_v11, %v394_v25  ;;  %v400_v16 = vsel %vm397_vm5, %v390_v57, %v392_v11 }
  0xc3   :  { %v354_v17 = vmul.f32 %v346_v3, %v341_v14  ;;  %v355_v19 = vmul.f32 %v347_v4, %v340_v12  ;;  %v413_v20 = vmul.f32 %v405_v5, %v400_v16  ;;  %v414_v21 = vmul.f32 %v406_v9, %v399_v15 }
  0xc4   :  { %v198_v5 = vperm.slane %v5415_v8, 0  ;;  %v199_v9 = vperm.slane %v5415_v8, 1  ;;  %v515_v10 = vperm.slane %v4975_v51, 0  ;;  %v516_v11 = vperm.slane %v4975_v51, 1 }
  0xc5   :  { %v362_v24 = vrot.slane %v354_v17, 1  ;;  %v363_v26 = vrot.slane %v355_v19, 1  ;;  %v421_v25 = vrot.slane %v413_v20, 6  ;;  %v422_v34 = vrot.slane %v414_v21, 6 }
  0xc7   :  { %370 = vst [vmem:[#allocation2 + $0x50] sm:$0x80] %v362_v24  ;;  %v242_v32 = vpop.permute.xlu2 %241 }
  0xc8   :  { %371 = vst [vmem:[#allocation2 + $0x68] sm:$0x80] %v363_v26  ;;  %v252_v35 = vsel %vm249_vm4, %v242_v32, %v5441_v30  ;;  %v253_v36 = vsel %vm249_vm4, %v5419_v13, %v242_v32  ;;  %v538_v32 = vld [vmem:[#allocation2 + $0x8] sm:$0xff] }
  0xc9   :  { %374 = vst [vmem:[#allocation2 + $0x40] sm:$0x3] %v362_v24  ;;  %v449_v22 = vpop.permute.xlu1 %448  ;;  %v265_v38 = vmul.f32 %v257_v27, %v253_v36  ;;  %v266_v39 = vmul.f32 %v258_v28, %v252_v35  ;;  %v445_v40 = vpop.permute.xlu0 %444  ;;  %v100_v27 = vperm.slane %v5381_v54, 0  ;;  %v539_v35 = vld [vmem:[#allocation2 + $0x48] sm:$0xff] }
  0xca   :  { %375 = vst [vmem:[#allocation2 + $0x20] sm:$0x3] %v363_v26  ;;  %v453_v41 = vsel %vm452_vm7, %v449_v22, %v5455_v43  ;;  %v454_v42 = vsel %vm452_vm7, %v447_v55, %v449_v22  ;;  %v455_v30 = vsel %vm452_vm7, %v445_v40, %v447_v55  ;;  %v456_v13 = vsel %vm452_vm7, %v5455_v43, %v445_v40  ;;  %v531_v22 = vld [vmem:[%s8056_s4] sm:$0xff] }
  0xcb   :  { %429 = vst [vmem:[#allocation2 + $0x40] sm:$0x1c] %v421_v25  ;;  %v469_v44 = vmul.f32 %v461_v29, %v454_v42  ;;  %v470_v45 = vmul.f32 %v462_v31, %v453_v41  ;;  %v273_v46 = vrot.slane %v265_v38, 7  ;;  %v274_v47 = vrot.slane %v266_v39, 7  ;;  %v534_v38 = vld [vmem:[#allocation2 + $0x58] sm:$0xff] }
  0xcc   :  { %430 = vst [vmem:[#allocation2 + $0x20] sm:$0x1c] %v422_v34  ;;  %v468_v48 = vmul.f32 %v460_v33, %v455_v30  ;;  %v471_v49 = vmul.f32 %v463_v37, %v456_v13  ;;  %v517_v43 = vperm.slane %v4975_v51, 2  ;;  %v101_v25 = vperm.slane %v5381_v54, 1  ;;  %v535_v42 = vld [vmem:[#allocation2 + $0x18] sm:$0xff] }
  0xcd   :  { %v477_v56 = vrot.slane %v469_v44, 3  ;;  %v478_v57 = vrot.slane %v470_v45, 3  ;;  %281 = vst [vmem:[#allocation2 + $0x50] sm:$0xe] %v273_v46  ;;  %v143_v29 = vperm.slane %v5397_v63, 0  ;;  %v144_v31 = vperm.slane %v5397_v63, 1 }
  0xce   :  { %282 = vst [vmem:[#allocation2 + $0x68] sm:$0xe] %v274_v47  ;;  %v476_v55 = vrot.slane %v468_v48, 3  ;;  %v479_v58 = vrot.slane %v471_v49, 3 }
  0xcf   :  { %485 = vst [vmem:[#allocation2 + $0x20] sm:$0xe0] %v477_v56 }
  0xd0   :  { %486 = vst [vmem:[#allocation2 + $0x10] sm:$0xe0] %v478_v57 }
  0xd1   :  { %484 = vst [vmem:[#allocation2 + $0x40] sm:$0xe0] %v476_v55  ;;  %v504_v61 = vpop.permute.xlu1 %503  ;;  %v500_v62 = vpop.permute.xlu0 %499 }
  0xd2   :  { %487 = vst [vmem:[#allocation2 + $0x38] sm:$0xe0] %v479_v58  ;;  %v508_v1 = vsel %vm507_vm8, %v504_v61, %v5464_v7  ;;  %v511_v2 = vsel %vm507_vm8, %v5464_v7, %v500_v62 }
  0xd3   :  { %v525_v3 = vmul.f32 %v517_v43, %v508_v1  ;;  %v526_v4 = vmul.f32 %v518_v60, %v511_v2  ;;  %v632_v43 = vld [vmem:[%s8056_s4 + $0x8] sm:$0xff]  ;;  %v633_v1 = vld [vmem:[%s8056_s4 + $0x10] sm:$0xff] }
  0xd5   :  { %529 = vst [vmem:[#allocation2 + $0x78] sm:$0x7] %v525_v3 }
  0xd6   :  { %530 = vst [vmem:[#allocation2 + $0x28] sm:$0x7] %v526_v4  ;;  %v541_v46 = vld [vmem:[#allocation2 + $0x20] sm:$0xff] }
  0xd9   :  { %v183_v12 = vpop.permute.xlu1 %182  ;;  %v502_v14 = vpop.permute.xlu0 %501  ;;  %v543_v28 = vld [vmem:[#allocation2 + $0x38] sm:$0xff] }
  0xda   :  { %v193_v15 = vsel %vm190_vm3, %v183_v12, %v5425_v18  ;;  %v194_v7 = vsel %vm190_vm3, %v5399_v0, %v183_v12  ;;  %v509_v16 = vsel %vm507_vm8, %v502_v14, %v504_v61  ;;  %v510_v17 = vsel %vm507_vm8, %v500_v62, %v502_v14  ;;  %v542_v0 = vld [vmem:[#allocation2 + $0x10] sm:$0xff] }
  0xdb   :  { %v206_v19 = vmul.f32 %v198_v5, %v194_v7  ;;  %v207_v8 = vmul.f32 %v199_v9, %v193_v15  ;;  %v523_v20 = vmul.f32 %v515_v10, %v510_v17  ;;  %v524_v21 = vmul.f32 %v516_v11, %v509_v16  ;;  %v4992_v5 = vld [vmem:[%s8055_s3 + $0x4] ss:$8 sm:$0xf] }
  0xdc   :  { %v5518_v23 = vld [vmem:[#allocation2 + $0x78] sm:$0xff]  ;;  %v900_v9 = vperm.slane %v4992_v5, 0  ;;  %v902_v10 = vperm.slane %v4992_v5, 2  ;;  %v903_v15 = vperm.slane %v4992_v5, 3 }
  0xdd   :  { %v214_v24 = vrot.slane %v206_v19, 2  ;;  %v215_v26 = vrot.slane %v207_v8, 2  ;;  %527 = vst [vmem:[#allocation2 + $0x60] sm:$0x7] %v523_v20  ;;  %604 = vmatpush.msra.mxu2 %v5518_v23  ;;  %v5521_v18 = vld [vmem:[#allocation2 + $0x28] sm:$0xff]  ;;  %v1103_v55 = vmax.f32 %v5518_v23, 0.0 }
  0xde   :  { %528 = vst [vmem:[#allocation2 + $0x70] sm:$0x7] %v524_v21  ;;  %624 = vmatpush.msra.mxu3 %v5521_v18  ;;  %v1104_v58 = vmax.f32 %v5521_v18, 0.0  ;;  %v901_v19 = vperm.slane %v4992_v5, 1 }
  0xdf   :  { %222 = vst [vmem:[#allocation2 + $0x30] sm:$0xc0] %v214_v24  ;;  %605 = vmatpush.msra.mxu2 %v542_v0 }
  0xe0   :  { %223 = vst [vmem:[#allocation2] sm:$0xc0] %v215_v26  ;;  %625 = vmatpush.msra.mxu3 %v543_v28 }
  0xe1   :  { %226 = vst [vmem:[#allocation2 + $0x50] sm:$0x1] %v214_v24  ;;  %v84_v33 = vpop.permute.xlu1 %83  ;;  %v128_v34 = vpop.permute.xlu0 %127  ;;  %606 = vmatpush.msra.mxu2 %v538_v32  ;;  %v5705_v32 = vld [vmem:[%s8055_s3 + $0x7] ss:$8 sm:$0xf] }
  0xe2   :  { %227 = vst [vmem:[#allocation2 + $0x68] sm:$0x1] %v215_v26  ;;  %v96_v36 = vsel %vm93_vm1, %v84_v33, %v5389_v59  ;;  %v97_v54 = vsel %vm93_vm1, %v5368_v50, %v84_v33  ;;  %v138_v63 = vsel %vm135_vm2, %v128_v34, %v5407_v6  ;;  %v139_v37 = vsel %vm135_vm2, %v5374_v52, %v128_v34  ;;  %v540_v52 = vld [vmem:[#allocation2 + $0x40] sm:$0xff] }
  0xe3   :  { %v108_v39 = vmul.f32 %v100_v27, %v97_v54  ;;  %v109_v40 = vmul.f32 %v101_v25, %v96_v36  ;;  %v151_v59 = vmul.f32 %v143_v29, %v139_v37  ;;  %v152_v41 = vmul.f32 %v144_v31, %v138_v63  ;;  %626 = vmatpush.msra.mxu3 %v539_v35  ;;  %v5724_v37 = vld [vmem:[%s8055_s3 + $0x6] ss:$8 sm:$0xf] }
  0xe4   :  { %607 = vmatpush.msra.mxu2 %v534_v38  ;;  %v5543_v50 = vld [vmem:[#allocation2 + $0x60] sm:$0xff]  ;;  %v1014_v33 = vperm.slane %v5705_v32, 0 }
  0xe5   :  { %112 = vst [vmem:[#allocation2 + $0x30] sm:$0x7] %v108_v39  ;;  %v159_v6 = vrot.slane %v151_v59, 5  ;;  %v160_v30 = vrot.slane %v152_v41, 5  ;;  %627 = vmatpush.msra.mxu3 %v535_v42  ;;  %4978 = vmatmul.msk.f32.vlgmr.msra.gmra.mxu2 %vm548_vm9, %v531_v22  ;;  %v5549_v45 = vld [vmem:[#allocation2 + $0x70] sm:$0xff]  ;;  %v1101_v62 = vmax.f32 %v5543_v50, 0.0 }
  0xe6   :  { %113 = vst [vmem:[#allocation2] sm:$0x7] %v109_v40  ;;  %4979 = vmatmul.msk.f32.vlgmr.msra.gmra.mxu3 %vm548_vm9, %v531_v22  ;;  %564 = vmatpush.msra.mxu1 %v5543_v50  ;;  %v1102_v4 = vmax.f32 %v5549_v45, 0.0  ;;  %v5729_v38 = vld [vmem:[%s8055_s3 + $0x1] ss:$8 sm:$0xf] }
  0xe7   :  { %167 = vst [vmem:[#allocation2 + $0x30] sm:$0x38] %v159_v6  ;;  %v972_v39 = vperm.slane %v5724_v37, 0  ;;  %v787_v40 = vperm.slane %v5729_v38, 1 }
  0xe8   :  { %168 = vst [vmem:[#allocation2] sm:$0x38] %v160_v30  ;;  %565 = vmatpush.msra.mxu1 %v540_v52  ;;  %v536_v13 = vld [vmem:[#allocation2 + $0x50] sm:$0xff] }
  0xe9   :  { %v537_v47 = vld [vmem:[#allocation2 + $0x68] sm:$0xff] }
  0xea   :  { %566 = vmatpush.msra.mxu1 %v536_v13 }
  0xee   :  { %v532_v44 = vld [vmem:[#allocation2 + $0x30] sm:$0xff] }
  0xef   :  { %567 = vmatpush.msra.mxu1 %v532_v44  ;;  %v533_v48 = vld [vmem:[#allocation2] sm:$0xff] }
  0xf0   :  { %4976 = vmatmul.msk.f32.vlgmr.msra.gmra.mxu1 %vm548_vm9, %v531_v22 }
  0xf1   :  { %584 = vmatpush.msrb.mxu1 %v5549_v45 }
  0xf3   :  { %585 = vmatpush.msrb.mxu1 %v541_v46  ;;  %v5753_v46 = vld [vmem:[%s8055_s3 + $0x2] ss:$8 sm:$0xf] }
  0xf5   :  { %586 = vmatpush.msrb.mxu1 %v537_v47 }
  0xf7   :  { %587 = vmatpush.msrb.mxu1 %v533_v48  ;;  %v829_v48 = vperm.slane %v5753_v46, 1 }
  0xf8   :  { %4977 = vmatmul.msk.f32.vlgmr.msrb.gmra.mxu1 %vm548_vm9, %v531_v22 }
 0x168   :  { %v609_v49 = vpop.f32.mrf.mxu2 }
 0x169   :  { %v629_v51 = vpop.f32.mrf.mxu3  ;;  %v636_v56 = vmax.f32 %v609_v49, 0.0 }
 0x16a   :  { %v637_v57 = vmax.f32 %v629_v51, 0.0 }
 0x16b   :  { %706 = vmatpush.msrb.mxu2 %v636_v56 }
 0x16c   :  { %729 = vmatpush.msrb.mxu3 %v637_v57  ;;  %4984 = vmatmul.msk.f32.vlgmr.msrb.gmra.mxu2 %vm638_vm10, %v632_v43 }
 0x16d   :  { %1160 = vmatpush.msra.mxu2 %v1103_v55  ;;  %v569_v60 = vpop.f32.mrf.mxu1  ;;  %4986 = vmatmul.msk.f32.vlgmr.msrb.gmra.mxu3 %vm638_vm10, %v632_v43 }
 0x16e   :  { %1180 = vmatpush.msra.mxu3 %v1104_v58  ;;  %v634_v61 = vmax.f32 %v569_v60, 0.0 }
 0x170   :  { %660 = vmatpush.msra.mxu0 %v634_v61  ;;  %v973_v61 = vperm.slane %v5724_v37, 1 }
 0x171   :  { %4980 = vmatmul.msk.f32.vlgmr.msra.gmra.mxu0 %vm638_vm10, %v632_v43 }
 0x172   :  { %1120 = vmatpush.msrb.mxu0 %v1101_v62 }
 0x174   :  { %4985 = vmatmul.msk.f32.gmra.mxu2 %vm638_vm10, %v633_v1 }
 0x175   :  { %v589_v2 = vpop.f32.mrf.mxu1  ;;  %4987 = vmatmul.msk.f32.gmra.mxu3 %vm638_vm10, %v633_v1 }
 0x176   :  { %v635_v3 = vmax.f32 %v589_v2, 0.0 }
 0x178   :  { %683 = vmatpush.msra.mxu1 %v635_v3 }
 0x179   :  { %4981 = vmatmul.msk.f32.gmra.mxu0 %vm638_vm10, %v633_v1  ;;  %4982 = vmatmul.msk.f32.vlgmr.msra.gmra.mxu1 %vm638_vm10, %v632_v43  ;;  %v5773_v43 = vld [vmem:[%s8055_s3 + $0x3] ss:$8 sm:$0xf] }
 0x17a   :  { %1140 = vmatpush.msrb.mxu1 %v1102_v4 }
 0x181   :  { %4983 = vmatmul.msk.f32.gmra.mxu1 %vm638_vm10, %v633_v1  ;;  %v871_v1 = vperm.slane %v5773_v43, 1 }
 0x1ee   :  { %v5580_v11 = vpop.f32.mrf.mxu0 }
 0x1ef   :  { %8100 = vst [vmem:[#allocation10_spill] sm:$0xff] %v5580_v11  ;;  %814 = vrot.lane.b32.xlu1 %v5580_v11, %s5239_s12  ;;  %772 = vrot.lane.b32.xlu0 %v5580_v11, %s5238_s11  ;;  %v908_v12 = vmul.f32 %v900_v9, %v5580_v11  ;;  %v5589_v14 = vpop.f32.mrf.mxu2 }
 0x1f0   :  { %916 = vrot.lane.b32.xlu2 %v5580_v11, %s5241_s14  ;;  %8101 = vst [vmem:[#allocation11_spill] sm:$0xff] %v5589_v14  ;;  %v910_v7 = vmul.f32 %v902_v10, %v5589_v14  ;;  %v5592_v16 = vpop.f32.mrf.mxu3 }
 0x1f1   :  { %912 = vst [vmem:[#allocation2 + $0x50] sm:$0x3] %v908_v12  ;;  %v911_v17 = vmul.f32 %v903_v15, %v5592_v16 }
 0x1f2   :  { %8102 = vst [vmem:[#allocation12_spill] sm:$0xff] %v5592_v16 }
 0x1f3   :  { %914 = vst [vmem:[#allocation2 + $0x8] sm:$0x3] %v910_v7 }
 0x1f4   :  { %915 = vst [vmem:[#allocation2 + $0x48] sm:$0x3] %v911_v17  ;;  %v5796_v17 = vld [vmem:[%s8055_s3] ss:$8 sm:$0xf] }
 0x1f6   :  { %v5595_v8 = vpop.f32.mrf.mxu1  ;;  %v5604_v21 = vpop.f32.mrf.mxu0 }
 0x1f7   :  { %8103 = vst [vmem:[#allocation13_spill] sm:$0xff] %v5595_v8  ;;  %v909_v20 = vmul.f32 %v901_v19, %v5595_v8  ;;  %742 = vrot.lane.b32.xlu0 %v5580_v11, %s5237_s1  ;;  %1002 = vrot.lane.b32.xlu1 %v5595_v8, %s5243_s16  ;;  %v5672_v0 = vpop.f32.mrf.mxu2 }
 0x1f8   :  { %958 = vrot.lane.b32.xlu2 %v5580_v11, %s5242_s15  ;;  %8104 = vst [vmem:[#allocation14_spill] sm:$0xff] %v5604_v21  ;;  %v5660_v24 = vpop.f32.mrf.mxu3 }
 0x1f9   :  { %913 = vst [vmem:[#allocation2 + $0x68] sm:$0x3] %v909_v20  ;;  %v1015_v20 = vperm.slane %v5705_v32, 1 }
 0x1fa   :  { %8105 = vst [vmem:[#allocation15_spill] sm:$0xff] %v5660_v24 }
 0x1fb   :  { %8107 = vst [vmem:[#allocation17_spill] sm:$0xff] %v5672_v0 }
 0x1fe   :  { %v5662_v26 = vpop.f32.mrf.mxu1 }
 0x1ff   :  { %1622 = vrot.lane.b32.xlu1 %v5604_v21, %s5241_s14  ;;  %960 = vrot.lane.b32.xlu0 %v5595_v8, %s5242_s15  ;;  %8106 = vst [vmem:[#allocation16_spill] sm:$0xff] %v5662_v26 }
 0x200   :  { %1000 = vrot.lane.b32.xlu2 %v5580_v11, %s5243_s16 }
 0x207   :  { %1664 = vrot.lane.b32.xlu1 %v5604_v21, %s5242_s15  ;;  %920 = vrot.lane.b32.xlu0 %v5589_v14, %s5241_s14 }
 0x208   :  { %1042 = vrot.lane.b32.xlu2 %v5580_v11, %s5244_s17 }
 0x20f   :  { %1706 = vrot.lane.b32.xlu1 %v5604_v21, %s5243_s16  ;;  %962 = vrot.lane.b32.xlu0 %v5589_v14, %s5242_s15 }
 0x210   :  { %856 = vrot.lane.b32.xlu2 %v5580_v11, %s5240_s13 }
 0x217   :  { %1748 = vrot.lane.b32.xlu1 %v5604_v21, %s5244_s17  ;;  %1004 = vrot.lane.b32.xlu0 %v5589_v14, %s5243_s16 }
 0x218   :  { %774 = vrot.lane.b32.xlu2 %v5595_v8, %s5238_s11 }
 0x21f   :  { %922 = vrot.lane.b32.xlu1 %v5592_v16, %s5241_s14  ;;  %1046 = vrot.lane.b32.xlu0 %v5589_v14, %s5244_s17 }
 0x220   :  { %816 = vrot.lane.b32.xlu2 %v5595_v8, %s5239_s12 }
 0x227   :  { %964 = vrot.lane.b32.xlu1 %v5592_v16, %s5242_s15  ;;  %776 = vrot.lane.b32.xlu0 %v5589_v14, %s5238_s11 }
 0x228   :  { %858 = vrot.lane.b32.xlu2 %v5595_v8, %s5240_s13 }
 0x22f   :  { %1006 = vrot.lane.b32.xlu1 %v5592_v16, %s5243_s16  ;;  %818 = vrot.lane.b32.xlu0 %v5589_v14, %s5239_s12 }
 0x230   :  { %744 = vrot.lane.b32.xlu2 %v5595_v8, %s5237_s1 }
 0x237   :  { %1048 = vrot.lane.b32.xlu1 %v5592_v16, %s5244_s17  ;;  %860 = vrot.lane.b32.xlu0 %v5589_v14, %s5240_s13 }
 0x238   :  { %918 = vrot.lane.b32.xlu2 %v5595_v8, %s5241_s14 }
 0x23f   :  { %778 = vrot.lane.b32.xlu1 %v5592_v16, %s5238_s11  ;;  %746 = vrot.lane.b32.xlu0 %v5589_v14, %s5237_s1 }
 0x240   :  { %1044 = vrot.lane.b32.xlu2 %v5595_v8, %s5244_s17 }
 0x247   :  { %820 = vrot.lane.b32.xlu1 %v5592_v16, %s5239_s12  ;;  %1628 = vrot.lane.b32.xlu0 %v5660_v24, %s5241_s14 }
 0x248   :  { %1666 = vrot.lane.b32.xlu2 %v5662_v26, %s5242_s15 }
 0x24a   :  { %v5670_v18 = vpop.permute.xlu2 %916 }
 0x24f   :  { %862 = vrot.lane.b32.xlu1 %v5592_v16, %s5240_s13  ;;  %1670 = vrot.lane.b32.xlu0 %v5660_v24, %s5242_s15 }
 0x250   :  { %1626 = vrot.lane.b32.xlu2 %v5672_v0, %s5241_s14 }
 0x252   :  { %v5680_v27 = vpop.permute.xlu2 %958 }
 0x257   :  { %748 = vrot.lane.b32.xlu1 %v5592_v16, %s5237_s1  ;;  %1712 = vrot.lane.b32.xlu0 %v5660_v24, %s5243_s16 }
 0x258   :  { %1668 = vrot.lane.b32.xlu2 %v5672_v0, %s5242_s15 }
 0x25a   :  { %v5688_v28 = vpop.permute.xlu2 %1000 }
 0x25f   :  { %1754 = vrot.lane.b32.xlu0 %v5660_v24, %s5244_s17  ;;  %1480 = vrot.lane.b32.xlu1 %v5662_v26, %s5238_s11 }
 0x260   :  { %1710 = vrot.lane.b32.xlu2 %v5672_v0, %s5243_s16 }
 0x261   :  { %v5696_v25 = vpop.permute.xlu1 %814  ;;  %v5698_v29 = vpop.permute.xlu0 %772 }
 0x262   :  { %v5700_v31 = vpop.permute.xlu2 %1042 }
 0x267   :  { %1484 = vrot.lane.b32.xlu0 %v5660_v24, %s5238_s11  ;;  %1522 = vrot.lane.b32.xlu1 %v5662_v26, %s5239_s12 }
 0x268   :  { %1752 = vrot.lane.b32.xlu2 %v5672_v0, %s5244_s17 }
 0x269   :  { %v5714_v34 = vpop.permute.xlu0 %742  ;;  %v1003_v35 = vpop.permute.xlu1 %1002 }
 0x26a   :  { %v5716_v36 = vpop.permute.xlu2 %856  ;;  %v1010_v54 = vsel %vm452_vm7, %v5688_v28, %v1003_v35 }
 0x26b   :  { %v1022_v63 = vmul.f32 %v1014_v33, %v1010_v54  ;;  %v757_v33 = vperm.slane %v5796_v17, 1 }
 0x26d   :  { %v1030_v22 = vrot.slane %v1022_v63, 2 }
 0x26f   :  { %1038 = vst [vmem:[#allocation2 + $0x50] sm:$0xc0] %v1030_v22  ;;  %1526 = vrot.lane.b32.xlu0 %v5660_v24, %s5239_s12  ;;  %1564 = vrot.lane.b32.xlu1 %v5662_v26, %s5240_s13 }
 0x270   :  { %1482 = vrot.lane.b32.xlu2 %v5672_v0, %s5238_s11 }
 0x271   :  { %v5739_v59 = vpop.permute.xlu1 %1622  ;;  %v961_v41 = vpop.permute.xlu0 %960 }
 0x272   :  { %v968_v42 = vsel %vm397_vm5, %v5680_v27, %v961_v41  ;;  %v5744_v6 = vpop.permute.xlu2 %774 }
 0x273   :  { %v980_v30 = vmul.f32 %v972_v39, %v968_v42  ;;  %v782_v52 = vsel %vm135_vm2, %v5698_v29, %v5744_v6 }
 0x274   :  { %v795_v13 = vmul.f32 %v787_v40, %v782_v52 }
 0x275   :  { %v988_v44 = vrot.slane %v980_v30, 4  ;;  %v4993_v30 = vld [vmem:[%s8055_s3 + $0x5] ss:$8 sm:$0xf] }
 0x276   :  { %v803_v47 = vrot.slane %v795_v13, 6  ;;  %v933_v13 = vperm.slane %v4993_v30, 3 }
 0x277   :  { %996 = vst [vmem:[#allocation2 + $0x50] sm:$0x30] %v988_v44  ;;  %1568 = vrot.lane.b32.xlu0 %v5660_v24, %s5240_s13  ;;  %1450 = vrot.lane.b32.xlu1 %v5662_v26, %s5237_s1  ;;  %v930_v44 = vperm.slane %v4993_v30, 0 }
 0x278   :  { %811 = vst [vmem:[#allocation2] sm:$0xc] %v803_v47  ;;  %1524 = vrot.lane.b32.xlu2 %v5672_v0, %s5239_s12  ;;  %v931_v47 = vperm.slane %v4993_v30, 1 }
 0x279   :  { %v5762_v49 = vpop.permute.xlu1 %1664  ;;  %v921_v51 = vpop.permute.xlu0 %920 }
 0x27a   :  { %v5764_v56 = vpop.permute.xlu2 %816 }
 0x27b   :  { %v824_v57 = vsel %vm190_vm3, %v5696_v25, %v5764_v56 }
 0x27c   :  { %v837_v58 = vmul.f32 %v829_v48, %v824_v57 }
 0x27e   :  { %v845_v60 = vrot.slane %v837_v58, 4 }
 0x27f   :  { %1454 = vrot.lane.b32.xlu0 %v5660_v24, %s5237_s1  ;;  %1624 = vrot.lane.b32.xlu1 %v5662_v26, %s5241_s14 }
 0x280   :  { %853 = vst [vmem:[#allocation2] sm:$0x30] %v845_v60  ;;  %1566 = vrot.lane.b32.xlu2 %v5672_v0, %s5240_s13 }
 0x281   :  { %v5783_v2 = vpop.permute.xlu1 %1706  ;;  %v963_v3 = vpop.permute.xlu0 %962 }
 0x282   :  { %v967_v5 = vsel %vm397_vm5, %v961_v41, %v963_v3  ;;  %v5787_v9 = vpop.permute.xlu2 %858 }
 0x283   :  { %v981_v10 = vmul.f32 %v973_v61, %v967_v5  ;;  %v866_v12 = vsel %vm249_vm4, %v5716_v36, %v5787_v9 }
 0x284   :  { %v879_v15 = vmul.f32 %v871_v1, %v866_v12 }
 0x285   :  { %v989_v7 = vrot.slane %v981_v10, 4 }
 0x286   :  { %v887_v19 = vrot.slane %v879_v15, 2 }
 0x287   :  { %997 = vst [vmem:[#allocation2 + $0x68] sm:$0x30] %v989_v7  ;;  %1708 = vrot.lane.b32.xlu0 %v5662_v26, %s5243_s16  ;;  %1750 = vrot.lane.b32.xlu1 %v5662_v26, %s5244_s17 }
 0x288   :  { %895 = vst [vmem:[#allocation2] sm:$0xc0] %v887_v19  ;;  %1452 = vrot.lane.b32.xlu2 %v5672_v0, %s5237_s1 }
 0x289   :  { %v5806_v54 = vpop.permute.xlu1 %1748  ;;  %v5808_v63 = vpop.permute.xlu0 %1004 }
 0x28a   :  { %v1009_v22 = vsel %vm452_vm7, %v1003_v35, %v5808_v63  ;;  %v5813_v39 = vpop.permute.xlu2 %744  ;;  %v932_v35 = vperm.slane %v4993_v30, 2 }
 0x28b   :  { %v1023_v40 = vmul.f32 %v1015_v20, %v1009_v22  ;;  %v752_v41 = vsel %vm93_vm1, %v5714_v34, %v5813_v39 }
 0x28c   :  { %v765_v42 = vmul.f32 %v757_v33, %v752_v41  ;;  %v5843_v33 = vld [vmem:[%s8055_s3 + $0x20] ss:$8 sm:$0xf]  ;;  %v974_v41 = vperm.slane %v5724_v37, 2 }
 0x28d   :  { %v1031_v52 = vrot.slane %v1023_v40, 2 }
 0x28e   :  { %769 = vst [vmem:[#allocation2] sm:$0x3] %v765_v42  ;;  %v788_v42 = vperm.slane %v5729_v38, 2 }
 0x28f   :  { %1039 = vst [vmem:[#allocation2 + $0x68] sm:$0xc0] %v1031_v52  ;;  %1520 = vrot.lane.b32.xlu0 %v5604_v21, %s5239_s12  ;;  %1562 = vrot.lane.b32.xlu1 %v5604_v21, %s5240_s13 }
 0x290   :  { %1478 = vrot.lane.b32.xlu2 %v5604_v21, %s5238_s11 }
 0x291   :  { %v923_v48 = vpop.permute.xlu1 %922  ;;  %v5828_v57 = vpop.permute.xlu0 %1046 }
 0x292   :  { %v924_v58 = vsel %vm338_vm6, %v921_v51, %v923_v48  ;;  %v927_v60 = vsel %vm338_vm6, %v923_v48, %v5670_v18  ;;  %v919_v61 = vpop.permute.xlu2 %918  ;;  %v5866_v48 = vld [vmem:[%s8055_s3 + $0x4] ss:$8 sm:$0xf] }
 0x293   :  { %v940_v1 = vmul.f32 %v932_v35, %v924_v58  ;;  %v941_v5 = vmul.f32 %v933_v13, %v927_v60  ;;  %v925_v10 = vsel %vm338_vm6, %v919_v61, %v921_v51  ;;  %v926_v12 = vsel %vm338_vm6, %v5670_v18, %v919_v61 }
 0x294   :  { %v938_v15 = vmul.f32 %v930_v44, %v926_v12  ;;  %v939_v7 = vmul.f32 %v931_v47, %v925_v10  ;;  %v975_v51 = vperm.slane %v5724_v37, 3  ;;  %v1057_v18 = vperm.slane %v5843_v33, 1 }
 0x295   :  { %v948_v19 = vrot.slane %v940_v1, 6  ;;  %v949_v20 = vrot.slane %v941_v5, 6  ;;  %v1056_v44 = vperm.slane %v5843_v33, 0  ;;  %v1607_v61 = vperm.slane %v5866_v48, 1 }
 0x296   :  { %v946_v22 = vrot.slane %v938_v15, 6  ;;  %v947_v40 = vrot.slane %v939_v7, 6  ;;  %v5878_v15 = vld [vmem:[%s8055_s3 + $0x6] ss:$8 sm:$0xf]  ;;  %v1606_v7 = vperm.slane %v5866_v48, 0 }
 0x297   :  { %956 = vst [vmem:[#allocation2 + $0x8] sm:$0xc] %v948_v19 }
 0x298   :  { %957 = vst [vmem:[#allocation2 + $0x48] sm:$0xc] %v949_v20  ;;  %1448 = vrot.lane.b32.xlu2 %v5604_v21, %s5237_s1  ;;  %v1016_v20 = vperm.slane %v5705_v32, 2 }
 0x299   :  { %954 = vst [vmem:[#allocation2 + $0x50] sm:$0xc] %v946_v22  ;;  %v965_v30 = vpop.permute.xlu1 %964  ;;  %v5851_v52 = vpop.permute.xlu0 %776  ;;  %v1017_v22 = vperm.slane %v5705_v32, 3 }
 0x29a   :  { %955 = vst [vmem:[#allocation2 + $0x68] sm:$0xc] %v947_v40  ;;  %v966_v35 = vsel %vm397_vm5, %v963_v3, %v965_v30  ;;  %v969_v37 = vsel %vm397_vm5, %v965_v30, %v5680_v27  ;;  %v781_v13 = vsel %vm135_vm2, %v5744_v6, %v5851_v52  ;;  %v1045_v47 = vpop.permute.xlu2 %1044  ;;  %v830_v40 = vperm.slane %v5753_v46, 2 }
 0x29b   :  { %v982_v58 = vmul.f32 %v974_v41, %v966_v35  ;;  %v983_v60 = vmul.f32 %v975_v51, %v969_v37  ;;  %v796_v3 = vmul.f32 %v788_v42, %v781_v13  ;;  %v1051_v27 = vsel %vm507_vm8, %v1045_v47, %v5828_v57 }
 0x29c   :  { %v1052_v6 = vsel %vm507_vm8, %v5700_v31, %v1045_v47  ;;  %v1065_v1 = vmul.f32 %v1057_v18, %v1051_v27  ;;  %v1615_v41 = vmul.f32 %v1607_v61, %v5662_v26  ;;  %v1678_v51 = vperm.slane %v5878_v15, 0 }
 0x29d   :  { %v990_v5 = vrot.slane %v982_v58, 4  ;;  %v991_v10 = vrot.slane %v983_v60, 4  ;;  %v804_v12 = vrot.slane %v796_v3, 6  ;;  %v1064_v19 = vmul.f32 %v1056_v44, %v1052_v6 }
 0x29e   :  { %1069 = vst [vmem:[#allocation2 + $0x20] sm:$0x3] %v1065_v1  ;;  %v1614_v47 = vmul.f32 %v1606_v7, %v5604_v21  ;;  %v1059_v7 = vperm.slane %v5843_v33, 3 }
 0x29f   :  { %998 = vst [vmem:[#allocation2 + $0x8] sm:$0x30] %v990_v5 }
 0x2a0   :  { %999 = vst [vmem:[#allocation2 + $0x48] sm:$0x30] %v991_v10  ;;  %v5886_v42 = vld [vmem:[#allocation2 + $0x50] sm:$0xff]  ;;  %v1073_v10 = vld [vmem:[#allocation2] sm:$0xff] }
 0x2a1   :  { %v5888_v18 = vld [vmem:[#allocation2 + $0x68] sm:$0xff]  ;;  %812 = vst [vmem:[#allocation2 + $0x58] sm:$0xc] %v804_v12  ;;  %v1007_v30 = vpop.permute.xlu1 %1006  ;;  %v5890_v35 = vpop.permute.xlu0 %818  ;;  %v1058_v12 = vperm.slane %v5843_v33, 2 }
 0x2a2   :  { %1619 = vst [vmem:[#allocation2 + $0x68] sm:$0x3] %v1615_v41  ;;  %v1008_v32 = vsel %vm452_vm7, %v5808_v63, %v1007_v30  ;;  %v1011_v37 = vsel %vm452_vm7, %v1007_v30, %v5688_v28  ;;  %v823_v13 = vsel %vm190_vm3, %v5764_v56, %v5890_v35  ;;  %v5902_v44 = vpop.permute.xlu2 %1666 }
 0x2a3   :  { %1068 = vst [vmem:[#allocation2 + $0x40] sm:$0x3] %v1064_v19  ;;  %v1024_v58 = vmul.f32 %v1016_v20, %v1008_v32  ;;  %v1025_v60 = vmul.f32 %v1017_v22, %v1011_v37  ;;  %v838_v3 = vmul.f32 %v830_v40, %v823_v13  ;;  %v1674_v63 = vsel %vm397_vm5, %v5762_v49, %v5902_v44 }
 0x2a4   :  { %v1686_v27 = vmul.f32 %v1678_v51, %v1674_v63  ;;  %1618 = vst [vmem:[#allocation2 + $0x50] sm:$0x3] %v1614_v47  ;;  %v872_v19 = vperm.slane %v5773_v43, 2  ;;  %v1094_v20 = vmax.f32 %v5888_v18, 0.0  ;;  %v1608_v22 = vperm.slane %v5866_v48, 2  ;;  %v5934_v47 = vld [vmem:[%s8056_s4 + $0x18] sm:$0xff] }
 0x2a5   :  { %v1032_v28 = vrot.slane %v1024_v58, 2  ;;  %v1033_v61 = vrot.slane %v1025_v60, 2  ;;  %v846_v6 = vrot.slane %v838_v3, 4  ;;  %v1081_v1 = vld [vmem:[#allocation2 + $0x20] sm:$0xff]  ;;  %v1609_v40 = vperm.slane %v5866_v48, 3 }
 0x2a6   :  { %v1694_v56 = vrot.slane %v1686_v27, 4  ;;  %v1098_v5 = vmax.f32 %v1081_v1, 0.0  ;;  %v1090_v13 = vmax.f32 %v1073_v10, 0.0  ;;  %v1093_v63 = vmax.f32 %v5886_v42, 0.0 }
 0x2a7   :  { %1040 = vst [vmem:[#allocation2 + $0x8] sm:$0xc0] %v1032_v28  ;;  %v1617_v27 = vmul.f32 %v1609_v40, %v5660_v24 }
 0x2a8   :  { %1041 = vst [vmem:[#allocation2 + $0x48] sm:$0xc0] %v1033_v61  ;;  %1141 = vmatpush.msrb.mxu1 %v1098_v5  ;;  %v758_v5 = vperm.slane %v5796_v17, 2 }
 0x2a9   :  { %854 = vst [vmem:[#allocation2 + $0x58] sm:$0x30] %v846_v6  ;;  %v1049_v41 = vpop.permute.xlu1 %1048  ;;  %v5915_v51 = vpop.permute.xlu0 %860  ;;  %v786_v6 = vperm.slane %v5729_v38, 0 }
 0x2aa   :  { %1702 = vst [vmem:[#allocation2 + $0x50] sm:$0x30] %v1694_v56  ;;  %v5917_v30 = vld [vmem:[#allocation2 + $0x40] sm:$0xff]  ;;  %v1050_v33 = vsel %vm507_vm8, %v5828_v57, %v1049_v41  ;;  %v1053_v32 = vsel %vm507_vm8, %v1049_v41, %v5700_v31  ;;  %v865_v48 = vsel %vm249_vm4, %v5787_v9, %v5915_v51  ;;  %1142 = vmatpush.msrb.mxu1 %v1094_v20  ;;  %v5929_v37 = vpop.permute.xlu2 %1626  ;;  %v789_v56 = vperm.slane %v5729_v38, 3 }
 0x2ab   :  { %v1097_v57 = vmax.f32 %v5917_v30, 0.0  ;;  %v1066_v58 = vmul.f32 %v1058_v12, %v1050_v33  ;;  %v1067_v60 = vmul.f32 %v1059_v7, %v1053_v32  ;;  %v880_v3 = vmul.f32 %v872_v19, %v865_v48 }
 0x2ac   :  { %1143 = vmatpush.msrb.mxu1 %v1090_v13  ;;  %v1616_v31 = vmul.f32 %v1608_v22, %v5672_v0  ;;  %v1679_v12 = vperm.slane %v5878_v15, 1 }
 0x2ad   :  { %1121 = vmatpush.msrb.mxu0 %v1097_v57  ;;  %1070 = vst [vmem:[#allocation2 + $0x10] sm:$0x3] %v1066_v58  ;;  %v888_v9 = vrot.slane %v880_v3, 2  ;;  %4998 = vmatmul.msk.f32.vlgmr.msrb.gmra.mxu1 %vm548_vm9, %v5934_v47  ;;  %v831_v3 = vperm.slane %v5753_v46, 3 }
 0x2ae   :  { %v5942_v28 = vld [vmem:[#allocation2 + $0x8] sm:$0xff]  ;;  %1071 = vst [vmem:[#allocation2 + $0x38] sm:$0x3] %v1067_v60  ;;  %1223 = vmatpush.msra.mxu1 %v5549_v45  ;;  %v828_v60 = vperm.slane %v5753_v46, 0 }
 0x2af   :  { %v5945_v61 = vld [vmem:[#allocation2 + $0x48] sm:$0xff]  ;;  %1620 = vst [vmem:[#allocation2 + $0x8] sm:$0x3] %v1616_v31  ;;  %1122 = vmatpush.msrb.mxu0 %v1093_v63  ;;  %v1095_v31 = vmax.f32 %v5942_v28, 0.0 }
 0x2b0   :  { %1621 = vst [vmem:[#allocation2 + $0x48] sm:$0x3] %v1617_v27  ;;  %1224 = vmatpush.msra.mxu1 %v1081_v1 }
 0x2b1   :  { %896 = vst [vmem:[#allocation2 + $0x58] sm:$0xc0] %v888_v9  ;;  %v779_v7 = vpop.permute.xlu1 %778  ;;  %v5951_v19 = vpop.permute.xlu0 %746  ;;  %v1096_v9 = vmax.f32 %v5945_v61, 0.0 }
 0x2b2   :  { %1225 = vmatpush.msra.mxu1 %v5888_v18  ;;  %v780_v20 = vsel %vm135_vm2, %v5851_v52, %v779_v7  ;;  %v783_v38 = vsel %vm135_vm2, %v779_v7, %v5698_v29  ;;  %v751_v1 = vsel %vm93_vm1, %v5813_v39, %v5951_v19  ;;  %v5964_v22 = vpop.permute.xlu2 %1668  ;;  %v5973_v52 = vld [vmem:[%s8056_s4 + $0x40] sm:$0x3]  ;;  %v5980_v39 = vld [vmem:[%s8055_s3 + $0x5] ss:$8 sm:$0xf] }
 0x2b3   :  { %v794_v40 = vmul.f32 %v786_v6, %v783_v38  ;;  %v797_v41 = vmul.f32 %v789_v56, %v780_v20  ;;  %v766_v33 = vmul.f32 %v758_v5, %v751_v1  ;;  %v1673_v18 = vsel %vm397_vm5, %v5902_v44, %v5964_v22 }
 0x2b4   :  { %v1687_v29 = vmul.f32 %v1679_v12, %v1673_v18  ;;  %1226 = vmatpush.msra.mxu1 %v1073_v10  ;;  %v5975_v32 = vld [vmem:[#allocation2 + $0x10] sm:$0xff]  ;;  %v1638_v45 = vperm.slane %v5980_v39, 2 }
 0x2b5   :  { %v802_v48 = vrot.slane %v794_v40, 6  ;;  %v805_v13 = vrot.slane %v797_v41, 6  ;;  %770 = vst [vmem:[#allocation2 + $0x58] sm:$0x3] %v766_v33  ;;  %v1099_v44 = vmax.f32 %v5975_v32, 0.0  ;;  %v5985_v57 = vld [vmem:[#allocation2 + $0x38] sm:$0xff]  ;;  %5002 = vmatmul.msk.f32.vlgmr.msra.gmra.mxu1 %vm548_vm9, %v5973_v52 }
 0x2b6   :  { %1846 = vmatpush.msrb.mxu1 %v1102_v4  ;;  %v1695_v58 = vrot.slane %v1687_v29, 4  ;;  %v1100_v10 = vmax.f32 %v5985_v57, 0.0  ;;  %v1639_v4 = vperm.slane %v5980_v39, 3  ;;  %v870_v29 = vperm.slane %v5773_v43, 0 }
 0x2b7   :  { %810 = vst [vmem:[#allocation2 + $0x30] sm:$0xc] %v802_v48  ;;  %1161 = vmatpush.msra.mxu2 %v1099_v44  ;;  %v873_v48 = vperm.slane %v5773_v43, 3  ;;  %v1681_v44 = vperm.slane %v5878_v15, 3 }
 0x2b8   :  { %813 = vst [vmem:[#allocation2 + $0x18] sm:$0xc] %v805_v13  ;;  %1181 = vmatpush.msra.mxu3 %v1100_v10  ;;  %v1680_v13 = vperm.slane %v5878_v15, 2 }
 0x2b9   :  { %1703 = vst [vmem:[#allocation2 + $0x68] sm:$0x30] %v1695_v58  ;;  %v821_v63 = vpop.permute.xlu1 %820  ;;  %1162 = vmatpush.msra.mxu2 %v1095_v31  ;;  %v1629_v27 = vpop.permute.xlu0 %1628 }
 0x2ba   :  { %1182 = vmatpush.msra.mxu3 %v1096_v9  ;;  %v822_v6 = vsel %vm190_vm3, %v5890_v35, %v821_v63  ;;  %v825_v46 = vsel %vm190_vm3, %v821_v63, %v5696_v25  ;;  %v1630_v56 = vsel %vm338_vm6, %v5929_v37, %v1629_v27  ;;  %v1633_v5 = vsel %vm338_vm6, %v1629_v27, %v5739_v59  ;;  %v6008_v12 = vpop.permute.xlu2 %1710 }
 0x2bb   :  { %v836_v7 = vmul.f32 %v828_v60, %v825_v46  ;;  %v839_v20 = vmul.f32 %v831_v3, %v822_v6  ;;  %v1646_v38 = vmul.f32 %v1638_v45, %v1630_v56  ;;  %v1647_v1 = vmul.f32 %v1639_v4, %v1633_v5 }
 0x2bc   :  { %v1074_v40 = vld [vmem:[#allocation2 + $0x58] sm:$0xff]  ;;  %v756_v46 = vperm.slane %v5796_v17, 0 }
 0x2bd   :  { %v844_v35 = vrot.slane %v836_v7, 4  ;;  %v847_v41 = vrot.slane %v839_v20, 4  ;;  %v1654_v33 = vrot.slane %v1646_v38, 6  ;;  %v1655_v18 = vrot.slane %v1647_v1, 6 }
 0x2be   :  { %v1091_v25 = vmax.f32 %v1074_v40, 0.0 }
 0x2bf   :  { %852 = vst [vmem:[#allocation2 + $0x30] sm:$0x30] %v844_v35 }
 0x2c0   :  { %855 = vst [vmem:[#allocation2 + $0x18] sm:$0x30] %v847_v41  ;;  %1163 = vmatpush.msra.mxu2 %v1091_v25 }
 0x2c1   :  { %1662 = vst [vmem:[#allocation2 + $0x8] sm:$0xc] %v1654_v33  ;;  %4999 = vmatmul.msk.f32.vlgmr.msra.gmra.mxu2 %vm548_vm9, %v5934_v47  ;;  %v863_v58 = vpop.permute.xlu1 %862  ;;  %v1671_v10 = vpop.permute.xlu0 %1670 }
 0x2c2   :  { %1663 = vst [vmem:[#allocation2 + $0x48] sm:$0xc] %v1655_v18  ;;  %1243 = vmatpush.msrb.mxu2 %v5518_v23  ;;  %v864_v60 = vsel %vm249_vm4, %v5915_v51, %v863_v58  ;;  %v867_v43 = vsel %vm249_vm4, %v863_v58, %v5716_v36  ;;  %v1672_v15 = vsel %vm397_vm5, %v5964_v22, %v1671_v10  ;;  %v6026_v3 = vpop.permute.xlu2 %1752  ;;  %v6035_v36 = vld [vmem:[%s8055_s3 + $0x7] ss:$8 sm:$0xf] }
 0x2c3   :  { %v878_v31 = vmul.f32 %v870_v29, %v867_v43  ;;  %v881_v45 = vmul.f32 %v873_v48, %v864_v60  ;;  %v1675_v4 = vsel %vm397_vm5, %v1671_v10, %v5762_v49  ;;  %v1688_v9 = vmul.f32 %v1680_v13, %v1672_v15 }
 0x2c4   :  { %v1689_v63 = vmul.f32 %v1681_v44, %v1675_v4  ;;  %1244 = vmatpush.msrb.mxu2 %v5975_v32  ;;  %v759_v49 = vperm.slane %v5796_v17, 3  ;;  %v1722_v56 = vperm.slane %v6035_v36, 2  ;;  %v1723_v32 = vperm.slane %v6035_v36, 3  ;;  %v6085_v4 = vld [vmem:[%s8055_s3 + $0x2] ss:$8 sm:$0xf] }
 0x2c5   :  { %v886_v51 = vrot.slane %v878_v31, 2  ;;  %v889_v27 = vrot.slane %v881_v45, 2  ;;  %v1696_v22 = vrot.slane %v1688_v9, 4 }
 0x2c6   :  { %v1697_v6 = vrot.slane %v1689_v63, 4  ;;  %1245 = vmatpush.msrb.mxu2 %v5942_v28 }
 0x2c7   :  { %894 = vst [vmem:[#allocation2 + $0x30] sm:$0xc0] %v886_v51 }
 0x2c8   :  { %897 = vst [vmem:[#allocation2 + $0x18] sm:$0xc0] %v889_v27  ;;  %1246 = vmatpush.msrb.mxu2 %v1074_v40 }
 0x2c9   :  { %1704 = vst [vmem:[#allocation2 + $0x8] sm:$0x30] %v1696_v22  ;;  %v749_v5 = vpop.permute.xlu1 %748  ;;  %v1713_v7 = vpop.permute.xlu0 %1712  ;;  %5003 = vmatmul.msk.f32.vlgmr.msrb.gmra.mxu2 %vm548_vm9, %v5973_v52 }
 0x2ca   :  { %1866 = vmatpush.msra.mxu2 %v1103_v55  ;;  %1705 = vst [vmem:[#allocation2 + $0x48] sm:$0x30] %v1697_v6  ;;  %v750_v17 = vsel %vm93_vm1, %v5951_v19, %v749_v5  ;;  %v753_v28 = vsel %vm93_vm1, %v749_v5, %v5714_v34  ;;  %v1714_v20 = vsel %vm452_vm7, %v6008_v12, %v1713_v7  ;;  %v1483_v23 = vpop.permute.xlu2 %1482  ;;  %v6061_v19 = vld [vmem:[%s8055_s3 + $0x20] ss:$8 sm:$0xf]  ;;  %v1536_v6 = vperm.slane %v6085_v4, 2 }
 0x2cb   :  { %v764_v55 = vmul.f32 %v756_v46, %v753_v28  ;;  %v767_v38 = vmul.f32 %v759_v49, %v750_v17  ;;  %v1717_v1 = vsel %vm452_vm7, %v1713_v7, %v5783_v2  ;;  %v1730_v40 = vmul.f32 %v1722_v56, %v1714_v20  ;;  %v6066_v34 = vld [vmem:[%s8055_s3 + $0x1] ss:$8 sm:$0xf] }
 0x2cc   :  { %v1731_v35 = vmul.f32 %v1723_v32, %v1717_v1  ;;  %v1764_v18 = vperm.slane %v6061_v19, 2  ;;  %v1765_v25 = vperm.slane %v6061_v19, 3  ;;  %v1494_v29 = vperm.slane %v6066_v34, 2  ;;  %v5190_v56 = vld [vmem:[#allocation2 + $0x28] sm:$0xff] }
 0x2cd   :  { %768 = vst [vmem:[#allocation2 + $0x30] sm:$0x3] %v764_v55  ;;  %v1738_v41 = vrot.slane %v1730_v40, 2  ;;  %v1495_v22 = vperm.slane %v6066_v34, 3  ;;  %v6108_v20 = vld [vmem:[#allocation2 + $0x28] sm:$0xff] }
 0x2ce   :  { %771 = vst [vmem:[#allocation2 + $0x18] sm:$0x3] %v767_v38  ;;  %v1739_v33 = vrot.slane %v1731_v35, 2  ;;  %v6113_v55 = vld [vmem:[%s8055_s3 + $0x3] ss:$8 sm:$0xf] }
 0x2cf   :  { %1746 = vst [vmem:[#allocation2 + $0x8] sm:$0xc0] %v1738_v41  ;;  %v1537_v35 = vperm.slane %v6085_v4, 3  ;;  %v1578_v41 = vperm.slane %v6113_v55, 2 }
 0x2d0   :  { %1747 = vst [vmem:[#allocation2 + $0x48] sm:$0xc0] %v1739_v33 }
 0x2d1   :  { %v1755_v48 = vpop.permute.xlu0 %1754  ;;  %v6071_v13 = vpop.permute.xlu1 %1480 }
 0x2d2   :  { %v1756_v44 = vsel %vm507_vm8, %v6026_v3, %v1755_v48  ;;  %v1759_v58 = vsel %vm507_vm8, %v1755_v48, %v5806_v54  ;;  %v1525_v10 = vpop.permute.xlu2 %1524  ;;  %v1487_v60 = vsel %vm135_vm2, %v6071_v13, %v1483_v23 }
 0x2d3   :  { %v1772_v43 = vmul.f32 %v1764_v18, %v1756_v44  ;;  %v1773_v15 = vmul.f32 %v1765_v25, %v1759_v58  ;;  %v1502_v31 = vmul.f32 %v1494_v29, %v1487_v60  ;;  %v1460_v60 = vld [vmem:[%s8055_s3] ss:$8 sm:$0xf] }
 0x2d4   :  { %v1072_v45 = vld [vmem:[#allocation2 + $0x30] sm:$0xff] }
 0x2d5   :  { %v1075_v9 = vld [vmem:[#allocation2 + $0x18] sm:$0xff]  ;;  %1776 = vst [vmem:[#allocation2 + $0x10] sm:$0x3] %v1772_v43  ;;  %v1510_v63 = vrot.slane %v1502_v31, 6  ;;  %v1089_v51 = vmax.f32 %v1072_v45, 0.0  ;;  %v1464_v31 = vperm.slane %v1460_v60, 2 }
 0x2d6   :  { %1777 = vst [vmem:[#allocation2 + $0x38] sm:$0x3] %v1773_v15  ;;  %v1092_v27 = vmax.f32 %v1075_v9, 0.0 }
 0x2d7   :  { %1518 = vst [vmem:[#allocation2 + $0x58] sm:$0xc] %v1510_v63  ;;  %1123 = vmatpush.msrb.mxu0 %v1089_v51  ;;  %v6125_v33 = vld [vmem:[#allocation2 + $0x48] sm:$0xff] }
 0x2d8   :  { %1183 = vmatpush.msra.mxu3 %v1092_v27  ;;  %4997 = vmatmul.msk.f32.vlgmr.msrb.gmra.mxu0 %vm548_vm9, %v5934_v47  ;;  %v1802_v58 = vmax.f32 %v6125_v33, 0.0 }
 0x2d9   :  { %5000 = vmatmul.msk.f32.vlgmr.msra.gmra.mxu3 %vm548_vm9, %v5934_v47  ;;  %1203 = vmatpush.msra.mxu0 %v5543_v50  ;;  %v6094_v46 = vpop.permute.xlu0 %1484  ;;  %v6096_v49 = vpop.permute.xlu1 %1522 }
 0x2da   :  { %1263 = vmatpush.msrb.mxu3 %v5190_v56  ;;  %v1486_v32 = vsel %vm135_vm2, %v1483_v23, %v6094_v46  ;;  %v1567_v5 = vpop.permute.xlu2 %1566  ;;  %v1529_v7 = vsel %vm190_vm3, %v6096_v49, %v1525_v10  ;;  %v6115_v23 = vld [vmem:[#allocation2 + $0x8] sm:$0xff] }
 0x2db   :  { %v1503_v17 = vmul.f32 %v1495_v22, %v1486_v32  ;;  %v1544_v28 = vmul.f32 %v1536_v6, %v1529_v7  ;;  %1204 = vmatpush.msra.mxu0 %v5917_v30 }
 0x2dc   :  { %1264 = vmatpush.msrb.mxu3 %v5985_v57  ;;  %v6106_v47 = vld [vmem:[#allocation2 + $0x10] sm:$0xff]  ;;  %v8059_v57 = vmax.f32 %v6108_v20, 0.0 }
 0x2dd   :  { %v1511_v38 = vrot.slane %v1503_v17, 6  ;;  %v1552_v1 = vrot.slane %v1544_v28, 4  ;;  %1205 = vmatpush.msra.mxu0 %v5886_v42  ;;  %v1805_v40 = vmax.f32 %v6106_v47, 0.0  ;;  %v6120_v30 = vld [vmem:[#allocation2 + $0x38] sm:$0xff]  ;;  %v1801_v42 = vmax.f32 %v6115_v23, 0.0 }
 0x2de   :  { %1265 = vmatpush.msrb.mxu3 %v5945_v61  ;;  %v1806_v61 = vmax.f32 %v6120_v30, 0.0 }
 0x2df   :  { %1519 = vst [vmem:[#allocation2 + $0x18] sm:$0xc] %v1511_v38  ;;  %1206 = vmatpush.msra.mxu0 %v1072_v45  ;;  %1867 = vmatpush.msra.mxu2 %v1805_v40  ;;  %v1492_v45 = vperm.slane %v6066_v34, 0  ;;  %v1465_v40 = vperm.slane %v1460_v60, 3 }
 0x2e0   :  { %1560 = vst [vmem:[#allocation2 + $0x58] sm:$0x30] %v1552_v1  ;;  %1266 = vmatpush.msrb.mxu3 %v1075_v9  ;;  %5001 = vmatmul.msk.f32.vlgmr.msra.gmra.mxu0 %vm548_vm9, %v5973_v52  ;;  %v1493_v9 = vperm.slane %v6066_v34, 1 }
 0x2e1   :  { %1826 = vmatpush.msrb.mxu0 %v1101_v62  ;;  %v6135_v18 = vpop.permute.xlu0 %1526  ;;  %v6137_v25 = vpop.permute.xlu1 %1564  ;;  %5004 = vmatmul.msk.f32.vlgmr.msrb.gmra.mxu3 %vm548_vm9, %v5973_v52 }
 0x2e2   :  { %1886 = vmatpush.msra.mxu3 %v8059_v57  ;;  %v1528_v50 = vsel %vm190_vm3, %v1525_v10, %v6135_v18  ;;  %1868 = vmatpush.msra.mxu2 %v1801_v42  ;;  %v1453_v62 = vpop.permute.xlu2 %1452  ;;  %v1571_v29 = vsel %vm249_vm4, %v6137_v25, %v1567_v5  ;;  %v1579_v10 = vperm.slane %v6113_v55, 3 }
 0x2e3   :  { %v1545_v48 = vmul.f32 %v1537_v35, %v1528_v50  ;;  %v1586_v44 = vmul.f32 %v1578_v41, %v1571_v29  ;;  %v1636_v35 = vperm.slane %v5980_v39, 0  ;;  %v1463_v41 = vperm.slane %v1460_v60, 1 }
 0x2e4   :  { %1887 = vmatpush.msra.mxu3 %v1806_v61 }
 0x2e5   :  { %v1553_v43 = vrot.slane %v1545_v48, 4  ;;  %v1594_v15 = vrot.slane %v1586_v44, 2 }
 0x2e6   :  { %1888 = vmatpush.msra.mxu3 %v1802_v58 }
 0x2e7   :  { %1561 = vst [vmem:[#allocation2 + $0x18] sm:$0x30] %v1553_v43 }
 0x2e8   :  { %1602 = vst [vmem:[#allocation2 + $0x58] sm:$0xc0] %v1594_v15 }
 0x2e9   :  { %v6154_v63 = vpop.permute.xlu0 %1568  ;;  %v1451_v51 = vpop.permute.xlu1 %1450 }
 0x2ea   :  { %v1570_v27 = vsel %vm249_vm4, %v1567_v5, %v6154_v63  ;;  %v1479_v22 = vpop.permute.xlu2 %1478  ;;  %v1457_v6 = vsel %vm93_vm1, %v1451_v51, %v1453_v62 }
 0x2eb   :  { %v1587_v56 = vmul.f32 %v1579_v10, %v1570_v27  ;;  %v1488_v32 = vsel %vm135_vm2, %v1479_v22, %v6071_v13  ;;  %v1489_v34 = vsel %vm135_vm2, %v6094_v46, %v1479_v22  ;;  %v1472_v7 = vmul.f32 %v1464_v31, %v1457_v6 }
 0x2ec   :  { %v1500_v17 = vmul.f32 %v1492_v45, %v1489_v34  ;;  %v1501_v28 = vmul.f32 %v1493_v9, %v1488_v32  ;;  %v1462_v13 = vperm.slane %v1460_v60, 0  ;;  %v1637_v46 = vperm.slane %v5980_v39, 1  ;;  %v5191_v34 = vld [vmem:[#allocation2 + $0x78] sm:$0xff] }
 0x2ed   :  { %v1595_v38 = vrot.slane %v1587_v56, 2  ;;  %1476 = vst [vmem:[#allocation2 + $0x58] sm:$0x3] %v1472_v7  ;;  %v1721_v27 = vperm.slane %v6035_v36, 1  ;;  %v1762_v22 = vperm.slane %v6061_v19, 0  ;;  %v1763_v6 = vperm.slane %v6061_v19, 1 }
 0x2ee   :  { %v1508_v1 = vrot.slane %v1500_v17, 6  ;;  %v1509_v5 = vrot.slane %v1501_v28, 6  ;;  %v6197_v56 = vstv %s6167_s23  ;;  %v6200_v32 = vstv %s6170_s24  ;;  %s5040_s23 = sld [smem:[#allocation3 + $0x181]] }
 0x2ef   :  { %1603 = vst [vmem:[#allocation2 + $0x18] sm:$0xc0] %v1595_v38  ;;  %v2008_v28 = vmul.f32 %v6200_v32, %v5672_v0  ;;  %s5044_s24 = sld [smem:[#allocation3 + $0x301]] }
 0x2f0   :  { %1516 = vst [vmem:[#allocation2 + $0x30] sm:$0xc] %v1508_v1 }
 0x2f1   :  { %1517 = vst [vmem:[#allocation2] sm:$0xc] %v1509_v5  ;;  %v1455_v42 = vpop.permute.xlu0 %1454  ;;  %v1625_v61 = vpop.permute.xlu1 %1624 }
 0x2f2   :  { %v1456_v50 = vsel %vm93_vm1, %v1453_v62, %v1455_v42  ;;  %v1449_v29 = vpop.permute.xlu2 %1448  ;;  %v1631_v48 = vsel %vm338_vm6, %v1625_v61, %v5929_v37  ;;  %v1632_v44 = vsel %vm338_vm6, %v5739_v59, %v1625_v61  ;;  %v6188_v59 = vld [vmem:[%s8056_s4 + $0x20] sm:$0xff] }
 0x2f3   :  { %v1473_v58 = vmul.f32 %v1465_v40, %v1456_v50  ;;  %v1458_v60 = vsel %vm93_vm1, %v1449_v29, %v1451_v51  ;;  %v1459_v39 = vsel %vm93_vm1, %v1455_v42, %v1449_v29  ;;  %v1644_v43 = vmul.f32 %v1636_v35, %v1632_v44 }
 0x2f4   :  { %v1780_v15 = vld [vmem:[#allocation2 + $0x58] sm:$0xff]  ;;  %v1470_v10 = vmul.f32 %v1462_v13, %v1459_v39  ;;  %v1471_v62 = vmul.f32 %v1463_v41, %v1458_v60  ;;  %v1645_v31 = vmul.f32 %v1637_v46, %v1631_v48  ;;  %v1720_v51 = vperm.slane %v6035_v36, 0 }
 0x2f5   :  { %1477 = vst [vmem:[#allocation2 + $0x18] sm:$0x3] %v1473_v58  ;;  %v1652_v37 = vrot.slane %v1644_v43, 6  ;;  %v1797_v45 = vmax.f32 %v1780_v15, 0.0  ;;  %v1314_v36 = vmul.f32 %v6197_v56, %v5589_v14  ;;  %v1576_v50 = vperm.slane %v6113_v55, 0 }
 0x2f6   :  { %1474 = vst [vmem:[#allocation2 + $0x30] sm:$0x3] %v1470_v10  ;;  %v1653_v9 = vrot.slane %v1645_v31, 6  ;;  %v1315_v48 = vmul.f32 %v6197_v56, %v5592_v16 }
 0x2f7   :  { %1475 = vst [vmem:[#allocation2] sm:$0x3] %v1471_v62  ;;  %1869 = vmatpush.msra.mxu2 %v1797_v45  ;;  %v2016_v61 = vadd.f32 %v2008_v28, %v1314_v36  ;;  %v5193_v36 = vld [vmem:[#allocation2 + $0x70] sm:$0xff]  ;;  %v2006_v28 = vmul.f32 %v6200_v32, %v5604_v21 }
 0x2f8   :  { %1660 = vst [vmem:[#allocation2 + $0x50] sm:$0xc] %v1652_v37  ;;  %5030 = vmatmul.msk.f32.vlgmr.msra.gmra.mxu2 %vm548_vm9, %v6188_v59 }
 0x2f9   :  { %1661 = vst [vmem:[#allocation2 + $0x68] sm:$0xc] %v1653_v9  ;;  %1946 = vmatpush.msrb.mxu2 %v5191_v34  ;;  %v1709_v7 = vpop.permute.xlu0 %1708  ;;  %v1751_v17 = vpop.permute.xlu1 %1750 }
 0x2fa   :  { %v1715_v19 = vsel %vm452_vm7, %v1709_v7, %v6008_v12  ;;  %v1716_v38 = vsel %vm452_vm7, %v5783_v2, %v1709_v7  ;;  %v1757_v1 = vsel %vm507_vm8, %v1751_v17, %v6026_v3  ;;  %v1758_v5 = vsel %vm507_vm8, %v5806_v54, %v1751_v17  ;;  %v5192_v17 = vld [vmem:[#allocation2 + $0x60] sm:$0xff] }
 0x2fb   :  { %v1728_v40 = vmul.f32 %v1720_v51, %v1716_v38  ;;  %v1729_v35 = vmul.f32 %v1721_v27, %v1715_v19  ;;  %v1770_v13 = vmul.f32 %v1762_v22, %v1758_v5  ;;  %v1771_v41 = vmul.f32 %v1763_v6, %v1757_v1  ;;  %1947 = vmatpush.msrb.mxu2 %v6106_v47 }
 0x2fc   :  { %v1781_v46 = vld [vmem:[#allocation2 + $0x18] sm:$0xff]  ;;  %v1534_v54 = vperm.slane %v6085_v4, 0  ;;  %v1535_v3 = vperm.slane %v6085_v4, 1  ;;  %v1577_v47 = vperm.slane %v6113_v55, 1  ;;  %v2009_v4 = vmul.f32 %v6200_v32, %v5660_v24 }
 0x2fd   :  { %v1736_v12 = vrot.slane %v1728_v40, 2  ;;  %v1737_v42 = vrot.slane %v1729_v35, 2  ;;  %1774 = vst [vmem:[#allocation2 + $0x40] sm:$0x3] %v1770_v13  ;;  %1948 = vmatpush.msrb.mxu2 %v6115_v23  ;;  %v1798_v2 = vmax.f32 %v1781_v46, 0.0  ;;  %v2007_v19 = vmul.f32 %v6200_v32, %v5662_v26 }
 0x2fe   :  { %1775 = vst [vmem:[#allocation2 + $0x20] sm:$0x3] %v1771_v41  ;;  %v1312_v38 = vmul.f32 %v6197_v56, %v5580_v11  ;;  %v1313_v1 = vmul.f32 %v6197_v56, %v5595_v8  ;;  %v6270_v32 = vld [vmem:[%s8055_s3 + $0x21] ss:$8 sm:$0xf]  ;;  %v6272_v40 = vstv %s5010_s28  ;;  %v6274_v35 = vstv %s5014_s29  ;;  %s5042_s28 = sld [smem:[#allocation3 + $0x183]] }
 0x2ff   :  { %1744 = vst [vmem:[#allocation2 + $0x50] sm:$0xc0] %v1736_v12  ;;  %1949 = vmatpush.msrb.mxu2 %v1780_v15  ;;  %1889 = vmatpush.msra.mxu3 %v1798_v2  ;;  %v6279_v13 = vperm.slane %v6270_v32, 1  ;;  %v6287_v2 = vstv %s5008_s27  ;;  %s5006_s27 = sld [smem:[#allocation3 + $0x2]] }
 0x300   :  { %1745 = vst [vmem:[#allocation2 + $0x68] sm:$0xc0] %v1737_v42  ;;  %5031 = vmatmul.msk.f32.vlgmr.msra.gmra.mxu3 %vm548_vm9, %v6188_v59  ;;  %5034 = vmatmul.msk.f32.vlgmr.msrb.gmra.mxu2 %vm548_vm9, %v5973_v52  ;;  %v2015_v5 = vadd.f32 %v2007_v19, %v1313_v1  ;;  %s5046_s29 = sld [smem:[#allocation3 + $0x303]] }
 0x301   :  { %2232 = vmatpush.msra.mxu2 %v2016_v61  ;;  %1966 = vmatpush.msrb.mxu3 %v6108_v20  ;;  %v1521_v23 = vpop.permute.xlu0 %1520  ;;  %v1563_v29 = vpop.permute.xlu1 %1562  ;;  %8108 = vst [vmem:[#allocation18_spill] sm:$0xff] %v6279_v13  ;;  %v6289_v61 = vstv %s5009_s0  ;;  %s5037_s0 = sld [smem:[#allocation3 + $0x82]] }
 0x302   :  { %v1530_v55 = vsel %vm190_vm3, %v1521_v23, %v6096_v49  ;;  %v1531_v44 = vsel %vm190_vm3, %v6135_v18, %v1521_v23  ;;  %v1572_v58 = vsel %vm249_vm4, %v1563_v29, %v6137_v25  ;;  %v1573_v60 = vsel %vm249_vm4, %v6154_v63, %v1563_v29 }
 0x303   :  { %v1542_v39 = vmul.f32 %v1534_v54, %v1531_v44  ;;  %v1543_v43 = vmul.f32 %v1535_v3, %v1530_v55  ;;  %v1584_v15 = vmul.f32 %v1576_v50, %v1573_v60  ;;  %v1585_v10 = vmul.f32 %v1577_v47, %v1572_v58  ;;  %1967 = vmatpush.msrb.mxu3 %v6120_v30 }
 0x304   :  { %v1786_v62 = vld [vmem:[#allocation2 + $0x40] sm:$0xff]  ;;  %v2017_v63 = vadd.f32 %v2009_v4, %v1315_v48  ;;  %v6291_v54 = vstv %s5013_s8  ;;  %v6293_v3 = vstv %s5017_s9  ;;  %v1319_v47 = vmul.f32 %v6287_v2, %v5595_v8  ;;  %s5041_s8 = sld [smem:[#allocation3 + $0x182]] }
 0x305   :  { %v1550_v49 = vrot.slane %v1542_v39, 4  ;;  %v1551_v31 = vrot.slane %v1543_v43, 4  ;;  %v1592_v37 = vrot.slane %v1584_v15, 2  ;;  %1968 = vmatpush.msrb.mxu3 %v6125_v33  ;;  %v1787_v18 = vld [vmem:[#allocation2 + $0x20] sm:$0xff]  ;;  %v1593_v9 = vrot.slane %v1585_v10, 2  ;;  %s5045_s9 = sld [smem:[#allocation3 + $0x302]] }
 0x306   :  { %v1782_v45 = vld [vmem:[#allocation2 + $0x50] sm:$0xff]  ;;  %v1803_v25 = vmax.f32 %v1786_v62, 0.0  ;;  %v1804_v51 = vmax.f32 %v1787_v18, 0.0  ;;  %v6300_v23 = vstv %s5012_s7  ;;  %v6302_v29 = vstv %s5016_s2  ;;  %s5038_s7 = sld [smem:[#allocation3 + $0x83]] }
 0x307   :  { %v1783_v27 = vld [vmem:[#allocation2 + $0x68] sm:$0xff]  ;;  %1558 = vst [vmem:[#allocation2 + $0x30] sm:$0x30] %v1550_v49  ;;  %1969 = vmatpush.msrb.mxu3 %v1781_v46  ;;  %v1799_v22 = vmax.f32 %v1782_v45, 0.0  ;;  %v1363_v55 = vmul.f32 %v6300_v23, %v5595_v8  ;;  %v1407_v44 = vmul.f32 %v6302_v29, %v5595_v8  ;;  %s5049_s2 = sld [smem:[#allocation3 + $0x502]] }
 0x308   :  { %1559 = vst [vmem:[#allocation2] sm:$0x30] %v1551_v31  ;;  %1827 = vmatpush.msrb.mxu0 %v1803_v25  ;;  %1847 = vmatpush.msrb.mxu1 %v1804_v51  ;;  %v1800_v30 = vmax.f32 %v1783_v27, 0.0 }
 0x309   :  { %1600 = vst [vmem:[#allocation2 + $0x30] sm:$0xc0] %v1592_v37  ;;  %2252 = vmatpush.msra.mxu3 %v2017_v63 }
 0x30a   :  { %1601 = vst [vmem:[#allocation2] sm:$0xc0] %v1593_v9  ;;  %5035 = vmatmul.msk.f32.vlgmr.msrb.gmra.mxu3 %vm548_vm9, %v5973_v52  ;;  %1828 = vmatpush.msrb.mxu0 %v1799_v22  ;;  %v1320_v22 = vmul.f32 %v6287_v2, %v5589_v14 }
 0x30b   :  { %1848 = vmatpush.msrb.mxu1 %v1800_v30 }
 0x310   :  { %v1778_v33 = vld [vmem:[#allocation2 + $0x30] sm:$0xff] }
 0x311   :  { %v1779_v6 = vld [vmem:[#allocation2] sm:$0xff]  ;;  %v1795_v34 = vmax.f32 %v1778_v33, 0.0 }
 0x312   :  { %v1796_v7 = vmax.f32 %v1779_v6, 0.0 }
 0x313   :  { %1829 = vmatpush.msrb.mxu0 %v1795_v34  ;;  %v1408_v34 = vmul.f32 %v6302_v29, %v5589_v14 }
 0x314   :  { %1849 = vmatpush.msrb.mxu1 %v1796_v7  ;;  %5028 = vmatmul.msk.f32.vlgmr.msrb.gmra.mxu0 %vm548_vm9, %v6188_v59 }
 0x315   :  { %5029 = vmatmul.msk.f32.vlgmr.msrb.gmra.mxu1 %vm548_vm9, %v6188_v59  ;;  %1906 = vmatpush.msra.mxu0 %v5192_v17  ;;  %v2014_v59 = vadd.f32 %v2006_v28, %v1312_v38 }
 0x316   :  { %1926 = vmatpush.msra.mxu1 %v5193_v36 }
 0x317   :  { %1907 = vmatpush.msra.mxu0 %v1786_v62 }
 0x318   :  { %1927 = vmatpush.msra.mxu1 %v1787_v18 }
 0x319   :  { %1908 = vmatpush.msra.mxu0 %v1782_v45  ;;  %v6323_v45 = vperm.slane %v6270_v32, 2 }
 0x31a   :  { %1928 = vmatpush.msra.mxu1 %v1783_v27 }
 0x31b   :  { %1909 = vmatpush.msra.mxu0 %v1778_v33  ;;  %8112 = vst [vmem:[#allocation22_spill] sm:$0xff] %v6323_v45 }
 0x31c   :  { %1929 = vmatpush.msra.mxu1 %v1779_v6  ;;  %5032 = vmatmul.msk.f32.vlgmr.msra.gmra.mxu0 %vm548_vm9, %v5973_v52  ;;  %v1364_v6 = vmul.f32 %v6300_v23, %v5589_v14 }
 0x31d   :  { %2192 = vmatpush.msrb.mxu0 %v2014_v59  ;;  %5033 = vmatmul.msk.f32.vlgmr.msra.gmra.mxu1 %vm548_vm9, %v5973_v52  ;;  %v6276_v52 = vstv %s5018_s30  ;;  %s5050_s30 = sld [smem:[#allocation3 + $0x503]] }
 0x31e   :  { %2212 = vmatpush.msrb.mxu1 %v2015_v5 }
 0x32a   :  { %v6265_v56 = vpop.f32.mrf.mxu1 }
 0x32b   :  { %v1335_v41 = vmul.f32 %v6272_v40, %v6265_v56  ;;  %v1379_v46 = vmul.f32 %v6274_v35, %v6265_v56  ;;  %v1423_v12 = vmul.f32 %v6276_v52, %v6265_v56 }
 0x32d   :  { %v1343_v48 = vrot.slane %v1335_v41, 2  ;;  %v1387_v4 = vrot.slane %v1379_v46, 4  ;;  %v1431_v58 = vrot.slane %v1423_v12, 6  ;;  %v6355_v12 = vperm.slane %v6270_v32, 0 }
 0x32f   :  { %8113 = vst [vmem:[#allocation23_spill] sm:$0xff] %v6355_v12 }
 0x332   :  { %v1228_v42 = vpop.f32.mrf.mxu1 }
 0x333   :  { %v6296_v50 = vmul.f32 %v6279_v13, %v1228_v42 }
 0x335   :  { %v1325_v60 = vmul.f32 %v6289_v61, %v6296_v50  ;;  %v1369_v39 = vmul.f32 %v6291_v54, %v6296_v50  ;;  %v1413_v43 = vmul.f32 %v6293_v3, %v6296_v50 }
 0x337   :  { %v1329_v15 = vadd.f32 %v1325_v60, %v1319_v47  ;;  %v1373_v10 = vadd.f32 %v1369_v39, %v1363_v55  ;;  %v1417_v62 = vadd.f32 %v1413_v43, %v1407_v44  ;;  %v1362_v43 = vmul.f32 %v6300_v23, %v5580_v11 }
 0x339   :  { %v6314_v49 = vadd.f32 %v1343_v48, %v1329_v15  ;;  %v6316_v31 = vadd.f32 %v1387_v4, %v1373_v10  ;;  %v6318_v37 = vadd.f32 %v1431_v58, %v1417_v62  ;;  %v1318_v58 = vmul.f32 %v6287_v2, %v5580_v11 }
 0x33a   :  { %v1406_v15 = vmul.f32 %v6302_v29, %v5580_v11 }
 0x33b   :  { %8109 = vst [vmem:[#allocation19_spill] sm:$0xff] %v6314_v49 }
 0x33c   :  { %8110 = vst [vmem:[#allocation20_spill] sm:$0xff] %v6316_v31 }
 0x33d   :  { %8111 = vst [vmem:[#allocation21_spill] sm:$0xff] %v6318_v37 }
 0x344   :  { %v6320_v18 = vpop.f32.mrf.mxu2 }
 0x345   :  { %v1336_v9 = vmul.f32 %v6272_v40, %v6320_v18  ;;  %v1380_v25 = vmul.f32 %v6274_v35, %v6320_v18  ;;  %v1424_v51 = vmul.f32 %v6276_v52, %v6320_v18 }
 0x347   :  { %v1344_v30 = vrot.slane %v1336_v9, 2  ;;  %v1388_v33 = vrot.slane %v1380_v25, 4  ;;  %v1432_v7 = vrot.slane %v1424_v51, 6 }
 0x34c   :  { %v1248_v27 = vpop.f32.mrf.mxu2 }
 0x34d   :  { %v6332_v63 = vmul.f32 %v6323_v45, %v1248_v27  ;;  %v6383_v27 = vperm.slane %v6270_v32, 3  ;;  %v1321_v32 = vmul.f32 %v6287_v2, %v5592_v16 }
 0x34f   :  { %v1326_v17 = vmul.f32 %v6289_v61, %v6332_v63  ;;  %v1370_v36 = vmul.f32 %v6291_v54, %v6332_v63  ;;  %v1414_v28 = vmul.f32 %v6293_v3, %v6332_v63  ;;  %8114 = vst [vmem:[#allocation24_spill] sm:$0xff] %v6383_v27 }
 0x351   :  { %v1330_v19 = vadd.f32 %v1326_v17, %v1320_v22  ;;  %v1374_v38 = vadd.f32 %v1370_v36, %v1364_v6  ;;  %v1418_v1 = vadd.f32 %v1414_v28, %v1408_v34 }
 0x353   :  { %v6346_v59 = vadd.f32 %v1344_v30, %v1330_v19  ;;  %v6348_v5 = vadd.f32 %v1388_v33, %v1374_v38  ;;  %v6350_v41 = vadd.f32 %v1432_v7, %v1418_v1  ;;  %v1365_v38 = vmul.f32 %v6300_v23, %v5592_v16  ;;  %v741_v23 = vld [vmem:[%s8056_s4 + $0x50] sm:$0xff] }
 0x354   :  { %5054 = vmatmul.msk.f32.vlgmr.msra.gmra.mxu2 %vm638_vm10, %v741_v23  ;;  %5055 = vmatmul.msk.f32.vlgmr.msra.gmra.mxu3 %vm638_vm10, %v741_v23 }
 0x355   :  { %v6352_v46 = vpop.f32.mrf.mxu0  ;;  %5052 = vmatmul.msk.f32.vlgmr.msrb.gmra.mxu0 %vm638_vm10, %v741_v23  ;;  %5053 = vmatmul.msk.f32.vlgmr.msrb.gmra.mxu1 %vm638_vm10, %v741_v23  ;;  %v6471_v23 = vld [vmem:[#allocation2 + $0x78] sm:$0xff] }
 0x356   :  { %v1334_v42 = vmul.f32 %v6272_v40, %v6352_v46  ;;  %v1378_v47 = vmul.f32 %v6274_v35, %v6352_v46  ;;  %v1422_v4 = vmul.f32 %v6276_v52, %v6352_v46 }
 0x358   :  { %v1342_v60 = vrot.slane %v1334_v42, 2  ;;  %v1386_v39 = vrot.slane %v1378_v47, 4  ;;  %v1430_v10 = vrot.slane %v1422_v4, 6 }
 0x35c   :  { %v6361_v48 = vpop.f32.mrf.mxu3 }
 0x35d   :  { %v1208_v55 = vpop.f32.mrf.mxu0  ;;  %v1337_v51 = vmul.f32 %v6272_v40, %v6361_v48  ;;  %v1381_v22 = vmul.f32 %v6274_v35, %v6361_v48  ;;  %v1425_v34 = vmul.f32 %v6276_v52, %v6361_v48  ;;  %v1409_v52 = vmul.f32 %v6302_v29, %v5592_v16 }
 0x35e   :  { %v6366_v44 = vmul.f32 %v6355_v12, %v1208_v55 }
 0x35f   :  { %v1345_v35 = vrot.slane %v1337_v51, 2  ;;  %v1389_v19 = vrot.slane %v1381_v22, 4  ;;  %v1433_v1 = vrot.slane %v1425_v34, 6  ;;  %v6439_v51 = vstv %s5040_s23  ;;  %s7672_s23 = sld [smem:[#allocation5 + $0x500]] }
 0x360   :  { %v1324_v62 = vmul.f32 %v6289_v61, %v6366_v44  ;;  %v1368_v9 = vmul.f32 %v6291_v54, %v6366_v44  ;;  %v1412_v25 = vmul.f32 %v6293_v3, %v6366_v44  ;;  %v6441_v22 = vstv %s5044_s24  ;;  %s5091_s24 = sld [smem:[#allocation5 + $0x580]] }
 0x362   :  { %v1328_v30 = vadd.f32 %v1324_v62, %v1318_v58  ;;  %v1372_v33 = vadd.f32 %v1368_v9, %v1362_v43  ;;  %v1416_v6 = vadd.f32 %v1412_v25, %v1406_v15  ;;  %v6427_v43 = vstv %s5042_s28  ;;  %s5084_s28 = sld [smem:[#allocation3 + $0x381]] }
 0x363   :  { %v6429_v15 = vstv %s5046_s29  ;;  %v6433_v62 = vstv %s5005_s21  ;;  %v6435_v9 = vstv %s5036_s22  ;;  %s5086_s29 = sld [smem:[#allocation3 + $0x383]] }
 0x364   :  { %v6389_v7 = vadd.f32 %v1342_v60, %v1328_v30  ;;  %v6391_v17 = vadd.f32 %v1386_v39, %v1372_v33  ;;  %v6393_v36 = vadd.f32 %v1430_v10, %v1416_v6  ;;  %v1268_v28 = vpop.f32.mrf.mxu3  ;;  %v6431_v10 = vstv %s5050_s30  ;;  %s5090_s30 = sld [smem:[#allocation3 + $0x583]] }
 0x365   :  { %v6396_v40 = vmul.f32 %v6383_v27, %v1268_v28  ;;  %v1288_v25 = vmul.f32 %v6433_v62, %v5589_v14  ;;  %v6443_v30 = vstv %s5048_s25  ;;  %v1289_v49 = vmul.f32 %v6433_v62, %v5592_v16  ;;  %s7313_s21 = sld [smem:[#allocation5 + $0x400]] }
 0x366   :  { %8115 = vst [vmem:[#allocation25_spill] sm:$0xff] %v6389_v7  ;;  %s5127_s25 = sld [smem:[#allocation5 + $0x600]] }
 0x367   :  { %8116 = vst [vmem:[#allocation26_spill] sm:$0xff] %v6391_v17  ;;  %v1327_v42 = vmul.f32 %v6289_v61, %v6396_v40  ;;  %v1371_v47 = vmul.f32 %v6291_v54, %v6396_v40  ;;  %v1415_v4 = vmul.f32 %v6293_v3, %v6396_v40  ;;  %v6423_v54 = vstv %s5006_s27  ;;  %s5080_s27 = sld [smem:[#allocation3 + $0x201]] }
 0x368   :  { %8117 = vst [vmem:[#allocation27_spill] sm:$0xff] %v6393_v36  ;;  %v1294_v3 = vmul.f32 %v6423_v54, %v6332_v63  ;;  %v6445_v63 = vstv %s5007_s26  ;;  %v1295_v17 = vmul.f32 %v6423_v54, %v6396_v40  ;;  %v6495_v40 = vld [vmem:[%s8056_s4 + $0x48] sm:$0xff]  ;;  %s5126_s26 = sld [smem:[#allocation3 + $0x603]] }
 0x369   :  { %v1331_v55 = vadd.f32 %v1327_v42, %v1321_v32  ;;  %v1375_v2 = vadd.f32 %v1371_v47, %v1365_v38  ;;  %v1419_v58 = vadd.f32 %v1415_v4, %v1409_v52  ;;  %v1304_v28 = vmul.f32 %v6445_v63, %v6320_v18 }
 0x36a   :  { %v1298_v32 = vadd.f32 %v1294_v3, %v1288_v25  ;;  %v1982_v38 = vmul.f32 %v6435_v9, %v5672_v0  ;;  %v6458_v42 = vstv %s5041_s8  ;;  %v6460_v47 = vstv %s5045_s9  ;;  %s5081_s8 = sld [smem:[#allocation3 + $0x202]] }
 0x36b   :  { %v6413_v60 = vadd.f32 %v1345_v35, %v1331_v55  ;;  %v6415_v29 = vadd.f32 %v1389_v19, %v1375_v2  ;;  %v6417_v39 = vadd.f32 %v1433_v1, %v1419_v58  ;;  %v6452_v35 = vstv %s5038_s7  ;;  %s5088_s7 = sld [smem:[#allocation3 + $0x581]] }
 0x36c   :  { %v6456_v1 = vstv %s5037_s0  ;;  %v6462_v4 = vstv %s5049_s2  ;;  %v2022_v18 = vmul.f32 %v6439_v51, %v5672_v0  ;;  %v2074_v2 = vmul.f32 %v6441_v22, %v5672_v0  ;;  %s5082_s0 = sld [smem:[#allocation3 + $0x203]] }
 0x36d   :  { %v2126_v58 = vmul.f32 %v6443_v30, %v5672_v0  ;;  %v1308_v31 = vadd.f32 %v1304_v28, %v1298_v32  ;;  %v1983_v0 = vmul.f32 %v6435_v9, %v5660_v24  ;;  %s5085_s9 = sld [smem:[#allocation3 + $0x382]] }
 0x36e   :  { %s5089_s2 = sld [smem:[#allocation3 + $0x582]] }
 0x37b   :  { %v1871_v61 = vpop.f32.mrf.mxu2 }
 0x37c   :  { %v2038_v33 = vmul.f32 %v6427_v43, %v1871_v61  ;;  %v2090_v6 = vmul.f32 %v6429_v15, %v1871_v61  ;;  %v2142_v34 = vmul.f32 %v6431_v10, %v1871_v61  ;;  %v1998_v3 = vmul.f32 %v6452_v35, %v1871_v61 }
 0x37d   :  { %v2023_v61 = vmul.f32 %v6439_v51, %v5660_v24 }
 0x37e   :  { %v2046_v25 = vrot.slane %v2038_v33, 2  ;;  %v2098_v57 = vrot.slane %v2090_v6, 4  ;;  %v2150_v14 = vrot.slane %v2142_v34, 6 }
 0x383   :  { %v1891_v19 = vpop.f32.mrf.mxu3  ;;  %v1951_v52 = vpop.f32.mrf.mxu2 }
 0x384   :  { %v1976_v55 = vmul.f32 %v1951_v52, %v6323_v45  ;;  %v2039_v7 = vmul.f32 %v6427_v43, %v1891_v19  ;;  %v2143_v28 = vmul.f32 %v6431_v10, %v1891_v19 }
 0x386   :  { %v1988_v53 = vmul.f32 %v6456_v1, %v1976_v55  ;;  %v2028_v52 = vmul.f32 %v6458_v42, %v1976_v55  ;;  %v2080_v45 = vmul.f32 %v6460_v47, %v1976_v55  ;;  %v2132_v37 = vmul.f32 %v6462_v4, %v1976_v55 }
 0x387   :  { %v2091_v55 = vmul.f32 %v6429_v15, %v1891_v19 }
 0x388   :  { %v1992_v33 = vadd.f32 %v1988_v53, %v1982_v38  ;;  %v2032_v6 = vadd.f32 %v2028_v52, %v2022_v18  ;;  %v2084_v34 = vadd.f32 %v2080_v45, %v2074_v2  ;;  %v2136_v36 = vadd.f32 %v2132_v37, %v2126_v58 }
 0x389   :  { %v2075_v53 = vmul.f32 %v6441_v22, %v5660_v24  ;;  %v1299_v18 = vadd.f32 %v1295_v17, %v1289_v49  ;;  %v2127_v2 = vmul.f32 %v6443_v30, %v5660_v24  ;;  %v1999_v58 = vmul.f32 %v6452_v35, %v1891_v19 }
 0x38a   :  { %v2002_v32 = vadd.f32 %v1998_v3, %v1992_v33  ;;  %v2054_v16 = vadd.f32 %v2046_v25, %v2032_v6  ;;  %v2106_v13 = vadd.f32 %v2098_v57, %v2084_v34  ;;  %v2158_v12 = vadd.f32 %v2150_v14, %v2136_v36 }
 0x38b   :  { %v1305_v36 = vmul.f32 %v6445_v63, %v6361_v48  ;;  %v2047_v3 = vrot.slane %v2039_v7, 2  ;;  %v1286_v48 = vmul.f32 %v6433_v62, %v5580_v11  ;;  %v1292_v7 = vmul.f32 %v6423_v54, %v6366_v44 }
 0x38c   :  { %v2012_v45 = vadd.f32 %v2002_v32, %v1308_v31  ;;  %v6498_v38 = vadd.f32 %v2054_v16, %v6346_v59  ;;  %v6501_v14 = vadd.f32 %v2106_v13, %v6348_v5  ;;  %v6504_v57 = vadd.f32 %v2158_v12, %v6350_v41 }
 0x38d   :  { %v1971_v37 = vpop.f32.mrf.mxu3  ;;  %v2099_v16 = vrot.slane %v2091_v55, 4  ;;  %v2151_v59 = vrot.slane %v2143_v28, 6  ;;  %v1293_v12 = vmul.f32 %v6423_v54, %v6296_v50  ;;  %v8118_v19 = vmax.f32 %v6471_v23, 0.0 }
 0x38e   :  { %v1977_v31 = vmul.f32 %v1971_v37, %v6383_v27  ;;  %5060 = vmatpush.msk.msrb.mxu2 %vm2261_vm11, %v2012_v45  ;;  %v1287_v55 = vmul.f32 %v6433_v62, %v5595_v8  ;;  %v1309_v28 = vadd.f32 %v1305_v36, %v1299_v18  ;;  %v1980_v50 = vmul.f32 %v6435_v9, %v5604_v21 }
 0x38f   :  { %5061 = vmatmul.msk.f32.vlgmr.msrb.gmra.mxu2 %vm2257_vm12, %v6495_v40  ;;  %v2020_v32 = vmul.f32 %v6439_v51, %v5604_v21  ;;  %v2072_v62 = vmul.f32 %v6441_v22, %v5604_v21  ;;  %v1296_v36 = vadd.f32 %v1292_v7, %v1286_v48 }
 0x390   :  { %v1989_v13 = vmul.f32 %v6456_v1, %v1977_v31  ;;  %v2029_v5 = vmul.f32 %v6458_v42, %v1977_v31  ;;  %v2081_v41 = vmul.f32 %v6460_v47, %v1977_v31  ;;  %v2133_v49 = vmul.f32 %v6462_v4, %v1977_v31  ;;  %2772 = vmatpush.msra.mxu2 %v8118_v19 }
 0x391   :  { %v1831_v17 = vpop.f32.mrf.mxu0 }
 0x392   :  { %v1993_v25 = vadd.f32 %v1989_v13, %v1983_v0  ;;  %v2033_v52 = vadd.f32 %v2029_v5, %v2023_v61  ;;  %v2085_v33 = vadd.f32 %v2081_v41, %v2075_v53  ;;  %v2137_v6 = vadd.f32 %v2133_v49, %v2127_v2  ;;  %v1851_v34 = vpop.f32.mrf.mxu1 }
 0x393   :  { %v1303_v0 = vmul.f32 %v6445_v63, %v6265_v56  ;;  %v1297_v61 = vadd.f32 %v1293_v12, %v1287_v55  ;;  %v1302_v53 = vmul.f32 %v6445_v63, %v6352_v46  ;;  %v2036_v18 = vmul.f32 %v6427_v43, %v1831_v17 }
 0x394   :  { %v2003_v44 = vadd.f32 %v1999_v58, %v1993_v25  ;;  %v2055_v54 = vadd.f32 %v2047_v3, %v2033_v52  ;;  %v2107_v37 = vadd.f32 %v2099_v16, %v2085_v33  ;;  %v2159_v45 = vadd.f32 %v2151_v59, %v2137_v6  ;;  %v8121_v33 = vld [vmem:[#allocation18_spill] sm:$0xff] }
 0x395   :  { %v2088_v31 = vmul.f32 %v6429_v15, %v1831_v17  ;;  %v2140_v58 = vmul.f32 %v6431_v10, %v1831_v17  ;;  %v2037_v46 = vmul.f32 %v6427_v43, %v1851_v34  ;;  %v2089_v63 = vmul.f32 %v6429_v15, %v1851_v34 }
 0x396   :  { %v2013_v2 = vadd.f32 %v2003_v44, %v1309_v28  ;;  %v6543_v3 = vadd.f32 %v2055_v54, %v6413_v60  ;;  %v6546_v56 = vadd.f32 %v2107_v37, %v6415_v29  ;;  %v6549_v16 = vadd.f32 %v2159_v45, %v6417_v39 }
 0x397   :  { %v2141_v59 = vmul.f32 %v6431_v10, %v1851_v34  ;;  %v2124_v13 = vmul.f32 %v6443_v30, %v5604_v21  ;;  %v1981_v60 = vmul.f32 %v6435_v9, %v5662_v26  ;;  %v2021_v29 = vmul.f32 %v6439_v51, %v5662_v26 }
 0x398   :  { %5062 = vmatpush.msk.msrb.mxu3 %vm2261_vm11, %v2013_v2  ;;  %v2073_v39 = vmul.f32 %v6441_v22, %v5662_v26  ;;  %v2125_v43 = vmul.f32 %v6443_v30, %v5662_v26  ;;  %v1307_v15 = vadd.f32 %v1303_v0, %v1297_v61  ;;  %v1306_v10 = vadd.f32 %v1302_v53, %v1296_v36  ;;  %v8120_v22 = vld [vmem:[#allocation23_spill] sm:$0xff] }
 0x399   :  { %5063 = vmatmul.msk.f32.vlgmr.msrb.gmra.mxu3 %vm2257_vm12, %v6495_v40  ;;  %v1996_v5 = vmul.f32 %v6452_v35, %v1831_v17  ;;  %v2044_v41 = vrot.slane %v2036_v18, 2  ;;  %v1911_v49 = vpop.f32.mrf.mxu0  ;;  %v8119_v9 = vmax.f32 %v6108_v20, 0.0  ;;  %v2096_v12 = vrot.slane %v2088_v31, 4 }
 0x39a   :  { %v2148_v51 = vrot.slane %v2140_v58, 6  ;;  %v1997_v48 = vmul.f32 %v6452_v35, %v1851_v34  ;;  %v1974_v7 = vmul.f32 %v1911_v49, %v8120_v22  ;;  %v1931_v19 = vpop.f32.mrf.mxu1  ;;  %v2045_v30 = vrot.slane %v2037_v46, 2 }
 0x39b   :  { %2792 = vmatpush.msra.mxu3 %v8119_v9  ;;  %v2097_v25 = vrot.slane %v2089_v63, 4  ;;  %v2149_v52 = vrot.slane %v2141_v59, 6  ;;  %v1975_v6 = vmul.f32 %v1931_v19, %v8121_v33  ;;  %v6581_v9 = vld [vmem:[#allocation2 + $0x60] sm:$0xff] }
 0x39c   :  { %v1986_v55 = vmul.f32 %v6456_v1, %v1974_v7  ;;  %v2026_v17 = vmul.f32 %v6458_v42, %v1974_v7  ;;  %v2078_v28 = vmul.f32 %v6460_v47, %v1974_v7  ;;  %v2130_v20 = vmul.f32 %v6462_v4, %v1974_v7  ;;  %v5067_v19 = vld [vmem:[%s8055_s3 + $0x4] ss:$8 sm:$0xf] }
 0x39d   :  { %v1987_v44 = vmul.f32 %v6456_v1, %v1975_v6  ;;  %v2027_v35 = vmul.f32 %v6458_v42, %v1975_v6  ;;  %v2079_v34 = vmul.f32 %v6460_v47, %v1975_v6  ;;  %v2131_v54 = vmul.f32 %v6462_v4, %v1975_v6  ;;  %v6583_v4 = vld [vmem:[#allocation2 + $0x70] sm:$0xff] }
 0x39e   :  { %v1990_v37 = vadd.f32 %v1986_v55, %v1980_v50  ;;  %v2030_v45 = vadd.f32 %v2026_v17, %v2020_v32  ;;  %v2082_v0 = vadd.f32 %v2078_v28, %v2072_v62  ;;  %v2134_v61 = vadd.f32 %v2130_v20, %v2124_v13  ;;  %v8122_v50 = vld [vmem:[#allocation25_spill] sm:$0xff]  ;;  %v8123_v62 = vld [vmem:[#allocation26_spill] sm:$0xff] }
 0x39f   :  { %v1991_v53 = vadd.f32 %v1987_v44, %v1981_v60  ;;  %v2031_v36 = vadd.f32 %v2027_v35, %v2021_v29  ;;  %v2083_v18 = vadd.f32 %v2079_v34, %v2073_v39  ;;  %v2135_v31 = vadd.f32 %v2131_v54, %v2125_v43  ;;  %v8124_v60 = vld [vmem:[#allocation27_spill] sm:$0xff] }
 0x3a0   :  { %v2000_v2 = vadd.f32 %v1996_v5, %v1990_v37  ;;  %v2052_v58 = vadd.f32 %v2044_v41, %v2030_v45  ;;  %v2104_v46 = vadd.f32 %v2096_v12, %v2082_v0  ;;  %v2156_v63 = vadd.f32 %v2148_v51, %v2134_v61  ;;  %v8125_v43 = vld [vmem:[#allocation19_spill] sm:$0xff]  ;;  %v8126_v41 = vld [vmem:[#allocation20_spill] sm:$0xff]  ;;  %v8128_v51 = vld [vmem:[#allocation21_spill] sm:$0xff] }
 0x3a1   :  { %v2001_v59 = vadd.f32 %v1997_v48, %v1991_v53  ;;  %v2053_v1 = vadd.f32 %v2045_v30, %v2031_v36  ;;  %v2105_v49 = vadd.f32 %v2097_v25, %v2083_v18  ;;  %v2157_v42 = vadd.f32 %v2149_v52, %v2135_v31 }
 0x3a2   :  { %v2010_v47 = vadd.f32 %v2000_v2, %v1306_v10  ;;  %v6586_v32 = vadd.f32 %v2052_v58, %v8122_v50  ;;  %v6589_v13 = vadd.f32 %v2104_v46, %v8123_v62  ;;  %v6592_v29 = vadd.f32 %v2156_v63, %v8124_v60  ;;  %v6699_v46 = vld [vmem:[%s8055_s3 + $0x5] ss:$8 sm:$0xf]  ;;  %v5069_v62 = vld [vmem:[%s8055_s3 + $0x6] ss:$8 sm:$0xf] }
 0x3a3   :  { %v2011_v39 = vadd.f32 %v2001_v59, %v1307_v15  ;;  %v6595_v5 = vadd.f32 %v2053_v1, %v8125_v43  ;;  %v6598_v12 = vadd.f32 %v2105_v49, %v8126_v41  ;;  %v6601_v10 = vadd.f32 %v2157_v42, %v8128_v51 }
 0x3a4   :  { %5056 = vmatpush.msk.msra.mxu0 %vm2261_vm11, %v2010_v47  ;;  %v8075_v48 = vmax.f32 %v6581_v9, 0.0  ;;  %v8074_v15 = vmax.f32 %v6583_v4, 0.0  ;;  %v2514_v25 = vperm.slane %v5067_v19, 2  ;;  %v2515_v44 = vperm.slane %v5067_v19, 3 }
 0x3a5   :  { %8127 = vst [vmem:[#allocation23_spill] sm:$0xff] %v6598_v12  ;;  %5058 = vmatpush.msk.msra.mxu1 %vm2261_vm11, %v2011_v39  ;;  %5057 = vmatmul.msk.f32.vlgmr.msra.gmra.mxu0 %vm2257_vm12, %v6495_v40  ;;  %v2512_v34 = vperm.slane %v5067_v19, 0  ;;  %v2513_v37 = vperm.slane %v5067_v19, 1  ;;  %v2545_v63 = vperm.slane %v6699_v46, 3  ;;  %v2584_v39 = vperm.slane %v5069_v62, 0 }
 0x3a6   :  { %8129 = vst [vmem:[#allocation18_spill] sm:$0xff] %v6601_v10  ;;  %5059 = vmatmul.msk.f32.vlgmr.msra.gmra.mxu1 %vm2257_vm12, %v6495_v40  ;;  %2732 = vmatpush.msrb.mxu0 %v8075_v48  ;;  %v2587_v43 = vperm.slane %v5069_v62, 3  ;;  %v2544_v41 = vperm.slane %v6699_v46, 2 }
 0x3a7   :  { %2752 = vmatpush.msrb.mxu1 %v8074_v15 }
 0x3d2   :  { %v2194_v40 = vpop.f32.mrf.mxu0  ;;  %v2214_v17 = vpop.f32.mrf.mxu1 }
 0x3d7   :  { %v2234_v7 = vpop.f32.mrf.mxu2  ;;  %v2254_v30 = vpop.f32.mrf.mxu3 }
 0x412   :  { %v2331_v52 = vpop.f32.mrf.mxu2 }
 0x413   :  { %v6618_v6 = vadd.f32 %v2331_v52, %v2234_v7 }
 0x415   :  { %8130 = vst [vmem:[#allocation25_spill] sm:$0xff] %v6618_v6  ;;  %v2522_v55 = vmul.f32 %v2514_v25, %v6618_v6 }
 0x417   :  { %2526 = vst [vmem:[#allocation2 + $0x8] sm:$0x3] %v2522_v55 }
 0x41c   :  { %v2351_v28 = vpop.f32.mrf.mxu3 }
 0x41d   :  { %v6621_v20 = vadd.f32 %v2351_v28, %v2254_v30  ;;  %v5070_v28 = vld [vmem:[%s8055_s3 + $0x7] ss:$8 sm:$0xf] }
 0x41f   :  { %8131 = vst [vmem:[#allocation26_spill] sm:$0xff] %v6621_v20  ;;  %2534 = vrot.lane.b32.xlu2 %v6621_v20, %s5241_s14  ;;  %v2523_v35 = vmul.f32 %v2515_v44, %v6621_v20 }
 0x421   :  { %2527 = vst [vmem:[#allocation2 + $0x48] sm:$0x3] %v2523_v35 }
 0x422   :  { %v2291_v54 = vpop.f32.mrf.mxu0 }
 0x423   :  { %v6626_v45 = vadd.f32 %v2291_v54, %v2194_v40  ;;  %v2311_v0 = vpop.f32.mrf.mxu1  ;;  %v2629_v54 = vperm.slane %v5070_v28, 3 }
 0x424   :  { %v6628_v61 = vadd.f32 %v2311_v0, %v2214_v17  ;;  %v2586_v0 = vperm.slane %v5069_v62, 2 }
 0x425   :  { %2528 = vrot.lane.b32.xlu0 %v6626_v45, %s5241_s14  ;;  %v2520_v53 = vmul.f32 %v2512_v34, %v6626_v45 }
 0x426   :  { %8132 = vst [vmem:[#allocation27_spill] sm:$0xff] %v6628_v61  ;;  %2572 = vrot.lane.b32.xlu1 %v6628_v61, %s5242_s15  ;;  %v2521_v36 = vmul.f32 %v2513_v37, %v6628_v61  ;;  %v2585_v37 = vperm.slane %v5069_v62, 1  ;;  %v6738_v62 = vld [vmem:[%s8055_s3 + $0x20] ss:$8 sm:$0xf] }
 0x427   :  { %2576 = vrot.lane.b32.xlu2 %v6621_v20, %s5242_s15  ;;  %2524 = vst [vmem:[#allocation2 + $0x50] sm:$0x3] %v2520_v53 }
 0x428   :  { %2525 = vst [vmem:[#allocation2 + $0x68] sm:$0x3] %v2521_v36 }
 0x42d   :  { %2570 = vrot.lane.b32.xlu0 %v6626_v45, %s5242_s15 }
 0x42e   :  { %2532 = vrot.lane.b32.xlu1 %v6618_v6, %s5241_s14 }
 0x42f   :  { %2618 = vrot.lane.b32.xlu2 %v6621_v20, %s5243_s16 }
 0x435   :  { %2612 = vrot.lane.b32.xlu0 %v6626_v45, %s5243_s16 }
 0x436   :  { %2574 = vrot.lane.b32.xlu1 %v6618_v6, %s5242_s15 }
 0x437   :  { %2660 = vrot.lane.b32.xlu2 %v6621_v20, %s5244_s17 }
 0x43d   :  { %2654 = vrot.lane.b32.xlu0 %v6626_v45, %s5244_s17 }
 0x43e   :  { %2616 = vrot.lane.b32.xlu1 %v6618_v6, %s5243_s16 }
 0x43f   :  { %2390 = vrot.lane.b32.xlu2 %v6621_v20, %s5238_s11 }
 0x445   :  { %2386 = vrot.lane.b32.xlu0 %v6628_v61, %s5238_s11 }
 0x446   :  { %2658 = vrot.lane.b32.xlu1 %v6618_v6, %s5244_s17 }
 0x447   :  { %2432 = vrot.lane.b32.xlu2 %v6621_v20, %s5239_s12 }
 0x44d   :  { %2428 = vrot.lane.b32.xlu0 %v6628_v61, %s5239_s12 }
 0x44e   :  { %2388 = vrot.lane.b32.xlu1 %v6618_v6, %s5238_s11 }
 0x44f   :  { %2474 = vrot.lane.b32.xlu2 %v6621_v20, %s5240_s13 }
 0x455   :  { %2470 = vrot.lane.b32.xlu0 %v6628_v61, %s5240_s13 }
 0x456   :  { %2430 = vrot.lane.b32.xlu1 %v6618_v6, %s5239_s12 }
 0x457   :  { %2360 = vrot.lane.b32.xlu2 %v6621_v20, %s5237_s1 }
 0x45d   :  { %2356 = vrot.lane.b32.xlu0 %v6628_v61, %s5237_s1 }
 0x45e   :  { %2472 = vrot.lane.b32.xlu1 %v6618_v6, %s5240_s13 }
 0x45f   :  { %2614 = vrot.lane.b32.xlu2 %v6628_v61, %s5243_s16 }
 0x465   :  { %2530 = vrot.lane.b32.xlu0 %v6628_v61, %s5241_s14 }
 0x466   :  { %2358 = vrot.lane.b32.xlu1 %v6618_v6, %s5237_s1 }
 0x467   :  { %2426 = vrot.lane.b32.xlu2 %v6626_v45, %s5239_s12 }
 0x46d   :  { %2656 = vrot.lane.b32.xlu0 %v6628_v61, %s5244_s17 }
 0x46e   :  { %2384 = vrot.lane.b32.xlu1 %v6626_v45, %s5238_s11 }
 0x475   :  { %2468 = vrot.lane.b32.xlu0 %v6626_v45, %s5240_s13 }
 0x476   :  { %2354 = vrot.lane.b32.xlu1 %v6626_v45, %s5237_s1 }
 0x479   :  { %v2535_v18 = vpop.permute.xlu2 %2534 }
 0x481   :  { %v2577_v31 = vpop.permute.xlu2 %2576 }
 0x489   :  { %v2619_v2 = vpop.permute.xlu2 %2618 }
 0x491   :  { %v6694_v58 = vpop.permute.xlu2 %2660 }
 0x497   :  { %v6702_v59 = vpop.permute.xlu0 %2528 }
 0x498   :  { %v2539_v49 = vsel %vm338_vm6, %v2535_v18, %v6702_v59  ;;  %v2573_v42 = vpop.permute.xlu1 %2572 }
 0x499   :  { %v6707_v47 = vpop.permute.xlu2 %2390  ;;  %v2553_v50 = vmul.f32 %v2545_v63, %v2539_v49 }
 0x49b   :  { %v2561_v60 = vrot.slane %v2553_v50, 6 }
 0x49d   :  { %2569 = vst [vmem:[#allocation2 + $0x48] sm:$0xc] %v2561_v60 }
 0x49f   :  { %v2571_v51 = vpop.permute.xlu0 %2570 }
 0x4a0   :  { %v2580_v7 = vsel %vm397_vm5, %v2571_v51, %v2573_v42  ;;  %v2581_v19 = vsel %vm397_vm5, %v2577_v31, %v2571_v51  ;;  %v6717_v30 = vpop.permute.xlu1 %2532 }
 0x4a1   :  { %v6719_v25 = vpop.permute.xlu2 %2432  ;;  %v2592_v52 = vmul.f32 %v2584_v39, %v2580_v7  ;;  %v2595_v55 = vmul.f32 %v2587_v43, %v2581_v19  ;;  %v2536_v40 = vsel %vm338_vm6, %v6717_v30, %v2535_v18  ;;  %v2671_v19 = vperm.slane %v6738_v62, 3 }
 0x4a2   :  { %v2552_v17 = vmul.f32 %v2544_v41, %v2536_v40 }
 0x4a3   :  { %v2600_v44 = vrot.slane %v2592_v52, 4  ;;  %v2603_v35 = vrot.slane %v2595_v55, 4  ;;  %v2628_v52 = vperm.slane %v5070_v28, 2 }
 0x4a4   :  { %v2560_v34 = vrot.slane %v2552_v17, 6 }
 0x4a5   :  { %2608 = vst [vmem:[#allocation2 + $0x50] sm:$0x30] %v2600_v44 }
 0x4a6   :  { %2611 = vst [vmem:[#allocation2 + $0x48] sm:$0x30] %v2603_v35 }
 0x4a7   :  { %2568 = vst [vmem:[#allocation2 + $0x8] sm:$0xc] %v2560_v34  ;;  %v2613_v53 = vpop.permute.xlu0 %2612 }
 0x4a8   :  { %v2623_v36 = vsel %vm452_vm7, %v2619_v2, %v2613_v53  ;;  %v2575_v63 = vpop.permute.xlu1 %2574 }
 0x4a9   :  { %v6729_v18 = vpop.permute.xlu2 %2474  ;;  %v2637_v49 = vmul.f32 %v2629_v54, %v2623_v36  ;;  %v2578_v50 = vsel %vm397_vm5, %v2575_v63, %v2577_v31  ;;  %v2579_v60 = vsel %vm397_vm5, %v2573_v42, %v2575_v63  ;;  %v2670_v54 = vperm.slane %v6738_v62, 2 }
 0x4aa   :  { %v2593_v39 = vmul.f32 %v2585_v37, %v2579_v60  ;;  %v2594_v43 = vmul.f32 %v2586_v0, %v2578_v50  ;;  %v2626_v37 = vperm.slane %v5070_v28, 0  ;;  %v2627_v0 = vperm.slane %v5070_v28, 1 }
 0x4ab   :  { %v2645_v41 = vrot.slane %v2637_v49, 2 }
 0x4ac   :  { %v2601_v51 = vrot.slane %v2593_v39, 4  ;;  %v2602_v7 = vrot.slane %v2594_v43, 4 }
 0x4ad   :  { %2653 = vst [vmem:[#allocation2 + $0x48] sm:$0xc0] %v2645_v41 }
 0x4ae   :  { %2609 = vst [vmem:[#allocation2 + $0x68] sm:$0x30] %v2601_v51 }
 0x4af   :  { %2610 = vst [vmem:[#allocation2 + $0x8] sm:$0x30] %v2602_v7  ;;  %v6741_v31 = vpop.permute.xlu0 %2654  ;;  %v6771_v7 = vld [vmem:[%s8055_s3 + $0x1] ss:$8 sm:$0xf] }
 0x4b0   :  { %v2665_v42 = vsel %vm507_vm8, %v6694_v58, %v6741_v31  ;;  %v2617_v55 = vpop.permute.xlu1 %2616 }
 0x4b1   :  { %v6747_v40 = vpop.permute.xlu2 %2360  ;;  %v2679_v17 = vmul.f32 %v2671_v19, %v2665_v42  ;;  %v2620_v44 = vsel %vm452_vm7, %v2617_v55, %v2619_v2  ;;  %v5065_v19 = vld [vmem:[%s8055_s3 + $0x2] ss:$8 sm:$0xf] }
 0x4b2   :  { %v2636_v35 = vmul.f32 %v2628_v52, %v2620_v44  ;;  %v2440_v44 = vperm.slane %v5065_v19, 0  ;;  %v2442_v10 = vperm.slane %v5065_v19, 2  ;;  %v2443_v12 = vperm.slane %v5065_v19, 3 }
 0x4b3   :  { %2683 = vst [vmem:[#allocation2 + $0x38] sm:$0x3] %v2679_v17  ;;  %v2401_v17 = vperm.slane %v6771_v7, 3 }
 0x4b4   :  { %v2644_v34 = vrot.slane %v2636_v35, 2  ;;  %v6766_v51 = vld [vmem:[#allocation2 + $0x48] sm:$0xff]  ;;  %v2441_v35 = vperm.slane %v5065_v19, 1 }
 0x4b5   :  { %v2708_v42 = vmax.f32 %v6766_v51, 0.0  ;;  %v6807_v19 = vld [vmem:[%s8055_s3 + $0x3] ss:$8 sm:$0xf] }
 0x4b6   :  { %2652 = vst [vmem:[#allocation2 + $0x8] sm:$0xc0] %v2644_v34 }
 0x4b7   :  { %v6752_v36 = vpop.permute.xlu0 %2386 }
 0x4b8   :  { %v6754_v63 = vpop.permute.xlu1 %2658 }
 0x4b9   :  { %v2615_v49 = vpop.permute.xlu2 %2614  ;;  %v2662_v50 = vsel %vm507_vm8, %v6754_v63, %v6694_v58 }
 0x4ba   :  { %v2621_v2 = vsel %vm452_vm7, %v2615_v49, %v2617_v55  ;;  %v2622_v60 = vsel %vm452_vm7, %v2613_v53, %v2615_v49  ;;  %v2678_v39 = vmul.f32 %v2670_v54, %v2662_v50  ;;  %v6764_v28 = vld [vmem:[#allocation2 + $0x38] sm:$0xff]  ;;  %v2400_v55 = vperm.slane %v6771_v7, 2 }
 0x4bb   :  { %v2634_v43 = vmul.f32 %v2626_v37, %v2622_v60  ;;  %v2635_v41 = vmul.f32 %v2627_v0, %v2621_v2  ;;  %v2712_v58 = vmax.f32 %v6764_v28, 0.0 }
 0x4bc   :  { %2682 = vst [vmem:[#allocation2 + $0x10] sm:$0x3] %v2678_v39 }
 0x4bd   :  { %v2642_v53 = vrot.slane %v2634_v43, 2  ;;  %v2643_v52 = vrot.slane %v2635_v41, 2  ;;  %2793 = vmatpush.msra.mxu3 %v2712_v58  ;;  %v6793_v15 = vld [vmem:[#allocation2 + $0x8] sm:$0xff] }
 0x4bf   :  { %2650 = vst [vmem:[#allocation2 + $0x50] sm:$0xc0] %v2642_v53  ;;  %2794 = vmatpush.msra.mxu3 %v2708_v42  ;;  %v2429_v34 = vpop.permute.xlu0 %2428 }
 0x4c0   :  { %2651 = vst [vmem:[#allocation2 + $0x68] sm:$0xc0] %v2643_v52  ;;  %v2389_v54 = vpop.permute.xlu1 %2388 }
 0x4c1   :  { %v2427_v37 = vpop.permute.xlu2 %2426  ;;  %v2392_v0 = vsel %vm135_vm2, %v2389_v54, %v6707_v47  ;;  %v2393_v49 = vsel %vm135_vm2, %v6752_v36, %v2389_v54 }
 0x4c2   :  { %v2436_v50 = vsel %vm190_vm3, %v2427_v37, %v2429_v34  ;;  %v2437_v2 = vsel %vm190_vm3, %v6719_v25, %v2427_v37  ;;  %v2408_v60 = vmul.f32 %v2400_v55, %v2393_v49  ;;  %v2409_v39 = vmul.f32 %v2401_v17, %v2392_v0 }
 0x4c3   :  { %v2448_v43 = vmul.f32 %v2440_v44, %v2437_v2  ;;  %v2449_v41 = vmul.f32 %v2441_v35, %v2436_v50  ;;  %v6791_v58 = vld [vmem:[#allocation2 + $0x10] sm:$0xff]  ;;  %v2707_v55 = vmax.f32 %v6793_v15, 0.0 }
 0x4c4   :  { %v2416_v53 = vrot.slane %v2408_v60, 6  ;;  %v2417_v52 = vrot.slane %v2409_v39, 6  ;;  %v2711_v54 = vmax.f32 %v6791_v58, 0.0  ;;  %v2485_v60 = vperm.slane %v6807_v19, 3 }
 0x4c5   :  { %v2456_v42 = vrot.slane %v2448_v43, 4  ;;  %v2457_v48 = vrot.slane %v2449_v41, 4  ;;  %v6822_v41 = vld [vmem:[%s8055_s3] ss:$8 sm:$0xf] }
 0x4c6   :  { %2424 = vst [vmem:[#allocation2 + $0x58] sm:$0xc] %v2416_v53  ;;  %2773 = vmatpush.msra.mxu2 %v2711_v54  ;;  %v2543_v54 = vperm.slane %v6699_v46, 1 }
 0x4c7   :  { %2425 = vst [vmem:[#allocation2 + $0x18] sm:$0xc] %v2417_v52  ;;  %v6797_v17 = vpop.permute.xlu0 %2470 }
 0x4c8   :  { %2464 = vst [vmem:[#allocation2 + $0x30] sm:$0x30] %v2456_v42  ;;  %v2431_v44 = vpop.permute.xlu1 %2430  ;;  %2774 = vmatpush.msra.mxu2 %v2707_v55  ;;  %v2542_v42 = vperm.slane %v6699_v46, 0  ;;  %v2370_v55 = vperm.slane %v6822_v41, 2 }
 0x4c9   :  { %2465 = vst [vmem:[#allocation2] sm:$0x30] %v2457_v48  ;;  %v2434_v35 = vsel %vm190_vm3, %v2431_v44, %v6719_v25  ;;  %v2435_v37 = vsel %vm190_vm3, %v2429_v34, %v2431_v44  ;;  %v2484_v48 = vperm.slane %v6807_v19, 2  ;;  %v2371_v44 = vperm.slane %v6822_v41, 3 }
 0x4ca   :  { %v2450_v0 = vmul.f32 %v2442_v10, %v2435_v37  ;;  %v2451_v49 = vmul.f32 %v2443_v12, %v2434_v35 }
 0x4cc   :  { %v2458_v50 = vrot.slane %v2450_v0, 4  ;;  %v2459_v2 = vrot.slane %v2451_v49, 4 }
 0x4ce   :  { %2466 = vst [vmem:[#allocation2 + $0x58] sm:$0x30] %v2458_v50 }
 0x4cf   :  { %2467 = vst [vmem:[#allocation2 + $0x18] sm:$0x30] %v2459_v2  ;;  %v6811_v39 = vpop.permute.xlu0 %2356 }
 0x4d0   :  { %v2473_v25 = vpop.permute.xlu1 %2472 }
 0x4d1   :  { %v2476_v12 = vsel %vm249_vm4, %v2473_v25, %v6729_v18  ;;  %v2477_v10 = vsel %vm249_vm4, %v6797_v17, %v2473_v25 }
 0x4d2   :  { %v2492_v34 = vmul.f32 %v2484_v48, %v2477_v10  ;;  %v2493_v43 = vmul.f32 %v2485_v60, %v2476_v12 }
 0x4d4   :  { %v2500_v53 = vrot.slane %v2492_v34, 2  ;;  %v2501_v52 = vrot.slane %v2493_v43, 2  ;;  %v2398_v34 = vperm.slane %v6771_v7, 0  ;;  %v2399_v43 = vperm.slane %v6771_v7, 1 }
 0x4d6   :  { %2508 = vst [vmem:[#allocation2 + $0x58] sm:$0xc0] %v2500_v53 }
 0x4d7   :  { %2509 = vst [vmem:[#allocation2 + $0x18] sm:$0xc0] %v2501_v52  ;;  %v2531_v35 = vpop.permute.xlu0 %2530 }
 0x4d8   :  { %v2359_v37 = vpop.permute.xlu1 %2358  ;;  %v2537_v0 = vsel %vm338_vm6, %v2531_v35, %v6717_v30  ;;  %v2538_v49 = vsel %vm338_vm6, %v6702_v59, %v2531_v35  ;;  %v2668_v30 = vperm.slane %v6738_v62, 0  ;;  %v2669_v59 = vperm.slane %v6738_v62, 1 }
 0x4d9   :  { %v2362_v46 = vsel %vm93_vm1, %v2359_v37, %v6747_v40  ;;  %v2363_v50 = vsel %vm93_vm1, %v6811_v39, %v2359_v37  ;;  %v2550_v2 = vmul.f32 %v2542_v42, %v2538_v49  ;;  %v2551_v48 = vmul.f32 %v2543_v54, %v2537_v0 }
 0x4da   :  { %v2378_v60 = vmul.f32 %v2370_v55, %v2363_v50  ;;  %v2379_v25 = vmul.f32 %v2371_v44, %v2362_v46  ;;  %v6861_v50 = vstv %s5011_s18  ;;  %s5015_s18 = sld [smem:[#allocation5 + $0x280]] }
 0x4db   :  { %v2558_v12 = vrot.slane %v2550_v2, 6  ;;  %v2559_v10 = vrot.slane %v2551_v48, 6  ;;  %v2483_v48 = vperm.slane %v6807_v19, 1 }
 0x4dc   :  { %2382 = vst [vmem:[#allocation2 + $0x58] sm:$0x3] %v2378_v60  ;;  %v6865_v60 = vstv %s5083_s19  ;;  %s5047_s19 = sld [smem:[#allocation5 + $0x300]] }
 0x4dd   :  { %2383 = vst [vmem:[#allocation2 + $0x18] sm:$0x3] %v2379_v25  ;;  %v2368_v25 = vperm.slane %v6822_v41, 0 }
 0x4de   :  { %2566 = vst [vmem:[#allocation2 + $0x50] sm:$0xc] %v2558_v12  ;;  %v2369_v12 = vperm.slane %v6822_v41, 1 }
 0x4df   :  { %2567 = vst [vmem:[#allocation2 + $0x68] sm:$0xc] %v2559_v10  ;;  %v2657_v53 = vpop.permute.xlu0 %2656  ;;  %v8134_v10 = vld [vmem:[#allocation11_spill] sm:$0xff] }
 0x4e0   :  { %v2385_v52 = vpop.permute.xlu1 %2384  ;;  %v2663_v42 = vsel %vm507_vm8, %v2657_v53, %v6754_v63  ;;  %v2664_v54 = vsel %vm507_vm8, %v6741_v31, %v2657_v53  ;;  %v6859_v63 = vld [vmem:[%s8056_s4 + $0x28] sm:$0xff]  ;;  %v8136_v53 = vld [vmem:[#allocation12_spill] sm:$0xff] }
 0x4e1   :  { %v2394_v62 = vsel %vm135_vm2, %v2385_v52, %v6752_v36  ;;  %v2395_v7 = vsel %vm135_vm2, %v6707_v47, %v2385_v52  ;;  %v2676_v55 = vmul.f32 %v2668_v30, %v2664_v54  ;;  %v2677_v44 = vmul.f32 %v2669_v59, %v2663_v42 }
 0x4e2   :  { %v2406_v35 = vmul.f32 %v2398_v34, %v2395_v7  ;;  %v2407_v37 = vmul.f32 %v2399_v43, %v2394_v62  ;;  %v2482_v47 = vperm.slane %v6807_v19, 0  ;;  %v1358_v30 = vmul.f32 %v6861_v50, %v8134_v10  ;;  %v8135_v19 = vld [vmem:[#allocation17_spill] sm:$0xff] }
 0x4e3   :  { %2680 = vst [vmem:[#allocation2 + $0x40] sm:$0x3] %v2676_v55  ;;  %v2686_v0 = vld [vmem:[#allocation2 + $0x58] sm:$0xff]  ;;  %v6871_v59 = vstv %s5043_s20  ;;  %v1359_v52 = vmul.f32 %v6861_v50, %v8136_v53  ;;  %v2914_v7 = vmul.f32 %v6865_v60, %v6618_v6  ;;  %v5194_v55 = vld [vmem:[#allocation2 + $0x28] sm:$0xff]  ;;  %s5087_s20 = sld [smem:[#allocation5 + $0x380]] }
 0x4e4   :  { %v2414_v31 = vrot.slane %v2406_v35, 6  ;;  %v2415_v49 = vrot.slane %v2407_v37, 6  ;;  %2681 = vst [vmem:[#allocation2 + $0x20] sm:$0x3] %v2677_v44  ;;  %v2703_v46 = vmax.f32 %v2686_v0, 0.0  ;;  %v2687_v36 = vld [vmem:[#allocation2 + $0x18] sm:$0xff]  ;;  %v2060_v43 = vmul.f32 %v6871_v59, %v8135_v19 }
 0x4e5   :  { %v2704_v2 = vmax.f32 %v2687_v36, 0.0  ;;  %v2061_v41 = vmul.f32 %v6871_v59, %v5660_v24  ;;  %v6986_v19 = vld [vmem:[#allocation2 + $0x28] sm:$0xff] }
 0x4e6   :  { %2422 = vst [vmem:[#allocation2 + $0x30] sm:$0xc] %v2414_v31  ;;  %2775 = vmatpush.msra.mxu2 %v2703_v46  ;;  %v2915_v46 = vmul.f32 %v6865_v60, %v6621_v20  ;;  %v2068_v24 = vadd.f32 %v2060_v43, %v1358_v30  ;;  %v6916_v43 = vld [vmem:[%s8056_s4 + $0x50] sm:$0xff] }
 0x4e7   :  { %2423 = vst [vmem:[#allocation2] sm:$0xc] %v2415_v49  ;;  %2795 = vmatpush.msra.mxu3 %v2704_v2  ;;  %5074 = vmatmul.msk.f32.vlgmr.msra.gmra.mxu2 %vm548_vm9, %v6859_v63  ;;  %v2469_v34 = vpop.permute.xlu0 %2468 }
 0x4e8   :  { %5075 = vmatmul.msk.f32.vlgmr.msra.gmra.mxu3 %vm548_vm9, %v6859_v63  ;;  %2852 = vmatpush.msrb.mxu2 %v6471_v23  ;;  %v2355_v42 = vpop.permute.xlu1 %2354  ;;  %v2478_v54 = vsel %vm249_vm4, %v2469_v34, %v6797_v17  ;;  %v2479_v62 = vsel %vm249_vm4, %v6729_v18, %v2469_v34  ;;  %8138 = vst [vmem:[#allocation20_spill] sm:$0xff] %v6916_v43 }
 0x4e9   :  { %2872 = vmatpush.msrb.mxu3 %v5194_v55  ;;  %v2364_v44 = vsel %vm93_vm1, %v2355_v42, %v6811_v39  ;;  %v2365_v35 = vsel %vm93_vm1, %v6747_v40, %v2355_v42  ;;  %v2490_v37 = vmul.f32 %v2482_v47, %v2479_v62  ;;  %v2491_v31 = vmul.f32 %v2483_v48, %v2478_v54  ;;  %v2688_v48 = vld [vmem:[#allocation2 + $0x50] sm:$0xff] }
 0x4ea   :  { %v2376_v17 = vmul.f32 %v2368_v25, %v2365_v35  ;;  %v2377_v49 = vmul.f32 %v2369_v12, %v2364_v44  ;;  %2853 = vmatpush.msrb.mxu2 %v6791_v58  ;;  %v2692_v18 = vld [vmem:[#allocation2 + $0x40] sm:$0xff]  ;;  %v2069_v47 = vadd.f32 %v2061_v41, %v1359_v52  ;;  %v2922_v58 = vadd.f32 %v2914_v7, %v2068_v24  ;;  %v2689_v25 = vld [vmem:[#allocation2 + $0x68] sm:$0xff] }
 0x4eb   :  { %v2498_v2 = vrot.slane %v2490_v37, 2  ;;  %v2499_v34 = vrot.slane %v2491_v31, 2  ;;  %2873 = vmatpush.msrb.mxu3 %v6764_v28  ;;  %v2709_v55 = vmax.f32 %v2692_v18, 0.0  ;;  %v2693_v39 = vld [vmem:[#allocation2 + $0x20] sm:$0xff]  ;;  %v2705_v28 = vmax.f32 %v2688_v48, 0.0 }
 0x4ec   :  { %2380 = vst [vmem:[#allocation2 + $0x30] sm:$0x3] %v2376_v17  ;;  %2854 = vmatpush.msrb.mxu2 %v6793_v15  ;;  %v2710_v40 = vmax.f32 %v2693_v39, 0.0  ;;  %v2923_v12 = vadd.f32 %v2915_v46, %v2069_v47  ;;  %v6907_v15 = vld [vmem:[%s8056_s4 + $0x40] sm:$0x3]  ;;  %v2058_v52 = vmul.f32 %v6871_v59, %v5604_v21  ;;  %v2059_v41 = vmul.f32 %v6871_v59, %v5662_v26 }
 0x4ed   :  { %2381 = vst [vmem:[#allocation2] sm:$0x3] %v2377_v49  ;;  %2874 = vmatpush.msrb.mxu3 %v6766_v51  ;;  %2733 = vmatpush.msrb.mxu0 %v2709_v55  ;;  %v2706_v51 = vmax.f32 %v2689_v25, 0.0  ;;  %v1356_v42 = vmul.f32 %v6861_v50, %v5580_v11  ;;  %v2912_v54 = vmul.f32 %v6865_v60, %v6626_v45  ;;  %v6948_v37 = vstv %s5086_s29  ;;  %s5121_s29 = sld [smem:[#allocation3 + $0x402]] }
 0x4ee   :  { %2506 = vst [vmem:[#allocation2 + $0x30] sm:$0xc0] %v2498_v2  ;;  %2855 = vmatpush.msrb.mxu2 %v2686_v0  ;;  %2753 = vmatpush.msrb.mxu1 %v2710_v40  ;;  %v2913_v62 = vmul.f32 %v6865_v60, %v6628_v61  ;;  %v6950_v31 = vstv %s5090_s30  ;;  %v2885_v17 = vstv %s5080_s27  ;;  %v2925_v49 = vstv %s5084_s28  ;;  %s5120_s27 = sld [smem:[#allocation3 + $0x401]] }
 0x4ef   :  { %2507 = vst [vmem:[#allocation2] sm:$0xc0] %v2499_v34  ;;  %2875 = vmatpush.msrb.mxu3 %v2687_v36  ;;  %5078 = vmatmul.msk.f32.vlgmr.msrb.gmra.mxu2 %vm548_vm9, %v6907_v15  ;;  %v2066_v59 = vadd.f32 %v2058_v52, %v1356_v42  ;;  %v6954_v46 = vstv %s5082_s0  ;;  %v2888_v55 = vmul.f32 %v2885_v17, %v6618_v6  ;;  %s5124_s28 = sld [smem:[#allocation3 + $0x601]] }
 0x4f0   :  { %3083 = vmatpush.msra.mxu2 %v2922_v58  ;;  %8137 = vst [vmem:[#allocation19_spill] sm:$0xff] %v6907_v15  ;;  %5079 = vmatmul.msk.f32.vlgmr.msrb.gmra.mxu3 %vm548_vm9, %v6907_v15  ;;  %v2928_v40 = vmul.f32 %v2925_v49, %v6618_v6  ;;  %v2929_v52 = vmul.f32 %v2925_v49, %v6621_v20  ;;  %s5125_s30 = sld [smem:[#allocation3 + $0x602]] }
 0x4f1   :  { %3103 = vmatpush.msra.mxu3 %v2923_v12  ;;  %2734 = vmatpush.msrb.mxu0 %v2705_v28  ;;  %v2920_v44 = vadd.f32 %v2912_v54, %v2066_v59  ;;  %v6965_v12 = vstv %s5081_s8  ;;  %v6967_v28 = vstv %s5085_s9  ;;  %s5156_s0 = sld [smem:[#allocation3 + $0x681]] }
 0x4f2   :  { %2754 = vmatpush.msrb.mxu1 %v2706_v51  ;;  %v6969_v51 = vstv %s5089_s2  ;;  %s5158_s8 = sld [smem:[#allocation3 + $0x683]] }
 0x4f5   :  { %v2684_v24 = vld [vmem:[#allocation2 + $0x30] sm:$0xff] }
 0x4f6   :  { %v2701_v0 = vmax.f32 %v2684_v24, 0.0  ;;  %v2685_v36 = vld [vmem:[#allocation2] sm:$0xff] }
 0x4f7   :  { %v2702_v30 = vmax.f32 %v2685_v36, 0.0  ;;  %5094 = vmatmul.msk.f32.vlgmr.msra.gmra.mxu2 %vm638_vm10, %v6916_v43 }
 0x4f8   :  { %2735 = vmatpush.msrb.mxu0 %v2701_v0  ;;  %5095 = vmatmul.msk.f32.vlgmr.msra.gmra.mxu3 %vm638_vm10, %v6916_v43  ;;  %v8139_v0 = vld [vmem:[#allocation22_spill] sm:$0xff] }
 0x4f9   :  { %2755 = vmatpush.msrb.mxu1 %v2702_v30  ;;  %5072 = vmatmul.msk.f32.vlgmr.msrb.gmra.mxu0 %vm548_vm9, %v6859_v63 }
 0x4fa   :  { %5073 = vmatmul.msk.f32.vlgmr.msrb.gmra.mxu1 %vm548_vm9, %v6859_v63  ;;  %2812 = vmatpush.msra.mxu0 %v6581_v9  ;;  %v1357_v63 = vmul.f32 %v6861_v50, %v5595_v8 }
 0x4fb   :  { %2832 = vmatpush.msra.mxu1 %v6583_v4 }
 0x4fc   :  { %2813 = vmatpush.msra.mxu0 %v2692_v18  ;;  %v2067_v7 = vadd.f32 %v2059_v41, %v1357_v63  ;;  %v6952_v18 = vstv %s5088_s7  ;;  %s5122_s7 = sld [smem:[#allocation3 + $0x403]] }
 0x4fd   :  { %2833 = vmatpush.msra.mxu1 %v2693_v39  ;;  %v2980_v47 = vmul.f32 %v6952_v18, %v6618_v6  ;;  %v2981_v41 = vmul.f32 %v6952_v18, %v6621_v20 }
 0x4fe   :  { %2814 = vmatpush.msra.mxu0 %v2688_v48  ;;  %v2921_v35 = vadd.f32 %v2913_v62, %v2067_v7  ;;  %v2889_v48 = vmul.f32 %v2885_v17, %v6621_v20 }
 0x4ff   :  { %2834 = vmatpush.msra.mxu1 %v2689_v25 }
 0x500   :  { %2815 = vmatpush.msra.mxu0 %v2684_v24 }
 0x501   :  { %2835 = vmatpush.msra.mxu1 %v2685_v36  ;;  %5076 = vmatmul.msk.f32.vlgmr.msra.gmra.mxu0 %vm548_vm9, %v6907_v15 }
 0x502   :  { %3043 = vmatpush.msrb.mxu0 %v2920_v44  ;;  %5077 = vmatmul.msk.f32.vlgmr.msra.gmra.mxu1 %vm548_vm9, %v6907_v15 }
 0x503   :  { %3063 = vmatpush.msrb.mxu1 %v2921_v35 }
 0x509   :  { %5092 = vmatmul.msk.f32.vlgmr.msrb.gmra.mxu0 %vm638_vm10, %v6916_v43 }
 0x50a   :  { %5093 = vmatmul.msk.f32.vlgmr.msrb.gmra.mxu1 %vm638_vm10, %v6916_v43 }
 0x56a   :  { %v2777_v50 = vpop.f32.mrf.mxu2 }
 0x56b   :  { %v2797_v60 = vpop.f32.mrf.mxu3  ;;  %v2944_v2 = vmul.f32 %v6948_v37, %v2777_v50  ;;  %v2996_v34 = vmul.f32 %v6950_v31, %v2777_v50  ;;  %v2904_v24 = vmul.f32 %v6954_v46, %v2777_v50 }
 0x56c   :  { %v2945_v39 = vmul.f32 %v6948_v37, %v2797_v60  ;;  %v2997_v58 = vmul.f32 %v6950_v31, %v2797_v60  ;;  %v2905_v63 = vmul.f32 %v6954_v46, %v2797_v60 }
 0x56d   :  { %v2952_v42 = vrot.slane %v2944_v2, 2  ;;  %v3004_v54 = vrot.slane %v2996_v34, 4 }
 0x56e   :  { %v2953_v59 = vrot.slane %v2945_v39, 2 }
 0x572   :  { %v2857_v25 = vpop.f32.mrf.mxu2 }
 0x573   :  { %v2882_v36 = vmul.f32 %v2857_v25, %v8139_v0  ;;  %v2877_v30 = vpop.f32.mrf.mxu3  ;;  %v3005_v25 = vrot.slane %v2997_v58, 4 }
 0x574   :  { %v2883_v62 = vmul.f32 %v2877_v30, %v6383_v27 }
 0x575   :  { %v2894_v7 = vmul.f32 %v6965_v12, %v2882_v36  ;;  %v2934_v44 = vmul.f32 %v6967_v28, %v2882_v36  ;;  %v2986_v35 = vmul.f32 %v6969_v51, %v2882_v36 }
 0x576   :  { %v2737_v50 = vpop.f32.mrf.mxu0  ;;  %v2895_v0 = vmul.f32 %v6965_v12, %v2883_v62  ;;  %v2935_v43 = vmul.f32 %v6967_v28, %v2883_v62  ;;  %v2987_v2 = vmul.f32 %v6969_v51, %v2883_v62 }
 0x577   :  { %v2757_v34 = vpop.f32.mrf.mxu1  ;;  %v2898_v8 = vadd.f32 %v2894_v7, %v2888_v55  ;;  %v2938_v60 = vadd.f32 %v2934_v44, %v2928_v40  ;;  %v2990_v11 = vadd.f32 %v2986_v35, %v2980_v47  ;;  %v2942_v53 = vmul.f32 %v6948_v37, %v2737_v50 }
 0x578   :  { %v2899_v30 = vadd.f32 %v2895_v0, %v2889_v48  ;;  %v2939_v39 = vadd.f32 %v2935_v43, %v2929_v52  ;;  %v2991_v27 = vadd.f32 %v2987_v2, %v2981_v41  ;;  %v2902_v40 = vmul.f32 %v6954_v46, %v2737_v50 }
 0x579   :  { %v2908_v26 = vadd.f32 %v2904_v24, %v2898_v8  ;;  %v2960_v21 = vadd.f32 %v2952_v42, %v2938_v60  ;;  %v3012_v15 = vadd.f32 %v3004_v54, %v2990_v11  ;;  %v2994_v11 = vmul.f32 %v6950_v31, %v2737_v50 }
 0x57a   :  { %v2909_v20 = vadd.f32 %v2905_v63, %v2899_v30  ;;  %v2961_v36 = vadd.f32 %v2953_v59, %v2939_v39  ;;  %v3013_v6 = vadd.f32 %v3005_v25, %v2991_v27  ;;  %v2926_v27 = vmul.f32 %v2925_v49, %v6626_v45 }
 0x57b   :  { %v2918_v58 = vadd.f32 %v2908_v26, %v6498_v38  ;;  %v6990_v55 = vadd.f32 %v2960_v21, %v6501_v14  ;;  %v6993_v43 = vadd.f32 %v3012_v15, %v6504_v57  ;;  %v2886_v26 = vmul.f32 %v2885_v17, %v6626_v45 }
 0x57c   :  { %v2919_v62 = vadd.f32 %v2909_v20, %v6543_v3  ;;  %v6996_v8 = vadd.f32 %v2961_v36, %v6546_v56  ;;  %v7003_v38 = vadd.f32 %v3013_v6, %v6549_v16  ;;  %v2978_v14 = vmul.f32 %v6952_v18, %v6626_v45  ;;  %v7013_v56 = vld [vmem:[%s8056_s4 + $0x48] sm:$0xff]  ;;  %v8141_v36 = vld [vmem:[#allocation23_spill] sm:$0xff] }
 0x57d   :  { %5100 = vmatpush.msk.msrb.mxu2 %vm2261_vm11, %v2918_v58  ;;  %v2887_v57 = vmul.f32 %v2885_v17, %v6628_v61  ;;  %v2927_v3 = vmul.f32 %v2925_v49, %v6628_v61  ;;  %v8096_v16 = vmax.f32 %v6986_v19, 0.0  ;;  %v2943_v6 = vmul.f32 %v6948_v37, %v2757_v34 }
 0x57e   :  { %5102 = vmatpush.msk.msrb.mxu3 %vm2261_vm11, %v2919_v62  ;;  %v2817_v21 = vpop.f32.mrf.mxu0  ;;  %5101 = vmatmul.msk.f32.vlgmr.msrb.gmra.mxu2 %vm2257_vm12, %v7013_v56  ;;  %v2979_v17 = vmul.f32 %v6952_v18, %v6628_v61  ;;  %v8140_v49 = vmax.f32 %v6471_v23, 0.0  ;;  %v2950_v47 = vrot.slane %v2942_v53, 2  ;;  %v2995_v48 = vmul.f32 %v6950_v31, %v2757_v34  ;;  %v8142_v62 = vld [vmem:[#allocation18_spill] sm:$0xff] }
 0x57f   :  { %v2880_v20 = vmul.f32 %v2817_v21, %v8120_v22  ;;  %v2837_v15 = vpop.f32.mrf.mxu1  ;;  %5103 = vmatmul.msk.f32.vlgmr.msrb.gmra.mxu3 %vm2257_vm12, %v7013_v56  ;;  %v3002_v37 = vrot.slane %v2994_v11, 4  ;;  %v2903_v23 = vmul.f32 %v6954_v46, %v2757_v34  ;;  %v2951_v42 = vrot.slane %v2943_v6, 2  ;;  %v5107_v21 = vld [vmem:[%s8055_s3 + $0x4] ss:$8 sm:$0xf] }
 0x580   :  { %3618 = vmatpush.msra.mxu2 %v8140_v49  ;;  %v2881_v24 = vmul.f32 %v2837_v15, %v8121_v33  ;;  %3638 = vmatpush.msra.mxu3 %v8096_v16  ;;  %v3003_v7 = vrot.slane %v2995_v48, 4 }
 0x581   :  { %v2892_v0 = vmul.f32 %v6965_v12, %v2880_v20  ;;  %v2932_v18 = vmul.f32 %v6967_v28, %v2880_v20  ;;  %v2984_v52 = vmul.f32 %v6969_v51, %v2880_v20 }
 0x582   :  { %v2893_v41 = vmul.f32 %v6965_v12, %v2881_v24  ;;  %v2933_v53 = vmul.f32 %v6967_v28, %v2881_v24  ;;  %v2985_v31 = vmul.f32 %v6969_v51, %v2881_v24 }
 0x583   :  { %v2896_v54 = vadd.f32 %v2892_v0, %v2886_v26  ;;  %v2936_v63 = vadd.f32 %v2932_v18, %v2926_v27  ;;  %v2988_v59 = vadd.f32 %v2984_v52, %v2978_v14  ;;  %v3360_v14 = vperm.slane %v5107_v21, 2 }
 0x584   :  { %v2897_v44 = vadd.f32 %v2893_v41, %v2887_v57  ;;  %v2937_v35 = vadd.f32 %v2933_v53, %v2927_v3  ;;  %v2989_v50 = vadd.f32 %v2985_v31, %v2979_v17  ;;  %v3361_v3 = vperm.slane %v5107_v21, 3 }
 0x585   :  { %v2906_v25 = vadd.f32 %v2902_v40, %v2896_v54  ;;  %v2958_v2 = vadd.f32 %v2950_v47, %v2936_v63  ;;  %v3010_v60 = vadd.f32 %v3002_v37, %v2988_v59  ;;  %v3358_v17 = vperm.slane %v5107_v21, 0  ;;  %v5109_v54 = vld [vmem:[%s8055_s3 + $0x6] ss:$8 sm:$0xf] }
 0x586   :  { %v2907_v30 = vadd.f32 %v2903_v23, %v2897_v44  ;;  %v2959_v39 = vadd.f32 %v2951_v42, %v2937_v35  ;;  %v3011_v46 = vadd.f32 %v3003_v7, %v2989_v50  ;;  %v3045_v26 = vpop.f32.mrf.mxu0  ;;  %v3359_v40 = vperm.slane %v5107_v21, 1  ;;  %v7146_v23 = vld [vmem:[%s8055_s3 + $0x5] ss:$8 sm:$0xf] }
 0x587   :  { %v2916_v12 = vadd.f32 %v2906_v25, %v6586_v32  ;;  %v7040_v28 = vadd.f32 %v2958_v2, %v6589_v13  ;;  %v7043_v51 = vadd.f32 %v3010_v60, %v6592_v29  ;;  %v8143_v32 = vmax.f32 %v6581_v9, 0.0  ;;  %v3085_v29 = vpop.f32.mrf.mxu2  ;;  %v3065_v27 = vpop.f32.mrf.mxu1 }
 0x588   :  { %v2917_v34 = vadd.f32 %v2907_v30, %v6595_v5  ;;  %v7047_v58 = vadd.f32 %v2959_v39, %v8141_v36  ;;  %v7050_v11 = vadd.f32 %v3011_v46, %v8142_v62  ;;  %v8144_v13 = vmax.f32 %v6583_v4, 0.0  ;;  %v3105_v5 = vpop.f32.mrf.mxu3 }
 0x589   :  { %5096 = vmatpush.msk.msra.mxu0 %vm2261_vm11, %v2916_v12  ;;  %v3391_v53 = vperm.slane %v7146_v23, 3  ;;  %v3430_v7 = vperm.slane %v5109_v54, 0  ;;  %v3433_v50 = vperm.slane %v5109_v54, 3  ;;  %v7166_v12 = vld [vmem:[%s8055_s3 + $0x7] ss:$8 sm:$0xf] }
 0x58a   :  { %5098 = vmatpush.msk.msra.mxu1 %vm2261_vm11, %v2917_v34  ;;  %5097 = vmatmul.msk.f32.vlgmr.msra.gmra.mxu0 %vm2257_vm12, %v7013_v56  ;;  %v3390_v36 = vperm.slane %v7146_v23, 2 }
 0x58b   :  { %5099 = vmatmul.msk.f32.vlgmr.msra.gmra.mxu1 %vm2257_vm12, %v7013_v56  ;;  %3578 = vmatpush.msrb.mxu0 %v8143_v32 }
 0x58c   :  { %3598 = vmatpush.msrb.mxu1 %v8144_v13  ;;  %v3475_v13 = vperm.slane %v7166_v12, 3 }
 0x601   :  { %v3177_v57 = vpop.f32.mrf.mxu2 }
 0x602   :  { %v7065_v6 = vadd.f32 %v3177_v57, %v3085_v29  ;;  %v3197_v20 = vpop.f32.mrf.mxu3  ;;  %v7180_v57 = vld [vmem:[%s8055_s3 + $0x20] ss:$8 sm:$0xf] }
 0x603   :  { %v7067_v15 = vadd.f32 %v3197_v20, %v3105_v5  ;;  %v3431_v20 = vperm.slane %v5109_v54, 1 }
 0x604   :  { %v3368_v9 = vmul.f32 %v3360_v14, %v7065_v6 }
 0x605   :  { %3380 = vrot.lane.b32.xlu1 %v7067_v15, %s5241_s14  ;;  %v3369_v4 = vmul.f32 %v3361_v3, %v7067_v15 }
 0x606   :  { %3372 = vst [vmem:[#allocation2 + $0x8] sm:$0x3] %v3368_v9  ;;  %v3432_v9 = vperm.slane %v5109_v54, 2 }
 0x607   :  { %v3137_v49 = vpop.f32.mrf.mxu0  ;;  %3373 = vst [vmem:[#allocation2 + $0x48] sm:$0x3] %v3369_v4 }
 0x608   :  { %v7073_v47 = vadd.f32 %v3137_v49, %v3045_v26  ;;  %v3157_v48 = vpop.f32.mrf.mxu1  ;;  %v3517_v49 = vperm.slane %v7180_v57, 3 }
 0x609   :  { %v7075_v24 = vadd.f32 %v3157_v48, %v3065_v27 }
 0x60a   :  { %3374 = vrot.lane.b32.xlu2 %v7073_v47, %s5241_s14  ;;  %v3366_v37 = vmul.f32 %v3358_v17, %v7073_v47 }
 0x60b   :  { %3418 = vrot.lane.b32.xlu0 %v7075_v24, %s5242_s15  ;;  %v3367_v0 = vmul.f32 %v3359_v40, %v7075_v24 }
 0x60c   :  { %3370 = vst [vmem:[#allocation2 + $0x50] sm:$0x3] %v3366_v37 }
 0x60d   :  { %3422 = vrot.lane.b32.xlu1 %v7067_v15, %s5242_s15  ;;  %3371 = vst [vmem:[#allocation2 + $0x68] sm:$0x3] %v3367_v0 }
 0x612   :  { %3416 = vrot.lane.b32.xlu2 %v7073_v47, %s5242_s15 }
 0x613   :  { %3378 = vrot.lane.b32.xlu0 %v7065_v6, %s5241_s14 }
 0x615   :  { %3464 = vrot.lane.b32.xlu1 %v7067_v15, %s5243_s16 }
 0x61a   :  { %3458 = vrot.lane.b32.xlu2 %v7073_v47, %s5243_s16 }
 0x61b   :  { %3420 = vrot.lane.b32.xlu0 %v7065_v6, %s5242_s15 }
 0x61d   :  { %3506 = vrot.lane.b32.xlu1 %v7067_v15, %s5244_s17 }
 0x622   :  { %3500 = vrot.lane.b32.xlu2 %v7073_v47, %s5244_s17 }
 0x623   :  { %3462 = vrot.lane.b32.xlu0 %v7065_v6, %s5243_s16 }
 0x625   :  { %3236 = vrot.lane.b32.xlu1 %v7067_v15, %s5238_s11 }
 0x62a   :  { %3232 = vrot.lane.b32.xlu2 %v7075_v24, %s5238_s11 }
 0x62b   :  { %3504 = vrot.lane.b32.xlu0 %v7065_v6, %s5244_s17 }
 0x62d   :  { %3278 = vrot.lane.b32.xlu1 %v7067_v15, %s5239_s12 }
 0x632   :  { %3274 = vrot.lane.b32.xlu2 %v7075_v24, %s5239_s12 }
 0x633   :  { %3234 = vrot.lane.b32.xlu0 %v7065_v6, %s5238_s11 }
 0x635   :  { %3320 = vrot.lane.b32.xlu1 %v7067_v15, %s5240_s13 }
 0x63a   :  { %3316 = vrot.lane.b32.xlu2 %v7075_v24, %s5240_s13 }
 0x63b   :  { %3276 = vrot.lane.b32.xlu0 %v7065_v6, %s5239_s12 }
 0x63d   :  { %3206 = vrot.lane.b32.xlu1 %v7067_v15, %s5237_s1 }
 0x642   :  { %3202 = vrot.lane.b32.xlu2 %v7075_v24, %s5237_s1 }
 0x643   :  { %3318 = vrot.lane.b32.xlu0 %v7065_v6, %s5240_s13 }
 0x645   :  { %3460 = vrot.lane.b32.xlu1 %v7075_v24, %s5243_s16 }
 0x64a   :  { %3376 = vrot.lane.b32.xlu2 %v7075_v24, %s5241_s14 }
 0x64b   :  { %3204 = vrot.lane.b32.xlu0 %v7065_v6, %s5237_s1 }
 0x64d   :  { %3272 = vrot.lane.b32.xlu1 %v7073_v47, %s5239_s12 }
 0x652   :  { %3502 = vrot.lane.b32.xlu2 %v7075_v24, %s5244_s17 }
 0x653   :  { %3230 = vrot.lane.b32.xlu0 %v7073_v47, %s5238_s11 }
 0x65a   :  { %3314 = vrot.lane.b32.xlu2 %v7073_v47, %s5240_s13 }
 0x65b   :  { %3200 = vrot.lane.b32.xlu0 %v7073_v47, %s5237_s1 }
 0x664   :  { %v7141_v18 = vpop.permute.xlu2 %3374 }
 0x66c   :  { %v3417_v52 = vpop.permute.xlu2 %3416 }
 0x674   :  { %v7148_v41 = vpop.permute.xlu2 %3458 }
 0x677   :  { %v3381_v31 = vpop.permute.xlu1 %3380 }
 0x678   :  { %v3385_v42 = vsel %vm338_vm6, %v3381_v31, %v7141_v18 }
 0x679   :  { %v3399_v63 = vmul.f32 %v3391_v53, %v3385_v42 }
 0x67b   :  { %v3407_v59 = vrot.slane %v3399_v63, 6  ;;  %v3474_v63 = vperm.slane %v7166_v12, 2 }
 0x67c   :  { %v7157_v44 = vpop.permute.xlu2 %3500 }
 0x67d   :  { %3415 = vst [vmem:[#allocation2 + $0x48] sm:$0xc] %v3407_v59  ;;  %v3419_v35 = vpop.permute.xlu0 %3418 }
 0x67e   :  { %v3426_v25 = vsel %vm397_vm5, %v3417_v52, %v3419_v35 }
 0x67f   :  { %v3438_v2 = vmul.f32 %v3430_v7, %v3426_v25  ;;  %v3423_v60 = vpop.permute.xlu1 %3422 }
 0x680   :  { %v3427_v30 = vsel %vm397_vm5, %v3423_v60, %v3417_v52 }
 0x681   :  { %v3446_v39 = vrot.slane %v3438_v2, 4  ;;  %v3441_v46 = vmul.f32 %v3433_v50, %v3427_v30 }
 0x683   :  { %3454 = vst [vmem:[#allocation2 + $0x50] sm:$0x30] %v3446_v39  ;;  %v3449_v34 = vrot.slane %v3441_v46, 4 }
 0x684   :  { %v7169_v62 = vpop.permute.xlu2 %3232 }
 0x685   :  { %3457 = vst [vmem:[#allocation2 + $0x48] sm:$0x30] %v3449_v34  ;;  %v3379_v32 = vpop.permute.xlu0 %3378 }
 0x686   :  { %v3382_v29 = vsel %vm338_vm6, %v3379_v32, %v3381_v31 }
 0x687   :  { %v3398_v5 = vmul.f32 %v3390_v36, %v3382_v29  ;;  %v3465_v26 = vpop.permute.xlu1 %3464 }
 0x688   :  { %v3469_v27 = vsel %vm452_vm7, %v3465_v26, %v7148_v41 }
 0x689   :  { %v3406_v21 = vrot.slane %v3398_v5, 6  ;;  %v3483_v14 = vmul.f32 %v3475_v13, %v3469_v27  ;;  %v7218_v27 = vld [vmem:[%s8055_s3 + $0x1] ss:$8 sm:$0xf] }
 0x68b   :  { %3414 = vst [vmem:[#allocation2 + $0x8] sm:$0xc] %v3406_v21  ;;  %v3491_v3 = vrot.slane %v3483_v14, 2  ;;  %v3388_v21 = vperm.slane %v7146_v23, 0  ;;  %v3389_v14 = vperm.slane %v7146_v23, 1 }
 0x68c   :  { %v7182_v4 = vpop.permute.xlu2 %3274 }
 0x68d   :  { %3499 = vst [vmem:[#allocation2 + $0x48] sm:$0xc0] %v3491_v3  ;;  %v3421_v17 = vpop.permute.xlu0 %3420  ;;  %v3246_v3 = vperm.slane %v7218_v27, 2 }
 0x68e   :  { %v3424_v40 = vsel %vm397_vm5, %v3421_v17, %v3423_v60  ;;  %v3425_v48 = vsel %vm397_vm5, %v3419_v35, %v3421_v17  ;;  %v3516_v60 = vperm.slane %v7180_v57, 2 }
 0x68f   :  { %v3439_v37 = vmul.f32 %v3431_v20, %v3425_v48  ;;  %v3440_v0 = vmul.f32 %v3432_v9, %v3424_v40  ;;  %v3507_v52 = vpop.permute.xlu1 %3506  ;;  %v3247_v20 = vperm.slane %v7218_v27, 3 }
 0x690   :  { %v3511_v53 = vsel %vm507_vm8, %v3507_v52, %v7157_v44 }
 0x691   :  { %v3447_v31 = vrot.slane %v3439_v37, 4  ;;  %v3448_v42 = vrot.slane %v3440_v0, 4  ;;  %v3525_v54 = vmul.f32 %v3517_v49, %v3511_v53 }
 0x693   :  { %3455 = vst [vmem:[#allocation2 + $0x68] sm:$0x30] %v3447_v31 }
 0x694   :  { %3456 = vst [vmem:[#allocation2 + $0x8] sm:$0x30] %v3448_v42  ;;  %v7193_v59 = vpop.permute.xlu2 %3316  ;;  %v7207_v46 = vld [vmem:[#allocation2 + $0x48] sm:$0xff] }
 0x695   :  { %3529 = vst [vmem:[#allocation2 + $0x38] sm:$0x3] %v3525_v54  ;;  %v7195_v7 = vpop.permute.xlu0 %3462 }
 0x696   :  { %v3466_v35 = vsel %vm452_vm7, %v7195_v7, %v3465_v26  ;;  %v3554_v26 = vmax.f32 %v7207_v46, 0.0 }
 0x697   :  { %v3482_v50 = vmul.f32 %v3474_v63, %v3466_v35  ;;  %v7200_v25 = vpop.permute.xlu1 %3236 }
 0x699   :  { %v3490_v2 = vrot.slane %v3482_v50, 2 }
 0x69b   :  { %3498 = vst [vmem:[#allocation2 + $0x8] sm:$0xc0] %v3490_v2 }
 0x69c   :  { %v7203_v30 = vld [vmem:[#allocation2 + $0x38] sm:$0xff]  ;;  %v7205_v39 = vpop.permute.xlu2 %3202 }
 0x69d   :  { %v3558_v34 = vmax.f32 %v7203_v30, 0.0  ;;  %v3505_v36 = vpop.permute.xlu0 %3504 }
 0x69e   :  { %v3508_v13 = vsel %vm507_vm8, %v3505_v36, %v3507_v52 }
 0x69f   :  { %3639 = vmatpush.msra.mxu3 %v3558_v34  ;;  %v3524_v29 = vmul.f32 %v3516_v60, %v3508_v13  ;;  %v7212_v5 = vpop.permute.xlu1 %3278  ;;  %v3514_v60 = vperm.slane %v7180_v57, 0  ;;  %v3515_v34 = vperm.slane %v7180_v57, 1 }
 0x6a1   :  { %3528 = vst [vmem:[#allocation2 + $0x10] sm:$0x3] %v3524_v29  ;;  %3640 = vmatpush.msra.mxu3 %v3554_v26 }
 0x6a4   :  { %v3377_v9 = vpop.permute.xlu2 %3376 }
 0x6a5   :  { %v3235_v17 = vpop.permute.xlu0 %3234  ;;  %v3383_v49 = vsel %vm338_vm6, %v3377_v9, %v3379_v32  ;;  %v3384_v40 = vsel %vm338_vm6, %v7141_v18, %v3377_v9  ;;  %v7237_v32 = vld [vmem:[#allocation2 + $0x8] sm:$0xff] }
 0x6a6   :  { %v3238_v48 = vsel %vm135_vm2, %v3235_v17, %v7200_v25  ;;  %v3239_v23 = vsel %vm135_vm2, %v7169_v62, %v3235_v17  ;;  %v3396_v37 = vmul.f32 %v3388_v21, %v3384_v40  ;;  %v3397_v0 = vmul.f32 %v3389_v14, %v3383_v49  ;;  %v7242_v18 = vld [vmem:[%s8055_s3 + $0x2] ss:$8 sm:$0xf] }
 0x6a7   :  { %v3254_v52 = vmul.f32 %v3246_v3, %v3239_v23  ;;  %v3255_v53 = vmul.f32 %v3247_v20, %v3238_v48  ;;  %v3321_v31 = vpop.permute.xlu1 %3320  ;;  %v3553_v13 = vmax.f32 %v7237_v32, 0.0  ;;  %v3288_v29 = vperm.slane %v7242_v18, 2 }
 0x6a8   :  { %v3404_v42 = vrot.slane %v3396_v37, 6  ;;  %v7235_v54 = vld [vmem:[#allocation2 + $0x10] sm:$0xff]  ;;  %v3405_v50 = vrot.slane %v3397_v0, 6  ;;  %v3289_v26 = vperm.slane %v7242_v18, 3 }
 0x6a9   :  { %v3262_v63 = vrot.slane %v3254_v52, 6  ;;  %v3263_v35 = vrot.slane %v3255_v53, 6  ;;  %v3557_v2 = vmax.f32 %v7235_v54, 0.0 }
 0x6aa   :  { %3412 = vst [vmem:[#allocation2 + $0x50] sm:$0xc] %v3404_v42 }
 0x6ab   :  { %3270 = vst [vmem:[#allocation2 + $0x58] sm:$0xc] %v3262_v63  ;;  %3619 = vmatpush.msra.mxu2 %v3557_v2 }
 0x6ac   :  { %3271 = vst [vmem:[#allocation2 + $0x18] sm:$0xc] %v3263_v35  ;;  %v3503_v21 = vpop.permute.xlu2 %3502 }
 0x6ad   :  { %3413 = vst [vmem:[#allocation2 + $0x68] sm:$0xc] %v3405_v50  ;;  %3620 = vmatpush.msra.mxu2 %v3553_v13  ;;  %v3277_v14 = vpop.permute.xlu0 %3276  ;;  %v3509_v3 = vsel %vm507_vm8, %v3503_v21, %v3505_v36  ;;  %v3510_v57 = vsel %vm507_vm8, %v7157_v44, %v3503_v21  ;;  %v5106_v36 = vld [vmem:[%s8055_s3 + $0x3] ss:$8 sm:$0xf] }
 0x6ae   :  { %v3280_v20 = vsel %vm190_vm3, %v3277_v14, %v7212_v5  ;;  %v3281_v9 = vsel %vm190_vm3, %v7182_v4, %v3277_v14  ;;  %v3522_v17 = vmul.f32 %v3514_v60, %v3510_v57  ;;  %v3523_v49 = vmul.f32 %v3515_v34, %v3509_v3 }
 0x6af   :  { %v3296_v40 = vmul.f32 %v3288_v29, %v3281_v9  ;;  %v3297_v48 = vmul.f32 %v3289_v26, %v3280_v20  ;;  %v7261_v23 = vpop.permute.xlu1 %3206  ;;  %v3328_v0 = vperm.slane %v5106_v36, 0  ;;  %v3329_v52 = vperm.slane %v5106_v36, 1 }
 0x6b0   :  { %3526 = vst [vmem:[#allocation2 + $0x40] sm:$0x3] %v3522_v17  ;;  %v3330_v53 = vperm.slane %v5106_v36, 2  ;;  %v3331_v42 = vperm.slane %v5106_v36, 3  ;;  %v3472_v60 = vperm.slane %v7166_v12, 0  ;;  %v3473_v34 = vperm.slane %v7166_v12, 1 }
 0x6b1   :  { %v3304_v44 = vrot.slane %v3296_v40, 4  ;;  %v3305_v37 = vrot.slane %v3297_v48, 4  ;;  %3527 = vst [vmem:[#allocation2 + $0x20] sm:$0x3] %v3523_v49 }
 0x6b3   :  { %3312 = vst [vmem:[#allocation2 + $0x58] sm:$0x30] %v3304_v44 }
 0x6b4   :  { %3313 = vst [vmem:[#allocation2 + $0x18] sm:$0x30] %v3305_v37  ;;  %v3315_v63 = vpop.permute.xlu2 %3314 }
 0x6b5   :  { %v3319_v35 = vpop.permute.xlu0 %3318  ;;  %v3324_v50 = vsel %vm249_vm4, %v3315_v63, %v7193_v59  ;;  %v3325_v2 = vsel %vm249_vm4, %v3321_v31, %v3315_v63  ;;  %v3286_v63 = vperm.slane %v7242_v18, 0 }
 0x6b6   :  { %v3322_v13 = vsel %vm249_vm4, %v3319_v35, %v3321_v31  ;;  %v3323_v29 = vsel %vm249_vm4, %v7193_v59, %v3319_v35  ;;  %v3336_v26 = vmul.f32 %v3328_v0, %v3325_v2  ;;  %v3337_v21 = vmul.f32 %v3329_v52, %v3324_v50  ;;  %v7291_v59 = vld [vmem:[%s8055_s3] ss:$8 sm:$0xf] }
 0x6b7   :  { %v3338_v14 = vmul.f32 %v3330_v53, %v3323_v29  ;;  %v3339_v3 = vmul.f32 %v3331_v42, %v3322_v13  ;;  %v3461_v57 = vpop.permute.xlu1 %3460  ;;  %v7278_v20 = vld [vmem:[#allocation2 + $0x40] sm:$0xff]  ;;  %v3217_v53 = vperm.slane %v7291_v59, 3  ;;  %v3287_v35 = vperm.slane %v7242_v18, 1 }
 0x6b8   :  { %v3344_v9 = vrot.slane %v3336_v26, 2  ;;  %v3345_v17 = vrot.slane %v3337_v21, 2  ;;  %v3467_v12 = vsel %vm452_vm7, %v3461_v57, %v7195_v7  ;;  %v3468_v31 = vsel %vm452_vm7, %v7148_v41, %v3461_v57  ;;  %v7286_v49 = vld [vmem:[#allocation2 + $0x20] sm:$0xff] }
 0x6b9   :  { %v3346_v40 = vrot.slane %v3338_v14, 2  ;;  %v3347_v48 = vrot.slane %v3339_v3, 2  ;;  %v3480_v36 = vmul.f32 %v3472_v60, %v3468_v31  ;;  %v3481_v44 = vmul.f32 %v3473_v34, %v3467_v12 }
 0x6ba   :  { %3352 = vst [vmem:[#allocation2 + $0x30] sm:$0xc0] %v3344_v9  ;;  %v3555_v37 = vmax.f32 %v7278_v20, 0.0  ;;  %v3556_v7 = vmax.f32 %v7286_v49, 0.0  ;;  %v3216_v41 = vperm.slane %v7291_v59, 2  ;;  %v3244_v57 = vperm.slane %v7218_v27, 0 }
 0x6bb   :  { %3354 = vst [vmem:[#allocation2 + $0x58] sm:$0xc0] %v3346_v40  ;;  %v3488_v0 = vrot.slane %v3480_v36, 2  ;;  %v3489_v52 = vrot.slane %v3481_v44, 2  ;;  %v3245_v9 = vperm.slane %v7218_v27, 1 }
 0x6bc   :  { %3355 = vst [vmem:[#allocation2 + $0x18] sm:$0xc0] %v3347_v48  ;;  %3579 = vmatpush.msrb.mxu0 %v3555_v37  ;;  %3599 = vmatpush.msrb.mxu1 %v3556_v7  ;;  %v7327_v37 = vstv %s5015_s18  ;;  %v2109_v7 = vstv %s5047_s19 }
 0x6bd   :  { %3353 = vst [vmem:[#allocation2] sm:$0xc0] %v3345_v17  ;;  %v3205_v42 = vpop.permute.xlu0 %3204 }
 0x6be   :  { %3496 = vst [vmem:[#allocation2 + $0x50] sm:$0xc0] %v3488_v0  ;;  %v3208_v50 = vsel %vm93_vm1, %v3205_v42, %v7261_v23  ;;  %v3209_v2 = vsel %vm93_vm1, %v7205_v39, %v3205_v42 }
 0x6bf   :  { %3497 = vst [vmem:[#allocation2 + $0x68] sm:$0xc0] %v3489_v52  ;;  %v3224_v60 = vmul.f32 %v3216_v41, %v3209_v2  ;;  %v3225_v34 = vmul.f32 %v3217_v53, %v3208_v50  ;;  %v3273_v13 = vpop.permute.xlu1 %3272  ;;  %v2963_v53 = vstv %s5087_s20  ;;  %v8146_v2 = vld [vmem:[#allocation12_spill] sm:$0xff] }
 0x6c0   :  { %v3282_v29 = vsel %vm190_vm3, %v3273_v13, %v7182_v4  ;;  %v3283_v18 = vsel %vm190_vm3, %v7212_v5, %v3273_v13  ;;  %v3215_v13 = vperm.slane %v7291_v59, 1 }
 0x6c1   :  { %3228 = vst [vmem:[#allocation2 + $0x58] sm:$0x3] %v3224_v60  ;;  %v3294_v26 = vmul.f32 %v3286_v63, %v3283_v18  ;;  %v3295_v21 = vmul.f32 %v3287_v35, %v3282_v29  ;;  %v1402_v63 = vmul.f32 %v7327_v37, %v8134_v10  ;;  %v8145_v35 = vld [vmem:[#allocation17_spill] sm:$0xff]  ;;  %v1403_v60 = vmul.f32 %v7327_v37, %v8146_v2  ;;  %v8147_v18 = vld [vmem:[#allocation15_spill] sm:$0xff] }
 0x6c2   :  { %3229 = vst [vmem:[#allocation2 + $0x18] sm:$0x3] %v3225_v34  ;;  %v2112_v50 = vmul.f32 %v2109_v7, %v8145_v35  ;;  %v3214_v34 = vperm.slane %v7291_v59, 0  ;;  %v3757_v29 = vstv %s7313_s21 }
 0x6c3   :  { %v3302_v14 = vrot.slane %v3294_v26, 4  ;;  %v3303_v3 = vrot.slane %v3295_v21, 4  ;;  %v2113_v26 = vmul.f32 %v2109_v7, %v8147_v18  ;;  %v8148_v21 = vld [vmem:[#allocation25_spill] sm:$0xff] }
 0x6c5   :  { %3310 = vst [vmem:[#allocation2 + $0x30] sm:$0x30] %v3302_v14  ;;  %v3231_v4 = vpop.permute.xlu0 %3230  ;;  %v7315_v17 = vld [vmem:[#allocation2 + $0x50] sm:$0xff]  ;;  %v2966_v14 = vmul.f32 %v2963_v53, %v8148_v21 }
 0x6c6   :  { %3311 = vst [vmem:[#allocation2] sm:$0x30] %v3303_v3  ;;  %v3240_v5 = vsel %vm135_vm2, %v3231_v4, %v7169_v62  ;;  %v3241_v12 = vsel %vm135_vm2, %v7200_v25, %v3231_v4  ;;  %v3551_v31 = vmax.f32 %v7315_v17, 0.0  ;;  %v7324_v40 = vld [vmem:[#allocation2 + $0x68] sm:$0xff]  ;;  %v5198_v3 = vld [vmem:[#allocation2 + $0x78] sm:$0xff] }
 0x6c7   :  { %v3252_v27 = vmul.f32 %v3244_v57, %v3241_v12  ;;  %v3253_v48 = vmul.f32 %v3245_v9, %v3240_v5  ;;  %v3552_v36 = vmax.f32 %v7324_v40, 0.0  ;;  %v3546_v25 = vld [vmem:[%s8056_s4 + $0x30] sm:$0xff]  ;;  %v2120_v12 = vadd.f32 %v2112_v50, %v1402_v63 }
 0x6c8   :  { %3580 = vmatpush.msrb.mxu0 %v3551_v31  ;;  %v3532_v44 = vld [vmem:[#allocation2 + $0x58] sm:$0xff]  ;;  %v8149_v9 = vld [vmem:[#allocation26_spill] sm:$0xff]  ;;  %v3760_v31 = vmul.f32 %v3757_v29, %v7065_v6 }
 0x6c9   :  { %v3260_v0 = vrot.slane %v3252_v27, 6  ;;  %v3261_v62 = vrot.slane %v3253_v48, 6  ;;  %3600 = vmatpush.msrb.mxu1 %v3552_v36  ;;  %v3549_v52 = vmax.f32 %v3532_v44, 0.0  ;;  %v3533_v41 = vld [vmem:[#allocation2 + $0x18] sm:$0xff]  ;;  %v2967_v4 = vmul.f32 %v2963_v53, %v8149_v9  ;;  %v8151_v50 = vld [vmem:[#allocation14_spill] sm:$0xff] }
 0x6ca   :  { %v3550_v42 = vmax.f32 %v3533_v41, 0.0  ;;  %v2121_v36 = vadd.f32 %v2113_v26, %v1403_v60  ;;  %v2110_v60 = vmul.f32 %v2109_v7, %v8151_v50  ;;  %v5199_v26 = vld [vmem:[#allocation2 + $0x60] sm:$0xff] }
 0x6cb   :  { %3268 = vst [vmem:[#allocation2 + $0x30] sm:$0xc] %v3260_v0  ;;  %3621 = vmatpush.msra.mxu2 %v3549_v52  ;;  %v3761_v0 = vmul.f32 %v3757_v29, %v7067_v15 }
 0x6cc   :  { %3269 = vst [vmem:[#allocation2] sm:$0xc] %v3261_v62  ;;  %3641 = vmatpush.msra.mxu3 %v3550_v42  ;;  %5114 = vmatmul.msk.f32.vlgmr.msra.gmra.mxu2 %vm548_vm9, %v3546_v25  ;;  %v2974_v62 = vadd.f32 %v2966_v14, %v2120_v12  ;;  %v8154_v14 = vld [vmem:[#allocation13_spill] sm:$0xff] }
 0x6cd   :  { %5115 = vmatmul.msk.f32.vlgmr.msra.gmra.mxu3 %vm548_vm9, %v3546_v25  ;;  %3698 = vmatpush.msrb.mxu2 %v5198_v3  ;;  %v3201_v57 = vpop.permute.xlu0 %3200  ;;  %v1401_v3 = vmul.f32 %v7327_v37, %v8154_v14 }
 0x6ce   :  { %3718 = vmatpush.msrb.mxu3 %v6986_v19  ;;  %v3210_v59 = vsel %vm93_vm1, %v3201_v57, %v7205_v39  ;;  %v3211_v5 = vsel %vm93_vm1, %v7261_v23, %v3201_v57  ;;  %v2975_v39 = vadd.f32 %v2967_v4, %v2121_v36  ;;  %v3768_v23 = vadd.f32 %v3760_v31, %v2974_v62  ;;  %v5200_v4 = vld [vmem:[#allocation2 + $0x70] sm:$0xff] }
 0x6cf   :  { %v3222_v27 = vmul.f32 %v3214_v34, %v3211_v5  ;;  %v3223_v48 = vmul.f32 %v3215_v13, %v3210_v59  ;;  %3699 = vmatpush.msrb.mxu2 %v7235_v54  ;;  %v8150_v54 = vld [vmem:[#allocation19_spill] sm:$0xff]  ;;  %v2964_v13 = vmul.f32 %v2963_v53, %v6626_v45  ;;  %v2965_v57 = vmul.f32 %v2963_v53, %v6628_v61  ;;  %v8155_v5 = vld [vmem:[#allocation20_spill] sm:$0xff] }
 0x6d0   :  { %3719 = vmatpush.msrb.mxu3 %v7203_v30  ;;  %v3769_v52 = vadd.f32 %v3761_v0, %v2975_v39  ;;  %v3758_v59 = vmul.f32 %v3757_v29, %v7073_v47  ;;  %v3771_v36 = vstv %s5124_s28  ;;  %v3737_v39 = vstv %s5121_s29  ;;  %v7401_v61 = vld [vmem:[#allocation2 + $0x78] sm:$0xff] }
 0x6d1   :  { %3226 = vst [vmem:[#allocation2 + $0x30] sm:$0x3] %v3222_v27  ;;  %3700 = vmatpush.msrb.mxu2 %v7237_v32 }
 0x6d2   :  { %3227 = vst [vmem:[#allocation2] sm:$0x3] %v3223_v48  ;;  %3720 = vmatpush.msrb.mxu3 %v7207_v46  ;;  %v8152_v46 = vld [vmem:[#allocation16_spill] sm:$0xff]  ;;  %v3731_v48 = vstv %s5120_s27 }
 0x6d3   :  { %3701 = vmatpush.msrb.mxu2 %v3532_v44  ;;  %v2111_v34 = vmul.f32 %v2109_v7, %v8152_v46  ;;  %v8153_v44 = vld [vmem:[#allocation10_spill] sm:$0xff] }
 0x6d4   :  { %3721 = vmatpush.msrb.mxu3 %v3533_v41  ;;  %5118 = vmatmul.msk.f32.vlgmr.msrb.gmra.mxu2 %vm548_vm9, %v8150_v54  ;;  %v1400_v41 = vmul.f32 %v7327_v37, %v8153_v44 }
 0x6d5   :  { %3877 = vmatpush.msra.mxu2 %v3768_v23  ;;  %5119 = vmatmul.msk.f32.vlgmr.msrb.gmra.mxu3 %vm548_vm9, %v8150_v54  ;;  %v2119_v12 = vadd.f32 %v2111_v34, %v1401_v3  ;;  %v3777_v23 = vstv %s5125_s30  ;;  %v8157_v34 = vld [vmem:[#allocation24_spill] sm:$0xff] }
 0x6d6   :  { %3897 = vmatpush.msra.mxu3 %v3769_v52  ;;  %v2118_v7 = vadd.f32 %v2110_v60, %v1400_v41  ;;  %v8156_v52 = vld [vmem:[#allocation22_spill] sm:$0xff]  ;;  %v3747_v60 = vstv %s5122_s7  ;;  %s5157_s7 = sld [smem:[#allocation3 + $0x682]] }
 0x6d7   :  { %v2973_v53 = vadd.f32 %v2965_v57, %v2119_v12 }
 0x6d8   :  { %v3530_v30 = vld [vmem:[#allocation2 + $0x30] sm:$0xff]  ;;  %v2972_v37 = vadd.f32 %v2964_v13, %v2118_v7  ;;  %v3735_v13 = vmul.f32 %v3731_v48, %v7067_v15 }
 0x6d9   :  { %v3547_v42 = vmax.f32 %v3530_v30, 0.0  ;;  %v3531_v63 = vld [vmem:[#allocation2] sm:$0xff] }
 0x6da   :  { %v3548_v32 = vmax.f32 %v3531_v63, 0.0  ;;  %v3766_v31 = vadd.f32 %v3758_v59, %v2972_v37 }
 0x6db   :  { %3581 = vmatpush.msrb.mxu0 %v3547_v42  ;;  %v3774_v42 = vmul.f32 %v3771_v36, %v7065_v6 }
 0x6dc   :  { %3601 = vmatpush.msrb.mxu1 %v3548_v32  ;;  %5112 = vmatmul.msk.f32.vlgmr.msrb.gmra.mxu0 %vm548_vm9, %v3546_v25 }
 0x6dd   :  { %5113 = vmatmul.msk.f32.vlgmr.msrb.gmra.mxu1 %vm548_vm9, %v3546_v25  ;;  %3658 = vmatpush.msra.mxu0 %v5199_v26  ;;  %v3759_v25 = vmul.f32 %v3757_v29, %v7075_v24  ;;  %v3775_v26 = vmul.f32 %v3771_v36, %v7067_v15 }
 0x6de   :  { %3678 = vmatpush.msra.mxu1 %v5200_v4  ;;  %5130 = vmatmul.msk.f32.vlgmr.msra.gmra.mxu2 %vm638_vm10, %v8155_v5 }
 0x6df   :  { %3659 = vmatpush.msra.mxu0 %v7278_v20  ;;  %5131 = vmatmul.msk.f32.vlgmr.msra.gmra.mxu3 %vm638_vm10, %v8155_v5  ;;  %v3767_v27 = vadd.f32 %v3759_v25, %v2973_v53  ;;  %v7385_v20 = vld [vmem:[%s8056_s4 + $0x40] sm:$0x3] }
 0x6e0   :  { %3679 = vmatpush.msra.mxu1 %v7286_v49 }
 0x6e1   :  { %3660 = vmatpush.msra.mxu0 %v7315_v17 }
 0x6e2   :  { %3680 = vmatpush.msra.mxu1 %v7324_v40  ;;  %v3787_v40 = vstv %s5126_s26  ;;  %s5159_s26 = sld [smem:[#allocation5 + $0x680]] }
 0x6e3   :  { %3661 = vmatpush.msra.mxu0 %v3530_v30  ;;  %v3734_v30 = vmul.f32 %v3731_v48, %v7065_v6 }
 0x6e4   :  { %3681 = vmatpush.msra.mxu1 %v3531_v63  ;;  %5116 = vmatmul.msk.f32.vlgmr.msra.gmra.mxu0 %vm548_vm9, %v7385_v20 }
 0x6e5   :  { %3837 = vmatpush.msrb.mxu0 %v3766_v31  ;;  %5117 = vmatmul.msk.f32.vlgmr.msra.gmra.mxu1 %vm548_vm9, %v7385_v20 }
 0x6e6   :  { %3857 = vmatpush.msrb.mxu1 %v3767_v27 }
 0x6ec   :  { %5128 = vmatmul.msk.f32.vlgmr.msrb.gmra.mxu0 %vm638_vm10, %v8155_v5 }
 0x6ed   :  { %5129 = vmatmul.msk.f32.vlgmr.msrb.gmra.mxu1 %vm638_vm10, %v8155_v5 }
 0x74f   :  { %v3623_v49 = vpop.f32.mrf.mxu2 }
 0x750   :  { %v3643_v17 = vpop.f32.mrf.mxu3  ;;  %v3790_v29 = vmul.f32 %v3787_v40, %v3623_v49  ;;  %v3750_v57 = vmul.f32 %v3747_v60, %v3623_v49 }
 0x751   :  { %v3791_v0 = vmul.f32 %v3787_v40, %v3643_v17  ;;  %v3751_v5 = vmul.f32 %v3747_v60, %v3643_v17 }
 0x752   :  { %v3798_v4 = vrot.slane %v3790_v29, 2 }
 0x753   :  { %v3799_v12 = vrot.slane %v3791_v0, 2 }
 0x757   :  { %v3703_v62 = vpop.f32.mrf.mxu2 }
 0x758   :  { %v3728_v54 = vmul.f32 %v3703_v62, %v8156_v52  ;;  %v3723_v63 = vpop.f32.mrf.mxu3 }
 0x759   :  { %v3583_v32 = vpop.f32.mrf.mxu0  ;;  %v3729_v41 = vmul.f32 %v3723_v63, %v8157_v34 }
 0x75a   :  { %v3603_v3 = vpop.f32.mrf.mxu1  ;;  %v3740_v7 = vmul.f32 %v3737_v39, %v3728_v54  ;;  %v3780_v59 = vmul.f32 %v3777_v23, %v3728_v54  ;;  %v3788_v54 = vmul.f32 %v3787_v40, %v3583_v32 }
 0x75b   :  { %v3741_v25 = vmul.f32 %v3737_v39, %v3729_v41  ;;  %v3781_v37 = vmul.f32 %v3777_v23, %v3729_v41  ;;  %v4355_v41 = vmax.f32 %v7401_v61, 0.0 }
 0x75c   :  { %v3744_v53 = vadd.f32 %v3740_v7, %v3734_v30  ;;  %v3784_v31 = vadd.f32 %v3780_v59, %v3774_v42 }
 0x75d   :  { %v3745_v27 = vadd.f32 %v3741_v25, %v3735_v13  ;;  %v3785_v62 = vadd.f32 %v3781_v37, %v3775_v26  ;;  %v3789_v13 = vmul.f32 %v3787_v40, %v3603_v3  ;;  %v8158_v26 = vmax.f32 %v6986_v19, 0.0  ;;  %v7432_v19 = vld [vmem:[#allocation2 + $0x70] sm:$0xff] }
 0x75e   :  { %v3754_v16 = vadd.f32 %v3750_v57, %v3744_v53  ;;  %v3806_v52 = vadd.f32 %v3798_v4, %v3784_v31  ;;  %v3748_v57 = vmul.f32 %v3747_v60, %v3583_v32  ;;  %v3796_v4 = vrot.slane %v3788_v54, 2 }
 0x75f   :  { %v3755_v63 = vadd.f32 %v3751_v5, %v3745_v27  ;;  %v3807_v34 = vadd.f32 %v3799_v12, %v3785_v62  ;;  %v3749_v5 = vmul.f32 %v3747_v60, %v3603_v3  ;;  %v3797_v12 = vrot.slane %v3789_v13, 2 }
 0x760   :  { %v3764_v14 = vadd.f32 %v3754_v16, %v6990_v55  ;;  %v7405_v49 = vadd.f32 %v3806_v52, %v6993_v43  ;;  %v3732_v55 = vmul.f32 %v3731_v48, %v7073_v47  ;;  %v3773_v52 = vmul.f32 %v3771_v36, %v7075_v24 }
 0x761   :  { %v3765_v17 = vadd.f32 %v3755_v63, %v6996_v8  ;;  %v7409_v29 = vadd.f32 %v3807_v34, %v7003_v38  ;;  %v3663_v0 = vpop.f32.mrf.mxu0  ;;  %v3772_v38 = vmul.f32 %v3771_v36, %v7073_v47 }
 0x762   :  { %v3726_v30 = vmul.f32 %v3663_v0, %v8120_v22  ;;  %v3683_v42 = vpop.f32.mrf.mxu1  ;;  %5136 = vmatpush.msk.msrb.mxu2 %vm2261_vm11, %v3764_v14  ;;  %v3733_v14 = vmul.f32 %v3731_v48, %v7075_v24  ;;  %v7426_v48 = vld [vmem:[#allocation2 + $0x60] sm:$0xff] }
 0x763   :  { %v3727_v43 = vmul.f32 %v3683_v42, %v8121_v33  ;;  %5138 = vmatpush.msk.msrb.mxu3 %vm2261_vm11, %v3765_v17  ;;  %5137 = vmatmul.msk.f32.vlgmr.msrb.gmra.mxu2 %vm2257_vm12, %v7013_v56  ;;  %v4353_v60 = vmax.f32 %v7426_v48, 0.0  ;;  %v5143_v17 = vld [vmem:[%s8055_s3 + $0x4] ss:$8 sm:$0xf] }
 0x764   :  { %v3738_v8 = vmul.f32 %v3737_v39, %v3726_v30  ;;  %v3778_v16 = vmul.f32 %v3777_v23, %v3726_v30  ;;  %5139 = vmatmul.msk.f32.vlgmr.msrb.gmra.mxu3 %vm2257_vm12, %v7013_v56  ;;  %4412 = vmatpush.msra.mxu2 %v4355_v41  ;;  %v4154_v54 = vperm.slane %v5143_v17, 2  ;;  %v4152_v42 = vperm.slane %v5143_v17, 0 }
 0x765   :  { %v3739_v40 = vmul.f32 %v3737_v39, %v3727_v43  ;;  %v3779_v34 = vmul.f32 %v3777_v23, %v3727_v43  ;;  %4432 = vmatpush.msra.mxu3 %v8158_v26  ;;  %v4153_v13 = vperm.slane %v5143_v17, 1 }
 0x766   :  { %v3742_v7 = vadd.f32 %v3738_v8, %v3732_v55  ;;  %v3782_v59 = vadd.f32 %v3778_v16, %v3772_v38 }
 0x767   :  { %v3743_v25 = vadd.f32 %v3739_v40, %v3733_v14  ;;  %v3783_v37 = vadd.f32 %v3779_v34, %v3773_v52  ;;  %v4155_v14 = vperm.slane %v5143_v17, 3 }
 0x768   :  { %v3752_v53 = vadd.f32 %v3748_v57, %v3742_v7  ;;  %v3804_v31 = vadd.f32 %v3796_v4, %v3782_v59  ;;  %v7532_v4 = vld [vmem:[%s8055_s3 + $0x6] ss:$8 sm:$0xf]  ;;  %v5144_v7 = vld [vmem:[%s8055_s3 + $0x5] ss:$8 sm:$0xf] }
 0x769   :  { %v3753_v27 = vadd.f32 %v3749_v5, %v3743_v25  ;;  %v3805_v62 = vadd.f32 %v3797_v12, %v3783_v37  ;;  %v4224_v59 = vperm.slane %v7532_v4, 0  ;;  %v4185_v5 = vperm.slane %v5144_v7, 3 }
 0x76a   :  { %v3762_v36 = vadd.f32 %v3752_v53, %v7040_v28  ;;  %v7430_v39 = vadd.f32 %v3804_v31, %v7043_v51  ;;  %v4354_v28 = vmax.f32 %v7432_v19, 0.0  ;;  %v3879_v51 = vpop.f32.mrf.mxu2  ;;  %v3859_v3 = vpop.f32.mrf.mxu1 }
 0x76b   :  { %v3763_v23 = vadd.f32 %v3753_v27, %v7047_v58  ;;  %v7436_v32 = vadd.f32 %v3805_v62, %v7050_v11  ;;  %v3839_v58 = vpop.f32.mrf.mxu0  ;;  %v3899_v11 = vpop.f32.mrf.mxu3 }
 0x76c   :  { %5132 = vmatpush.msk.msra.mxu0 %vm2261_vm11, %v3762_v36 }
 0x76d   :  { %8159 = vst [vmem:[#allocation21_spill] sm:$0xff] %v7436_v32  ;;  %5134 = vmatpush.msk.msra.mxu1 %vm2261_vm11, %v3763_v23  ;;  %5133 = vmatmul.msk.f32.vlgmr.msra.gmra.mxu0 %vm2257_vm12, %v7013_v56 }
 0x76e   :  { %5135 = vmatmul.msk.f32.vlgmr.msra.gmra.mxu1 %vm2257_vm12, %v7013_v56  ;;  %4372 = vmatpush.msrb.mxu0 %v4353_v60 }
 0x76f   :  { %4392 = vmatpush.msrb.mxu1 %v4354_v28 }
 0x7e6   :  { %v3971_v63 = vpop.f32.mrf.mxu2 }
 0x7e7   :  { %v7449_v0 = vadd.f32 %v3971_v63, %v3879_v51  ;;  %v3991_v56 = vpop.f32.mrf.mxu3 }
 0x7e8   :  { %v7461_v16 = vadd.f32 %v3991_v56, %v3899_v11  ;;  %v4225_v56 = vperm.slane %v7532_v4, 1 }
 0x7e9   :  { %v4162_v30 = vmul.f32 %v4154_v54, %v7449_v0 }
 0x7ea   :  { %v3931_v41 = vpop.f32.mrf.mxu0  ;;  %v4163_v52 = vmul.f32 %v4155_v14, %v7461_v16 }
 0x7eb   :  { %v7452_v55 = vadd.f32 %v3931_v41, %v3839_v58  ;;  %v3951_v43 = vpop.f32.mrf.mxu1  ;;  %4166 = vst [vmem:[#allocation2 + $0x8] sm:$0x3] %v4162_v30  ;;  %v7554_v58 = vld [vmem:[%s8055_s3 + $0x20] ss:$8 sm:$0xf]  ;;  %v4182_v41 = vperm.slane %v5144_v7, 0 }
 0x7ec   :  { %v7454_v8 = vadd.f32 %v3951_v43, %v3859_v3  ;;  %4167 = vst [vmem:[#allocation2 + $0x48] sm:$0x3] %v4163_v52  ;;  %v4311_v11 = vperm.slane %v7554_v58, 3 }
 0x7ed   :  { %4252 = vrot.lane.b32.xlu2 %v7452_v55, %s5243_s16  ;;  %4210 = vrot.lane.b32.xlu1 %v7452_v55, %s5242_s15  ;;  %v4160_v38 = vmul.f32 %v4152_v42, %v7452_v55  ;;  %v7570_v42 = vld [vmem:[%s8055_s3 + $0x3] ss:$8 sm:$0xf] }
 0x7ee   :  { %4168 = vrot.lane.b32.xlu0 %v7452_v55, %s5241_s14  ;;  %v4161_v40 = vmul.f32 %v4153_v13, %v7454_v8  ;;  %v4124_v13 = vperm.slane %v7570_v42, 2 }
 0x7ef   :  { %4164 = vst [vmem:[#allocation2 + $0x50] sm:$0x3] %v4160_v38 }
 0x7f0   :  { %4165 = vst [vmem:[#allocation2 + $0x68] sm:$0x3] %v4161_v40 }
 0x7f5   :  { %4110 = vrot.lane.b32.xlu1 %v7454_v8, %s5240_s13  ;;  %4068 = vrot.lane.b32.xlu2 %v7454_v8, %s5239_s12 }
 0x7f6   :  { %4294 = vrot.lane.b32.xlu0 %v7452_v55, %s5244_s17 }
 0x7fd   :  { %3996 = vrot.lane.b32.xlu1 %v7454_v8, %s5237_s1  ;;  %4212 = vrot.lane.b32.xlu2 %v7454_v8, %s5242_s15 }
 0x7fe   :  { %4026 = vrot.lane.b32.xlu0 %v7454_v8, %s5238_s11 }
 0x805   :  { %4170 = vrot.lane.b32.xlu1 %v7454_v8, %s5241_s14  ;;  %4174 = vrot.lane.b32.xlu2 %v7461_v16, %s5241_s14 }
 0x806   :  { %4214 = vrot.lane.b32.xlu0 %v7449_v0, %s5242_s15 }
 0x80d   :  { %4172 = vrot.lane.b32.xlu1 %v7449_v0, %s5241_s14  ;;  %4256 = vrot.lane.b32.xlu2 %v7449_v0, %s5243_s16 }
 0x80e   :  { %4258 = vrot.lane.b32.xlu0 %v7461_v16, %s5243_s16 }
 0x815   :  { %4216 = vrot.lane.b32.xlu1 %v7461_v16, %s5242_s15  ;;  %4300 = vrot.lane.b32.xlu2 %v7461_v16, %s5244_s17 }
 0x816   :  { %4070 = vrot.lane.b32.xlu0 %v7449_v0, %s5239_s12 }
 0x81d   :  { %4298 = vrot.lane.b32.xlu1 %v7449_v0, %s5244_s17  ;;  %4112 = vrot.lane.b32.xlu2 %v7449_v0, %s5240_s13 }
 0x81e   :  { %4030 = vrot.lane.b32.xlu0 %v7461_v16, %s5238_s11 }
 0x825   :  { %4028 = vrot.lane.b32.xlu1 %v7449_v0, %s5238_s11  ;;  %3998 = vrot.lane.b32.xlu2 %v7449_v0, %s5237_s1 }
 0x826   :  { %4000 = vrot.lane.b32.xlu0 %v7461_v16, %s5237_s1 }
 0x82d   :  { %4072 = vrot.lane.b32.xlu1 %v7461_v16, %s5239_s12  ;;  %4114 = vrot.lane.b32.xlu2 %v7461_v16, %s5240_s13 }
 0x82e   :  { %4254 = vrot.lane.b32.xlu0 %v7454_v8, %s5243_s16 }
 0x835   :  { %4296 = vrot.lane.b32.xlu1 %v7454_v8, %s5244_s17  ;;  %4024 = vrot.lane.b32.xlu2 %v7452_v55, %s5238_s11 }
 0x836   :  { %4066 = vrot.lane.b32.xlu0 %v7452_v55, %s5239_s12 }
 0x83d   :  { %4108 = vrot.lane.b32.xlu1 %v7452_v55, %s5240_s13  ;;  %3994 = vrot.lane.b32.xlu2 %v7452_v55, %s5237_s1 }
 0x847   :  { %v7525_v34 = vpop.permute.xlu2 %4252 }
 0x84f   :  { %v7527_v26 = vpop.permute.xlu2 %4068 }
 0x857   :  { %v4213_v57 = vpop.permute.xlu2 %4212 }
 0x85f   :  { %v7538_v12 = vpop.permute.xlu1 %4210  ;;  %v4175_v25 = vpop.permute.xlu2 %4174 }
 0x860   :  { %v4220_v37 = vsel %vm397_vm5, %v7538_v12, %v4213_v57  ;;  %v4169_v53 = vpop.permute.xlu0 %4168 }
 0x861   :  { %v4232_v31 = vmul.f32 %v4224_v59, %v4220_v37  ;;  %v4179_v27 = vsel %vm338_vm6, %v4175_v25, %v4169_v53 }
 0x862   :  { %v4193_v62 = vmul.f32 %v4185_v5, %v4179_v27 }
 0x863   :  { %v4240_v36 = vrot.slane %v4232_v31, 4 }
 0x864   :  { %v4201_v23 = vrot.slane %v4193_v62, 6  ;;  %v7586_v62 = vld [vmem:[%s8055_s3] ss:$8 sm:$0xf] }
 0x865   :  { %4248 = vst [vmem:[#allocation2 + $0x50] sm:$0x30] %v4240_v36 }
 0x866   :  { %4209 = vst [vmem:[#allocation2 + $0x48] sm:$0xc] %v4201_v23 }
 0x867   :  { %v7545_v60 = vpop.permute.xlu1 %4110  ;;  %v7547_v28 = vpop.permute.xlu2 %4256 }
 0x868   :  { %v7549_v51 = vpop.permute.xlu0 %4294 }
 0x86f   :  { %v7557_v3 = vpop.permute.xlu1 %3996  ;;  %v7559_v63 = vpop.permute.xlu2 %4300 }
 0x870   :  { %v4305_v17 = vsel %vm507_vm8, %v7559_v63, %v7549_v51  ;;  %v7565_v54 = vpop.permute.xlu0 %4026 }
 0x871   :  { %v4319_v30 = vmul.f32 %v4311_v11, %v4305_v17  ;;  %v7592_v11 = vld [vmem:[%s8055_s3 + $0x7] ss:$8 sm:$0xf] }
 0x873   :  { %4323 = vst [vmem:[#allocation2 + $0x38] sm:$0x3] %v4319_v30  ;;  %v4184_v30 = vperm.slane %v5144_v7, 2 }
 0x877   :  { %v4171_v43 = vpop.permute.xlu1 %4170  ;;  %v4113_v38 = vpop.permute.xlu2 %4112 }
 0x878   :  { %v4178_v14 = vsel %vm338_vm6, %v4169_v53, %v4171_v43  ;;  %v4117_v40 = vsel %vm249_vm4, %v7545_v60, %v4113_v38  ;;  %v4215_v52 = vpop.permute.xlu0 %4214 }
 0x879   :  { %v4190_v59 = vmul.f32 %v4182_v41, %v4178_v14  ;;  %v4132_v5 = vmul.f32 %v4124_v13, %v4117_v40  ;;  %v4219_v37 = vsel %vm397_vm5, %v4213_v57, %v4215_v52  ;;  %v4183_v57 = vperm.slane %v5144_v7, 1 }
 0x87a   :  { %v4233_v31 = vmul.f32 %v4225_v56, %v4219_v37  ;;  %v7581_v27 = vld [vmem:[#allocation2 + $0x38] sm:$0xff]  ;;  %v4010_v41 = vperm.slane %v7586_v62, 2  ;;  %v4268_v13 = vperm.slane %v7592_v11, 2  ;;  %v4269_v40 = vperm.slane %v7592_v11, 3 }
 0x87b   :  { %v4198_v36 = vrot.slane %v4190_v59, 6  ;;  %v4140_v53 = vrot.slane %v4132_v5, 2  ;;  %v4352_v23 = vmax.f32 %v7581_v27, 0.0 }
 0x87c   :  { %v4241_v17 = vrot.slane %v4233_v31, 4 }
 0x87d   :  { %4206 = vst [vmem:[#allocation2 + $0x50] sm:$0xc] %v4198_v36  ;;  %4433 = vmatpush.msra.mxu3 %v4352_v23 }
 0x87e   :  { %4148 = vst [vmem:[#allocation2 + $0x58] sm:$0xc0] %v4140_v53 }
 0x87f   :  { %4249 = vst [vmem:[#allocation2 + $0x68] sm:$0x30] %v4241_v17  ;;  %v4173_v56 = vpop.permute.xlu1 %4172  ;;  %v7596_v14 = vpop.permute.xlu2 %3998 }
 0x880   :  { %v4176_v59 = vsel %vm338_vm6, %v4173_v56, %v4175_v25  ;;  %v4177_v5 = vsel %vm338_vm6, %v4171_v43, %v4173_v56  ;;  %v4003_v7 = vsel %vm93_vm1, %v7557_v3, %v7596_v14  ;;  %v4259_v37 = vpop.permute.xlu0 %4258  ;;  %v7616_v43 = vld [vmem:[%s8055_s3 + $0x2] ss:$8 sm:$0xf] }
 0x881   :  { %v4191_v31 = vmul.f32 %v4183_v57, %v4177_v5  ;;  %v4192_v36 = vmul.f32 %v4184_v30, %v4176_v59  ;;  %v4018_v53 = vmul.f32 %v4010_v41, %v4003_v7  ;;  %v4260_v23 = vsel %vm452_vm7, %v7547_v28, %v4259_v37 }
 0x882   :  { %v4263_v25 = vsel %vm452_vm7, %v4259_v37, %v7525_v34  ;;  %v4276_v17 = vmul.f32 %v4268_v13, %v4260_v23  ;;  %v4226_v59 = vperm.slane %v7532_v4, 2  ;;  %v4227_v5 = vperm.slane %v7532_v4, 3 }
 0x883   :  { %v4199_v56 = vrot.slane %v4191_v31, 6  ;;  %v4200_v32 = vrot.slane %v4192_v36, 6  ;;  %4022 = vst [vmem:[#allocation2 + $0x58] sm:$0x3] %v4018_v53  ;;  %v4277_v57 = vmul.f32 %v4269_v40, %v4263_v25  ;;  %v4125_v7 = vperm.slane %v7570_v42, 3 }
 0x884   :  { %v4284_v30 = vrot.slane %v4276_v17, 2  ;;  %v4082_v13 = vperm.slane %v7616_v43, 2 }
 0x885   :  { %4207 = vst [vmem:[#allocation2 + $0x68] sm:$0xc] %v4199_v56  ;;  %v4285_v41 = vrot.slane %v4277_v57, 2 }
 0x886   :  { %4208 = vst [vmem:[#allocation2 + $0x8] sm:$0xc] %v4200_v32 }
 0x887   :  { %4292 = vst [vmem:[#allocation2 + $0x8] sm:$0xc0] %v4284_v30  ;;  %v4217_v37 = vpop.permute.xlu1 %4216  ;;  %v7622_v23 = vpop.permute.xlu2 %4114 }
 0x888   :  { %4293 = vst [vmem:[#allocation2 + $0x48] sm:$0xc0] %v4285_v41  ;;  %v4218_v40 = vsel %vm397_vm5, %v4215_v52, %v4217_v37  ;;  %v4221_v31 = vsel %vm397_vm5, %v4217_v37, %v7538_v12  ;;  %v4116_v4 = vsel %vm249_vm4, %v4113_v38, %v7622_v23  ;;  %v7632_v36 = vpop.permute.xlu0 %4070  ;;  %v5140_v52 = vld [vmem:[%s8055_s3 + $0x1] ss:$8 sm:$0xf]  ;;  %v4310_v38 = vperm.slane %v7554_v58, 2 }
 0x889   :  { %v4234_v32 = vmul.f32 %v4226_v59, %v4218_v40  ;;  %v4235_v53 = vmul.f32 %v4227_v5, %v4221_v31  ;;  %v4133_v25 = vmul.f32 %v4125_v7, %v4116_v4  ;;  %v4075_v17 = vsel %vm190_vm3, %v7527_v26, %v7632_v36  ;;  %s7667_s3 = sld [smem:[#allocation5 + $0x480]] }
 0x88a   :  { %v4090_v56 = vmul.f32 %v4082_v13, %v4075_v17  ;;  %v4039_v59 = vperm.slane %v5140_v52, 1  ;;  %v4038_v5 = vperm.slane %v5140_v52, 0 }
 0x88b   :  { %v4242_v12 = vrot.slane %v4234_v32, 4  ;;  %v4243_v57 = vrot.slane %v4235_v53, 4  ;;  %v4141_v30 = vrot.slane %v4133_v25, 2 }
 0x88c   :  { %v4098_v41 = vrot.slane %v4090_v56, 4 }
 0x88d   :  { %4250 = vst [vmem:[#allocation2 + $0x8] sm:$0x30] %v4242_v12  ;;  %v4040_v12 = vperm.slane %v5140_v52, 2 }
 0x88e   :  { %4251 = vst [vmem:[#allocation2 + $0x48] sm:$0x30] %v4243_v57  ;;  %v4041_v57 = vperm.slane %v5140_v52, 3 }
 0x88f   :  { %4149 = vst [vmem:[#allocation2 + $0x18] sm:$0xc0] %v4141_v30  ;;  %v7642_v7 = vpop.permute.xlu1 %4298  ;;  %v4025_v37 = vpop.permute.xlu2 %4024  ;;  %v4009_v30 = vperm.slane %v7586_v62, 1 }
 0x890   :  { %4106 = vst [vmem:[#allocation2 + $0x58] sm:$0x30] %v4098_v41  ;;  %v4302_v13 = vsel %vm507_vm8, %v7642_v7, %v7559_v63  ;;  %v4034_v40 = vsel %vm135_vm2, %v4025_v37, %v7565_v54  ;;  %v4031_v31 = vpop.permute.xlu0 %4030 }
 0x891   :  { %v4318_v4 = vmul.f32 %v4310_v38, %v4302_v13  ;;  %v4047_v32 = vmul.f32 %v4039_v59, %v4034_v40  ;;  %v4035_v53 = vsel %vm135_vm2, %v4031_v31, %v4025_v37  ;;  %v4011_v38 = vperm.slane %v7586_v62, 3 }
 0x892   :  { %v4046_v25 = vmul.f32 %v4038_v5, %v4035_v53  ;;  %v4008_v37 = vperm.slane %v7586_v62, 0 }
 0x893   :  { %4322 = vst [vmem:[#allocation2 + $0x10] sm:$0x3] %v4318_v4  ;;  %v4055_v17 = vrot.slane %v4047_v32, 6 }
 0x894   :  { %v4054_v56 = vrot.slane %v4046_v25, 6 }
 0x895   :  { %4063 = vst [vmem:[#allocation2] sm:$0xc] %v4055_v17  ;;  %v7654_v63 = vld [vmem:[#allocation2 + $0x48] sm:$0xff] }
 0x896   :  { %4062 = vst [vmem:[#allocation2 + $0x30] sm:$0xc] %v4054_v56  ;;  %v4348_v41 = vmax.f32 %v7654_v63, 0.0 }
 0x897   :  { %v4029_v59 = vpop.permute.xlu1 %4028  ;;  %v3995_v13 = vpop.permute.xlu2 %3994 }
 0x898   :  { %v4032_v5 = vsel %vm135_vm2, %v4029_v59, %v4031_v31  ;;  %v4033_v52 = vsel %vm135_vm2, %v7565_v54, %v4029_v59  ;;  %v4004_v40 = vsel %vm93_vm1, %v3995_v13, %v7557_v3  ;;  %4434 = vmatpush.msra.mxu3 %v4348_v41  ;;  %v4001_v4 = vpop.permute.xlu0 %4000  ;;  %v7678_v3 = vld [vmem:[#allocation2 + $0x8] sm:$0xff]  ;;  %v4267_v59 = vperm.slane %v7592_v11, 1 }
 0x899   :  { %v4048_v32 = vmul.f32 %v4040_v12, %v4033_v52  ;;  %v4049_v53 = vmul.f32 %v4041_v57, %v4032_v5  ;;  %v4017_v25 = vmul.f32 %v4009_v30, %v4004_v40  ;;  %v4002_v62 = vsel %vm93_vm1, %v7596_v14, %v4001_v4 }
 0x89a   :  { %v4005_v54 = vsel %vm93_vm1, %v4001_v4, %v3995_v13  ;;  %v4019_v31 = vmul.f32 %v4011_v38, %v4002_v62  ;;  %v7676_v17 = vld [vmem:[#allocation2 + $0x10] sm:$0xff]  ;;  %v4083_v14 = vperm.slane %v7616_v43, 3  ;;  %v4347_v30 = vmax.f32 %v7678_v3, 0.0 }
 0x89b   :  { %v4056_v56 = vrot.slane %v4048_v32, 6  ;;  %v4057_v41 = vrot.slane %v4049_v53, 6  ;;  %4021 = vst [vmem:[#allocation2] sm:$0x3] %v4017_v25  ;;  %v4016_v12 = vmul.f32 %v4008_v37, %v4005_v54  ;;  %v4351_v57 = vmax.f32 %v7676_v17, 0.0 }
 0x89c   :  { %4023 = vst [vmem:[#allocation2 + $0x18] sm:$0x3] %v4019_v31  ;;  %v4266_v38 = vperm.slane %v7592_v11, 0  ;;  %v7695_v25 = vstv %s7667_s3  ;;  %v7698_v62 = vstv %s7672_s23  ;;  %v7700_v54 = vstv %s5091_s24 }
 0x89d   :  { %4064 = vst [vmem:[#allocation2 + $0x58] sm:$0xc] %v4056_v56  ;;  %4413 = vmatpush.msra.mxu2 %v4351_v57 }
 0x89e   :  { %4065 = vst [vmem:[#allocation2 + $0x18] sm:$0xc] %v4057_v41  ;;  %v1446_v41 = vmul.f32 %v7695_v25, %v8134_v10  ;;  %v4081_v10 = vperm.slane %v7616_v43, 1 }
 0x89f   :  { %4020 = vst [vmem:[#allocation2 + $0x30] sm:$0x3] %v4016_v12  ;;  %v4073_v13 = vpop.permute.xlu1 %4072  ;;  %4414 = vmatpush.msra.mxu2 %v4347_v30  ;;  %v4309_v12 = vperm.slane %v7554_v58, 1  ;;  %v7713_v30 = vstv %s5127_s25 }
 0x8a0   :  { %v4074_v37 = vsel %vm190_vm3, %v7632_v36, %v4073_v13  ;;  %v4255_v5 = vpop.permute.xlu0 %4254 }
 0x8a1   :  { %v4091_v52 = vmul.f32 %v4083_v14, %v4074_v37  ;;  %v4261_v40 = vsel %vm452_vm7, %v4255_v5, %v7547_v28  ;;  %v4262_v4 = vsel %vm452_vm7, %v7525_v34, %v4255_v5  ;;  %v2164_v28 = vmul.f32 %v7698_v62, %v8145_v35  ;;  %v7711_v14 = vld [vmem:[%s8056_s4 + $0x38] sm:$0xff] }
 0x8a2   :  { %v4274_v32 = vmul.f32 %v4266_v38, %v4262_v4  ;;  %v4275_v11 = vmul.f32 %v4267_v59, %v4261_v40  ;;  %v4308_v34 = vperm.slane %v7554_v58, 0  ;;  %v4080_v38 = vperm.slane %v7616_v43, 0 }
 0x8a3   :  { %v4099_v53 = vrot.slane %v4091_v52, 4  ;;  %v3018_v35 = vmul.f32 %v7700_v54, %v8148_v21  ;;  %v7719_v58 = vstv %s5159_s26  ;;  %v2172_v43 = vadd.f32 %v2164_v28, %v1446_v41 }
 0x8a4   :  { %v4282_v36 = vrot.slane %v4274_v32, 2  ;;  %v4283_v31 = vrot.slane %v4275_v11, 2  ;;  %v4326_v56 = vld [vmem:[#allocation2 + $0x58] sm:$0xff]  ;;  %v3812_v40 = vmul.f32 %v7713_v30, %v7065_v6  ;;  %v1447_v41 = vmul.f32 %v7695_v25, %v8146_v2 }
 0x8a5   :  { %4107 = vst [vmem:[#allocation2 + $0x18] sm:$0x30] %v4099_v53  ;;  %v4343_v57 = vmax.f32 %v4326_v56, 0.0  ;;  %v3019_v2 = vmul.f32 %v7700_v54, %v8149_v9  ;;  %v4555_v1 = vmul.f32 %v7719_v58, %v7461_v16 }
 0x8a6   :  { %4290 = vst [vmem:[#allocation2 + $0x50] sm:$0xc0] %v4282_v36  ;;  %v3026_v36 = vadd.f32 %v3018_v35, %v2172_v43 }
 0x8a7   :  { %4291 = vst [vmem:[#allocation2 + $0x68] sm:$0xc0] %v4283_v31  ;;  %v4297_v59 = vpop.permute.xlu1 %4296  ;;  %4415 = vmatpush.msra.mxu2 %v4343_v57  ;;  %v4554_v31 = vmul.f32 %v7719_v58, %v7449_v0  ;;  %v4123_v57 = vperm.slane %v7570_v42, 1 }
 0x8a8   :  { %v4303_v37 = vsel %vm507_vm8, %v4297_v59, %v7642_v7  ;;  %v4304_v5 = vsel %vm507_vm8, %v7549_v51, %v4297_v59  ;;  %v4067_v52 = vpop.permute.xlu0 %4066  ;;  %5150 = vmatmul.msk.f32.vlgmr.msra.gmra.mxu2 %vm548_vm9, %v7711_v14 }
 0x8a9   :  { %v4316_v4 = vmul.f32 %v4308_v34, %v4304_v5  ;;  %v4317_v32 = vmul.f32 %v4309_v12, %v4303_v37  ;;  %v4076_v11 = vsel %vm190_vm3, %v4067_v52, %v7527_v26  ;;  %v4077_v7 = vsel %vm190_vm3, %v4073_v13, %v4067_v52  ;;  %4492 = vmatpush.msrb.mxu2 %v7401_v61  ;;  %v5202_v37 = vld [vmem:[#allocation2 + $0x28] sm:$0xff] }
 0x8aa   :  { %v4088_v51 = vmul.f32 %v4080_v38, %v4077_v7  ;;  %v4089_v53 = vmul.f32 %v4081_v10, %v4076_v11  ;;  %v2165_v26 = vmul.f32 %v7698_v62, %v8147_v18  ;;  %v3820_v61 = vadd.f32 %v3812_v40, %v3026_v36 }
 0x8ab   :  { %4320 = vst [vmem:[#allocation2 + $0x40] sm:$0x3] %v4316_v4  ;;  %4493 = vmatpush.msrb.mxu2 %v7676_v17  ;;  %v4122_v12 = vperm.slane %v7570_v42, 0  ;;  %v3813_v42 = vmul.f32 %v7713_v30, %v7067_v15 }
 0x8ac   :  { %4321 = vst [vmem:[#allocation2 + $0x20] sm:$0x3] %v4317_v32  ;;  %v4096_v28 = vrot.slane %v4088_v51, 4  ;;  %v4097_v13 = vrot.slane %v4089_v53, 4  ;;  %v4327_v34 = vld [vmem:[#allocation2 + $0x18] sm:$0xff]  ;;  %v4562_v17 = vadd.f32 %v4554_v31, %v3820_v61  ;;  %v2173_v10 = vadd.f32 %v2165_v26, %v1447_v41 }
 0x8ad   :  { %4494 = vmatpush.msrb.mxu2 %v7678_v3  ;;  %v4344_v38 = vmax.f32 %v4327_v34, 0.0  ;;  %v2162_v31 = vmul.f32 %v7698_v62, %v8151_v50  ;;  %v3016_v61 = vmul.f32 %v7700_v54, %v6626_v45 }
 0x8ae   :  { %4104 = vst [vmem:[#allocation2 + $0x30] sm:$0x30] %v4096_v28  ;;  %v3027_v52 = vadd.f32 %v3019_v2, %v2173_v10  ;;  %v4329_v32 = vld [vmem:[#allocation2 + $0x68] sm:$0xff]  ;;  %v2163_v28 = vmul.f32 %v7698_v62, %v8152_v46  ;;  %v3810_v46 = vmul.f32 %v7713_v30, %v7073_v47 }
 0x8af   :  { %4105 = vst [vmem:[#allocation2] sm:$0x30] %v4097_v13  ;;  %4495 = vmatpush.msrb.mxu2 %v4326_v56  ;;  %v4109_v18 = vpop.permute.xlu1 %4108  ;;  %4435 = vmatpush.msra.mxu3 %v4344_v38  ;;  %v4346_v53 = vmax.f32 %v4329_v32, 0.0  ;;  %v8161_v38 = vld [vmem:[#allocation27_spill] sm:$0xff] }
 0x8b0   :  { %v4118_v35 = vsel %vm249_vm4, %v4109_v18, %v7545_v60  ;;  %v4119_v3 = vsel %vm249_vm4, %v7622_v23, %v4109_v18  ;;  %5151 = vmatmul.msk.f32.vlgmr.msra.gmra.mxu3 %vm548_vm9, %v7711_v14  ;;  %5154 = vmatmul.msk.f32.vlgmr.msrb.gmra.mxu2 %vm548_vm9, %v7385_v20  ;;  %v4328_v60 = vld [vmem:[#allocation2 + $0x50] sm:$0xff]  ;;  %v3821_v7 = vadd.f32 %v3813_v42, %v3027_v52  ;;  %v8162_v42 = vld [vmem:[#allocation22_spill] sm:$0xff] }
 0x8b1   :  { %4619 = vmatpush.msra.mxu2 %v4562_v17  ;;  %v4130_v59 = vmul.f32 %v4122_v12, %v4119_v3  ;;  %v4131_v56 = vmul.f32 %v4123_v57, %v4118_v35  ;;  %4512 = vmatpush.msrb.mxu3 %v5202_v37  ;;  %v4345_v51 = vmax.f32 %v4328_v60, 0.0  ;;  %v8160_v12 = vld [vmem:[#allocation13_spill] sm:$0xff]  ;;  %v3017_v17 = vmul.f32 %v7700_v54, %v8161_v38 }
 0x8b2   :  { %v4332_v5 = vld [vmem:[#allocation2 + $0x40] sm:$0xff]  ;;  %v4563_v36 = vadd.f32 %v4555_v1, %v3821_v7  ;;  %v1445_v57 = vmul.f32 %v7695_v25, %v8160_v12  ;;  %v4552_v54 = vmul.f32 %v7719_v58, %v7452_v55  ;;  %v4553_v18 = vmul.f32 %v7719_v58, %v7454_v8  ;;  %v4783_v7 = vld [vmem:[%s8057_s5 + $0x178] sm:$0xff] }
 0x8b3   :  { %v4138_v23 = vrot.slane %v4130_v59, 2  ;;  %v4139_v43 = vrot.slane %v4131_v56, 2  ;;  %4513 = vmatpush.msrb.mxu3 %v7581_v27  ;;  %v4349_v40 = vmax.f32 %v4332_v5, 0.0  ;;  %v4333_v4 = vld [vmem:[#allocation2 + $0x20] sm:$0xff]  ;;  %v5203_v27 = vld [vmem:[%s8056_s4 + $0x50] sm:$0xff]  ;;  %v4531_v3 = vstv %s5157_s7 }
 0x8b4   :  { %v4350_v11 = vmax.f32 %v4333_v4, 0.0  ;;  %v4541_v56 = vstv %s5158_s8  ;;  %v4525_v37 = vstv %s5156_s0 }
 0x8b5   :  { %4146 = vst [vmem:[#allocation2 + $0x30] sm:$0xc0] %v4138_v23  ;;  %4514 = vmatpush.msrb.mxu3 %v7654_v63  ;;  %4373 = vmatpush.msrb.mxu0 %v4349_v40  ;;  %v8163_v40 = vld [vmem:[#allocation24_spill] sm:$0xff] }
 0x8b6   :  { %4147 = vst [vmem:[#allocation2] sm:$0xc0] %v4139_v43  ;;  %4393 = vmatpush.msrb.mxu1 %v4350_v11 }
 0x8b7   :  { %4515 = vmatpush.msrb.mxu3 %v4327_v34  ;;  %4374 = vmatpush.msrb.mxu0 %v4345_v51  ;;  %v1444_v34 = vmul.f32 %v7695_v25, %v8153_v44  ;;  %v2171_v44 = vadd.f32 %v2163_v28, %v1445_v57  ;;  %v3811_v25 = vmul.f32 %v7713_v30, %v7075_v24 }
 0x8b8   :  { %4394 = vmatpush.msrb.mxu1 %v4346_v53  ;;  %5155 = vmatmul.msk.f32.vlgmr.msrb.gmra.mxu3 %vm548_vm9, %v7385_v20  ;;  %v4529_v51 = vmul.f32 %v4525_v37, %v7461_v16 }
 0x8b9   :  { %4639 = vmatpush.msra.mxu3 %v4563_v36  ;;  %5162 = vmatmul.msk.f32.vlgmr.msra.gmra.mxu2 %vm638_vm10, %v5203_v27  ;;  %v2170_v50 = vadd.f32 %v2162_v31, %v1444_v34  ;;  %v3025_v2 = vadd.f32 %v3017_v17, %v2171_v44  ;;  %v5204_v36 = vld [vmem:[%s8056_s4 + $0x48] sm:$0xff]  ;;  %v4779_v34 = vld [vmem:[%s8057_s5 + $0x158] sm:$0xff] }
 0x8ba   :  { %v4781_v31 = vld [vmem:[%s8057_s5 + $0x168] sm:$0xff] }
 0x8bb   :  { %v3024_v62 = vadd.f32 %v3016_v61, %v2170_v50  ;;  %v4799_v61 = vld [vmem:[%s8057_s5 + $0x1f8] sm:$0xff]  ;;  %v4798_v50 = vld [vmem:[%s8057_s5 + $0x1f0] sm:$0xff] }
 0x8bc   :  { %v4324_v63 = vld [vmem:[#allocation2 + $0x30] sm:$0xff] }
 0x8bd   :  { %v4341_v41 = vmax.f32 %v4324_v63, 0.0  ;;  %v4325_v26 = vld [vmem:[#allocation2] sm:$0xff] }
 0x8be   :  { %v4342_v13 = vmax.f32 %v4325_v26, 0.0 }
 0x8bf   :  { %4375 = vmatpush.msrb.mxu0 %v4341_v41 }
 0x8c0   :  { %4395 = vmatpush.msrb.mxu1 %v4342_v13  ;;  %5148 = vmatmul.msk.f32.vlgmr.msrb.gmra.mxu0 %vm548_vm9, %v7711_v14 }
 0x8c1   :  { %5149 = vmatmul.msk.f32.vlgmr.msrb.gmra.mxu1 %vm548_vm9, %v7711_v14  ;;  %4452 = vmatpush.msra.mxu0 %v7426_v48  ;;  %v3818_v14 = vadd.f32 %v3810_v46, %v3024_v62  ;;  %v3819_v48 = vadd.f32 %v3811_v25, %v3025_v2  ;;  %v4526_v46 = vmul.f32 %v4525_v37, %v7452_v55  ;;  %v4797_v62 = vld [vmem:[%s8057_s5 + $0x1e8] sm:$0xff] }
 0x8c2   :  { %4472 = vmatpush.msra.mxu1 %v7432_v19  ;;  %5163 = vmatmul.msk.f32.vlgmr.msra.gmra.mxu3 %vm638_vm10, %v5203_v27 }
 0x8c3   :  { %4453 = vmatpush.msra.mxu0 %v4332_v5  ;;  %v4560_v10 = vadd.f32 %v4552_v54, %v3818_v14  ;;  %v4561_v30 = vadd.f32 %v4553_v18, %v3819_v48  ;;  %v4528_v5 = vmul.f32 %v4525_v37, %v7449_v0  ;;  %v4776_v48 = vld [vmem:[%s8057_s5 + $0x140] sm:$0xff] }
 0x8c4   :  { %4473 = vmatpush.msra.mxu1 %v4333_v4 }
 0x8c5   :  { %4454 = vmatpush.msra.mxu0 %v4328_v60 }
 0x8c6   :  { %4474 = vmatpush.msra.mxu1 %v4329_v32 }
 0x8c7   :  { %4455 = vmatpush.msra.mxu0 %v4324_v63 }
 0x8c8   :  { %4475 = vmatpush.msra.mxu1 %v4325_v26  ;;  %5152 = vmatmul.msk.f32.vlgmr.msra.gmra.mxu0 %vm548_vm9, %v7385_v20  ;;  %v4780_v26 = vld [vmem:[%s8057_s5 + $0x160] sm:$0xff] }
 0x8c9   :  { %4579 = vmatpush.msrb.mxu0 %v4560_v10  ;;  %5153 = vmatmul.msk.f32.vlgmr.msra.gmra.mxu1 %vm548_vm9, %v7385_v20  ;;  %v4796_v10 = vld [vmem:[%s8057_s5 + $0x1e0] sm:$0xff] }
 0x8ca   :  { %4599 = vmatpush.msrb.mxu1 %v4561_v30 }
 0x8d0   :  { %5160 = vmatmul.msk.f32.vlgmr.msrb.gmra.mxu0 %vm638_vm10, %v5203_v27 }
 0x8d1   :  { %5161 = vmatmul.msk.f32.vlgmr.msrb.gmra.mxu1 %vm638_vm10, %v5203_v27 }
 0x92b   :  { %v4417_v19 = vpop.f32.mrf.mxu2 }
 0x92c   :  { %v4544_v52 = vmul.f32 %v4541_v56, %v4417_v19 }
 0x933   :  { %v4437_v58 = vpop.f32.mrf.mxu3  ;;  %v4497_v35 = vpop.f32.mrf.mxu2 }
 0x934   :  { %v4522_v59 = vmul.f32 %v4497_v35, %v8162_v42  ;;  %v4545_v27 = vmul.f32 %v4541_v56, %v4437_v58  ;;  %v4775_v58 = vld [vmem:[%s8057_s5 + $0x138] sm:$0xff]  ;;  %v8164_v42 = vld [vmem:[#allocation21_spill] sm:$0xff] }
 0x935   :  { %v4795_v35 = vld [vmem:[%s8057_s5 + $0x1d8] sm:$0xff] }
 0x936   :  { %v4534_v60 = vmul.f32 %v4531_v3, %v4522_v59 }
 0x938   :  { %v4538_v20 = vadd.f32 %v4534_v60, %v4528_v5  ;;  %v4794_v5 = vld [vmem:[%s8057_s5 + $0x1d0] sm:$0xff] }
 0x939   :  { %v4750_v60 = vld [vmem:[%s8057_s5 + $0x70] sm:$0xff] }
 0x93a   :  { %v4548_v1 = vadd.f32 %v4544_v52, %v4538_v20  ;;  %v4766_v52 = vld [vmem:[%s8057_s5 + $0xf0] sm:$0xff]  ;;  %v4773_v20 = vld [vmem:[%s8057_s5 + $0x128] sm:$0xff] }
 0x93b   :  { %v4517_v23 = vpop.f32.mrf.mxu3 }
 0x93c   :  { %v4558_v43 = vadd.f32 %v4548_v1, %v7405_v49  ;;  %v4523_v4 = vmul.f32 %v4517_v23, %v8163_v40  ;;  %v4782_v49 = vld [vmem:[%s8057_s5 + $0x170] sm:$0xff]  ;;  %v4793_v1 = vld [vmem:[%s8057_s5 + $0x1c8] sm:$0xff]  ;;  %v4772_v40 = vld [vmem:[%s8057_s5 + $0x120] sm:$0xff] }
 0x93d   :  { %v4377_v32 = vpop.f32.mrf.mxu0  ;;  %v4749_v23 = vld [vmem:[%s8057_s5 + $0x68] sm:$0xff] }
 0x93e   :  { %v4397_v11 = vpop.f32.mrf.mxu1  ;;  %v4535_v53 = vmul.f32 %v4531_v3, %v4523_v4  ;;  %5168 = vmatpush.msk.msrb.mxu2 %vm2261_vm11, %v4558_v43  ;;  %v4542_v54 = vmul.f32 %v4541_v56, %v4377_v32  ;;  %v4765_v43 = vld [vmem:[%s8057_s5 + $0xe8] sm:$0xff]  ;;  %v4792_v4 = vld [vmem:[%s8057_s5 + $0x1c0] sm:$0xff] }
 0x93f   :  { %5169 = vmatmul.msk.f32.vlgmr.msrb.gmra.mxu2 %vm2257_vm12, %v5204_v36  ;;  %v4543_v18 = vmul.f32 %v4541_v56, %v4397_v11  ;;  %v4751_v56 = vld [vmem:[%s8057_s5 + $0x78] sm:$0xff]  ;;  %v4748_v32 = vld [vmem:[%s8057_s5 + $0x60] sm:$0xff] }
 0x940   :  { %v4539_v63 = vadd.f32 %v4535_v53, %v4529_v51  ;;  %4858 = vmatpush.msra.mxu2 %v4783_v7  ;;  %v4764_v11 = vld [vmem:[%s8057_s5 + $0xe0] sm:$0xff]  ;;  %v4771_v7 = vld [vmem:[%s8057_s5 + $0x118] sm:$0xff] }
 0x941   :  { %v4791_v51 = vld [vmem:[%s8057_s5 + $0x1b8] sm:$0xff] }
 0x942   :  { %v4549_v41 = vadd.f32 %v4545_v27, %v4539_v63  ;;  %4859 = vmatpush.msra.mxu2 %v4782_v49  ;;  %v4747_v53 = vld [vmem:[%s8057_s5 + $0x58] sm:$0xff]  ;;  %v4770_v49 = vld [vmem:[%s8057_s5 + $0x110] sm:$0xff] }
 0x943   :  { %v4790_v27 = vld [vmem:[%s8057_s5 + $0x1b0] sm:$0xff] }
 0x944   :  { %v4559_v28 = vadd.f32 %v4549_v41, %v7409_v29  ;;  %4860 = vmatpush.msra.mxu2 %v4781_v31  ;;  %v4778_v29 = vld [vmem:[%s8057_s5 + $0x150] sm:$0xff]  ;;  %v4769_v41 = vld [vmem:[%s8057_s5 + $0x108] sm:$0xff] }
 0x945   :  { %v4457_v13 = vpop.f32.mrf.mxu0  ;;  %v4746_v63 = vld [vmem:[%s8057_s5 + $0x50] sm:$0xff] }
 0x946   :  { %v4520_v12 = vmul.f32 %v4457_v13, %v8120_v22  ;;  %v4477_v57 = vpop.f32.mrf.mxu1  ;;  %4861 = vmatpush.msra.mxu2 %v4780_v26  ;;  %5170 = vmatpush.msk.msrb.mxu3 %vm2261_vm11, %v4559_v28  ;;  %v4527_v22 = vmul.f32 %v4525_v37, %v7454_v8  ;;  %v4767_v37 = vld [vmem:[%s8057_s5 + $0xf8] sm:$0xff]  ;;  %v4762_v31 = vld [vmem:[%s8057_s5 + $0xd0] sm:$0xff]  ;;  %v4789_v26 = vld [vmem:[%s8057_s5 + $0x1a8] sm:$0xff] }
 0x947   :  { %v4521_v17 = vmul.f32 %v4477_v57, %v8121_v33  ;;  %5171 = vmatmul.msk.f32.vlgmr.msrb.gmra.mxu3 %vm2257_vm12, %v5204_v36  ;;  %v4777_v33 = vld [vmem:[%s8057_s5 + $0x148] sm:$0xff]  ;;  %v4760_v57 = vld [vmem:[%s8057_s5 + $0xc0] sm:$0xff] }
 0x948   :  { %v4532_v44 = vmul.f32 %v4531_v3, %v4520_v12  ;;  %4862 = vmatpush.msra.mxu2 %v4779_v34  ;;  %4887 = vmatpush.msra.mxu3 %v4799_v61  ;;  %v4745_v28 = vld [vmem:[%s8057_s5 + $0x48] sm:$0xff]  ;;  %v4768_v34 = vld [vmem:[%s8057_s5 + $0x100] sm:$0xff] }
 0x949   :  { %v4533_v25 = vmul.f32 %v4531_v3, %v4521_v17  ;;  %v4761_v13 = vld [vmem:[%s8057_s5 + $0xc8] sm:$0xff]  ;;  %v4788_v61 = vld [vmem:[%s8057_s5 + $0x1a0] sm:$0xff]  ;;  %v4787_v17 = vld [vmem:[%s8057_s5 + $0x198] sm:$0xff] }
 0x94a   :  { %v4536_v2 = vadd.f32 %v4532_v44, %v4526_v46  ;;  %4863 = vmatpush.msra.mxu2 %v4778_v29  ;;  %4888 = vmatpush.msra.mxu3 %v4798_v50  ;;  %v4744_v12 = vld [vmem:[%s8057_s5 + $0x40] sm:$0xff]  ;;  %v4743_v29 = vld [vmem:[%s8057_s5 + $0x38] sm:$0xff]  ;;  %v4786_v46 = vld [vmem:[%s8057_s5 + $0x190] sm:$0xff] }
 0x94b   :  { %v4537_v14 = vadd.f32 %v4533_v25, %v4527_v22  ;;  %v4759_v50 = vld [vmem:[%s8057_s5 + $0xb8] sm:$0xff]  ;;  %v4742_v44 = vld [vmem:[%s8057_s5 + $0x30] sm:$0xff]  ;;  %v4785_v22 = vld [vmem:[%s8057_s5 + $0x188] sm:$0xff] }
 0x94c   :  { %v4546_v30 = vadd.f32 %v4542_v54, %v4536_v2  ;;  %4864 = vmatpush.msra.mxu2 %v4777_v33  ;;  %4889 = vmatpush.msra.mxu3 %v4797_v62  ;;  %v4741_v25 = vld [vmem:[%s8057_s5 + $0x28] sm:$0xff]  ;;  %v4784_v62 = vld [vmem:[%s8057_s5 + $0x180] sm:$0xff] }
 0x94d   :  { %v4547_v19 = vadd.f32 %v4543_v18, %v4537_v14  ;;  %v4757_v33 = vld [vmem:[%s8057_s5 + $0xa8] sm:$0xff]  ;;  %v4740_v54 = vld [vmem:[%s8057_s5 + $0x20] sm:$0xff]  ;;  %v4739_v18 = vld [vmem:[%s8057_s5 + $0x18] sm:$0xff] }
 0x94e   :  { %v4556_v3 = vadd.f32 %v4546_v30, %v7430_v39  ;;  %4865 = vmatpush.msra.mxu2 %v4776_v48  ;;  %4890 = vmatpush.msra.mxu3 %v4796_v10  ;;  %v4774_v39 = vld [vmem:[%s8057_s5 + $0x130] sm:$0xff]  ;;  %v4756_v2 = vld [vmem:[%s8057_s5 + $0xa0] sm:$0xff]  ;;  %v4755_v14 = vld [vmem:[%s8057_s5 + $0x98] sm:$0xff] }
 0x94f   :  { %v4557_v59 = vadd.f32 %v4547_v19, %v8164_v42  ;;  %v4738_v48 = vld [vmem:[%s8057_s5 + $0x10] sm:$0xff]  ;;  %v4753_v10 = vld [vmem:[%s8057_s5 + $0x88] sm:$0xff]  ;;  %v4736_v30 = vld [vmem:[%s8057_s5] sm:$0xff]  ;;  %v4601_v42 = vpop.f32.mrf.mxu1 }
 0x950   :  { %4866 = vmatpush.msra.mxu2 %v4775_v58  ;;  %4891 = vmatpush.msra.mxu3 %v4795_v35  ;;  %v4752_v19 = vld [vmem:[%s8057_s5 + $0x80] sm:$0xff]  ;;  %v4621_v58 = vpop.f32.mrf.mxu2 }
 0x951   :  { %5164 = vmatpush.msk.msra.mxu0 %vm2261_vm11, %v4556_v3  ;;  %5166 = vmatpush.msk.msra.mxu1 %vm2261_vm11, %v4557_v59  ;;  %v4581_v3 = vpop.f32.mrf.mxu0 }
 0x952   :  { %5165 = vmatmul.msk.f32.vlgmr.msra.gmra.mxu0 %vm2257_vm12, %v5204_v36  ;;  %5167 = vmatmul.msk.f32.vlgmr.msra.gmra.mxu1 %vm2257_vm12, %v5204_v36  ;;  %v4763_v36 = vld [vmem:[%s8057_s5 + $0xd8] sm:$0xff] }
 0x953   :  { %4800 = vmatpush.msrb.mxu0 %v4751_v56  ;;  %4829 = vmatpush.msrb.mxu1 %v4767_v37 }
 0x954   :  { %4867 = vmatpush.msra.mxu2 %v4774_v39  ;;  %4892 = vmatpush.msra.mxu3 %v4794_v5 }
 0x955   :  { %4801 = vmatpush.msrb.mxu0 %v4750_v60  ;;  %4830 = vmatpush.msrb.mxu1 %v4766_v52 }
 0x956   :  { %4868 = vmatpush.msra.mxu2 %v4773_v20  ;;  %4893 = vmatpush.msra.mxu3 %v4793_v1  ;;  %v4918_v20 = vld [vmem:[%s8056_s4 + $0x62] sm:$0xff]  ;;  %v4919_v1 = vld [vmem:[%s8056_s4 + $0x6a] sm:$0x3] }
 0x957   :  { %4802 = vmatpush.msrb.mxu0 %v4749_v23  ;;  %4831 = vmatpush.msrb.mxu1 %v4765_v43  ;;  %v5246_v23 = vmov 0  }
 0x958   :  { %4869 = vmatpush.msra.mxu2 %v4772_v40  ;;  %4894 = vmatpush.msra.mxu3 %v4792_v4 }
 0x959   :  { %4803 = vmatpush.msrb.mxu0 %v4748_v32  ;;  %4832 = vmatpush.msrb.mxu1 %v4764_v11 }
 0x95a   :  { %4870 = vmatpush.msra.mxu2 %v4771_v7  ;;  %4895 = vmatpush.msra.mxu3 %v4791_v51 }
 0x95b   :  { %4804 = vmatpush.msrb.mxu0 %v4747_v53  ;;  %4833 = vmatpush.msrb.mxu1 %v4763_v36 }
 0x95c   :  { %4871 = vmatpush.msra.mxu2 %v4770_v49  ;;  %4896 = vmatpush.msra.mxu3 %v4790_v27 }
 0x95d   :  { %4805 = vmatpush.msrb.mxu0 %v4746_v63  ;;  %4834 = vmatpush.msrb.mxu1 %v4762_v31 }
 0x95e   :  { %4872 = vmatpush.msra.mxu2 %v4769_v41  ;;  %4897 = vmatpush.msra.mxu3 %v4789_v26 }
 0x95f   :  { %4806 = vmatpush.msrb.mxu0 %v4745_v28  ;;  %4835 = vmatpush.msrb.mxu1 %v4761_v13 }
 0x960   :  { %4873 = vmatpush.msra.mxu2 %v4768_v34  ;;  %4898 = vmatpush.msra.mxu3 %v4788_v61 }
 0x961   :  { %4874 = vmatmul.f32.vlgmr.msra.gmra.mxu2 %v8148_v21  ;;  %4807 = vmatpush.msrb.mxu0 %v4744_v12  ;;  %v4758_v21 = vld [vmem:[%s8057_s5 + $0xb0] sm:$0xff] }
 0x962   :  { %4836 = vmatpush.msrb.mxu1 %v4760_v57  ;;  %4899 = vmatpush.msra.mxu3 %v4787_v17  ;;  %v4916_v57 = vld [vmem:[%s8056_s4 + $0x58] sm:$0xff]  ;;  %v4917_v17 = vld [vmem:[%s8056_s4 + $0x60] sm:$0x3] }
 0x963   :  { %4808 = vmatpush.msrb.mxu0 %v4743_v29  ;;  %5188 = vset.pattern.permute.xlu0 %v5246_v23 }
 0x964   :  { %4837 = vmatpush.msrb.mxu1 %v4759_v50  ;;  %4900 = vmatpush.msra.mxu3 %v4786_v46 }
 0x965   :  { %4809 = vmatpush.msrb.mxu0 %v4742_v44  ;;  %5189 = vset.pattern.permute.xlu1 %v5246_v23 }
 0x966   :  { %4838 = vmatpush.msrb.mxu1 %v4758_v21  ;;  %4901 = vmatpush.msra.mxu3 %v4785_v22 }
 0x967   :  { %4810 = vmatpush.msrb.mxu0 %v4741_v25  ;;  %4922 = vperm.xlu0 %5188, %v4918_v20  }
 0x968   :  { %4839 = vmatpush.msrb.mxu1 %v4757_v33  ;;  %4902 = vmatpush.msra.mxu3 %v4784_v62 }
 0x969   :  { %4877 = vmatmul.f32.gmra.mxu2 %v7065_v6  ;;  %4903 = vmatmul.f32.vlgmr.msra.gmra.mxu3 %v8149_v9  ;;  %v4754_v6 = vld [vmem:[%s8057_s5 + $0x90] sm:$0xff]  ;;  %v4737_v9 = vld [vmem:[%s8057_s5 + $0x8] sm:$0xff] }
 0x96a   :  { %4811 = vmatpush.msrb.mxu0 %v4740_v54  ;;  %4840 = vmatpush.msrb.mxu1 %v4756_v2 }
 0x96b   :  { %4927 = vperm.xlu1 %5189, %v4919_v1  }
 0x96c   :  { %4812 = vmatpush.msrb.mxu0 %v4739_v18  ;;  %4841 = vmatpush.msrb.mxu1 %v4755_v14 }
 0x96e   :  { %4813 = vmatpush.msrb.mxu0 %v4738_v48  ;;  %4842 = vmatpush.msrb.mxu1 %v4754_v6 }
 0x970   :  { %4814 = vmatpush.msrb.mxu0 %v4737_v9  ;;  %4843 = vmatpush.msrb.mxu1 %v4753_v10 }
 0x971   :  { %4880 = vmatmul.f32.gmra.mxu2 %v7449_v0  ;;  %4906 = vmatmul.f32.gmra.mxu3 %v7067_v15  ;;  %v4641_v0 = vpop.f32.mrf.mxu3 }
 0x972   :  { %4815 = vmatpush.msrb.mxu0 %v4736_v30  ;;  %4844 = vmatpush.msrb.mxu1 %v4752_v19 }
 0x973   :  { %4816 = vmatmul.f32.vlgmr.msrb.gmra.mxu0 %v6626_v45  ;;  %4845 = vmatmul.f32.vlgmr.msrb.gmra.mxu1 %v8161_v38 }
 0x979   :  { %4909 = vmatmul.f32.gmra.mxu3 %v7461_v16 }
 0x97b   :  { %4819 = vmatmul.f32.gmra.mxu0 %v7073_v47  ;;  %4848 = vmatmul.f32.gmra.mxu1 %v7075_v24 }
 0x983   :  { %4822 = vmatmul.f32.gmra.mxu0 %v7452_v55  ;;  %4851 = vmatmul.f32.gmra.mxu1 %v7454_v8 }
 0x9c2   :  { %v4713_v35 = vpop.f32.mrf.mxu2 }
 0x9c3   :  { %v4714_v15 = vadd.f32 %v4713_v35, %v4621_v58 }
 0x9c5   :  { %4883 = vmatmul.f32.gmra.mxu2 %v4714_v15 }
 0x9ca   :  { %v4733_v45 = vpop.f32.mrf.mxu3 }
 0x9cb   :  { %v4734_v59 = vadd.f32 %v4733_v45, %v4641_v0 }
 0x9cd   :  { %4912 = vmatmul.f32.gmra.mxu3 %v4734_v59 }
 0x9cf   :  { %v4673_v38 = vpop.f32.mrf.mxu0  ;;  %v4693_v16 = vpop.f32.mrf.mxu1 }
 0x9d0   :  { %v4674_v56 = vadd.f32 %v4673_v38, %v4581_v3  ;;  %v4694_v47 = vadd.f32 %v4693_v16, %v4601_v42 }
 0x9d2   :  { %4825 = vmatmul.f32.gmra.mxu0 %v4674_v56  ;;  %4854 = vmatmul.f32.gmra.mxu1 %v4694_v47 }
 0x9d9   :  { %v4923_v29 = vpop.permute.xlu0 %4922 }
 0x9dd   :  { %v4928_v44 = vpop.permute.xlu1 %4927 }
 0x9e4   :  { %v4875_v37 = vpop.f32.mrf.mxu2 }
 0x9ec   :  { %v4904_v8 = vpop.f32.mrf.mxu3  ;;  %v4878_v60 = vpop.f32.mrf.mxu2 }
 0x9f0   :  { %v4817_v24 = vpop.f32.mrf.mxu0  ;;  %v4846_v55 = vpop.f32.mrf.mxu1 }
 0x9f1   :  { %v4847_v27 = vadd.f32 %v4846_v55, %v4817_v24 }
 0x9f3   :  { %v4876_v13 = vadd.f32 %v4875_v37, %v4847_v27 }
 0x9f4   :  { %v4907_v52 = vpop.f32.mrf.mxu3  ;;  %v4881_v4 = vpop.f32.mrf.mxu2 }
 0x9f5   :  { %v4905_v12 = vadd.f32 %v4904_v8, %v4876_v13 }
 0x9f8   :  { %v4820_v39 = vpop.f32.mrf.mxu0  ;;  %v4849_v5 = vpop.f32.mrf.mxu1 }
 0x9f9   :  { %v4850_v53 = vadd.f32 %v4849_v5, %v4820_v39 }
 0x9fb   :  { %v4879_v26 = vadd.f32 %v4878_v60, %v4850_v53 }
 0x9fc   :  { %v4910_v32 = vpop.f32.mrf.mxu3 }
 0x9fd   :  { %v4908_v61 = vadd.f32 %v4907_v52, %v4879_v26 }
 0xa00   :  { %v4823_v43 = vpop.f32.mrf.mxu0  ;;  %v4852_v40 = vpop.f32.mrf.mxu1 }
 0xa01   :  { %v4853_v11 = vadd.f32 %v4852_v40, %v4823_v43 }
 0xa03   :  { %v4882_v63 = vadd.f32 %v4881_v4, %v4853_v11 }
 0xa05   :  { %v4911_v34 = vadd.f32 %v4910_v32, %v4882_v63 }
 0xa48   :  { %v4884_v49 = vpop.f32.mrf.mxu2 }
 0xa4f   :  { %v4826_v7 = vpop.f32.mrf.mxu0  ;;  %v4855_v51 = vpop.f32.mrf.mxu1 }
 0xa50   :  { %v4856_v36 = vadd.f32 %v4855_v51, %v4826_v7  ;;  %v4913_v41 = vpop.f32.mrf.mxu3 }
 0xa52   :  { %v4885_v31 = vadd.f32 %v4884_v49, %v4856_v36 }
 0xa54   :  { %v4914_v28 = vadd.f32 %v4913_v41, %v4885_v31 }
 0xa56   :  { %4948 = vmatpush.msra.mxu0 %v4914_v28 }
 0xa58   :  { %4949 = vmatpush.msra.mxu0 %v4911_v34 }
 0xa5a   :  { %4950 = vmatpush.msra.mxu0 %v4908_v61 }
 0xa5c   :  { %4951 = vmatpush.msra.mxu0 %v4905_v12 }
 0xa5d   :  { %5172 = vmatmul.msk.f32.vlgmr.msra.gmra.mxu0 %vm548_vm9, %v4916_v57 }
 0xa65   :  { %5173 = vmatmul.msk.f32.gmra.mxu0 %vm548_vm9, %v4917_v17 }
 0xada   :  { %v4953_v50 = vpop.f32.mrf.mxu0 }
 0xadb   :  { %v4954_v46 = vadd.f32 %v4953_v50, %v4923_v29 }
 0xadd   :  { %4959 = vst.msk [vmem:[%s8058_s6] sm:$0xff] %vm2257_vm12, %v4954_v46 }
 0xae2   :  { %v4956_v21 = vpop.f32.mrf.mxu0 }
 0xae3   :  { %v4957_v22 = vadd.f32 %v4956_v21, %v4928_v44 }
 0xae5   :  { %4961 = vst.msk [vmem:[%s8058_s6 + $0x8] sm:$0x3] %vm4960_vm13, %v4957_v22 }
 0xae6   :  { %4966 = vsyncpa [#allocation4], 1 }
 0xae7   :  { %4967 = vsyncpa [#allocation6], 1 }

</bundles_post_ra>
